<compile_context>
chip_gen: v7x
topology: tpu7x:2x2x1
jax: 0.10.0
libtpu: 0.0.40
codegen_flags: <defaults>
</compile_context>

<pallas_src>
import functools
import numpy as np
import jax
import jax.numpy as jnp
from jax.experimental import pallas as pl
from jax.experimental.pallas import tpu as pltpu


# ------------------------------------------------------------------ constants

_GAUSS = np.array(
    [[1.0, 4.0, 6.0, 4.0, 1.0],
     [4.0, 16.0, 24.0, 16.0, 4.0],
     [6.0, 24.0, 36.0, 24.0, 6.0],
     [4.0, 16.0, 24.0, 16.0, 4.0],
     [1.0, 4.0, 6.0, 4.0, 1.0]], dtype=np.float32) / 256.0

_TILE_M = 256                        # row tile for all flattened-spatial kernels
_VMEM_LIMIT = 32 * 1024 * 1024       # safe on v5e/v6e/v7x


def _cparams(n_parallel, n_arbitrary=0):
    sem = ("parallel",) * n_parallel + ("arbitrary",) * n_arbitrary
    return pltpu.CompilerParams(dimension_semantics=sem,
                                vmem_limit_bytes=_VMEM_LIMIT)


# ------------------------------------------------------------------ glue utils

def im2col(x_nhwc, kh, kw, pad):
    """(N,H,W,C) -> (N*H*W, kh*kw*C) zero-padded patches (tap-major, channel-minor)."""
    N, H, W, C = x_nhwc.shape
    xp = jnp.pad(x_nhwc, ((0, 0), (pad, pad), (pad, pad), (0, 0)))
    cols = [xp[:, i:i + H, j:j + W, :] for i in range(kh) for j in range(kw)]
    patches = jnp.stack(cols, axis=3)                 # (N, H, W, kh*kw, C)
    return patches.reshape(N * H * W, kh * kw * C)


def interp_matrix_align_corners(out_size, in_size):
    """1-D bilinear interpolation matrix, align_corners=True semantics."""
    m = np.zeros((out_size, in_size), np.float32)
    if in_size == 1:
        m[:, 0] = 1.0
        return jnp.asarray(m)
    if out_size == 1:
        m[0, 0] = 1.0
        return jnp.asarray(m)
    scale = (in_size - 1) / (out_size - 1)
    for i in range(out_size):
        src = i * scale
        i0 = min(int(np.floor(src)), in_size - 2)
        frac = src - i0
        m[i, i0] += 1.0 - frac
        m[i, i0 + 1] += frac
    return jnp.asarray(m)


def _row_plan(M):
    tile = min(_TILE_M, ((M + 7) // 8) * 8)
    Mp = ((M + tile - 1) // tile) * tile
    return tile, Mp


def _pad_rows(a, Mp):
    return a if a.shape[0] == Mp else jnp.pad(a, ((0, Mp - a.shape[0]), (0, 0)))


def _vec(v, n):
    return jnp.broadcast_to(jnp.asarray(v, jnp.float32).reshape(-1), (n,)).reshape(1, n)


def _hw_tile(HW):
    for t in (512, 256, 128, 64, 32, 16, 8):
        if HW % t == 0:
            return t
    return HW


# --------------------------------------------------------------- Pallas kernels

def _mm_act_kernel(act, x_ref, w_ref, s_ref, b_ref, o_ref):
    # y = act((x @ w) * scale + bias)  -- bf16 MXU operands, f32 epilogue.
    y = jnp.dot(x_ref[...], w_ref[...], preferred_element_type=jnp.float32)
    y = y * s_ref[...] + b_ref[...]
    if act == "relu":
        y = jnp.maximum(y, 0.0)
    elif act == "sigmoid":
        y = jax.nn.sigmoid(y)
    o_ref[...] = y.astype(o_ref.dtype)


def matmul_act(x, w, scale, bias, act="none", out_dtype=jnp.float32):
    M, K = x.shape
    Kw, Nout = w.shape
    assert K == Kw
    tile, Mp = _row_plan(M)
    out = pl.pallas_call(
        functools.partial(_mm_act_kernel, act),
        out_shape=jax.ShapeDtypeStruct((Mp, Nout), out_dtype),
        grid=(Mp // tile,),
        in_specs=[pl.BlockSpec((tile, K), lambda i: (i, 0)),
                  pl.BlockSpec((K, Nout), lambda i: (0, 0)),
                  pl.BlockSpec((1, Nout), lambda i: (0, 0)),
                  pl.BlockSpec((1, Nout), lambda i: (0, 0))],
        out_specs=pl.BlockSpec((tile, Nout), lambda i: (i, 0)),
        compiler_params=_cparams(1),
    )(_pad_rows(x.astype(jnp.bfloat16), Mp), w.astype(jnp.bfloat16),
      _vec(scale, Nout), _vec(bias, Nout))
    return out[:M] if Mp != M else out


def _mm_gate_add_kernel(x_ref, w_ref, s_ref, b_ref, ff_ref, res_ref, o_ref):
    # attention conv (+BN) -> sigmoid -> ff*attn + residual, all fused.
    a = jnp.dot(x_ref[...], w_ref[...], preferred_element_type=jnp.float32)
    a = jax.nn.sigmoid(a * s_ref[...] + b_ref[...])            # (tile, 1)
    o_ref[...] = ff_ref[...] * a + res_ref[...]


def conv_gate_add(xcol, w, scale, bias, ff, residual):
    M, K = xcol.shape
    Nout = w.shape[1]
    C = ff.shape[1]
    tile, Mp = _row_plan(M)
    out = pl.pallas_call(
        _mm_gate_add_kernel,
        out_shape=jax.ShapeDtypeStruct((Mp, C), jnp.float32),
        grid=(Mp // tile,),
        in_specs=[pl.BlockSpec((tile, K), lambda i: (i, 0)),
                  pl.BlockSpec((K, Nout), lambda i: (0, 0)),
                  pl.BlockSpec((1, Nout), lambda i: (0, 0)),
                  pl.BlockSpec((1, Nout), lambda i: (0, 0)),
                  pl.BlockSpec((tile, C), lambda i: (i, 0)),
                  pl.BlockSpec((tile, C), lambda i: (i, 0))],
        out_specs=pl.BlockSpec((tile, C), lambda i: (i, 0)),
        compiler_params=_cparams(1),
    )(_pad_rows(xcol.astype(jnp.bfloat16), Mp), w.astype(jnp.bfloat16),
      _vec(scale, Nout), _vec(bias, Nout),
      _pad_rows(ff.astype(jnp.float32), Mp),
      _pad_rows(residual.astype(jnp.float32), Mp))
    return out[:M] if Mp != M else out


def _mm_gate_kernel(x_ref, w_ref, b_ref, feat_ref, o_ref):
    # spatial-gate 7x7 conv -> sigmoid -> feat * gate, all fused.
    a = jnp.dot(x_ref[...], w_ref[...], preferred_element_type=jnp.float32)
    a = jax.nn.sigmoid(a + b_ref[...])                          # (tile, 1)
    o_ref[...] = feat_ref[...] * a


def conv_gate(xcol, w, bias, feat):
    M, K = xcol.shape
    Nout = w.shape[1]
    C = feat.shape[1]
    tile, Mp = _row_plan(M)
    out = pl.pallas_call(
        _mm_gate_kernel,
        out_shape=jax.ShapeDtypeStruct((Mp, C), jnp.float32),
        grid=(Mp // tile,),
        in_specs=[pl.BlockSpec((tile, K), lambda i: (i, 0)),
                  pl.BlockSpec((K, Nout), lambda i: (0, 0)),
                  pl.BlockSpec((1, Nout), lambda i: (0, 0)),
                  pl.BlockSpec((tile, C), lambda i: (i, 0))],
        out_specs=pl.BlockSpec((tile, C), lambda i: (i, 0)),
        compiler_params=_cparams(1),
    )(_pad_rows(xcol.astype(jnp.bfloat16), Mp), w.astype(jnp.bfloat16),
      _vec(bias, Nout), _pad_rows(feat.astype(jnp.float32), Mp))
    return out[:M] if Mp != M else out


def _fuse_kernel(C, x_ref, p_ref, u_ref, e_ref, o_ref):
    # lane-slice writes of [x*(1-pred), x*(pred-up), x*edge] into a (tile, 3C) block.
    x = x_ref[...]
    p = p_ref[...]
    o_ref[:, 0:C] = (x * (1.0 - p)).astype(o_ref.dtype)
    o_ref[:, C:2 * C] = (x * (p - u_ref[...])).astype(o_ref.dtype)
    o_ref[:, 2 * C:3 * C] = (x * e_ref[...]).astype(o_ref.dtype)


def fuse_features(x, pred, up, edge, C):
    M = x.shape[0]
    tile, Mp = _row_plan(M)
    out = pl.pallas_call(
        functools.partial(_fuse_kernel, C),
        out_shape=jax.ShapeDtypeStruct((Mp, 3 * C), jnp.bfloat16),
        grid=(Mp // tile,),
        in_specs=[pl.BlockSpec((tile, C), lambda i: (i, 0)),
                  pl.BlockSpec((tile, 1), lambda i: (i, 0)),
                  pl.BlockSpec((tile, 1), lambda i: (i, 0)),
                  pl.BlockSpec((tile, 1), lambda i: (i, 0))],
        out_specs=pl.BlockSpec((tile, 3 * C), lambda i: (i, 0)),
        compiler_params=_cparams(1),
    )(_pad_rows(x.astype(jnp.float32), Mp), _pad_rows(pred, Mp),
      _pad_rows(up, Mp), _pad_rows(edge, Mp))
    return out[:M] if Mp != M else out


def _blur5_kernel(H, W, k2d, xp_ref, o_ref):
    # 5x5 Gaussian blur as a pure VPU stencil (no MXU, no im2col).
    xp = xp_ref[0]                                   # (H+4, W+4) f32
    acc = jnp.zeros((H, W), jnp.float32)
    for dy in range(5):
        for dx in range(5):
            acc = acc + float(k2d[dy, dx]) * xp[dy:dy + H, dx:dx + W]
    o_ref[...] = acc[None, :, :]


def gauss_blur(img_nhw, k2d):
    """Reflect-padded 5x5 blur on a 1-channel (N,H,W) image, gridded over batch."""
    N, H, W = img_nhw.shape
    xp = jnp.pad(img_nhw.astype(jnp.float32), ((0, 0), (2, 2), (2, 2)), mode="reflect")
    return pl.pallas_call(
        functools.partial(_blur5_kernel, H, W, k2d),
        out_shape=jax.ShapeDtypeStruct((N, H, W), jnp.float32),
        grid=(N,),
        in_specs=[pl.BlockSpec((1, H + 4, W + 4), lambda n: (n, 0, 0))],
        out_specs=pl.BlockSpec((1, H, W), lambda n: (n, 0, 0)),
        compiler_params=_cparams(1),
    )(xp)


def _chan_pool_kernel(inv_hw, x_ref, avg_ref, max_ref):
    # Tiled spatial reduction: output blocks are the accumulators (reduction axis last).
    j = pl.program_id(1)
    x = x_ref[...]                                   # (1, t_hw, C)
    psum = jnp.sum(x, axis=1, keepdims=True)
    pmax = jnp.max(x, axis=1, keepdims=True)

    @pl.when(j == 0)
    def _():
        avg_ref[...] = psum
        max_ref[...] = pmax

    @pl.when(j > 0)
    def _():
        avg_ref[...] = avg_ref[...] + psum
        max_ref[...] = jnp.maximum(max_ref[...], pmax)

    @pl.when(j == pl.num_programs(1) - 1)
    def _():
        avg_ref[...] = avg_ref[...] * inv_hw


def chan_pool(x3, t_hw):
    N, HW, C = x3.shape
    avg, mx = pl.pallas_call(
        functools.partial(_chan_pool_kernel, 1.0 / HW),
        out_shape=(jax.ShapeDtypeStruct((N, 1, C), jnp.float32),
                   jax.ShapeDtypeStruct((N, 1, C), jnp.float32)),
        grid=(N, HW // t_hw),
        in_specs=[pl.BlockSpec((1, t_hw, C), lambda n, j: (n, j, 0))],
        out_specs=(pl.BlockSpec((1, 1, C), lambda n, j: (n, 0, 0)),
                   pl.BlockSpec((1, 1, C), lambda n, j: (n, 0, 0))),
        compiler_params=_cparams(1, 1),
    )(x3)
    return avg[:, 0, :], mx[:, 0, :]


def _chan_apply_compress_kernel(x_ref, a_ref, m_ref, o_ref, c_ref):
    # channel-gate apply fused with the spatial-gate [max_c, mean_c] compression.
    scale = jax.nn.sigmoid(a_ref[...] + m_ref[...])  # (1, 1, C)
    y = x_ref[...] * scale                           # (1, t_hw, C)
    o_ref[...] = y
    c_ref[:, :, 0:1] = jnp.max(y, axis=2, keepdims=True)
    c_ref[:, :, 1:2] = jnp.mean(y, axis=2, keepdims=True)


def chan_apply_compress(x3, att_avg, att_max, t_hw):
    N, HW, C = x3.shape
    out, comp = pl.pallas_call(
        _chan_apply_compress_kernel,
        out_shape=(jax.ShapeDtypeStruct((N, HW, C), jnp.float32),
                   jax.ShapeDtypeStruct((N, HW, 2), jnp.float32)),
        grid=(N, HW // t_hw),
        in_specs=[pl.BlockSpec((1, t_hw, C), lambda n, j: (n, j, 0)),
                  pl.BlockSpec((1, 1, C), lambda n, j: (n, 0, 0)),
                  pl.BlockSpec((1, 1, C), lambda n, j: (n, 0, 0))],
        out_specs=(pl.BlockSpec((1, t_hw, C), lambda n, j: (n, j, 0)),
                   pl.BlockSpec((1, t_hw, 2), lambda n, j: (n, j, 0))),
        compiler_params=_cparams(2),
    )(x3, att_avg.reshape(N, 1, C), att_max.reshape(N, 1, C))
    return out, comp


# -------------------------------------------------------------------- EGA model

def init_params(in_channels, reduction_ratio=16, seed=42):
    C = in_channels
    hid = C // reduction_ratio
    assert hid >= 1, "in_channels must be >= reduction_ratio"
    keys = jax.random.split(jax.random.PRNGKey(seed), 12)

    def w(key, shape, fan_in):
        return jax.random.normal(key, shape, jnp.float32) / np.sqrt(fan_in)

    eps = 1e-5
    bn_scale_c = jnp.full((C,), 1.0 / np.sqrt(1.0 + eps), jnp.float32)
    bn_scale_1 = jnp.full((1,), 1.0 / np.sqrt(1.0 + eps), jnp.float32)
    b_fus = w(keys[5], (C,), C)
    b_att = w(keys[7], (1,), C)
    return dict(
        # pred_conv: 3x3, C -> 1
        w_pred=w(keys[0], (9 * C, 1), 9 * C), b_pred=w(keys[1], (1,), 9 * C),
        # fusion_conv: 3x3, 3C -> C, + folded BN + ReLU
        w_fus=w(keys[2], (9 * 3 * C, C), 9 * 3 * C),
        s_fus=bn_scale_c, bb_fus=b_fus * bn_scale_c,
        # attention: 3x3, C -> 1, + folded BN + Sigmoid
        w_att=w(keys[3], (9 * C, 1), 9 * C),
        s_att=bn_scale_1, bb_att=b_att * bn_scale_1,
        # CBAM ChannelGate MLP
        w_mlp1=w(keys[4], (C, hid), C), b_mlp1=w(keys[6], (hid,), C),
        w_mlp2=w(keys[8], (hid, C), hid), b_mlp2=w(keys[9], (C,), hid),
        # CBAM SpatialGate: 7x7, 2 -> 1
        w_sp=w(keys[10], (49 * 2, 1), 98), b_sp=w(keys[11], (1,), 98),
    )


def ega_forward(params, edge_feature, x):
    """edge_feature: (N, 1, He, We), x: (N, C, H, W)  -- NCHW like PyTorch."""
    N, C, H, W = x.shape
    # TODO(synk): odd H/W would need the F.interpolate fallback inside make_laplace.
    assert H % 2 == 0 and W % 2 == 0
    M = N * H * W
    x_nhwc = jnp.transpose(x, (0, 2, 3, 1)).astype(jnp.float32)
    x_flat = x_nhwc.reshape(M, C)
    one = jnp.ones((1,), jnp.float32)

    # pred = sigmoid(pred_conv(x))
    xcol = im2col(x_nhwc.astype(jnp.bfloat16), 3, 3, 1)              # (M, 9C) bf16
    pred_flat = matmul_act(xcol, params["w_pred"], one, params["b_pred"], act="sigmoid")
    pred_img = pred_flat.reshape(N, H, W)

    # make_laplace(pred, 1): blur -> downsample -> zero-insert upsample -> blur(4k)
    filt = gauss_blur(pred_img, _GAUSS)
    down = filt[:, ::2, ::2]
    up0 = jnp.zeros((N, H, W), jnp.float32).at[:, ::2, ::2].set(down)
    up_flat = gauss_blur(up0, 4.0 * _GAUSS).reshape(M, 1)
    # edge_pred = pred - up  (the subtraction is fused inside the fuse kernel)

    # edge_input: bilinear resize (align_corners=True) of the 1-channel edge map
    He, We = edge_feature.shape[2], edge_feature.shape[3]
    Rh = interp_matrix_align_corners(H, He)
    Rw = interp_matrix_align_corners(W, We)
    edge_up = jnp.einsum("hk,nkl,wl->nhw", Rh,
                         edge_feature[:, 0].astype(jnp.float32), Rw)
    edge_flat = edge_up.reshape(M, 1)

    # fused = [x*(1-pred), x*(pred-up), x*edge]  (bf16, lane-slice writes)
    fused = fuse_features(x_flat, pred_flat, up_flat, edge_flat, C)  # (M, 3C) bf16

    # fusion_conv (+BN+ReLU); attention conv (+BN+sigmoid) fused with gating + residual
    fcol = im2col(fused.reshape(N, H, W, 3 * C), 3, 3, 1)            # (M, 27C) bf16
    ff = matmul_act(fcol, params["w_fus"], params["s_fus"], params["bb_fus"], act="relu")
    acol = im2col(ff.reshape(N, H, W, C).astype(jnp.bfloat16), 3, 3, 1)
    out = conv_gate_add(acol, params["w_att"], params["s_att"], params["bb_att"],
                        ff, x_flat)                                  # (M, C) f32

    # CBAM ChannelGate (tiled reduction + shared MLP on [avg; max])
    x3 = out.reshape(N, H * W, C)
    t_hw = _hw_tile(H * W)
    avg, mx = chan_pool(x3, t_hw)                                    # (N, C) each
    pooled = jnp.concatenate([avg, mx], axis=0)                      # (2N, C)
    h1 = matmul_act(pooled, params["w_mlp1"], one, params["b_mlp1"], act="relu")
    h2 = matmul_act(h1, params["w_mlp2"], one, params["b_mlp2"])
    gated3, comp3 = chan_apply_compress(x3, h2[:N], h2[N:], t_hw)

    # CBAM SpatialGate: 7x7 conv on [max_c, mean_c] -> sigmoid -> scale (fused)
    scol = im2col(comp3.reshape(N, H, W, 2).astype(jnp.bfloat16), 7, 7, 3)   # (M, 98)
    out_flat = conv_gate(scol, params["w_sp"], params["b_sp"],
                         gated3.reshape(M, C))                       # (M, C)

    return jnp.transpose(out_flat.reshape(N, H, W, C), (0, 3, 1, 2))


# ------------------------------------------------------------------------ main

if __name__ == "__main__":
    N, C, H, W = 2, 16, 16, 16
    He, We = 8, 8
    k1, k2 = jax.random.split(jax.random.PRNGKey(0))
    x = jax.random.normal(k1, (N, C, H, W), jnp.float32)
    edge_feature = jax.random.normal(k2, (N, 1, He, We), jnp.float32)

    params = init_params(C, reduction_ratio=16)
    out = jax.jit(ega_forward)(params, edge_feature, x)
    out = jax.block_until_ready(out)
    assert out.shape == (N, C, H, W)
    assert bool(jnp.all(jnp.isfinite(out)))
    print("KERNEL_OK")
</pallas_src>

<mosaic_0001>
module attributes {stable_mosaic.version = 11 : i64} {
  func.func @_mm_act_kernel(%arg0: i32, %arg1: memref<256x144xbf16, #tpu.memory_space<vmem>>, %arg2: memref<144x1xbf16, #tpu.memory_space<vmem>>, %arg3: memref<1x1xf32, #tpu.memory_space<vmem>>, %arg4: memref<1x1xf32, #tpu.memory_space<vmem>>, %arg5: memref<256x1xf32, #tpu.memory_space<vmem>>) attributes {dimension_semantics = [#tpu.dimension_semantics<parallel>], iteration_bounds = array<i64: 2>, scalar_prefetch = 0 : i64, scratch_operands = 0 : i64, tpu.core_type = #tpu.core_type<tc>, window_params = [{transform_indices = @transform_0, window_bounds = array<i64: 256, 144>}, {pipeline_mode = #tpu.pipeline_mode<synchronous>, transform_indices = @transform_1, window_bounds = array<i64: 144, 1>}, {pipeline_mode = #tpu.pipeline_mode<synchronous>, transform_indices = @transform_2, window_bounds = array<i64: 1, 1>}, {pipeline_mode = #tpu.pipeline_mode<synchronous>, transform_indices = @transform_3, window_bounds = array<i64: 1, 1>}, {transform_indices = @transform_4, window_bounds = array<i64: 256, 1>}]} {
    %c0 = arith.constant 0 : index
    %c0_0 = arith.constant 0 : index
    %0 = vector.load %arg1[%c0, %c0_0] : memref<256x144xbf16, #tpu.memory_space<vmem>>, vector<256x144xbf16>
    %c0_1 = arith.constant 0 : index
    %c0_2 = arith.constant 0 : index
    %1 = vector.load %arg2[%c0_1, %c0_2] : memref<144x1xbf16, #tpu.memory_space<vmem>>, vector<144x1xbf16>
    %cst = arith.constant dense<0.000000e+00> : vector<256x1xf32>
    %2 = tpu.matmul %0, %1, %cst {dimension_numbers = #tpu.dot_dimension_numbers<[1], [0], [0], [1], [0, 0, 1, 1], [], []>} : vector<256x144xbf16>, vector<144x1xbf16>, vector<256x1xf32> -> vector<256x1xf32>
    %c0_3 = arith.constant 0 : index
    %c0_4 = arith.constant 0 : index
    %3 = vector.load %arg3[%c0_3, %c0_4] : memref<1x1xf32, #tpu.memory_space<vmem>>, vector<1x1xf32>
    %4 = vector.broadcast %3 : vector<1x1xf32> to vector<256x1xf32>
    %5 = arith.mulf %2, %4 : vector<256x1xf32>
    %c0_5 = arith.constant 0 : index
    %c0_6 = arith.constant 0 : index
    %6 = vector.load %arg4[%c0_5, %c0_6] : memref<1x1xf32, #tpu.memory_space<vmem>>, vector<1x1xf32>
    %7 = vector.broadcast %6 : vector<1x1xf32> to vector<256x1xf32>
    %8 = arith.addf %5, %7 : vector<256x1xf32>
    %9 = arith.negf %8 : vector<256x1xf32>
    %10 = math.exp %9 : vector<256x1xf32>
    %cst_7 = arith.constant 1.000000e+00 : f32
    %11 = vector.broadcast %cst_7 : f32 to vector<256x1xf32>
    %12 = arith.addf %11, %10 : vector<256x1xf32>
    %13 = arith.divf %11, %12 : vector<256x1xf32>
    %c0_8 = arith.constant 0 : index
    %c0_9 = arith.constant 0 : index
    %14 = vector.load %arg5[%c0_8, %c0_9] : memref<256x1xf32, #tpu.memory_space<vmem>>, vector<256x1xf32>
    tpu.vector_store %arg5[%c0_8, %c0_9], %13 {strides = array<i32>} : memref<256x1xf32, #tpu.memory_space<vmem>>, vector<256x1xf32>,
    return
  }
  func.func @transform_0(%arg0: i32) -> (i32, i32) {
    %c0_i32 = arith.constant 0 : i32
    %c0_i32_0 = arith.constant 0 : i32
    return %arg0, %c0_i32 : i32, i32
  }
  func.func @transform_1(%arg0: i32) -> (i32, i32) {
    %c0_i32 = arith.constant 0 : i32
    %c0_i32_0 = arith.constant 0 : i32
    %c0_i32_1 = arith.constant 0 : i32
    return %c0_i32, %c0_i32_0 : i32, i32
  }
  func.func @transform_2(%arg0: i32) -> (i32, i32) {
    %c0_i32 = arith.constant 0 : i32
    %c0_i32_0 = arith.constant 0 : i32
    %c0_i32_1 = arith.constant 0 : i32
    return %c0_i32, %c0_i32_0 : i32, i32
  }
  func.func @transform_3(%arg0: i32) -> (i32, i32) {
    %c0_i32 = arith.constant 0 : i32
    %c0_i32_0 = arith.constant 0 : i32
    %c0_i32_1 = arith.constant 0 : i32
    return %c0_i32, %c0_i32_0 : i32, i32
  }
  func.func @transform_4(%arg0: i32) -> (i32, i32) {
    %c0_i32 = arith.constant 0 : i32
    %c0_i32_0 = arith.constant 0 : i32
    return %arg0, %c0_i32 : i32, i32
  }
}

module attributes {stable_mosaic.version = 11 : i64} {
  func.func @_blur5_kernel(%arg0: i32, %arg1: memref<1x20x20xf32, #tpu.memory_space<vmem>>, %arg2: memref<1x16x16xf32, #tpu.memory_space<vmem>>) attributes {dimension_semantics = [#tpu.dimension_semantics<parallel>], iteration_bounds = array<i64: 2>, scalar_prefetch = 0 : i64, scratch_operands = 0 : i64, tpu.core_type = #tpu.core_type<tc>, window_params = [{transform_indices = @transform_0, window_bounds = array<i64: 1, 20, 20>}, {transform_indices = @transform_1, window_bounds = array<i64: 1, 16, 16>}]} {
    %c0 = arith.constant 0 : index
    %c0_0 = arith.constant 0 : index
    %c0_1 = arith.constant 0 : index
    %0 = vector.load %arg1[%c0, %c0_0, %c0_1] : memref<1x20x20xf32, #tpu.memory_space<vmem>>, vector<1x20x20xf32>
    %1 = vector.shape_cast %0 : vector<1x20x20xf32> to vector<20x20xf32>
    %cst = arith.constant 0.000000e+00 : f32
    %2 = vector.broadcast %cst : f32 to vector<16x16xf32>
    %3 = vector.extract_strided_slice %1 {offsets = [0, 0], sizes = [16, 16], strides = [1, 1]} : vector<20x20xf32> to vector<16x16xf32>
    %cst_2 = arith.constant 3.906250e-03 : f32
    %4 = vector.broadcast %cst_2 : f32 to vector<16x16xf32>
    %5 = arith.mulf %4, %3 : vector<16x16xf32>
    %6 = arith.addf %2, %5 : vector<16x16xf32>
    %7 = vector.extract_strided_slice %1 {offsets = [0, 1], sizes = [16, 16], strides = [1, 1]} : vector<20x20xf32> to vector<16x16xf32>
    %cst_3 = arith.constant 1.562500e-02 : f32
    %8 = vector.broadcast %cst_3 : f32 to vector<16x16xf32>
    %9 = arith.mulf %8, %7 : vector<16x16xf32>
    %10 = arith.addf %6, %9 : vector<16x16xf32>
    %11 = vector.extract_strided_slice %1 {offsets = [0, 2], sizes = [16, 16], strides = [1, 1]} : vector<20x20xf32> to vector<16x16xf32>
    %cst_4 = arith.constant 2.343750e-02 : f32
    %12 = vector.broadcast %cst_4 : f32 to vector<16x16xf32>
    %13 = arith.mulf %12, %11 : vector<16x16xf32>
    %14 = arith.addf %10, %13 : vector<16x16xf32>
    %15 = vector.extract_strided_slice %1 {offsets = [0, 3], sizes = [16, 16], strides = [1, 1]} : vector<20x20xf32> to vector<16x16xf32>
    %cst_5 = arith.constant 1.562500e-02 : f32
    %16 = vector.broadcast %cst_5 : f32 to vector<16x16xf32>
    %17 = arith.mulf %16, %15 : vector<16x16xf32>
    %18 = arith.addf %14, %17 : vector<16x16xf32>
    %19 = vector.extract_strided_slice %1 {offsets = [0, 4], sizes = [16, 16], strides = [1, 1]} : vector<20x20xf32> to vector<16x16xf32>
    %cst_6 = arith.constant 3.906250e-03 : f32
    %20 = vector.broadcast %cst_6 : f32 to vector<16x16xf32>
    %21 = arith.mulf %20, %19 : vector<16x16xf32>
    %22 = arith.addf %18, %21 : vector<16x16xf32>
    %23 = vector.extract_strided_slice %1 {offsets = [1, 0], sizes = [16, 16], strides = [1, 1]} : vector<20x20xf32> to vector<16x16xf32>
    %cst_7 = arith.constant 1.562500e-02 : f32
    %24 = vector.broadcast %cst_7 : f32 to vector<16x16xf32>
    %25 = arith.mulf %24, %23 : vector<16x16xf32>
    %26 = arith.addf %22, %25 : vector<16x16xf32>
    %27 = vector.extract_strided_slice %1 {offsets = [1, 1], sizes = [16, 16], strides = [1, 1]} : vector<20x20xf32> to vector<16x16xf32>
    %cst_8 = arith.constant 6.250000e-02 : f32
    %28 = vector.broadcast %cst_8 : f32 to vector<16x16xf32>
    %29 = arith.mulf %28, %27 : vector<16x16xf32>
    %30 = arith.addf %26, %29 : vector<16x16xf32>
    %31 = vector.extract_strided_slice %1 {offsets = [1, 2], sizes = [16, 16], strides = [1, 1]} : vector<20x20xf32> to vector<16x16xf32>
    %cst_9 = arith.constant 9.375000e-02 : f32
    %32 = vector.broadcast %cst_9 : f32 to vector<16x16xf32>
    %33 = arith.mulf %32, %31 : vector<16x16xf32>
    %34 = arith.addf %30, %33 : vector<16x16xf32>
    %35 = vector.extract_strided_slice %1 {offsets = [1, 3], sizes = [16, 16], strides = [1, 1]} : vector<20x20xf32> to vector<16x16xf32>
    %cst_10 = arith.constant 6.250000e-02 : f32
    %36 = vector.broadcast %cst_10 : f32 to vector<16x16xf32>
    %37 = arith.mulf %36, %35 : vector<16x16xf32>
    %38 = arith.addf %34, %37 : vector<16x16xf32>
    %39 = vector.extract_strided_slice %1 {offsets = [1, 4], sizes = [16, 16], strides = [1, 1]} : vector<20x20xf32> to vector<16x16xf32>
    %cst_11 = arith.constant 1.562500e-02 : f32
    %40 = vector.broadcast %cst_11 : f32 to vector<16x16xf32>
    %41 = arith.mulf %40, %39 : vector<16x16xf32>
    %42 = arith.addf %38, %41 : vector<16x16xf32>
    %43 = vector.extract_strided_slice %1 {offsets = [2, 0], sizes = [16, 16], strides = [1, 1]} : vector<20x20xf32> to vector<16x16xf32>
    %cst_12 = arith.constant 2.343750e-02 : f32
    %44 = vector.broadcast %cst_12 : f32 to vector<16x16xf32>
    %45 = arith.mulf %44, %43 : vector<16x16xf32>
    %46 = arith.addf %42, %45 : vector<16x16xf32>
    %47 = vector.extract_strided_slice %1 {offsets = [2, 1], sizes = [16, 16], strides = [1, 1]} : vector<20x20xf32> to vector<16x16xf32>
    %cst_13 = arith.constant 9.375000e-02 : f32
    %48 = vector.broadcast %cst_13 : f32 to vector<16x16xf32>
    %49 = arith.mulf %48, %47 : vector<16x16xf32>
    %50 = arith.addf %46, %49 : vector<16x16xf32>
    %51 = vector.extract_strided_slice %1 {offsets = [2, 2], sizes = [16, 16], strides = [1, 1]} : vector<20x20xf32> to vector<16x16xf32>
    %cst_14 = arith.constant 1.406250e-01 : f32
    %52 = vector.broadcast %cst_14 : f32 to vector<16x16xf32>
    %53 = arith.mulf %52, %51 : vector<16x16xf32>
    %54 = arith.addf %50, %53 : vector<16x16xf32>
    %55 = vector.extract_strided_slice %1 {offsets = [2, 3], sizes = [16, 16], strides = [1, 1]} : vector<20x20xf32> to vector<16x16xf32>
    %cst_15 = arith.constant 9.375000e-02 : f32
    %56 = vector.broadcast %cst_15 : f32 to vector<16x16xf32>
    %57 = arith.mulf %56, %55 : vector<16x16xf32>
    %58 = arith.addf %54, %57 : vector<16x16xf32>
    %59 = vector.extract_strided_slice %1 {offsets = [2, 4], sizes = [16, 16], strides = [1, 1]} : vector<20x20xf32> to vector<16x16xf32>
    %cst_16 = arith.constant 2.343750e-02 : f32
    %60 = vector.broadcast %cst_16 : f32 to vector<16x16xf32>
    %61 = arith.mulf %60, %59 : vector<16x16xf32>
    %62 = arith.addf %58, %61 : vector<16x16xf32>
    %63 = vector.extract_strided_slice %1 {offsets = [3, 0], sizes = [16, 16], strides = [1, 1]} : vector<20x20xf32> to vector<16x16xf32>
    %cst_17 = arith.constant 1.562500e-02 : f32
    %64 = vector.broadcast %cst_17 : f32 to vector<16x16xf32>
    %65 = arith.mulf %64, %63 : vector<16x16xf32>
    %66 = arith.addf %62, %65 : vector<16x16xf32>
    %67 = vector.extract_strided_slice %1 {offsets = [3, 1], sizes = [16, 16], strides = [1, 1]} : vector<20x20xf32> to vector<16x16xf32>
    %cst_18 = arith.constant 6.250000e-02 : f32
    %68 = vector.broadcast %cst_18 : f32 to vector<16x16xf32>
    %69 = arith.mulf %68, %67 : vector<16x16xf32>
    %70 = arith.addf %66, %69 : vector<16x16xf32>
    %71 = vector.extract_strided_slice %1 {offsets = [3, 2], sizes = [16, 16], strides = [1, 1]} : vector<20x20xf32> to vector<16x16xf32>
    %cst_19 = arith.constant 9.375000e-02 : f32
    %72 = vector.broadcast %cst_19 : f32 to vector<16x16xf32>
    %73 = arith.mulf %72, %71 : vector<16x16xf32>
    %74 = arith.addf %70, %73 : vector<16x16xf32>
    %75 = vector.extract_strided_slice %1 {offsets = [3, 3], sizes = [16, 16], strides = [1, 1]} : vector<20x20xf32> to vector<16x16xf32>
    %cst_20 = arith.constant 6.250000e-02 : f32
    %76 = vector.broadcast %cst_20 : f32 to vector<16x16xf32>
    %77 = arith.mulf %76, %75 : vector<16x16xf32>
    %78 = arith.addf %74, %77 : vector<16x16xf32>
    %79 = vector.extract_strided_slice %1 {offsets = [3, 4], sizes = [16, 16], strides = [1, 1]} : vector<20x20xf32> to vector<16x16xf32>
    %cst_21 = arith.constant 1.562500e-02 : f32
    %80 = vector.broadcast %cst_21 : f32 to vector<16x16xf32>
    %81 = arith.mulf %80, %79 : vector<16x16xf32>
    %82 = arith.addf %78, %81 : vector<16x16xf32>
    %83 = vector.extract_strided_slice %1 {offsets = [4, 0], sizes = [16, 16], strides = [1, 1]} : vector<20x20xf32> to vector<16x16xf32>
    %cst_22 = arith.constant 3.906250e-03 : f32
    %84 = vector.broadcast %cst_22 : f32 to vector<16x16xf32>
    %85 = arith.mulf %84, %83 : vector<16x16xf32>
    %86 = arith.addf %82, %85 : vector<16x16xf32>
    %87 = vector.extract_strided_slice %1 {offsets = [4, 1], sizes = [16, 16], strides = [1, 1]} : vector<20x20xf32> to vector<16x16xf32>
    %cst_23 = arith.constant 1.562500e-02 : f32
    %88 = vector.broadcast %cst_23 : f32 to vector<16x16xf32>
    %89 = arith.mulf %88, %87 : vector<16x16xf32>
    %90 = arith.addf %86, %89 : vector<16x16xf32>
    %91 = vector.extract_strided_slice %1 {offsets = [4, 2], sizes = [16, 16], strides = [1, 1]} : vector<20x20xf32> to vector<16x16xf32>
    %cst_24 = arith.constant 2.343750e-02 : f32
    %92 = vector.broadcast %cst_24 : f32 to vector<16x16xf32>
    %93 = arith.mulf %92, %91 : vector<16x16xf32>
    %94 = arith.addf %90, %93 : vector<16x16xf32>
    %95 = vector.extract_strided_slice %1 {offsets = [4, 3], sizes = [16, 16], strides = [1, 1]} : vector<20x20xf32> to vector<16x16xf32>
    %cst_25 = arith.constant 1.562500e-02 : f32
    %96 = vector.broadcast %cst_25 : f32 to vector<16x16xf32>
    %97 = arith.mulf %96, %95 : vector<16x16xf32>
    %98 = arith.addf %94, %97 : vector<16x16xf32>
    %99 = vector.extract_strided_slice %1 {offsets = [4, 4], sizes = [16, 16], strides = [1, 1]} : vector<20x20xf32> to vector<16x16xf32>
    %cst_26 = arith.constant 3.906250e-03 : f32
    %100 = vector.broadcast %cst_26 : f32 to vector<16x16xf32>
    %101 = arith.mulf %100, %99 : vector<16x16xf32>
    %102 = arith.addf %98, %101 : vector<16x16xf32>
    %103 = vector.shape_cast %102 : vector<16x16xf32> to vector<1x16x16xf32>
    %c0_27 = arith.constant 0 : index
    %c0_28 = arith.constant 0 : index
    %c0_29 = arith.constant 0 : index
    %104 = vector.load %arg2[%c0_27, %c0_28, %c0_29] : memref<1x16x16xf32, #tpu.memory_space<vmem>>, vector<1x16x16xf32>
    tpu.vector_store %arg2[%c0_27, %c0_28, %c0_29], %103 {strides = array<i32>} : memref<1x16x16xf32, #tpu.memory_space<vmem>>, vector<1x16x16xf32>,
    return
  }
  func.func @transform_0(%arg0: i32) -> (i32, i32, i32) {
    %c0_i32 = arith.constant 0 : i32
    %c0_i32_0 = arith.constant 0 : i32
    %c0_i32_1 = arith.constant 0 : i32
    return %arg0, %c0_i32, %c0_i32_0 : i32, i32, i32
  }
  func.func @transform_1(%arg0: i32) -> (i32, i32, i32) {
    %c0_i32 = arith.constant 0 : i32
    %c0_i32_0 = arith.constant 0 : i32
    %c0_i32_1 = arith.constant 0 : i32
    return %arg0, %c0_i32, %c0_i32_0 : i32, i32, i32
  }
}

module attributes {stable_mosaic.version = 11 : i64} {
  func.func @_blur5_kernel(%arg0: i32, %arg1: memref<1x20x20xf32, #tpu.memory_space<vmem>>, %arg2: memref<1x16x16xf32, #tpu.memory_space<vmem>>) attributes {dimension_semantics = [#tpu.dimension_semantics<parallel>], iteration_bounds = array<i64: 2>, scalar_prefetch = 0 : i64, scratch_operands = 0 : i64, tpu.core_type = #tpu.core_type<tc>, window_params = [{transform_indices = @transform_0, window_bounds = array<i64: 1, 20, 20>}, {transform_indices = @transform_1, window_bounds = array<i64: 1, 16, 16>}]} {
    %c0 = arith.constant 0 : index
    %c0_0 = arith.constant 0 : index
    %c0_1 = arith.constant 0 : index
    %0 = vector.load %arg1[%c0, %c0_0, %c0_1] : memref<1x20x20xf32, #tpu.memory_space<vmem>>, vector<1x20x20xf32>
    %1 = vector.shape_cast %0 : vector<1x20x20xf32> to vector<20x20xf32>
    %cst = arith.constant 0.000000e+00 : f32
    %2 = vector.broadcast %cst : f32 to vector<16x16xf32>
    %3 = vector.extract_strided_slice %1 {offsets = [0, 0], sizes = [16, 16], strides = [1, 1]} : vector<20x20xf32> to vector<16x16xf32>
    %cst_2 = arith.constant 1.562500e-02 : f32
    %4 = vector.broadcast %cst_2 : f32 to vector<16x16xf32>
    %5 = arith.mulf %4, %3 : vector<16x16xf32>
    %6 = arith.addf %2, %5 : vector<16x16xf32>
    %7 = vector.extract_strided_slice %1 {offsets = [0, 1], sizes = [16, 16], strides = [1, 1]} : vector<20x20xf32> to vector<16x16xf32>
    %cst_3 = arith.constant 6.250000e-02 : f32
    %8 = vector.broadcast %cst_3 : f32 to vector<16x16xf32>
    %9 = arith.mulf %8, %7 : vector<16x16xf32>
    %10 = arith.addf %6, %9 : vector<16x16xf32>
    %11 = vector.extract_strided_slice %1 {offsets = [0, 2], sizes = [16, 16], strides = [1, 1]} : vector<20x20xf32> to vector<16x16xf32>
    %cst_4 = arith.constant 9.375000e-02 : f32
    %12 = vector.broadcast %cst_4 : f32 to vector<16x16xf32>
    %13 = arith.mulf %12, %11 : vector<16x16xf32>
    %14 = arith.addf %10, %13 : vector<16x16xf32>
    %15 = vector.extract_strided_slice %1 {offsets = [0, 3], sizes = [16, 16], strides = [1, 1]} : vector<20x20xf32> to vector<16x16xf32>
    %cst_5 = arith.constant 6.250000e-02 : f32
    %16 = vector.broadcast %cst_5 : f32 to vector<16x16xf32>
    %17 = arith.mulf %16, %15 : vector<16x16xf32>
    %18 = arith.addf %14, %17 : vector<16x16xf32>
    %19 = vector.extract_strided_slice %1 {offsets = [0, 4], sizes = [16, 16], strides = [1, 1]} : vector<20x20xf32> to vector<16x16xf32>
    %cst_6 = arith.constant 1.562500e-02 : f32
    %20 = vector.broadcast %cst_6 : f32 to vector<16x16xf32>
    %21 = arith.mulf %20, %19 : vector<16x16xf32>
    %22 = arith.addf %18, %21 : vector<16x16xf32>
    %23 = vector.extract_strided_slice %1 {offsets = [1, 0], sizes = [16, 16], strides = [1, 1]} : vector<20x20xf32> to vector<16x16xf32>
    %cst_7 = arith.constant 6.250000e-02 : f32
    %24 = vector.broadcast %cst_7 : f32 to vector<16x16xf32>
    %25 = arith.mulf %24, %23 : vector<16x16xf32>
    %26 = arith.addf %22, %25 : vector<16x16xf32>
    %27 = vector.extract_strided_slice %1 {offsets = [1, 1], sizes = [16, 16], strides = [1, 1]} : vector<20x20xf32> to vector<16x16xf32>
    %cst_8 = arith.constant 2.500000e-01 : f32
    %28 = vector.broadcast %cst_8 : f32 to vector<16x16xf32>
    %29 = arith.mulf %28, %27 : vector<16x16xf32>
    %30 = arith.addf %26, %29 : vector<16x16xf32>
    %31 = vector.extract_strided_slice %1 {offsets = [1, 2], sizes = [16, 16], strides = [1, 1]} : vector<20x20xf32> to vector<16x16xf32>
    %cst_9 = arith.constant 3.750000e-01 : f32
    %32 = vector.broadcast %cst_9 : f32 to vector<16x16xf32>
    %33 = arith.mulf %32, %31 : vector<16x16xf32>
    %34 = arith.addf %30, %33 : vector<16x16xf32>
    %35 = vector.extract_strided_slice %1 {offsets = [1, 3], sizes = [16, 16], strides = [1, 1]} : vector<20x20xf32> to vector<16x16xf32>
    %cst_10 = arith.constant 2.500000e-01 : f32
    %36 = vector.broadcast %cst_10 : f32 to vector<16x16xf32>
    %37 = arith.mulf %36, %35 : vector<16x16xf32>
    %38 = arith.addf %34, %37 : vector<16x16xf32>
    %39 = vector.extract_strided_slice %1 {offsets = [1, 4], sizes = [16, 16], strides = [1, 1]} : vector<20x20xf32> to vector<16x16xf32>
    %cst_11 = arith.constant 6.250000e-02 : f32
    %40 = vector.broadcast %cst_11 : f32 to vector<16x16xf32>
    %41 = arith.mulf %40, %39 : vector<16x16xf32>
    %42 = arith.addf %38, %41 : vector<16x16xf32>
    %43 = vector.extract_strided_slice %1 {offsets = [2, 0], sizes = [16, 16], strides = [1, 1]} : vector<20x20xf32> to vector<16x16xf32>
    %cst_12 = arith.constant 9.375000e-02 : f32
    %44 = vector.broadcast %cst_12 : f32 to vector<16x16xf32>
    %45 = arith.mulf %44, %43 : vector<16x16xf32>
    %46 = arith.addf %42, %45 : vector<16x16xf32>
    %47 = vector.extract_strided_slice %1 {offsets = [2, 1], sizes = [16, 16], strides = [1, 1]} : vector<20x20xf32> to vector<16x16xf32>
    %cst_13 = arith.constant 3.750000e-01 : f32
    %48 = vector.broadcast %cst_13 : f32 to vector<16x16xf32>
    %49 = arith.mulf %48, %47 : vector<16x16xf32>
    %50 = arith.addf %46, %49 : vector<16x16xf32>
    %51 = vector.extract_strided_slice %1 {offsets = [2, 2], sizes = [16, 16], strides = [1, 1]} : vector<20x20xf32> to vector<16x16xf32>
    %cst_14 = arith.constant 5.625000e-01 : f32
    %52 = vector.broadcast %cst_14 : f32 to vector<16x16xf32>
    %53 = arith.mulf %52, %51 : vector<16x16xf32>
    %54 = arith.addf %50, %53 : vector<16x16xf32>
    %55 = vector.extract_strided_slice %1 {offsets = [2, 3], sizes = [16, 16], strides = [1, 1]} : vector<20x20xf32> to vector<16x16xf32>
    %cst_15 = arith.constant 3.750000e-01 : f32
    %56 = vector.broadcast %cst_15 : f32 to vector<16x16xf32>
    %57 = arith.mulf %56, %55 : vector<16x16xf32>
    %58 = arith.addf %54, %57 : vector<16x16xf32>
    %59 = vector.extract_strided_slice %1 {offsets = [2, 4], sizes = [16, 16], strides = [1, 1]} : vector<20x20xf32> to vector<16x16xf32>
    %cst_16 = arith.constant 9.375000e-02 : f32
    %60 = vector.broadcast %cst_16 : f32 to vector<16x16xf32>
    %61 = arith.mulf %60, %59 : vector<16x16xf32>
    %62 = arith.addf %58, %61 : vector<16x16xf32>
    %63 = vector.extract_strided_slice %1 {offsets = [3, 0], sizes = [16, 16], strides = [1, 1]} : vector<20x20xf32> to vector<16x16xf32>
    %cst_17 = arith.constant 6.250000e-02 : f32
    %64 = vector.broadcast %cst_17 : f32 to vector<16x16xf32>
    %65 = arith.mulf %64, %63 : vector<16x16xf32>
    %66 = arith.addf %62, %65 : vector<16x16xf32>
    %67 = vector.extract_strided_slice %1 {offsets = [3, 1], sizes = [16, 16], strides = [1, 1]} : vector<20x20xf32> to vector<16x16xf32>
    %cst_18 = arith.constant 2.500000e-01 : f32
    %68 = vector.broadcast %cst_18 : f32 to vector<16x16xf32>
    %69 = arith.mulf %68, %67 : vector<16x16xf32>
    %70 = arith.addf %66, %69 : vector<16x16xf32>
    %71 = vector.extract_strided_slice %1 {offsets = [3, 2], sizes = [16, 16], strides = [1, 1]} : vector<20x20xf32> to vector<16x16xf32>
    %cst_19 = arith.constant 3.750000e-01 : f32
    %72 = vector.broadcast %cst_19 : f32 to vector<16x16xf32>
    %73 = arith.mulf %72, %71 : vector<16x16xf32>
    %74 = arith.addf %70, %73 : vector<16x16xf32>
    %75 = vector.extract_strided_slice %1 {offsets = [3, 3], sizes = [16, 16], strides = [1, 1]} : vector<20x20xf32> to vector<16x16xf32>
    %cst_20 = arith.constant 2.500000e-01 : f32
    %76 = vector.broadcast %cst_20 : f32 to vector<16x16xf32>
    %77 = arith.mulf %76, %75 : vector<16x16xf32>
    %78 = arith.addf %74, %77 : vector<16x16xf32>
    %79 = vector.extract_strided_slice %1 {offsets = [3, 4], sizes = [16, 16], strides = [1, 1]} : vector<20x20xf32> to vector<16x16xf32>
    %cst_21 = arith.constant 6.250000e-02 : f32
    %80 = vector.broadcast %cst_21 : f32 to vector<16x16xf32>
    %81 = arith.mulf %80, %79 : vector<16x16xf32>
    %82 = arith.addf %78, %81 : vector<16x16xf32>
    %83 = vector.extract_strided_slice %1 {offsets = [4, 0], sizes = [16, 16], strides = [1, 1]} : vector<20x20xf32> to vector<16x16xf32>
    %cst_22 = arith.constant 1.562500e-02 : f32
    %84 = vector.broadcast %cst_22 : f32 to vector<16x16xf32>
    %85 = arith.mulf %84, %83 : vector<16x16xf32>
    %86 = arith.addf %82, %85 : vector<16x16xf32>
    %87 = vector.extract_strided_slice %1 {offsets = [4, 1], sizes = [16, 16], strides = [1, 1]} : vector<20x20xf32> to vector<16x16xf32>
    %cst_23 = arith.constant 6.250000e-02 : f32
    %88 = vector.broadcast %cst_23 : f32 to vector<16x16xf32>
    %89 = arith.mulf %88, %87 : vector<16x16xf32>
    %90 = arith.addf %86, %89 : vector<16x16xf32>
    %91 = vector.extract_strided_slice %1 {offsets = [4, 2], sizes = [16, 16], strides = [1, 1]} : vector<20x20xf32> to vector<16x16xf32>
    %cst_24 = arith.constant 9.375000e-02 : f32
    %92 = vector.broadcast %cst_24 : f32 to vector<16x16xf32>
    %93 = arith.mulf %92, %91 : vector<16x16xf32>
    %94 = arith.addf %90, %93 : vector<16x16xf32>
    %95 = vector.extract_strided_slice %1 {offsets = [4, 3], sizes = [16, 16], strides = [1, 1]} : vector<20x20xf32> to vector<16x16xf32>
    %cst_25 = arith.constant 6.250000e-02 : f32
    %96 = vector.broadcast %cst_25 : f32 to vector<16x16xf32>
    %97 = arith.mulf %96, %95 : vector<16x16xf32>
    %98 = arith.addf %94, %97 : vector<16x16xf32>
    %99 = vector.extract_strided_slice %1 {offsets = [4, 4], sizes = [16, 16], strides = [1, 1]} : vector<20x20xf32> to vector<16x16xf32>
    %cst_26 = arith.constant 1.562500e-02 : f32
    %100 = vector.broadcast %cst_26 : f32 to vector<16x16xf32>
    %101 = arith.mulf %100, %99 : vector<16x16xf32>
    %102 = arith.addf %98, %101 : vector<16x16xf32>
    %103 = vector.shape_cast %102 : vector<16x16xf32> to vector<1x16x16xf32>
    %c0_27 = arith.constant 0 : index
    %c0_28 = arith.constant 0 : index
    %c0_29 = arith.constant 0 : index
    %104 = vector.load %arg2[%c0_27, %c0_28, %c0_29] : memref<1x16x16xf32, #tpu.memory_space<vmem>>, vector<1x16x16xf32>
    tpu.vector_store %arg2[%c0_27, %c0_28, %c0_29], %103 {strides = array<i32>} : memref<1x16x16xf32, #tpu.memory_space<vmem>>, vector<1x16x16xf32>,
    return
  }
  func.func @transform_0(%arg0: i32) -> (i32, i32, i32) {
    %c0_i32 = arith.constant 0 : i32
    %c0_i32_0 = arith.constant 0 : i32
    %c0_i32_1 = arith.constant 0 : i32
    return %arg0, %c0_i32, %c0_i32_0 : i32, i32, i32
  }
  func.func @transform_1(%arg0: i32) -> (i32, i32, i32) {
    %c0_i32 = arith.constant 0 : i32
    %c0_i32_0 = arith.constant 0 : i32
    %c0_i32_1 = arith.constant 0 : i32
    return %arg0, %c0_i32, %c0_i32_0 : i32, i32, i32
  }
}

module attributes {stable_mosaic.version = 11 : i64} {
  func.func @_fuse_kernel(%arg0: i32, %arg1: memref<256x16xf32, #tpu.memory_space<vmem>>, %arg2: memref<256x1xf32, #tpu.memory_space<vmem>>, %arg3: memref<256x1xf32, #tpu.memory_space<vmem>>, %arg4: memref<256x1xf32, #tpu.memory_space<vmem>>, %arg5: memref<256x48xbf16, #tpu.memory_space<vmem>>) attributes {dimension_semantics = [#tpu.dimension_semantics<parallel>], iteration_bounds = array<i64: 2>, scalar_prefetch = 0 : i64, scratch_operands = 0 : i64, tpu.core_type = #tpu.core_type<tc>, window_params = [{transform_indices = @transform_0, window_bounds = array<i64: 256, 16>}, {transform_indices = @transform_1, window_bounds = array<i64: 256, 1>}, {transform_indices = @transform_2, window_bounds = array<i64: 256, 1>}, {transform_indices = @transform_3, window_bounds = array<i64: 256, 1>}, {transform_indices = @transform_4, window_bounds = array<i64: 256, 48>}]} {
    %c0 = arith.constant 0 : index
    %c0_0 = arith.constant 0 : index
    %0 = vector.load %arg1[%c0, %c0_0] : memref<256x16xf32, #tpu.memory_space<vmem>>, vector<256x16xf32>
    %c0_1 = arith.constant 0 : index
    %c0_2 = arith.constant 0 : index
    %1 = vector.load %arg2[%c0_1, %c0_2] : memref<256x1xf32, #tpu.memory_space<vmem>>, vector<256x1xf32>
    %cst = arith.constant 1.000000e+00 : f32
    %2 = vector.broadcast %cst : f32 to vector<256x1xf32>
    %3 = arith.subf %2, %1 : vector<256x1xf32>
    %4 = vector.broadcast %3 : vector<256x1xf32> to vector<256x16xf32>
    %5 = arith.mulf %0, %4 : vector<256x16xf32>
    %6 = arith.truncf %5 : vector<256x16xf32> to vector<256x16xbf16>
    %c0_3 = arith.constant 0 : index
    %c0_4 = arith.constant 0 : index
    %7 = vector.load %arg5[%c0_3, %c0_4] : memref<256x48xbf16, #tpu.memory_space<vmem>>, vector<256x16xbf16>
    tpu.vector_store %arg5[%c0_3, %c0_4], %6 {strides = array<i32>} : memref<256x48xbf16, #tpu.memory_space<vmem>>, vector<256x16xbf16>,
    %c0_5 = arith.constant 0 : index
    %c0_6 = arith.constant 0 : index
    %8 = vector.load %arg3[%c0_5, %c0_6] : memref<256x1xf32, #tpu.memory_space<vmem>>, vector<256x1xf32>
    %9 = arith.subf %1, %8 : vector<256x1xf32>
    %10 = vector.broadcast %9 : vector<256x1xf32> to vector<256x16xf32>
    %11 = arith.mulf %0, %10 : vector<256x16xf32>
    %12 = arith.truncf %11 : vector<256x16xf32> to vector<256x16xbf16>
    %c0_7 = arith.constant 0 : index
    %c16 = arith.constant 16 : index
    %13 = vector.load %arg5[%c0_7, %c16] : memref<256x48xbf16, #tpu.memory_space<vmem>>, vector<256x16xbf16>
    tpu.vector_store %arg5[%c0_7, %c16], %12 {strides = array<i32>} : memref<256x48xbf16, #tpu.memory_space<vmem>>, vector<256x16xbf16>,
    %c0_8 = arith.constant 0 : index
    %c0_9 = arith.constant 0 : index
    %14 = vector.load %arg4[%c0_8, %c0_9] : memref<256x1xf32, #tpu.memory_space<vmem>>, vector<256x1xf32>
    %15 = vector.broadcast %14 : vector<256x1xf32> to vector<256x16xf32>
    %16 = arith.mulf %0, %15 : vector<256x16xf32>
    %17 = arith.truncf %16 : vector<256x16xf32> to vector<256x16xbf16>
    %c0_10 = arith.constant 0 : index
    %c32 = arith.constant 32 : index
    %18 = vector.load %arg5[%c0_10, %c32] : memref<256x48xbf16, #tpu.memory_space<vmem>>, vector<256x16xbf16>
    tpu.vector_store %arg5[%c0_10, %c32], %17 {strides = array<i32>} : memref<256x48xbf16, #tpu.memory_space<vmem>>, vector<256x16xbf16>,
    return
  }
  func.func @transform_0(%arg0: i32) -> (i32, i32) {
    %c0_i32 = arith.constant 0 : i32
    %c0_i32_0 = arith.constant 0 : i32
    return %arg0, %c0_i32 : i32, i32
  }
  func.func @transform_1(%arg0: i32) -> (i32, i32) {
    %c0_i32 = arith.constant 0 : i32
    %c0_i32_0 = arith.constant 0 : i32
    return %arg0, %c0_i32 : i32, i32
  }
  func.func @transform_2(%arg0: i32) -> (i32, i32) {
    %c0_i32 = arith.constant 0 : i32
    %c0_i32_0 = arith.constant 0 : i32
    return %arg0, %c0_i32 : i32, i32
  }
  func.func @transform_3(%arg0: i32) -> (i32, i32) {
    %c0_i32 = arith.constant 0 : i32
    %c0_i32_0 = arith.constant 0 : i32
    return %arg0, %c0_i32 : i32, i32
  }
  func.func @transform_4(%arg0: i32) -> (i32, i32) {
    %c0_i32 = arith.constant 0 : i32
    %c0_i32_0 = arith.constant 0 : i32
    return %arg0, %c0_i32 : i32, i32
  }
}

module attributes {stable_mosaic.version = 11 : i64} {
  func.func @_mm_act_kernel(%arg0: i32, %arg1: memref<256x432xbf16, #tpu.memory_space<vmem>>, %arg2: memref<432x16xbf16, #tpu.memory_space<vmem>>, %arg3: memref<1x16xf32, #tpu.memory_space<vmem>>, %arg4: memref<1x16xf32, #tpu.memory_space<vmem>>, %arg5: memref<256x16xf32, #tpu.memory_space<vmem>>) attributes {dimension_semantics = [#tpu.dimension_semantics<parallel>], iteration_bounds = array<i64: 2>, scalar_prefetch = 0 : i64, scratch_operands = 0 : i64, tpu.core_type = #tpu.core_type<tc>, window_params = [{transform_indices = @transform_0, window_bounds = array<i64: 256, 432>}, {pipeline_mode = #tpu.pipeline_mode<synchronous>, transform_indices = @transform_1, window_bounds = array<i64: 432, 16>}, {pipeline_mode = #tpu.pipeline_mode<synchronous>, transform_indices = @transform_2, window_bounds = array<i64: 1, 16>}, {pipeline_mode = #tpu.pipeline_mode<synchronous>, transform_indices = @transform_3, window_bounds = array<i64: 1, 16>}, {transform_indices = @transform_4, window_bounds = array<i64: 256, 16>}]} {
    %c0 = arith.constant 0 : index
    %c0_0 = arith.constant 0 : index
    %0 = vector.load %arg1[%c0, %c0_0] : memref<256x432xbf16, #tpu.memory_space<vmem>>, vector<256x432xbf16>
    %c0_1 = arith.constant 0 : index
    %c0_2 = arith.constant 0 : index
    %1 = vector.load %arg2[%c0_1, %c0_2] : memref<432x16xbf16, #tpu.memory_space<vmem>>, vector<432x16xbf16>
    %cst = arith.constant dense<0.000000e+00> : vector<256x16xf32>
    %2 = tpu.matmul %0, %1, %cst {dimension_numbers = #tpu.dot_dimension_numbers<[1], [0], [0], [1], [0, 0, 1, 1], [], []>} : vector<256x432xbf16>, vector<432x16xbf16>, vector<256x16xf32> -> vector<256x16xf32>
    %c0_3 = arith.constant 0 : index
    %c0_4 = arith.constant 0 : index
    %3 = vector.load %arg3[%c0_3, %c0_4] : memref<1x16xf32, #tpu.memory_space<vmem>>, vector<1x16xf32>
    %4 = vector.broadcast %3 : vector<1x16xf32> to vector<256x16xf32>
    %5 = arith.mulf %2, %4 : vector<256x16xf32>
    %c0_5 = arith.constant 0 : index
    %c0_6 = arith.constant 0 : index
    %6 = vector.load %arg4[%c0_5, %c0_6] : memref<1x16xf32, #tpu.memory_space<vmem>>, vector<1x16xf32>
    %7 = vector.broadcast %6 : vector<1x16xf32> to vector<256x16xf32>
    %8 = arith.addf %5, %7 : vector<256x16xf32>
    %cst_7 = arith.constant 0.000000e+00 : f32
    %9 = vector.broadcast %cst_7 : f32 to vector<256x16xf32>
    %10 = arith.maximumf %8, %9 : vector<256x16xf32>
    %c0_8 = arith.constant 0 : index
    %c0_9 = arith.constant 0 : index
    %11 = vector.load %arg5[%c0_8, %c0_9] : memref<256x16xf32, #tpu.memory_space<vmem>>, vector<256x16xf32>
    tpu.vector_store %arg5[%c0_8, %c0_9], %10 {strides = array<i32>} : memref<256x16xf32, #tpu.memory_space<vmem>>, vector<256x16xf32>,
    return
  }
  func.func @transform_0(%arg0: i32) -> (i32, i32) {
    %c0_i32 = arith.constant 0 : i32
    %c0_i32_0 = arith.constant 0 : i32
    return %arg0, %c0_i32 : i32, i32
  }
  func.func @transform_1(%arg0: i32) -> (i32, i32) {
    %c0_i32 = arith.constant 0 : i32
    %c0_i32_0 = arith.constant 0 : i32
    %c0_i32_1 = arith.constant 0 : i32
    return %c0_i32, %c0_i32_0 : i32, i32
  }
  func.func @transform_2(%arg0: i32) -> (i32, i32) {
    %c0_i32 = arith.constant 0 : i32
    %c0_i32_0 = arith.constant 0 : i32
    %c0_i32_1 = arith.constant 0 : i32
    return %c0_i32, %c0_i32_0 : i32, i32
  }
  func.func @transform_3(%arg0: i32) -> (i32, i32) {
    %c0_i32 = arith.constant 0 : i32
    %c0_i32_0 = arith.constant 0 : i32
    %c0_i32_1 = arith.constant 0 : i32
    return %c0_i32, %c0_i32_0 : i32, i32
  }
  func.func @transform_4(%arg0: i32) -> (i32, i32) {
    %c0_i32 = arith.constant 0 : i32
    %c0_i32_0 = arith.constant 0 : i32
    return %arg0, %c0_i32 : i32, i32
  }
}

module attributes {stable_mosaic.version = 11 : i64} {
  func.func @_mm_gate_add_kernel(%arg0: i32, %arg1: memref<256x144xbf16, #tpu.memory_space<vmem>>, %arg2: memref<144x1xbf16, #tpu.memory_space<vmem>>, %arg3: memref<1x1xf32, #tpu.memory_space<vmem>>, %arg4: memref<1x1xf32, #tpu.memory_space<vmem>>, %arg5: memref<256x16xf32, #tpu.memory_space<vmem>>, %arg6: memref<256x16xf32, #tpu.memory_space<vmem>>, %arg7: memref<256x16xf32, #tpu.memory_space<vmem>>) attributes {dimension_semantics = [#tpu.dimension_semantics<parallel>], iteration_bounds = array<i64: 2>, scalar_prefetch = 0 : i64, scratch_operands = 0 : i64, tpu.core_type = #tpu.core_type<tc>, window_params = [{transform_indices = @transform_0, window_bounds = array<i64: 256, 144>}, {pipeline_mode = #tpu.pipeline_mode<synchronous>, transform_indices = @transform_1, window_bounds = array<i64: 144, 1>}, {pipeline_mode = #tpu.pipeline_mode<synchronous>, transform_indices = @transform_2, window_bounds = array<i64: 1, 1>}, {pipeline_mode = #tpu.pipeline_mode<synchronous>, transform_indices = @transform_3, window_bounds = array<i64: 1, 1>}, {transform_indices = @transform_4, window_bounds = array<i64: 256, 16>}, {transform_indices = @transform_5, window_bounds = array<i64: 256, 16>}, {transform_indices = @transform_6, window_bounds = array<i64: 256, 16>}]} {
    %c0 = arith.constant 0 : index
    %c0_0 = arith.constant 0 : index
    %0 = vector.load %arg1[%c0, %c0_0] : memref<256x144xbf16, #tpu.memory_space<vmem>>, vector<256x144xbf16>
    %c0_1 = arith.constant 0 : index
    %c0_2 = arith.constant 0 : index
    %1 = vector.load %arg2[%c0_1, %c0_2] : memref<144x1xbf16, #tpu.memory_space<vmem>>, vector<144x1xbf16>
    %cst = arith.constant dense<0.000000e+00> : vector<256x1xf32>
    %2 = tpu.matmul %0, %1, %cst {dimension_numbers = #tpu.dot_dimension_numbers<[1], [0], [0], [1], [0, 0, 1, 1], [], []>} : vector<256x144xbf16>, vector<144x1xbf16>, vector<256x1xf32> -> vector<256x1xf32>
    %c0_3 = arith.constant 0 : index
    %c0_4 = arith.constant 0 : index
    %3 = vector.load %arg3[%c0_3, %c0_4] : memref<1x1xf32, #tpu.memory_space<vmem>>, vector<1x1xf32>
    %4 = vector.broadcast %3 : vector<1x1xf32> to vector<256x1xf32>
    %5 = arith.mulf %2, %4 : vector<256x1xf32>
    %c0_5 = arith.constant 0 : index
    %c0_6 = arith.constant 0 : index
    %6 = vector.load %arg4[%c0_5, %c0_6] : memref<1x1xf32, #tpu.memory_space<vmem>>, vector<1x1xf32>
    %7 = vector.broadcast %6 : vector<1x1xf32> to vector<256x1xf32>
    %8 = arith.addf %5, %7 : vector<256x1xf32>
    %9 = arith.negf %8 : vector<256x1xf32>
    %10 = math.exp %9 : vector<256x1xf32>
    %cst_7 = arith.constant 1.000000e+00 : f32
    %11 = vector.broadcast %cst_7 : f32 to vector<256x1xf32>
    %12 = arith.addf %11, %10 : vector<256x1xf32>
    %13 = arith.divf %11, %12 : vector<256x1xf32>
    %c0_8 = arith.constant 0 : index
    %c0_9 = arith.constant 0 : index
    %14 = vector.load %arg5[%c0_8, %c0_9] : memref<256x16xf32, #tpu.memory_space<vmem>>, vector<256x16xf32>
    %15 = vector.broadcast %13 : vector<256x1xf32> to vector<256x16xf32>
    %16 = arith.mulf %14, %15 : vector<256x16xf32>
    %c0_10 = arith.constant 0 : index
    %c0_11 = arith.constant 0 : index
    %17 = vector.load %arg6[%c0_10, %c0_11] : memref<256x16xf32, #tpu.memory_space<vmem>>, vector<256x16xf32>
    %18 = arith.addf %16, %17 : vector<256x16xf32>
    %c0_12 = arith.constant 0 : index
    %c0_13 = arith.constant 0 : index
    %19 = vector.load %arg7[%c0_12, %c0_13] : memref<256x16xf32, #tpu.memory_space<vmem>>, vector<256x16xf32>
    tpu.vector_store %arg7[%c0_12, %c0_13], %18 {strides = array<i32>} : memref<256x16xf32, #tpu.memory_space<vmem>>, vector<256x16xf32>,
    return
  }
  func.func @transform_0(%arg0: i32) -> (i32, i32) {
    %c0_i32 = arith.constant 0 : i32
    %c0_i32_0 = arith.constant 0 : i32
    return %arg0, %c0_i32 : i32, i32
  }
  func.func @transform_1(%arg0: i32) -> (i32, i32) {
    %c0_i32 = arith.constant 0 : i32
    %c0_i32_0 = arith.constant 0 : i32
    %c0_i32_1 = arith.constant 0 : i32
    return %c0_i32, %c0_i32_0 : i32, i32
  }
  func.func @transform_2(%arg0: i32) -> (i32, i32) {
    %c0_i32 = arith.constant 0 : i32
    %c0_i32_0 = arith.constant 0 : i32
    %c0_i32_1 = arith.constant 0 : i32
    return %c0_i32, %c0_i32_0 : i32, i32
  }
  func.func @transform_3(%arg0: i32) -> (i32, i32) {
    %c0_i32 = arith.constant 0 : i32
    %c0_i32_0 = arith.constant 0 : i32
    %c0_i32_1 = arith.constant 0 : i32
    return %c0_i32, %c0_i32_0 : i32, i32
  }
  func.func @transform_4(%arg0: i32) -> (i32, i32) {
    %c0_i32 = arith.constant 0 : i32
    %c0_i32_0 = arith.constant 0 : i32
    return %arg0, %c0_i32 : i32, i32
  }
  func.func @transform_5(%arg0: i32) -> (i32, i32) {
    %c0_i32 = arith.constant 0 : i32
    %c0_i32_0 = arith.constant 0 : i32
    return %arg0, %c0_i32 : i32, i32
  }
  func.func @transform_6(%arg0: i32) -> (i32, i32) {
    %c0_i32 = arith.constant 0 : i32
    %c0_i32_0 = arith.constant 0 : i32
    return %arg0, %c0_i32 : i32, i32
  }
}

module attributes {stable_mosaic.version = 11 : i64} {
  func.func @_chan_pool_kernel(%arg0: i32, %arg1: i32, %arg2: memref<1x256x16xf32, #tpu.memory_space<vmem>>, %arg3: memref<1x1x16xf32, #tpu.memory_space<vmem>>, %arg4: memref<1x1x16xf32, #tpu.memory_space<vmem>>) attributes {dimension_semantics = [#tpu.dimension_semantics<parallel>, #tpu.dimension_semantics<arbitrary>], iteration_bounds = array<i64: 2, 1>, scalar_prefetch = 0 : i64, scratch_operands = 0 : i64, tpu.core_type = #tpu.core_type<tc>, window_params = [{transform_indices = @transform_0, window_bounds = array<i64: 1, 256, 16>}, {transform_indices = @transform_1, window_bounds = array<i64: 1, 1, 16>}, {transform_indices = @transform_2, window_bounds = array<i64: 1, 1, 16>}]} {
    %c0 = arith.constant 0 : index
    %c0_0 = arith.constant 0 : index
    %c0_1 = arith.constant 0 : index
    %0 = vector.load %arg2[%c0, %c0_0, %c0_1] : memref<1x256x16xf32, #tpu.memory_space<vmem>>, vector<1x256x16xf32>
    %cst = arith.constant dense<0.000000e+00> : vector<1x16xf32>
    %1 = vector.multi_reduction <add>, %0, %cst [1] : vector<1x256x16xf32> to vector<1x16xf32>
    %2 = vector.shape_cast %1 : vector<1x16xf32> to vector<1x1x16xf32>
    %cst_2 = arith.constant dense<0xFF800000> : vector<1x16xf32>
    %3 = vector.multi_reduction <maximumf>, %0, %cst_2 [1] : vector<1x256x16xf32> to vector<1x16xf32>
    %4 = vector.shape_cast %3 : vector<1x16xf32> to vector<1x1x16xf32>
    %c0_i32 = arith.constant 0 : i32
    %5 = arith.cmpi eq, %arg1, %c0_i32 : i32
    %6 = arith.extui %5 : i1 to i32
    %c0_i32_3 = arith.constant 0 : i32
    %7 = arith.cmpi ne, %6, %c0_i32_3 : i32
    scf.if %7 {
      %c0_8 = arith.constant 0 : index
      %c0_9 = arith.constant 0 : index
      %c0_10 = arith.constant 0 : index
      %14 = vector.load %arg3[%c0_8, %c0_9, %c0_10] : memref<1x1x16xf32, #tpu.memory_space<vmem>>, vector<1x1x16xf32>
      tpu.vector_store %arg3[%c0_8, %c0_9, %c0_10], %2 {strides = array<i32>} : memref<1x1x16xf32, #tpu.memory_space<vmem>>, vector<1x1x16xf32>,
      %c0_11 = arith.constant 0 : index
      %c0_12 = arith.constant 0 : index
      %c0_13 = arith.constant 0 : index
      %15 = vector.load %arg4[%c0_11, %c0_12, %c0_13] : memref<1x1x16xf32, #tpu.memory_space<vmem>>, vector<1x1x16xf32>
      tpu.vector_store %arg4[%c0_11, %c0_12, %c0_13], %4 {strides = array<i32>} : memref<1x1x16xf32, #tpu.memory_space<vmem>>, vector<1x1x16xf32>,
    } else {
    }
    %c0_i32_4 = arith.constant 0 : i32
    %8 = arith.cmpi sgt, %arg1, %c0_i32_4 : i32
    %9 = arith.extui %8 : i1 to i32
    %c0_i32_5 = arith.constant 0 : i32
    %10 = arith.cmpi ne, %9, %c0_i32_5 : i32
    scf.if %10 {
      %c0_8 = arith.constant 0 : index
      %c0_9 = arith.constant 0 : index
      %c0_10 = arith.constant 0 : index
      %14 = vector.load %arg3[%c0_8, %c0_9, %c0_10] : memref<1x1x16xf32, #tpu.memory_space<vmem>>, vector<1x1x16xf32>
      %15 = arith.addf %14, %2 : vector<1x1x16xf32>
      %c0_11 = arith.constant 0 : index
      %c0_12 = arith.constant 0 : index
      %c0_13 = arith.constant 0 : index
      %16 = vector.load %arg3[%c0_11, %c0_12, %c0_13] : memref<1x1x16xf32, #tpu.memory_space<vmem>>, vector<1x1x16xf32>
      tpu.vector_store %arg3[%c0_11, %c0_12, %c0_13], %15 {strides = array<i32>} : memref<1x1x16xf32, #tpu.memory_space<vmem>>, vector<1x1x16xf32>,
      %c0_14 = arith.constant 0 : index
      %c0_15 = arith.constant 0 : index
      %c0_16 = arith.constant 0 : index
      %17 = vector.load %arg4[%c0_14, %c0_15, %c0_16] : memref<1x1x16xf32, #tpu.memory_space<vmem>>, vector<1x1x16xf32>
      %18 = arith.maximumf %17, %4 : vector<1x1x16xf32>
      %c0_17 = arith.constant 0 : index
      %c0_18 = arith.constant 0 : index
      %c0_19 = arith.constant 0 : index
      %19 = vector.load %arg4[%c0_17, %c0_18, %c0_19] : memref<1x1x16xf32, #tpu.memory_space<vmem>>, vector<1x1x16xf32>
      tpu.vector_store %arg4[%c0_17, %c0_18, %c0_19], %18 {strides = array<i32>} : memref<1x1x16xf32, #tpu.memory_space<vmem>>, vector<1x1x16xf32>,
    } else {
    }
    %c0_i32_6 = arith.constant 0 : i32
    %11 = arith.cmpi eq, %arg1, %c0_i32_6 : i32
    %12 = arith.extui %11 : i1 to i32
    %c0_i32_7 = arith.constant 0 : i32
    %13 = arith.cmpi ne, %12, %c0_i32_7 : i32
    scf.if %13 {
      %c0_8 = arith.constant 0 : index
      %c0_9 = arith.constant 0 : index
      %c0_10 = arith.constant 0 : index
      %14 = vector.load %arg3[%c0_8, %c0_9, %c0_10] : memref<1x1x16xf32, #tpu.memory_space<vmem>>, vector<1x1x16xf32>
      %cst_11 = arith.constant 3.906250e-03 : f32
      %15 = vector.broadcast %cst_11 : f32 to vector<1x1x16xf32>
      %16 = arith.mulf %14, %15 : vector<1x1x16xf32>
      %c0_12 = arith.constant 0 : index
      %c0_13 = arith.constant 0 : index
      %c0_14 = arith.constant 0 : index
      %17 = vector.load %arg3[%c0_12, %c0_13, %c0_14] : memref<1x1x16xf32, #tpu.memory_space<vmem>>, vector<1x1x16xf32>
      tpu.vector_store %arg3[%c0_12, %c0_13, %c0_14], %16 {strides = array<i32>} : memref<1x1x16xf32, #tpu.memory_space<vmem>>, vector<1x1x16xf32>,
    } else {
    }
    return
  }
  func.func @transform_0(%arg0: i32, %arg1: i32) -> (i32, i32, i32) {
    %c0_i32 = arith.constant 0 : i32
    %c0_i32_0 = arith.constant 0 : i32
    return %arg0, %arg1, %c0_i32 : i32, i32, i32
  }
  func.func @transform_1(%arg0: i32, %arg1: i32) -> (i32, i32, i32) {
    %c0_i32 = arith.constant 0 : i32
    %c0_i32_0 = arith.constant 0 : i32
    %c0_i32_1 = arith.constant 0 : i32
    return %arg0, %c0_i32, %c0_i32_0 : i32, i32, i32
  }
  func.func @transform_2(%arg0: i32, %arg1: i32) -> (i32, i32, i32) {
    %c0_i32 = arith.constant 0 : i32
    %c0_i32_0 = arith.constant 0 : i32
    %c0_i32_1 = arith.constant 0 : i32
    return %arg0, %c0_i32, %c0_i32_0 : i32, i32, i32
  }
}

module attributes {stable_mosaic.version = 11 : i64} {
  func.func @_mm_act_kernel(%arg0: i32, %arg1: memref<8x16xbf16, #tpu.memory_space<vmem>>, %arg2: memref<16x1xbf16, #tpu.memory_space<vmem>>, %arg3: memref<1x1xf32, #tpu.memory_space<vmem>>, %arg4: memref<1x1xf32, #tpu.memory_space<vmem>>, %arg5: memref<8x1xf32, #tpu.memory_space<vmem>>) attributes {dimension_semantics = [#tpu.dimension_semantics<parallel>], iteration_bounds = array<i64: 1>, scalar_prefetch = 0 : i64, scratch_operands = 0 : i64, tpu.core_type = #tpu.core_type<tc>, window_params = [{transform_indices = @transform_0, window_bounds = array<i64: 8, 16>}, {pipeline_mode = #tpu.pipeline_mode<synchronous>, transform_indices = @transform_1, window_bounds = array<i64: 16, 1>}, {pipeline_mode = #tpu.pipeline_mode<synchronous>, transform_indices = @transform_2, window_bounds = array<i64: 1, 1>}, {pipeline_mode = #tpu.pipeline_mode<synchronous>, transform_indices = @transform_3, window_bounds = array<i64: 1, 1>}, {transform_indices = @transform_4, window_bounds = array<i64: 8, 1>}]} {
    %c0 = arith.constant 0 : index
    %c0_0 = arith.constant 0 : index
    %0 = vector.load %arg1[%c0, %c0_0] : memref<8x16xbf16, #tpu.memory_space<vmem>>, vector<8x16xbf16>
    %c0_1 = arith.constant 0 : index
    %c0_2 = arith.constant 0 : index
    %1 = vector.load %arg2[%c0_1, %c0_2] : memref<16x1xbf16, #tpu.memory_space<vmem>>, vector<16x1xbf16>
    %cst = arith.constant dense<0.000000e+00> : vector<8x1xf32>
    %2 = tpu.matmul %0, %1, %cst {dimension_numbers = #tpu.dot_dimension_numbers<[1], [0], [0], [1], [0, 0, 1, 1], [], []>} : vector<8x16xbf16>, vector<16x1xbf16>, vector<8x1xf32> -> vector<8x1xf32>
    %c0_3 = arith.constant 0 : index
    %c0_4 = arith.constant 0 : index
    %3 = vector.load %arg3[%c0_3, %c0_4] : memref<1x1xf32, #tpu.memory_space<vmem>>, vector<1x1xf32>
    %4 = vector.broadcast %3 : vector<1x1xf32> to vector<8x1xf32>
    %5 = arith.mulf %2, %4 : vector<8x1xf32>
    %c0_5 = arith.constant 0 : index
    %c0_6 = arith.constant 0 : index
    %6 = vector.load %arg4[%c0_5, %c0_6] : memref<1x1xf32, #tpu.memory_space<vmem>>, vector<1x1xf32>
    %7 = vector.broadcast %6 : vector<1x1xf32> to vector<8x1xf32>
    %8 = arith.addf %5, %7 : vector<8x1xf32>
    %cst_7 = arith.constant 0.000000e+00 : f32
    %9 = vector.broadcast %cst_7 : f32 to vector<8x1xf32>
    %10 = arith.maximumf %8, %9 : vector<8x1xf32>
    %c0_8 = arith.constant 0 : index
    %c0_9 = arith.constant 0 : index
    %11 = vector.load %arg5[%c0_8, %c0_9] : memref<8x1xf32, #tpu.memory_space<vmem>>, vector<8x1xf32>
    tpu.vector_store %arg5[%c0_8, %c0_9], %10 {strides = array<i32>} : memref<8x1xf32, #tpu.memory_space<vmem>>, vector<8x1xf32>,
    return
  }
  func.func @transform_0(%arg0: i32) -> (i32, i32) {
    %c0_i32 = arith.constant 0 : i32
    %c0_i32_0 = arith.constant 0 : i32
    return %arg0, %c0_i32 : i32, i32
  }
  func.func @transform_1(%arg0: i32) -> (i32, i32) {
    %c0_i32 = arith.constant 0 : i32
    %c0_i32_0 = arith.constant 0 : i32
    %c0_i32_1 = arith.constant 0 : i32
    return %c0_i32, %c0_i32_0 : i32, i32
  }
  func.func @transform_2(%arg0: i32) -> (i32, i32) {
    %c0_i32 = arith.constant 0 : i32
    %c0_i32_0 = arith.constant 0 : i32
    %c0_i32_1 = arith.constant 0 : i32
    return %c0_i32, %c0_i32_0 : i32, i32
  }
  func.func @transform_3(%arg0: i32) -> (i32, i32) {
    %c0_i32 = arith.constant 0 : i32
    %c0_i32_0 = arith.constant 0 : i32
    %c0_i32_1 = arith.constant 0 : i32
    return %c0_i32, %c0_i32_0 : i32, i32
  }
  func.func @transform_4(%arg0: i32) -> (i32, i32) {
    %c0_i32 = arith.constant 0 : i32
    %c0_i32_0 = arith.constant 0 : i32
    return %arg0, %c0_i32 : i32, i32
  }
}

module attributes {stable_mosaic.version = 11 : i64} {
  func.func @_mm_act_kernel(%arg0: i32, %arg1: memref<8x1xbf16, #tpu.memory_space<vmem>>, %arg2: memref<1x16xbf16, #tpu.memory_space<vmem>>, %arg3: memref<1x16xf32, #tpu.memory_space<vmem>>, %arg4: memref<1x16xf32, #tpu.memory_space<vmem>>, %arg5: memref<8x16xf32, #tpu.memory_space<vmem>>) attributes {dimension_semantics = [#tpu.dimension_semantics<parallel>], iteration_bounds = array<i64: 1>, scalar_prefetch = 0 : i64, scratch_operands = 0 : i64, tpu.core_type = #tpu.core_type<tc>, window_params = [{transform_indices = @transform_0, window_bounds = array<i64: 8, 1>}, {pipeline_mode = #tpu.pipeline_mode<synchronous>, transform_indices = @transform_1, window_bounds = array<i64: 1, 16>}, {pipeline_mode = #tpu.pipeline_mode<synchronous>, transform_indices = @transform_2, window_bounds = array<i64: 1, 16>}, {pipeline_mode = #tpu.pipeline_mode<synchronous>, transform_indices = @transform_3, window_bounds = array<i64: 1, 16>}, {transform_indices = @transform_4, window_bounds = array<i64: 8, 16>}]} {
    %c0 = arith.constant 0 : index
    %c0_0 = arith.constant 0 : index
    %0 = vector.load %arg1[%c0, %c0_0] : memref<8x1xbf16, #tpu.memory_space<vmem>>, vector<8x1xbf16>
    %c0_1 = arith.constant 0 : index
    %c0_2 = arith.constant 0 : index
    %1 = vector.load %arg2[%c0_1, %c0_2] : memref<1x16xbf16, #tpu.memory_space<vmem>>, vector<1x16xbf16>
    %cst = arith.constant dense<0.000000e+00> : vector<8x16xf32>
    %2 = tpu.matmul %0, %1, %cst {dimension_numbers = #tpu.dot_dimension_numbers<[1], [0], [0], [1], [0, 0, 1, 1], [], []>} : vector<8x1xbf16>, vector<1x16xbf16>, vector<8x16xf32> -> vector<8x16xf32>
    %c0_3 = arith.constant 0 : index
    %c0_4 = arith.constant 0 : index
    %3 = vector.load %arg3[%c0_3, %c0_4] : memref<1x16xf32, #tpu.memory_space<vmem>>, vector<1x16xf32>
    %4 = vector.broadcast %3 : vector<1x16xf32> to vector<8x16xf32>
    %5 = arith.mulf %2, %4 : vector<8x16xf32>
    %c0_5 = arith.constant 0 : index
    %c0_6 = arith.constant 0 : index
    %6 = vector.load %arg4[%c0_5, %c0_6] : memref<1x16xf32, #tpu.memory_space<vmem>>, vector<1x16xf32>
    %7 = vector.broadcast %6 : vector<1x16xf32> to vector<8x16xf32>
    %8 = arith.addf %5, %7 : vector<8x16xf32>
    %c0_7 = arith.constant 0 : index
    %c0_8 = arith.constant 0 : index
    %9 = vector.load %arg5[%c0_7, %c0_8] : memref<8x16xf32, #tpu.memory_space<vmem>>, vector<8x16xf32>
    tpu.vector_store %arg5[%c0_7, %c0_8], %8 {strides = array<i32>} : memref<8x16xf32, #tpu.memory_space<vmem>>, vector<8x16xf32>,
    return
  }
  func.func @transform_0(%arg0: i32) -> (i32, i32) {
    %c0_i32 = arith.constant 0 : i32
    %c0_i32_0 = arith.constant 0 : i32
    return %arg0, %c0_i32 : i32, i32
  }
  func.func @transform_1(%arg0: i32) -> (i32, i32) {
    %c0_i32 = arith.constant 0 : i32
    %c0_i32_0 = arith.constant 0 : i32
    %c0_i32_1 = arith.constant 0 : i32
    return %c0_i32, %c0_i32_0 : i32, i32
  }
  func.func @transform_2(%arg0: i32) -> (i32, i32) {
    %c0_i32 = arith.constant 0 : i32
    %c0_i32_0 = arith.constant 0 : i32
    %c0_i32_1 = arith.constant 0 : i32
    return %c0_i32, %c0_i32_0 : i32, i32
  }
  func.func @transform_3(%arg0: i32) -> (i32, i32) {
    %c0_i32 = arith.constant 0 : i32
    %c0_i32_0 = arith.constant 0 : i32
    %c0_i32_1 = arith.constant 0 : i32
    return %c0_i32, %c0_i32_0 : i32, i32
  }
  func.func @transform_4(%arg0: i32) -> (i32, i32) {
    %c0_i32 = arith.constant 0 : i32
    %c0_i32_0 = arith.constant 0 : i32
    return %arg0, %c0_i32 : i32, i32
  }
}

module attributes {stable_mosaic.version = 11 : i64} {
  func.func @_chan_apply_compress_kernel(%arg0: i32, %arg1: i32, %arg2: memref<1x256x16xf32, #tpu.memory_space<vmem>>, %arg3: memref<1x1x16xf32, #tpu.memory_space<vmem>>, %arg4: memref<1x1x16xf32, #tpu.memory_space<vmem>>, %arg5: memref<1x256x16xf32, #tpu.memory_space<vmem>>, %arg6: memref<1x256x2xf32, #tpu.memory_space<vmem>>) attributes {dimension_semantics = [#tpu.dimension_semantics<parallel>, #tpu.dimension_semantics<parallel>], iteration_bounds = array<i64: 2, 1>, scalar_prefetch = 0 : i64, scratch_operands = 0 : i64, tpu.core_type = #tpu.core_type<tc>, window_params = [{transform_indices = @transform_0, window_bounds = array<i64: 1, 256, 16>}, {transform_indices = @transform_1, window_bounds = array<i64: 1, 1, 16>}, {transform_indices = @transform_2, window_bounds = array<i64: 1, 1, 16>}, {transform_indices = @transform_3, window_bounds = array<i64: 1, 256, 16>}, {transform_indices = @transform_4, window_bounds = array<i64: 1, 256, 2>}]} {
    %c0 = arith.constant 0 : index
    %c0_0 = arith.constant 0 : index
    %c0_1 = arith.constant 0 : index
    %0 = vector.load %arg3[%c0, %c0_0, %c0_1] : memref<1x1x16xf32, #tpu.memory_space<vmem>>, vector<1x1x16xf32>
    %c0_2 = arith.constant 0 : index
    %c0_3 = arith.constant 0 : index
    %c0_4 = arith.constant 0 : index
    %1 = vector.load %arg4[%c0_2, %c0_3, %c0_4] : memref<1x1x16xf32, #tpu.memory_space<vmem>>, vector<1x1x16xf32>
    %2 = arith.addf %0, %1 : vector<1x1x16xf32>
    %3 = arith.negf %2 : vector<1x1x16xf32>
    %4 = math.exp %3 : vector<1x1x16xf32>
    %cst = arith.constant 1.000000e+00 : f32
    %5 = vector.broadcast %cst : f32 to vector<1x1x16xf32>
    %6 = arith.addf %5, %4 : vector<1x1x16xf32>
    %7 = arith.divf %5, %6 : vector<1x1x16xf32>
    %c0_5 = arith.constant 0 : index
    %c0_6 = arith.constant 0 : index
    %c0_7 = arith.constant 0 : index
    %8 = vector.load %arg2[%c0_5, %c0_6, %c0_7] : memref<1x256x16xf32, #tpu.memory_space<vmem>>, vector<1x256x16xf32>
    %9 = vector.broadcast %7 : vector<1x1x16xf32> to vector<1x256x16xf32>
    %10 = arith.mulf %8, %9 : vector<1x256x16xf32>
    %c0_8 = arith.constant 0 : index
    %c0_9 = arith.constant 0 : index
    %c0_10 = arith.constant 0 : index
    %11 = vector.load %arg5[%c0_8, %c0_9, %c0_10] : memref<1x256x16xf32, #tpu.memory_space<vmem>>, vector<1x256x16xf32>
    tpu.vector_store %arg5[%c0_8, %c0_9, %c0_10], %10 {strides = array<i32>} : memref<1x256x16xf32, #tpu.memory_space<vmem>>, vector<1x256x16xf32>,
    %cst_11 = arith.constant dense<0xFF800000> : vector<1x256xf32>
    %12 = vector.multi_reduction <maximumf>, %10, %cst_11 [2] : vector<1x256x16xf32> to vector<1x256xf32>
    %13 = vector.shape_cast %12 : vector<1x256xf32> to vector<1x256x1xf32>
    %c0_12 = arith.constant 0 : index
    %c0_13 = arith.constant 0 : index
    %c0_14 = arith.constant 0 : index
    %14 = vector.load %arg6[%c0_12, %c0_13, %c0_14] : memref<1x256x2xf32, #tpu.memory_space<vmem>>, vector<1x256x1xf32>
    tpu.vector_store %arg6[%c0_12, %c0_13, %c0_14], %13 {strides = array<i32>} : memref<1x256x2xf32, #tpu.memory_space<vmem>>, vector<1x256x1xf32>,
    %cst_15 = arith.constant dense<0.000000e+00> : vector<1x256xf32>
    %15 = vector.multi_reduction <add>, %10, %cst_15 [2] : vector<1x256x16xf32> to vector<1x256xf32>
    %16 = vector.shape_cast %15 : vector<1x256xf32> to vector<1x256x1xf32>
    %cst_16 = arith.constant 1.600000e+01 : f32
    %17 = vector.broadcast %cst_16 : f32 to vector<1x256x1xf32>
    %18 = arith.divf %16, %17 : vector<1x256x1xf32>
    %c0_17 = arith.constant 0 : index
    %c0_18 = arith.constant 0 : index
    %c1 = arith.constant 1 : index
    %19 = vector.load %arg6[%c0_17, %c0_18, %c1] : memref<1x256x2xf32, #tpu.memory_space<vmem>>, vector<1x256x1xf32>
    tpu.vector_store %arg6[%c0_17, %c0_18, %c1], %18 {strides = array<i32>} : memref<1x256x2xf32, #tpu.memory_space<vmem>>, vector<1x256x1xf32>,
    return
  }
  func.func @transform_0(%arg0: i32, %arg1: i32) -> (i32, i32, i32) {
    %c0_i32 = arith.constant 0 : i32
    %c0_i32_0 = arith.constant 0 : i32
    return %arg0, %arg1, %c0_i32 : i32, i32, i32
  }
  func.func @transform_1(%arg0: i32, %arg1: i32) -> (i32, i32, i32) {
    %c0_i32 = arith.constant 0 : i32
    %c0_i32_0 = arith.constant 0 : i32
    %c0_i32_1 = arith.constant 0 : i32
    return %arg0, %c0_i32, %c0_i32_0 : i32, i32, i32
  }
  func.func @transform_2(%arg0: i32, %arg1: i32) -> (i32, i32, i32) {
    %c0_i32 = arith.constant 0 : i32
    %c0_i32_0 = arith.constant 0 : i32
    %c0_i32_1 = arith.constant 0 : i32
    return %arg0, %c0_i32, %c0_i32_0 : i32, i32, i32
  }
  func.func @transform_3(%arg0: i32, %arg1: i32) -> (i32, i32, i32) {
    %c0_i32 = arith.constant 0 : i32
    %c0_i32_0 = arith.constant 0 : i32
    return %arg0, %arg1, %c0_i32 : i32, i32, i32
  }
  func.func @transform_4(%arg0: i32, %arg1: i32) -> (i32, i32, i32) {
    %c0_i32 = arith.constant 0 : i32
    %c0_i32_0 = arith.constant 0 : i32
    return %arg0, %arg1, %c0_i32 : i32, i32, i32
  }
}

module attributes {stable_mosaic.version = 11 : i64} {
  func.func @_mm_gate_kernel(%arg0: i32, %arg1: memref<256x98xbf16, #tpu.memory_space<vmem>>, %arg2: memref<98x1xbf16, #tpu.memory_space<vmem>>, %arg3: memref<1x1xf32, #tpu.memory_space<vmem>>, %arg4: memref<256x16xf32, #tpu.memory_space<vmem>>, %arg5: memref<256x16xf32, #tpu.memory_space<vmem>>) attributes {dimension_semantics = [#tpu.dimension_semantics<parallel>], iteration_bounds = array<i64: 2>, scalar_prefetch = 0 : i64, scratch_operands = 0 : i64, tpu.core_type = #tpu.core_type<tc>, window_params = [{transform_indices = @transform_0, window_bounds = array<i64: 256, 98>}, {pipeline_mode = #tpu.pipeline_mode<synchronous>, transform_indices = @transform_1, window_bounds = array<i64: 98, 1>}, {pipeline_mode = #tpu.pipeline_mode<synchronous>, transform_indices = @transform_2, window_bounds = array<i64: 1, 1>}, {transform_indices = @transform_3, window_bounds = array<i64: 256, 16>}, {transform_indices = @transform_4, window_bounds = array<i64: 256, 16>}]} {
    %c0 = arith.constant 0 : index
    %c0_0 = arith.constant 0 : index
    %0 = vector.load %arg1[%c0, %c0_0] : memref<256x98xbf16, #tpu.memory_space<vmem>>, vector<256x98xbf16>
    %c0_1 = arith.constant 0 : index
    %c0_2 = arith.constant 0 : index
    %1 = vector.load %arg2[%c0_1, %c0_2] : memref<98x1xbf16, #tpu.memory_space<vmem>>, vector<98x1xbf16>
    %cst = arith.constant dense<0.000000e+00> : vector<256x1xf32>
    %2 = tpu.matmul %0, %1, %cst {dimension_numbers = #tpu.dot_dimension_numbers<[1], [0], [0], [1], [0, 0, 1, 1], [], []>} : vector<256x98xbf16>, vector<98x1xbf16>, vector<256x1xf32> -> vector<256x1xf32>
    %c0_3 = arith.constant 0 : index
    %c0_4 = arith.constant 0 : index
    %3 = vector.load %arg3[%c0_3, %c0_4] : memref<1x1xf32, #tpu.memory_space<vmem>>, vector<1x1xf32>
    %4 = vector.broadcast %3 : vector<1x1xf32> to vector<256x1xf32>
    %5 = arith.addf %2, %4 : vector<256x1xf32>
    %6 = arith.negf %5 : vector<256x1xf32>
    %7 = math.exp %6 : vector<256x1xf32>
    %cst_5 = arith.constant 1.000000e+00 : f32
    %8 = vector.broadcast %cst_5 : f32 to vector<256x1xf32>
    %9 = arith.addf %8, %7 : vector<256x1xf32>
    %10 = arith.divf %8, %9 : vector<256x1xf32>
    %c0_6 = arith.constant 0 : index
    %c0_7 = arith.constant 0 : index
    %11 = vector.load %arg4[%c0_6, %c0_7] : memref<256x16xf32, #tpu.memory_space<vmem>>, vector<256x16xf32>
    %12 = vector.broadcast %10 : vector<256x1xf32> to vector<256x16xf32>
    %13 = arith.mulf %11, %12 : vector<256x16xf32>
    %c0_8 = arith.constant 0 : index
    %c0_9 = arith.constant 0 : index
    %14 = vector.load %arg5[%c0_8, %c0_9] : memref<256x16xf32, #tpu.memory_space<vmem>>, vector<256x16xf32>
    tpu.vector_store %arg5[%c0_8, %c0_9], %13 {strides = array<i32>} : memref<256x16xf32, #tpu.memory_space<vmem>>, vector<256x16xf32>,
    return
  }
  func.func @transform_0(%arg0: i32) -> (i32, i32) {
    %c0_i32 = arith.constant 0 : i32
    %c0_i32_0 = arith.constant 0 : i32
    return %arg0, %c0_i32 : i32, i32
  }
  func.func @transform_1(%arg0: i32) -> (i32, i32) {
    %c0_i32 = arith.constant 0 : i32
    %c0_i32_0 = arith.constant 0 : i32
    %c0_i32_1 = arith.constant 0 : i32
    return %c0_i32, %c0_i32_0 : i32, i32
  }
  func.func @transform_2(%arg0: i32) -> (i32, i32) {
    %c0_i32 = arith.constant 0 : i32
    %c0_i32_0 = arith.constant 0 : i32
    %c0_i32_1 = arith.constant 0 : i32
    return %c0_i32, %c0_i32_0 : i32, i32
  }
  func.func @transform_3(%arg0: i32) -> (i32, i32) {
    %c0_i32 = arith.constant 0 : i32
    %c0_i32_0 = arith.constant 0 : i32
    return %arg0, %c0_i32 : i32, i32
  }
  func.func @transform_4(%arg0: i32) -> (i32, i32) {
    %c0_i32 = arith.constant 0 : i32
    %c0_i32_0 = arith.constant 0 : i32
    return %arg0, %c0_i32 : i32, i32
  }
}

</mosaic_0001>

<bundles_post_ra>
// kernel: ega_forward.12
= control target key start
LH: loop header
LB: loop body
LE: loop exit
PB: predicated region body
PF: predicated region fallthrough
CT: control target
= control target key end

     0   :  { %s502_s6 = smov 0   ;;  %s693_s0 = inlined_call_operand.vmem [shape: f32[2,20,20], index: 0, kind: input, shape index: {}]   ;;  %s694_s1 = inlined_call_operand.vmem [shape: f32[2,16,16], index: 1, kind: output, shape index: {}]  }
   0x1 LB: > { %s456_s7 = sadd.s32 4294967295, %s486_s6   ;;  %p460_p0 = scmp.ge.s32.totalorder %s486_s6, 1  ;;  %s486_s6 = sphi %s502_s6, %s11_s6  }
   0x2   : > { %p87_p1 = scmp.lt.s32.totalorder %s486_s6, 3 }
   0x4   : > { %p88_p2 = pnand %p460_p0, %p87_p1 }
   0x5   : > { %p107_p3 = scmp.lt.s32.totalorder (!%p88_p2), %s456_s7, 1  ;;  %s488_s12 = smov (!%p88_p2), 126   ;;  %vm168_vm0 = vcmask (!%p88_p2), 1046528   ;;  %vm234_vm1 = vcmask (!%p88_p2), 1045504   ;;  %vm292_vm2 = vcmask (!%p88_p2), 1044480   ;;  %vm346_vm3 = vcmask (!%p88_p2), 1043456  }
   0x6   : > { %91 = sbr.rel (%p88_p2) target bundleno = 214 (0xd6), region = 24  ;;  %s489_s13 = smov (!%p88_p2), 127   ;;  %vm398_vm4 = vcmask (!%p88_p2), 130048  }
   0x7   : > { %s490_s14 = smov (!%p88_p2), 125   ;;  %s491_s15 = smov (!%p88_p2), 124  }
   0xd   : > { %s696_s7 = smov (!%p107_p3, %s456_s7), 1 }
   0xe   : > { %s467_s8 = smul.u32 24, %s696_s7  ;;  %s466_s16 = sshll.u32 %s696_s7, 4 }
   0xf   : > { %s116_s19 = scalar_lea.vmem %s694_s1, %s466_s16 }
  0x10   : > { %s111_s11 = scalar_lea.vmem %s693_s0, %s467_s8 }
  0x11   : > { %v117_v0 = vld [vmem:[%s111_s11] sm:$0xff]  ;;  %v118_v1 = vld [vmem:[%s111_s11 + $0x8] sm:$0xff]  ;;  %v528_v6 = vld [vmem:[%s111_s11 + $0x10] sm:$0xf] }
  0x12   : > { %v516_v2 = vmul.f32 0.0234375, %v117_v0  ;;  %v518_v3 = vmul.f32 0.015625, %v117_v0  ;;  %v524_v4 = vmul.f32 0.0234375, %v118_v1  ;;  %v526_v5 = vmul.f32 0.015625, %v118_v1 }
  0x13   : > { %v534_v7 = vmul.f32 0.0625, %v118_v1  ;;  %v537_v8 = vmul.f32 0.0625, %v528_v6  ;;  %v539_v9 = vmul.f32 0.0625, %v117_v0  ;;  %v545_v10 = vmul.f32 0.00390625, %v118_v1 }
  0x14   : > { %140 = vrot.lane.b32.xlu1 %v516_v2, %s488_s12  ;;  %128 = vrot.lane.b32.xlu0 %v518_v3, %s489_s13  ;;  %v547_v11 = vmul.f32 0.00390625, %v117_v0  ;;  %v549_v12 = vmul.f32 0.09375, %v118_v1  ;;  %v552_v13 = vmul.f32 0.09375, %v528_v6  ;;  %v557_v17 = vmul.f32 0.09375, %v117_v0 }
  0x15   : > { %v185_v14 = vrot.slane %v534_v7, 1  ;;  %v187_v15 = vrot.slane %v537_v8, 1  ;;  %v184_v16 = vrot.slane %v539_v9, 1  ;;  %v571_v23 = vmul.f32 0.015625, %v528_v6 }
  0x16   : > { %v204_v18 = vrot.slane %v549_v12, 1  ;;  %v206_v21 = vrot.slane %v552_v13, 1  ;;  %v203_v22 = vrot.slane %v557_v17, 1  ;;  %v170_v26 = vrot.slane %v526_v5, 1 }
  0x17   : > { %v188_v19 = vsel %vm168_vm0, %v185_v14, %v187_v15  ;;  %v186_v20 = vsel %vm168_vm0, %v184_v16, %v185_v14  ;;  %v172_v27 = vrot.slane %v571_v23, 1  ;;  %v169_v28 = vrot.slane %v518_v3, 1 }
  0x18   : > { %142 = vrot.lane.b32.xlu1 %v524_v4, %s488_s12  ;;  %130 = vrot.lane.b32.xlu0 %v526_v5, %s489_s13  ;;  %v207_v24 = vsel %vm168_vm0, %v204_v18, %v206_v21  ;;  %v205_v25 = vsel %vm168_vm0, %v203_v22, %v204_v18  ;;  %v245_v31 = vrot.slane %v549_v12, 2  ;;  %v247_v32 = vrot.slane %v552_v13, 2 }
  0x19   : > { %v583_v29 = vsel %vm168_vm0, %v170_v26, %v172_v27  ;;  %v586_v30 = vsel %vm168_vm0, %v169_v28, %v170_v26  ;;  %v244_v33 = vrot.slane %v557_v17, 2  ;;  %v258_v34 = vmul.f32 0.140625, %v118_v1 }
  0x1a   : > { %v259_v35 = vmul.f32 0.140625, %v528_v6  ;;  %v257_v36 = vmul.f32 0.140625, %v117_v0  ;;  %v248_v37 = vsel %vm234_vm1, %v245_v31, %v247_v32  ;;  %v232_v44 = vmul.f32 0.0234375, %v528_v6 }
  0x1b   : > { %v246_v38 = vsel %vm234_vm1, %v244_v33, %v245_v31  ;;  %v264_v39 = vrot.slane %v258_v34, 2  ;;  %v236_v45 = vrot.slane %v524_v4, 2  ;;  %v235_v47 = vrot.slane %v516_v2, 2 }
  0x1c   : > { %150 = vrot.lane.b32.xlu1 %v526_v5, %s490_s14  ;;  %148 = vrot.lane.b32.xlu0 %v518_v3, %s490_s14  ;;  %v266_v40 = vrot.slane %v259_v35, 2  ;;  %v263_v41 = vrot.slane %v257_v36, 2  ;;  %v238_v46 = vrot.slane %v232_v44, 2  ;;  %v303_v48 = vrot.slane %v534_v7, 3 }
  0x1d   : > { %v614_v50 = vsel %vm234_vm1, %v235_v47, %v236_v45  ;;  %v305_v51 = vrot.slane %v537_v8, 3  ;;  %v302_v52 = vrot.slane %v539_v9, 3  ;;  %v316_v53 = vrot.slane %v549_v12, 3 }
  0x1e   : > { %v267_v42 = vsel %vm234_vm1, %v264_v39, %v266_v40  ;;  %v265_v43 = vsel %vm234_vm1, %v263_v41, %v264_v39  ;;  %v611_v49 = vsel %vm234_vm1, %v236_v45, %v238_v46  ;;  %v318_v56 = vrot.slane %v552_v13, 3 }
  0x1f   : > { %v306_v54 = vsel %vm292_vm2, %v303_v48, %v305_v51  ;;  %v304_v55 = vsel %vm292_vm2, %v302_v52, %v303_v48  ;;  %v315_v57 = vrot.slane %v557_v17, 3  ;;  %v294_v60 = vrot.slane %v526_v5, 3 }
  0x20   : > { %160 = vrot.lane.b32.xlu1 %v545_v10, %s491_s15  ;;  %158 = vrot.lane.b32.xlu0 %v547_v11, %s491_s15  ;;  %v319_v58 = vsel %vm292_vm2, %v316_v53, %v318_v56  ;;  %v296_v61 = vrot.slane %v571_v23, 3  ;;  %v293_v62 = vrot.slane %v518_v3, 3  ;;  %v357_v63 = vrot.slane %v526_v5, 4 }
  0x21   : > { %v317_v59 = vsel %vm292_vm2, %v315_v57, %v316_v53  ;;  %v359_v7 = vrot.slane %v571_v23, 4  ;;  %v356_v8 = vrot.slane %v518_v3, 4  ;;  %v370_v9 = vrot.slane %v524_v4, 4 }
  0x22   : > { %v640_v0 = vsel %vm292_vm2, %v294_v60, %v296_v61  ;;  %v643_v1 = vsel %vm292_vm2, %v293_v62, %v294_v60  ;;  %v372_v13 = vrot.slane %v232_v44, 4  ;;  %v369_v14 = vrot.slane %v516_v2, 4 }
  0x23   : > { %v360_v5 = vsel %vm346_vm3, %v357_v63, %v359_v7  ;;  %v358_v12 = vsel %vm346_vm3, %v356_v8, %v357_v63  ;;  %v344_v16 = vmul.f32 0.00390625, %v528_v6  ;;  %v348_v4 = vrot.slane %v545_v10, 4 }
  0x24   : > { %191 = vrot.lane.b32.xlu1 %v188_v19, %s489_s13  ;;  %189 = vrot.lane.b32.xlu0 %v186_v20, %s489_s13  ;;  %v373_v3 = vsel %vm346_vm3, %v370_v9, %v372_v13  ;;  %v371_v15 = vsel %vm346_vm3, %v369_v14, %v370_v9  ;;  %v347_v18 = vrot.slane %v547_v11, 4 }
  0x25   : > { %v350_v17 = vrot.slane %v344_v16, 4 }
  0x27   : > { %v667_v2 = vsel %vm346_vm3, %v348_v4, %v350_v17 }
  0x28   : > { %210 = vrot.lane.b32.xlu1 %v207_v24, %s488_s12  ;;  %208 = vrot.lane.b32.xlu0 %v205_v25, %s488_s12 }
  0x2c   : > { %218 = vrot.lane.b32.xlu1 %v188_v19, %s490_s14  ;;  %216 = vrot.lane.b32.xlu0 %v186_v20, %s490_s14  ;;  %v670_v19 = vsel %vm346_vm3, %v347_v18, %v348_v4 }
  0x30   : > { %226 = vrot.lane.b32.xlu1 %v583_v29, %s491_s15  ;;  %224 = vrot.lane.b32.xlu0 %v586_v30, %s491_s15 }
  0x34   : > { %251 = vrot.lane.b32.xlu1 %v248_v37, %s489_s13  ;;  %249 = vrot.lane.b32.xlu0 %v246_v38, %s489_s13 }
  0x38   : > { %270 = vrot.lane.b32.xlu1 %v267_v42, %s488_s12  ;;  %268 = vrot.lane.b32.xlu0 %v265_v43, %s488_s12 }
  0x3c   : > { %278 = vrot.lane.b32.xlu1 %v248_v37, %s490_s14  ;;  %276 = vrot.lane.b32.xlu0 %v246_v38, %s490_s14 }
  0x40   : > { %286 = vrot.lane.b32.xlu1 %v611_v49, %s491_s15  ;;  %284 = vrot.lane.b32.xlu0 %v614_v50, %s491_s15 }
  0x44   : > { %309 = vrot.lane.b32.xlu1 %v306_v54, %s489_s13  ;;  %307 = vrot.lane.b32.xlu0 %v304_v55, %s489_s13 }
  0x48   : > { %322 = vrot.lane.b32.xlu1 %v319_v58, %s488_s12  ;;  %320 = vrot.lane.b32.xlu0 %v317_v59, %s488_s12 }
  0x4c   : > { %330 = vrot.lane.b32.xlu1 %v306_v54, %s490_s14  ;;  %328 = vrot.lane.b32.xlu0 %v304_v55, %s490_s14 }
  0x50   : > { %338 = vrot.lane.b32.xlu1 %v640_v0, %s491_s15  ;;  %336 = vrot.lane.b32.xlu0 %v643_v1, %s491_s15 }
  0x54   : > { %363 = vrot.lane.b32.xlu1 %v360_v5, %s489_s13  ;;  %361 = vrot.lane.b32.xlu0 %v358_v12, %s489_s13 }
  0x58   : > { %376 = vrot.lane.b32.xlu1 %v373_v3, %s488_s12  ;;  %374 = vrot.lane.b32.xlu0 %v371_v15, %s488_s12 }
  0x5c   : > { %384 = vrot.lane.b32.xlu1 %v360_v5, %s490_s14  ;;  %382 = vrot.lane.b32.xlu0 %v358_v12, %s490_s14 }
  0x60   : > { %392 = vrot.lane.b32.xlu1 %v667_v2, %s491_s15  ;;  %390 = vrot.lane.b32.xlu0 %v670_v19, %s491_s15 }
  0x86   : > { %v141_v6 = vpop.permute.xlu1 %140  ;;  %v129_v20 = vpop.permute.xlu0 %128 }
  0x87   : > { %v134_v28 = vadd.f32 %v129_v20, %v547_v11 }
  0x89   : > { %v146_v34 = vadd.f32 %v141_v6, %v134_v28 }
  0x8a   : > { %v143_v21 = vpop.permute.xlu1 %142  ;;  %v131_v22 = vpop.permute.xlu0 %130 }
  0x8b   : > { %v135_v25 = vadd.f32 %v131_v22, %v545_v10 }
  0x8d   : > { %v147_v31 = vadd.f32 %v143_v21, %v135_v25 }
  0x8e   : > { %v151_v23 = vpop.permute.xlu1 %150  ;;  %v149_v24 = vpop.permute.xlu0 %148 }
  0x8f   : > { %v155_v35 = vadd.f32 %v151_v23, %v147_v31  ;;  %v154_v36 = vadd.f32 %v149_v24, %v146_v34 }
  0x92   : > { %v161_v26 = vpop.permute.xlu1 %160  ;;  %v159_v27 = vpop.permute.xlu0 %158 }
  0x93   : > { %v165_v39 = vadd.f32 %v161_v26, %v155_v35  ;;  %v164_v40 = vadd.f32 %v159_v27, %v154_v36 }
  0x95   : > { %v177_v43 = vadd.f32 %v583_v29, %v165_v39  ;;  %v176_v10 = vadd.f32 %v586_v30, %v164_v40 }
  0x96   : > { %v192_v32 = vpop.permute.xlu1 %191  ;;  %v190_v33 = vpop.permute.xlu0 %189 }
  0x97   : > { %v196_v46 = vadd.f32 %v192_v32, %v177_v43  ;;  %v195_v11 = vadd.f32 %v190_v33, %v176_v10 }
  0x9a   : > { %v211_v37 = vpop.permute.xlu1 %210  ;;  %v209_v38 = vpop.permute.xlu0 %208 }
  0x9b   : > { %v215_v47 = vadd.f32 %v211_v37, %v196_v46  ;;  %v214_v48 = vadd.f32 %v209_v38, %v195_v11 }
  0x9e   : > { %v219_v41 = vpop.permute.xlu1 %218  ;;  %v217_v42 = vpop.permute.xlu0 %216 }
  0x9f   : > { %v223_v53 = vadd.f32 %v219_v41, %v215_v47  ;;  %v222_v54 = vadd.f32 %v217_v42, %v214_v48 }
  0xa2   : > { %v227_v44 = vpop.permute.xlu1 %226  ;;  %v225_v45 = vpop.permute.xlu0 %224 }
  0xa3   : > { %v231_v55 = vadd.f32 %v227_v44, %v223_v53  ;;  %v230_v56 = vadd.f32 %v225_v45, %v222_v54 }
  0xa5   : > { %v243_v59 = vadd.f32 %v611_v49, %v231_v55  ;;  %v242_v29 = vadd.f32 %v614_v50, %v230_v56 }
  0xa6   : > { %v252_v51 = vpop.permute.xlu1 %251  ;;  %v250_v52 = vpop.permute.xlu0 %249 }
  0xa7   : > { %v256_v61 = vadd.f32 %v252_v51, %v243_v59  ;;  %v255_v62 = vadd.f32 %v250_v52, %v242_v29 }
  0xaa   : > { %v271_v57 = vpop.permute.xlu1 %270  ;;  %v269_v58 = vpop.permute.xlu0 %268 }
  0xab   : > { %v275_v8 = vadd.f32 %v271_v57, %v256_v61  ;;  %v274_v9 = vadd.f32 %v269_v58, %v255_v62 }
  0xae   : > { %v279_v60 = vpop.permute.xlu1 %278  ;;  %v277_v30 = vpop.permute.xlu0 %276 }
  0xaf   : > { %v283_v5 = vadd.f32 %v279_v60, %v275_v8  ;;  %v282_v12 = vadd.f32 %v277_v30, %v274_v9 }
  0xb2   : > { %v287_v63 = vpop.permute.xlu1 %286  ;;  %v285_v7 = vpop.permute.xlu0 %284 }
  0xb3   : > { %v291_v3 = vadd.f32 %v287_v63, %v283_v5  ;;  %v290_v15 = vadd.f32 %v285_v7, %v282_v12 }
  0xb5   : > { %v301_v49 = vadd.f32 %v640_v0, %v291_v3  ;;  %v300_v50 = vadd.f32 %v643_v1, %v290_v15 }
  0xb6   : > { %v310_v13 = vpop.permute.xlu1 %309  ;;  %v308_v14 = vpop.permute.xlu0 %307 }
  0xb7   : > { %v314_v6 = vadd.f32 %v310_v13, %v301_v49  ;;  %v313_v20 = vadd.f32 %v308_v14, %v300_v50 }
  0xba   : > { %v323_v16 = vpop.permute.xlu1 %322  ;;  %v321_v4 = vpop.permute.xlu0 %320 }
  0xbb   : > { %v327_v21 = vadd.f32 %v323_v16, %v314_v6  ;;  %v326_v22 = vadd.f32 %v321_v4, %v313_v20 }
  0xbe   : > { %v331_v17 = vpop.permute.xlu1 %330  ;;  %v329_v18 = vpop.permute.xlu0 %328 }
  0xbf   : > { %v335_v25 = vadd.f32 %v331_v17, %v327_v21  ;;  %v334_v26 = vadd.f32 %v329_v18, %v326_v22 }
  0xc2   : > { %v339_v23 = vpop.permute.xlu1 %338  ;;  %v337_v24 = vpop.permute.xlu0 %336 }
  0xc3   : > { %v343_v27 = vadd.f32 %v339_v23, %v335_v25  ;;  %v342_v28 = vadd.f32 %v337_v24, %v334_v26 }
  0xc5   : > { %v355_v33 = vadd.f32 %v667_v2, %v343_v27  ;;  %v354_v0 = vadd.f32 %v670_v19, %v342_v28 }
  0xc6   : > { %v364_v31 = vpop.permute.xlu1 %363  ;;  %v362_v32 = vpop.permute.xlu0 %361 }
  0xc7   : > { %v368_v35 = vadd.f32 %v364_v31, %v355_v33  ;;  %v367_v36 = vadd.f32 %v362_v32, %v354_v0 }
  0xca   : > { %v377_v1 = vpop.permute.xlu1 %376  ;;  %v375_v34 = vpop.permute.xlu0 %374 }
  0xcb   : > { %v381_v39 = vadd.f32 %v377_v1, %v368_v35  ;;  %v380_v40 = vadd.f32 %v375_v34, %v367_v36 }
  0xce   : > { %v385_v37 = vpop.permute.xlu1 %384  ;;  %v383_v38 = vpop.permute.xlu0 %382 }
  0xcf   : > { %v389_v41 = vadd.f32 %v385_v37, %v381_v39  ;;  %v388_v42 = vadd.f32 %v383_v38, %v380_v40 }
  0xd2   : > { %v393_v43 = vpop.permute.xlu1 %392  ;;  %v391_v2 = vpop.permute.xlu0 %390 }
  0xd3   : > { %v397_v10 = vadd.f32 %v393_v43, %v389_v41  ;;  %v396_v19 = vadd.f32 %v391_v2, %v388_v42 }
  0xd5   : > { %400 = vst.msk [vmem:[%s116_s19 + $0x8] sm:$0xff] %vm398_vm4, %v397_v10  ;;  %399 = vst.msk [vmem:[%s116_s19] sm:$0xff] %vm398_vm4, %v396_v19 }
  0xd6 PF: > { %s11_s6 = sadd.s32 1, %s486_s6  }
  0xd7   : > { %p8_p4 = scmp.ge.s32.totalorder %s11_s6, 4  }
  0xd9   :  { %10 = sbr.rel (!%p8_p4) target bundleno = 1 (0x1), region = 54 }

// kernel: ega_forward.11
= control target key start
LH: loop header
LB: loop body
LE: loop exit
PB: predicated region body
PF: predicated region fallthrough
CT: control target
= control target key end

     0   :  { %s1382_s19 = smov 0   ;;  %s1617_s0 = inlined_call_operand.vmem [shape: bf16[512,144], index: 0, kind: input, shape index: {}]   ;;  %s1618_s1 = inlined_call_operand.vmem [shape: bf16[144,1], index: 1, kind: input, shape index: {}]   ;;  %s1619_s2 = inlined_call_operand.<no memory space> [shape: f32[1,1], index: 2, kind: input, shape index: {}]   ;;  %s1620_s4 = inlined_call_operand.vmem [shape: f32[512,1], index: 4, kind: output, shape index: {}]   ;;  %s1621_s3 = inlined_call_operand.<no memory space> [shape: f32[1,1], index: 3, kind: input, shape index: {}]  }
   0x1   :  { %v9_v0 = vstv %s1619_s2  ;;  %v11_v1 = vstv %s1621_s3 }
   0x2   :  { %10 = vst [vmem:[#allocation2] sm:$0x1] %v9_v0  ;;  %12 = vst [vmem:[#allocation3] sm:$0x1] %v11_v1 }
   0x3 LB: > { %s1026_s20 = sadd.s32 4294967295, %s1348_s19   ;;  %p1030_p0 = scmp.ge.s32.totalorder %s1348_s19, 1  ;;  %s1348_s19 = sphi %s1382_s19, %s18_s19  }
   0x4   : > { %p168_p1 = scmp.lt.s32.totalorder %s1348_s19, 3 }
   0x6   : > { %p169_p2 = pnand %p1030_p0, %p168_p1 }
   0x7   : > { %v1157_v2 = vld [vmem:[%s1618_s1] sm:$0xff] (!%p169_p2)   ;;  %v1350_v3 = vmov (!%p169_p2), 0   ;;  %s1031_s3 = sshll.u32 (!%p169_p2), %s1026_s20, 5  ;;  %v1158_v4 = vld [vmem:[%s1618_s1 + $0x8] sm:$0xff] (!%p169_p2)   ;;  %v1159_v5 = vld [vmem:[%s1618_s1 + $0x10] sm:$0xff] (!%p169_p2)   ;;  %vm457_vm0 = vcmask (!%p169_p2), 130048  }
   0x8   : > { %172 = sbr.rel (%p169_p2) target bundleno = 352 (0x160), region = 36  ;;  %506 = vmatprep.subr.bf16.mxu0 (!%p169_p2), %v1350_v3  ;;  %1130 = vmatprep.subr.bf16.mxu1 (!%p169_p2), %v1350_v3  ;;  %p196_p3 = scmp.lt.s32.totalorder (!%p169_p2), %s1031_s3, 63  ;;  %v1160_v6 = vld [vmem:[%s1618_s1 + $0x18] sm:$0xff] (!%p169_p2)   ;;  %v1161_v9 = vld [vmem:[%s1618_s1 + $0x20] sm:$0xff] (!%p169_p2)   ;;  %v1162_v10 = vld [vmem:[%s1618_s1 + $0x28] sm:$0xff] (!%p169_p2)   ;;  %vm937_vm1 = vcmask (!%p169_p2), 7168  }
   0x9   : > { %507 = vmatpush1.bf16.msra.mxu0 (!%p169_p2), %v1157_v2  ;;  %1139 = vmatpush1.bf16.msra.mxu1 (!%p169_p2), %v1157_v2  ;;  %v1163_v11 = vld [vmem:[%s1618_s1 + $0x30] sm:$0xff] (!%p169_p2)   ;;  %v1164_v12 = vld [vmem:[%s1618_s1 + $0x38] sm:$0xff] (!%p169_p2)   ;;  %v1165_v13 = vld [vmem:[%s1618_s1 + $0x40] sm:$0xff] (!%p169_p2)  }
   0xa   : > { %508 = vmatprep.subr.bf16.mxu0 (!%p169_p2), %v1350_v3  ;;  %1131 = vmatprep.subr.bf16.mxu1 (!%p169_p2), %v1350_v3  ;;  %v1475_v44 = vld [vmem:[#allocation2] ss:$0 sm:$0xff] (!%p169_p2)  ;;  %v1477_v46 = vld [vmem:[#allocation3] ss:$0 sm:$0xff] (!%p169_p2) }
   0xd   : > { %509 = vmatpush1.bf16.msra.mxu0 (!%p169_p2), %v1158_v4  ;;  %1140 = vmatpush1.bf16.msra.mxu1 (!%p169_p2), %v1158_v4 }
   0xe   : > { %510 = vmatprep.subr.bf16.mxu0 (!%p169_p2), %v1350_v3  ;;  %1132 = vmatprep.subr.bf16.mxu1 (!%p169_p2), %v1350_v3 }
   0xf   : > { %s1623_s3 = smov (!%p196_p3, %s1031_s3), 63 }
  0x10   : > { %s1129_s26 = sshll.u32 %s1623_s3, 3 }
  0x11   : > { %s1407_s29 = scalar_lea.vmem %s1617_s0, %s1129_s26  ;;  %511 = vmatpush1.bf16.msra.mxu0 %v1159_v5  ;;  %1141 = vmatpush1.bf16.msra.mxu1 %v1159_v5  ;;  %s1512_s18 = scalar_lea.vmem %s1620_s4, %s1129_s26 }
  0x12   : > { %v1168_v7 = vld [vmem:[%s1407_s29 + $0x4] ss:$8 sps:$4 sm:$0xff]   ;;  %512 = vmatprep.subr.bf16.mxu0 %v1350_v3  ;;  %1133 = vmatprep.subr.bf16.mxu1 %v1350_v3  ;;  %v1166_v14 = vld [vmem:[%s1407_s29] ss:$8 sps:$4 sm:$0xff]   ;;  %v1172_v16 = vld [vmem:[%s1407_s29 + $0x14] ss:$8 sps:$4 sm:$0xff]  }
  0x13   : > { %v1171_v8 = vld [vmem:[%s1407_s29 + $0x84] ss:$8 sps:$4 sm:$0xff]   ;;  %1077 = vmatprep.mubr.msk.bf16.mxu0 %vm457_vm0, %v1168_v7  ;;  %v1169_v15 = vld [vmem:[%s1407_s29 + $0x80] ss:$8 sps:$4 sm:$0xff]   ;;  %v1174_v17 = vld [vmem:[%s1407_s29 + $0x94] ss:$8 sps:$4 sm:$0xff]  }
  0x14   : > { %1085 = vmatprep.mubr.msk.bf16.mxu1 %vm457_vm0, %v1171_v8  ;;  %v1176_v18 = vld [vmem:[%s1407_s29 + $0x10] ss:$8 sps:$4 sm:$0xff]   ;;  %v1178_v20 = vld [vmem:[%s1407_s29 + $0x24] ss:$8 sps:$4 sm:$0xff]   ;;  %v1182_v22 = vld [vmem:[%s1407_s29 + $0x20] ss:$8 sps:$4 sm:$0xff]  }
  0x15   : > { %513 = vmatpush1.bf16.msra.mxu0 %v1160_v6  ;;  %1142 = vmatpush1.bf16.msra.mxu1 %v1160_v6  ;;  %v1177_v19 = vld [vmem:[%s1407_s29 + $0x90] ss:$8 sps:$4 sm:$0xff]   ;;  %v1180_v21 = vld [vmem:[%s1407_s29 + $0xa4] ss:$8 sps:$4 sm:$0xff]   ;;  %v1183_v23 = vld [vmem:[%s1407_s29 + $0xa0] ss:$8 sps:$4 sm:$0xff]  }
  0x16   : > { %514 = vmatprep.subr.bf16.mxu0 %v1350_v3  ;;  %1134 = vmatprep.subr.bf16.mxu1 %v1350_v3  ;;  %v1184_v24 = vld [vmem:[%s1407_s29 + $0x34] ss:$8 sps:$4 sm:$0xff]   ;;  %v1188_v26 = vld [vmem:[%s1407_s29 + $0x30] ss:$8 sps:$4 sm:$0xff]   ;;  %v1190_v28 = vld [vmem:[%s1407_s29 + $0x44] ss:$8 sps:$4 sm:$0xff]  }
  0x17   : > { %v1186_v25 = vld [vmem:[%s1407_s29 + $0xb4] ss:$8 sps:$4 sm:$0xff]   ;;  %v1189_v27 = vld [vmem:[%s1407_s29 + $0xb0] ss:$8 sps:$4 sm:$0xff]   ;;  %v1192_v29 = vld [vmem:[%s1407_s29 + $0xc4] ss:$8 sps:$4 sm:$0xff]  }
  0x18   : > { %v1194_v30 = vld [vmem:[%s1407_s29 + $0x40] ss:$8 sps:$4 sm:$0xff]   ;;  %v1196_v32 = vld [vmem:[%s1407_s29 + $0x54] ss:$8 sps:$4 sm:$0xff]   ;;  %v1200_v34 = vld [vmem:[%s1407_s29 + $0x50] ss:$8 sps:$4 sm:$0xff]  }
  0x19   : > { %515 = vmatpush1.bf16.msra.mxu0 %v1161_v9  ;;  %1143 = vmatpush1.bf16.msra.mxu1 %v1161_v9  ;;  %v1195_v31 = vld [vmem:[%s1407_s29 + $0xc0] ss:$8 sps:$4 sm:$0xff]   ;;  %v1198_v33 = vld [vmem:[%s1407_s29 + $0xd4] ss:$8 sps:$4 sm:$0xff]   ;;  %v1201_v35 = vld [vmem:[%s1407_s29 + $0xd0] ss:$8 sps:$4 sm:$0xff]  }
  0x1a   : > { %516 = vmatprep.subr.bf16.mxu0 %v1350_v3  ;;  %1135 = vmatprep.subr.bf16.mxu1 %v1350_v3  ;;  %v1202_v36 = vld [vmem:[%s1407_s29 + $0x64] ss:$8 sps:$4 sm:$0xff]   ;;  %v1206_v38 = vld [vmem:[%s1407_s29 + $0x60] ss:$8 sps:$4 sm:$0xff]   ;;  %v1208_v40 = vld [vmem:[%s1407_s29 + $0x74] ss:$8 sps:$4 sm:$0xff]  }
  0x1b   : > { %v1204_v37 = vld [vmem:[%s1407_s29 + $0xe4] ss:$8 sps:$4 sm:$0xff]   ;;  %v1207_v39 = vld [vmem:[%s1407_s29 + $0xe0] ss:$8 sps:$4 sm:$0xff]   ;;  %v1210_v41 = vld [vmem:[%s1407_s29 + $0xf4] ss:$8 sps:$4 sm:$0xff]  }
  0x1c   : > { %v1212_v42 = vld [vmem:[%s1407_s29 + $0x70] ss:$8 sps:$4 sm:$0xff]  }
  0x1d   : > { %517 = vmatpush1.bf16.msra.mxu0 %v1162_v10  ;;  %1144 = vmatpush1.bf16.msra.mxu1 %v1162_v10  ;;  %v1213_v43 = vld [vmem:[%s1407_s29 + $0xf0] ss:$8 sps:$4 sm:$0xff]  }
  0x1e   : > { %518 = vmatprep.subr.bf16.mxu0 %v1350_v3  ;;  %1136 = vmatprep.subr.bf16.mxu1 %v1350_v3 }
  0x21   : > { %519 = vmatpush1.bf16.msra.mxu0 %v1163_v11  ;;  %1145 = vmatpush1.bf16.msra.mxu1 %v1163_v11 }
  0x22   : > { %520 = vmatprep.subr.bf16.mxu0 %v1350_v3  ;;  %1137 = vmatprep.subr.bf16.mxu1 %v1350_v3 }
  0x25   : > { %521 = vmatpush1.bf16.msra.mxu0 %v1164_v12  ;;  %1146 = vmatpush1.bf16.msra.mxu1 %v1164_v12 }
  0x26   : > { %522 = vmatprep.subr.bf16.mxu0 %v1350_v3  ;;  %1138 = vmatprep.subr.bf16.mxu1 %v1350_v3 }
  0x29   : > { %523 = vmatpush1.bf16.msra.mxu0 %v1165_v13  ;;  %1147 = vmatpush1.bf16.msra.mxu1 %v1165_v13 }
  0x2c   : > { %539 = vmatmul.mubr.bf16.vlgmr.msra.gmra.mrb[0].mxu0 %v1166_v14  ;;  %603 = vmatmul.mubr.bf16.vlgmr.msra.gmra.mrb[0].mxu1 %v1169_v15 }
  0x2d   : > { %1078 = vmatprep.mubr.msk.bf16.mxu0 %vm457_vm0, %v1172_v16  ;;  %1086 = vmatprep.mubr.msk.bf16.mxu1 %vm457_vm0, %v1174_v17 }
  0x34   : > { %547 = vmatmul.mubr.bf16.gmra.mrb[4].mxu0 %v1176_v18  ;;  %611 = vmatmul.mubr.bf16.gmra.mrb[4].mxu1 %v1177_v19 }
  0x35   : > { %1079 = vmatprep.mubr.msk.bf16.mxu0 %vm457_vm0, %v1178_v20  ;;  %1087 = vmatprep.mubr.msk.bf16.mxu1 %vm457_vm0, %v1180_v21 }
  0x3c   : > { %555 = vmatmul.mubr.bf16.gmra.mrb[8].mxu0 %v1182_v22  ;;  %619 = vmatmul.mubr.bf16.gmra.mrb[8].mxu1 %v1183_v23 }
  0x3d   : > { %1080 = vmatprep.mubr.msk.bf16.mxu0 %vm457_vm0, %v1184_v24  ;;  %1088 = vmatprep.mubr.msk.bf16.mxu1 %vm457_vm0, %v1186_v25 }
  0x44   : > { %563 = vmatmul.mubr.bf16.gmra.mrb[12].mxu0 %v1188_v26  ;;  %627 = vmatmul.mubr.bf16.gmra.mrb[12].mxu1 %v1189_v27 }
  0x45   : > { %1081 = vmatprep.mubr.msk.bf16.mxu0 %vm457_vm0, %v1190_v28  ;;  %1089 = vmatprep.mubr.msk.bf16.mxu1 %vm457_vm0, %v1192_v29 }
  0x4c   : > { %571 = vmatmul.mubr.bf16.gmra.mrb[16].mxu0 %v1194_v30  ;;  %635 = vmatmul.mubr.bf16.gmra.mrb[16].mxu1 %v1195_v31 }
  0x4d   : > { %1082 = vmatprep.mubr.msk.bf16.mxu0 %vm457_vm0, %v1196_v32  ;;  %1090 = vmatprep.mubr.msk.bf16.mxu1 %vm457_vm0, %v1198_v33 }
  0x54   : > { %579 = vmatmul.mubr.bf16.gmra.mrb[20].mxu0 %v1200_v34  ;;  %643 = vmatmul.mubr.bf16.gmra.mrb[20].mxu1 %v1201_v35 }
  0x55   : > { %1083 = vmatprep.mubr.msk.bf16.mxu0 %vm457_vm0, %v1202_v36  ;;  %1091 = vmatprep.mubr.msk.bf16.mxu1 %vm457_vm0, %v1204_v37 }
  0x5c   : > { %587 = vmatmul.mubr.bf16.gmra.mrb[24].mxu0 %v1206_v38  ;;  %651 = vmatmul.mubr.bf16.gmra.mrb[24].mxu1 %v1207_v39 }
  0x5d   : > { %1084 = vmatprep.mubr.msk.bf16.mxu0 %vm457_vm0, %v1208_v40  ;;  %1092 = vmatprep.mubr.msk.bf16.mxu1 %vm457_vm0, %v1210_v41 }
  0x64   : > { %595 = vmatmul.mubr.bf16.gmra.mrb[28].mxu0 %v1212_v42  ;;  %659 = vmatmul.mubr.bf16.gmra.mrb[28].mxu1 %v1213_v43 }
  0xff   : > { %v540_v45 = vpop.f32.mrb[0].mxu0  ;;  %v604_v47 = vpop.f32.mrb[0].mxu1 }
 0x100   : > { %v674_v48 = vmul.f32 %v1475_v44, %v540_v45  ;;  %v690_v49 = vmul.f32 %v1475_v44, %v604_v47  ;;  %v542_v50 = vpop.f32.mrb[1].mxu0  ;;  %v606_v51 = vpop.f32.mrb[1].mxu1 }
 0x101   : > { %v543_v52 = vpop.f32.mrb[2].mxu0  ;;  %v607_v53 = vpop.f32.mrb[2].mxu1 }
 0x102   : > { %v713_v54 = vadd.f32 %v1477_v46, %v674_v48  ;;  %v729_v55 = vadd.f32 %v1477_v46, %v690_v49  ;;  %v675_v56 = vmul.f32 %v1475_v44, %v543_v52  ;;  %v691_v57 = vmul.f32 %v1475_v44, %v607_v53  ;;  %v545_v58 = vpop.f32.mrb[3].mxu0  ;;  %v609_v59 = vpop.f32.mrb[3].mxu1 }
 0x104   : > { %v1095_v60 = vmul.f32 -1.442695, %v713_v54  ;;  %v1111_v61 = vmul.f32 -1.442695, %v729_v55  ;;  %v714_v62 = vadd.f32 %v1477_v46, %v675_v56  ;;  %v730_v63 = vadd.f32 %v1477_v46, %v691_v57 }
 0x106   : > { %1214 = vpow2.f32 %v1095_v60  ;;  %v1096_v0 = vmul.f32 -1.442695, %v714_v62  ;;  %v1112_v1 = vmul.f32 -1.442695, %v730_v63 }
 0x107   : > { %1216 = vpow2.f32 %v1111_v61  ;;  %v548_v2 = vpop.f32.mrb[4].mxu0  ;;  %v612_v3 = vpop.f32.mrb[4].mxu1 }
 0x108   : > { %1218 = vpow2.f32 %v1096_v0  ;;  %v676_v4 = vmul.f32 %v1475_v44, %v548_v2  ;;  %v692_v5 = vmul.f32 %v1475_v44, %v612_v3  ;;  %v550_v6 = vpop.f32.mrb[5].mxu0  ;;  %v614_v7 = vpop.f32.mrb[5].mxu1 }
 0x109   : > { %1220 = vpow2.f32 %v1112_v1  ;;  %v551_v8 = vpop.f32.mrb[6].mxu0  ;;  %v615_v9 = vpop.f32.mrb[6].mxu1 }
 0x10a   : > { %v715_v10 = vadd.f32 %v1477_v46, %v676_v4  ;;  %v731_v11 = vadd.f32 %v1477_v46, %v692_v5  ;;  %v677_v12 = vmul.f32 %v1475_v44, %v551_v8  ;;  %v693_v13 = vmul.f32 %v1475_v44, %v615_v9  ;;  %v553_v14 = vpop.f32.mrb[7].mxu0  ;;  %v617_v15 = vpop.f32.mrb[7].mxu1 }
 0x10c   : > { %v1097_v16 = vmul.f32 -1.442695, %v715_v10  ;;  %v1113_v17 = vmul.f32 -1.442695, %v731_v11  ;;  %v716_v18 = vadd.f32 %v1477_v46, %v677_v12  ;;  %v732_v19 = vadd.f32 %v1477_v46, %v693_v13 }
 0x10e   : > { %1222 = vpow2.f32 %v1097_v16  ;;  %v1098_v20 = vmul.f32 -1.442695, %v716_v18  ;;  %v1114_v21 = vmul.f32 -1.442695, %v732_v19 }
 0x10f   : > { %1224 = vpow2.f32 %v1113_v17  ;;  %v556_v22 = vpop.f32.mrb[8].mxu0  ;;  %v620_v23 = vpop.f32.mrb[8].mxu1 }
 0x110   : > { %v1215_v24 = vpop.eup %1214  ;;  %1226 = vpow2.f32 %v1098_v20  ;;  %v678_v25 = vmul.f32 %v1475_v44, %v556_v22  ;;  %v694_v26 = vmul.f32 %v1475_v44, %v620_v23  ;;  %v558_v27 = vpop.f32.mrb[9].mxu0 }
 0x111   : > { %v622_v28 = vpop.f32.mrb[9].mxu1  ;;  %v1217_v29 = vpop.eup %1216  ;;  %v841_v30 = vadd.f32 1.0, %v1215_v24  ;;  %1228 = vpow2.f32 %v1114_v21 }
 0x112   : > { %v559_v31 = vpop.f32.mrb[10].mxu0  ;;  %v623_v32 = vpop.f32.mrb[10].mxu1  ;;  %v857_v34 = vadd.f32 1.0, %v1217_v29  ;;  %v717_v35 = vadd.f32 %v1477_v46, %v678_v25  ;;  %v733_v36 = vadd.f32 %v1477_v46, %v694_v26 }
 0x113   : > { %v1219_v33 = vpop.eup %1218  ;;  %v679_v37 = vmul.f32 %v1475_v44, %v559_v31  ;;  %v561_v38 = vpop.f32.mrb[11].mxu0  ;;  %1230 = vrcp.f32 %v841_v30  ;;  %v695_v42 = vmul.f32 %v1475_v44, %v623_v32 }
 0x114   : > { %v625_v39 = vpop.f32.mrb[11].mxu1  ;;  %v1221_v40 = vpop.eup %1220  ;;  %v842_v41 = vadd.f32 1.0, %v1219_v33  ;;  %1232 = vrcp.f32 %v857_v34  ;;  %v1099_v45 = vmul.f32 -1.442695, %v717_v35  ;;  %v1115_v47 = vmul.f32 -1.442695, %v733_v36 }
 0x115   : > { %v858_v43 = vadd.f32 1.0, %v1221_v40  ;;  %v718_v48 = vadd.f32 %v1477_v46, %v679_v37  ;;  %v734_v49 = vadd.f32 %v1477_v46, %v695_v42 }
 0x116   : > { %1234 = vrcp.f32 %v842_v41 }
 0x117   : > { %1236 = vrcp.f32 %v858_v43  ;;  %v1100_v50 = vmul.f32 -1.442695, %v718_v48  ;;  %v1116_v51 = vmul.f32 -1.442695, %v734_v49  ;;  %v564_v52 = vpop.f32.mrb[12].mxu0  ;;  %v628_v53 = vpop.f32.mrb[12].mxu1 }
 0x118   : > { %1238 = vpow2.f32 %v1099_v45  ;;  %v1223_v54 = vpop.eup %1222  ;;  %v680_v55 = vmul.f32 %v1475_v44, %v564_v52  ;;  %v696_v56 = vmul.f32 %v1475_v44, %v628_v53  ;;  %v566_v57 = vpop.f32.mrb[13].mxu0 }
 0x119   : > { %1240 = vpow2.f32 %v1115_v47  ;;  %v630_v58 = vpop.f32.mrb[13].mxu1  ;;  %v1225_v59 = vpop.eup %1224  ;;  %v843_v60 = vadd.f32 1.0, %v1223_v54 }
 0x11a   : > { %1242 = vpow2.f32 %v1100_v50  ;;  %v567_v61 = vpop.f32.mrb[14].mxu0  ;;  %v631_v62 = vpop.f32.mrb[14].mxu1  ;;  %v859_v0 = vadd.f32 1.0, %v1225_v59  ;;  %v719_v1 = vadd.f32 %v1477_v46, %v680_v55  ;;  %v735_v2 = vadd.f32 %v1477_v46, %v696_v56 }
 0x11b   : > { %v1227_v63 = vpop.eup %1226  ;;  %1244 = vpow2.f32 %v1116_v51  ;;  %v569_v3 = vpop.f32.mrb[15].mxu0  ;;  %v681_v7 = vmul.f32 %v1475_v44, %v567_v61  ;;  %v697_v8 = vmul.f32 %v1475_v44, %v631_v62 }
 0x11c   : > { %v633_v4 = vpop.f32.mrb[15].mxu1  ;;  %v1229_v5 = vpop.eup %1228  ;;  %1246 = vrcp.f32 %v843_v60  ;;  %v844_v6 = vadd.f32 1.0, %v1227_v63  ;;  %v1101_v10 = vmul.f32 -1.442695, %v719_v1  ;;  %v1117_v11 = vmul.f32 -1.442695, %v735_v2 }
 0x11d   : > { %1248 = vrcp.f32 %v859_v0  ;;  %v860_v9 = vadd.f32 1.0, %v1229_v5  ;;  %v1231_v12 = vpop.eup %1230  ;;  %v720_v13 = vadd.f32 %v1477_v46, %v681_v7  ;;  %v736_v14 = vadd.f32 %v1477_v46, %v697_v8 }
 0x11e   : > { %1250 = vrcp.f32 %v844_v6  ;;  %v1233_v15 = vpop.eup %1232  ;;  %938 = vst.msk [vmem:[%s1512_s18] sm:$0xff] %vm937_vm1, %v1231_v12 }
 0x11f   : > { %1252 = vrcp.f32 %v860_v9  ;;  %954 = vst.msk [vmem:[%s1512_s18 + $0x80] sm:$0xff] %vm937_vm1, %v1233_v15  ;;  %v1102_v17 = vmul.f32 -1.442695, %v720_v13  ;;  %v1118_v18 = vmul.f32 -1.442695, %v736_v14  ;;  %v572_v19 = vpop.f32.mrb[16].mxu0 }
 0x120   : > { %v1235_v16 = vpop.eup %1234  ;;  %1254 = vpow2.f32 %v1101_v10  ;;  %v636_v20 = vpop.f32.mrb[16].mxu1  ;;  %v682_v22 = vmul.f32 %v1475_v44, %v572_v19 }
 0x121   : > { %v1237_v21 = vpop.eup %1236  ;;  %939 = vst.msk [vmem:[%s1512_s18 + $0x8] sm:$0xff] %vm937_vm1, %v1235_v16  ;;  %1256 = vpow2.f32 %v1117_v11  ;;  %v698_v23 = vmul.f32 %v1475_v44, %v636_v20  ;;  %v574_v24 = vpop.f32.mrb[17].mxu0 }
 0x122   : > { %v638_v25 = vpop.f32.mrb[17].mxu1  ;;  %v1239_v26 = vpop.eup %1238  ;;  %955 = vst.msk [vmem:[%s1512_s18 + $0x88] sm:$0xff] %vm937_vm1, %v1237_v21  ;;  %1258 = vpow2.f32 %v1102_v17  ;;  %v721_v31 = vadd.f32 %v1477_v46, %v682_v22 }
 0x123   : > { %v575_v27 = vpop.f32.mrb[18].mxu0  ;;  %v639_v28 = vpop.f32.mrb[18].mxu1  ;;  %v845_v30 = vadd.f32 1.0, %v1239_v26  ;;  %1260 = vpow2.f32 %v1118_v18  ;;  %v737_v32 = vadd.f32 %v1477_v46, %v698_v23 }
 0x124   : > { %v1241_v29 = vpop.eup %1240  ;;  %v577_v33 = vpop.f32.mrb[19].mxu0  ;;  %v683_v37 = vmul.f32 %v1475_v44, %v575_v27  ;;  %v699_v38 = vmul.f32 %v1475_v44, %v639_v28  ;;  %v1103_v41 = vmul.f32 -1.442695, %v721_v31 }
 0x125   : > { %v641_v34 = vpop.f32.mrb[19].mxu1  ;;  %v1243_v35 = vpop.eup %1242  ;;  %v861_v36 = vadd.f32 1.0, %v1241_v29  ;;  %1262 = vrcp.f32 %v845_v30  ;;  %v1119_v42 = vmul.f32 -1.442695, %v737_v32 }
 0x126   : > { %v1245_v39 = vpop.eup %1244  ;;  %v846_v40 = vadd.f32 1.0, %v1243_v35  ;;  %v722_v47 = vadd.f32 %v1477_v46, %v683_v37  ;;  %v738_v48 = vadd.f32 %v1477_v46, %v699_v38 }
 0x127   : > { %v1247_v43 = vpop.eup %1246  ;;  %1264 = vrcp.f32 %v861_v36  ;;  %v862_v45 = vadd.f32 1.0, %v1245_v39  ;;  %v580_v53 = vpop.f32.mrb[20].mxu0 }
 0x128   : > { %v1249_v49 = vpop.eup %1248  ;;  %940 = vst.msk [vmem:[%s1512_s18 + $0x10] sm:$0xff] %vm937_vm1, %v1247_v43  ;;  %1266 = vrcp.f32 %v846_v40  ;;  %v1104_v51 = vmul.f32 -1.442695, %v722_v47  ;;  %v1120_v52 = vmul.f32 -1.442695, %v738_v48  ;;  %v644_v54 = vpop.f32.mrb[20].mxu1  ;;  %v684_v56 = vmul.f32 %v1475_v44, %v580_v53 }
 0x129   : > { %v1251_v50 = vpop.eup %1250  ;;  %956 = vst.msk [vmem:[%s1512_s18 + $0x90] sm:$0xff] %vm937_vm1, %v1249_v49  ;;  %1268 = vrcp.f32 %v862_v45  ;;  %v700_v57 = vmul.f32 %v1475_v44, %v644_v54  ;;  %v582_v58 = vpop.f32.mrb[21].mxu0 }
 0x12a   : > { %v1253_v55 = vpop.eup %1252  ;;  %941 = vst.msk [vmem:[%s1512_s18 + $0x18] sm:$0xff] %vm937_vm1, %v1251_v50  ;;  %1270 = vpow2.f32 %v1103_v41  ;;  %v646_v59 = vpop.f32.mrb[21].mxu1  ;;  %v723_v1 = vadd.f32 %v1477_v46, %v684_v56 }
 0x12b   : > { %v1255_v60 = vpop.eup %1254  ;;  %957 = vst.msk [vmem:[%s1512_s18 + $0x98] sm:$0xff] %vm937_vm1, %v1253_v55  ;;  %1272 = vpow2.f32 %v1119_v42  ;;  %v583_v61 = vpop.f32.mrb[22].mxu0  ;;  %v739_v2 = vadd.f32 %v1477_v46, %v700_v57 }
 0x12c   : > { %v647_v62 = vpop.f32.mrb[22].mxu1  ;;  %v1257_v63 = vpop.eup %1256  ;;  %v847_v0 = vadd.f32 1.0, %v1255_v60  ;;  %1274 = vpow2.f32 %v1104_v51  ;;  %v685_v7 = vmul.f32 %v1475_v44, %v583_v61  ;;  %v1105_v11 = vmul.f32 -1.442695, %v723_v1 }
 0x12d   : > { %v585_v3 = vpop.f32.mrb[23].mxu0  ;;  %v649_v4 = vpop.f32.mrb[23].mxu1  ;;  %v863_v6 = vadd.f32 1.0, %v1257_v63  ;;  %1276 = vpow2.f32 %v1120_v52  ;;  %v701_v8 = vmul.f32 %v1475_v44, %v647_v62  ;;  %v1121_v12 = vmul.f32 -1.442695, %v739_v2 }
 0x12e   : > { %v1259_v5 = vpop.eup %1258  ;;  %1278 = vrcp.f32 %v847_v0  ;;  %v724_v14 = vadd.f32 %v1477_v46, %v685_v7 }
 0x12f   : > { %v1261_v9 = vpop.eup %1260  ;;  %v848_v10 = vadd.f32 1.0, %v1259_v5  ;;  %1280 = vrcp.f32 %v863_v6  ;;  %v740_v15 = vadd.f32 %v1477_v46, %v701_v8  ;;  %v588_v20 = vpop.f32.mrb[24].mxu0 }
 0x130   : > { %v864_v13 = vadd.f32 1.0, %v1261_v9  ;;  %v1263_v16 = vpop.eup %1262  ;;  %v1106_v18 = vmul.f32 -1.442695, %v724_v14  ;;  %v652_v21 = vpop.f32.mrb[24].mxu1  ;;  %v686_v23 = vmul.f32 %v1475_v44, %v588_v20 }
 0x131   : > { %1282 = vrcp.f32 %v848_v10  ;;  %v1265_v17 = vpop.eup %1264  ;;  %942 = vst.msk [vmem:[%s1512_s18 + $0x20] sm:$0xff] %vm937_vm1, %v1263_v16  ;;  %v1122_v19 = vmul.f32 -1.442695, %v740_v15  ;;  %v702_v24 = vmul.f32 %v1475_v44, %v652_v21  ;;  %v590_v25 = vpop.f32.mrb[25].mxu0 }
 0x132   : > { %1284 = vrcp.f32 %v864_v13  ;;  %v1267_v22 = vpop.eup %1266  ;;  %958 = vst.msk [vmem:[%s1512_s18 + $0xa0] sm:$0xff] %vm937_vm1, %v1265_v17  ;;  %v654_v26 = vpop.f32.mrb[25].mxu1  ;;  %v725_v31 = vadd.f32 %v1477_v46, %v686_v23 }
 0x133   : > { %1286 = vpow2.f32 %v1105_v11  ;;  %v1269_v27 = vpop.eup %1268  ;;  %943 = vst.msk [vmem:[%s1512_s18 + $0x28] sm:$0xff] %vm937_vm1, %v1267_v22  ;;  %v591_v28 = vpop.f32.mrb[26].mxu0  ;;  %v741_v32 = vadd.f32 %v1477_v46, %v702_v24 }
 0x134   : > { %1288 = vpow2.f32 %v1121_v12  ;;  %v655_v29 = vpop.f32.mrb[26].mxu1  ;;  %v1271_v30 = vpop.eup %1270  ;;  %959 = vst.msk [vmem:[%s1512_s18 + $0xa8] sm:$0xff] %vm937_vm1, %v1269_v27  ;;  %v687_v33 = vmul.f32 %v1475_v44, %v591_v28  ;;  %v1107_v45 = vmul.f32 -1.442695, %v725_v31 }
 0x135   : > { %1290 = vpow2.f32 %v1106_v18  ;;  %v593_v34 = vpop.f32.mrb[27].mxu0  ;;  %v657_v35 = vpop.f32.mrb[27].mxu1  ;;  %v849_v37 = vadd.f32 1.0, %v1271_v30  ;;  %v703_v38 = vmul.f32 %v1475_v44, %v655_v29  ;;  %v1123_v50 = vmul.f32 -1.442695, %v741_v32 }
 0x136   : > { %v1273_v36 = vpop.eup %1272  ;;  %1292 = vpow2.f32 %v1122_v19  ;;  %v726_v41 = vadd.f32 %v1477_v46, %v687_v33 }
 0x137   : > { %v1275_v39 = vpop.eup %1274  ;;  %v865_v40 = vadd.f32 1.0, %v1273_v36  ;;  %1294 = vrcp.f32 %v849_v37  ;;  %v742_v47 = vadd.f32 %v1477_v46, %v703_v38  ;;  %v596_v53 = vpop.f32.mrb[28].mxu0 }
 0x138   : > { %v1277_v42 = vpop.eup %1276  ;;  %v850_v43 = vadd.f32 1.0, %v1275_v39  ;;  %v1108_v52 = vmul.f32 -1.442695, %v726_v41  ;;  %v660_v54 = vpop.f32.mrb[28].mxu1  ;;  %v688_v57 = vmul.f32 %v1475_v44, %v596_v53 }
 0x139   : > { %v1279_v48 = vpop.eup %1278  ;;  %1296 = vrcp.f32 %v865_v40  ;;  %v866_v49 = vadd.f32 1.0, %v1277_v42  ;;  %v1124_v56 = vmul.f32 -1.442695, %v742_v47  ;;  %v704_v58 = vmul.f32 %v1475_v44, %v660_v54  ;;  %v598_v59 = vpop.f32.mrb[29].mxu0 }
 0x13a   : > { %v1281_v51 = vpop.eup %1280  ;;  %944 = vst.msk [vmem:[%s1512_s18 + $0x30] sm:$0xff] %vm937_vm1, %v1279_v48  ;;  %1298 = vrcp.f32 %v850_v43  ;;  %v662_v60 = vpop.f32.mrb[29].mxu1  ;;  %v727_v1 = vadd.f32 %v1477_v46, %v688_v57 }
 0x13b   : > { %v1283_v55 = vpop.eup %1282  ;;  %960 = vst.msk [vmem:[%s1512_s18 + $0xb0] sm:$0xff] %vm937_vm1, %v1281_v51  ;;  %1300 = vrcp.f32 %v866_v49  ;;  %v599_v62 = vpop.f32.mrb[30].mxu0  ;;  %v743_v2 = vadd.f32 %v1477_v46, %v704_v58 }
 0x13c   : > { %v1285_v61 = vpop.eup %1284  ;;  %945 = vst.msk [vmem:[%s1512_s18 + $0x38] sm:$0xff] %vm937_vm1, %v1283_v55  ;;  %1302 = vpow2.f32 %v1107_v45  ;;  %v663_v63 = vpop.f32.mrb[30].mxu1  ;;  %v689_v3 = vmul.f32 %v1475_v44, %v599_v62  ;;  %v1109_v11 = vmul.f32 -1.442695, %v727_v1 }
 0x13d   : > { %v1287_v0 = vpop.eup %1286  ;;  %961 = vst.msk [vmem:[%s1512_s18 + $0xb8] sm:$0xff] %vm937_vm1, %v1285_v61  ;;  %1304 = vpow2.f32 %v1123_v50  ;;  %v601_v4 = vpop.f32.mrb[31].mxu0  ;;  %v705_v8 = vmul.f32 %v1475_v44, %v663_v63  ;;  %v1125_v17 = vmul.f32 -1.442695, %v743_v2 }
 0x13e   : > { %v665_v5 = vpop.f32.mrb[31].mxu1  ;;  %v1289_v6 = vpop.eup %1288  ;;  %v851_v7 = vadd.f32 1.0, %v1287_v0  ;;  %1306 = vpow2.f32 %v1108_v52  ;;  %v728_v14 = vadd.f32 %v1477_v46, %v689_v3 }
 0x13f   : > { %v1291_v9 = vpop.eup %1290  ;;  %v867_v10 = vadd.f32 1.0, %v1289_v6  ;;  %1308 = vpow2.f32 %v1124_v56  ;;  %v744_v15 = vadd.f32 %v1477_v46, %v705_v8 }
 0x140   : > { %v1293_v12 = vpop.eup %1292  ;;  %1310 = vrcp.f32 %v851_v7  ;;  %v852_v13 = vadd.f32 1.0, %v1291_v9  ;;  %v1110_v44 = vmul.f32 -1.442695, %v728_v14 }
 0x141   : > { %1312 = vrcp.f32 %v867_v10  ;;  %v868_v16 = vadd.f32 1.0, %v1293_v12  ;;  %v1295_v18 = vpop.eup %1294  ;;  %v1126_v20 = vmul.f32 -1.442695, %v744_v15 }
 0x142   : > { %1314 = vrcp.f32 %v852_v13  ;;  %946 = vst.msk [vmem:[%s1512_s18 + $0x40] sm:$0xff] %vm937_vm1, %v1295_v18 }
 0x143   : > { %v1297_v19 = vpop.eup %1296  ;;  %1316 = vrcp.f32 %v868_v16 }
 0x144   : > { %v1299_v21 = vpop.eup %1298  ;;  %962 = vst.msk [vmem:[%s1512_s18 + $0xc0] sm:$0xff] %vm937_vm1, %v1297_v19  ;;  %1318 = vpow2.f32 %v1109_v11 }
 0x145   : > { %v1301_v22 = vpop.eup %1300  ;;  %947 = vst.msk [vmem:[%s1512_s18 + $0x48] sm:$0xff] %vm937_vm1, %v1299_v21  ;;  %1320 = vpow2.f32 %v1125_v17 }
 0x146   : > { %v1303_v46 = vpop.eup %1302  ;;  %963 = vst.msk [vmem:[%s1512_s18 + $0xc8] sm:$0xff] %vm937_vm1, %v1301_v22  ;;  %1322 = vpow2.f32 %v1110_v44 }
 0x147   : > { %v1305_v23 = vpop.eup %1304  ;;  %v853_v24 = vadd.f32 1.0, %v1303_v46  ;;  %1324 = vpow2.f32 %v1126_v20 }
 0x148   : > { %v1307_v25 = vpop.eup %1306  ;;  %v869_v26 = vadd.f32 1.0, %v1305_v23 }
 0x149   : > { %v1309_v27 = vpop.eup %1308  ;;  %1326 = vrcp.f32 %v853_v24  ;;  %v854_v28 = vadd.f32 1.0, %v1307_v25 }
 0x14a   : > { %v1311_v29 = vpop.eup %1310  ;;  %1328 = vrcp.f32 %v869_v26  ;;  %v870_v30 = vadd.f32 1.0, %v1309_v27 }
 0x14b   : > { %v1313_v31 = vpop.eup %1312  ;;  %948 = vst.msk [vmem:[%s1512_s18 + $0x50] sm:$0xff] %vm937_vm1, %v1311_v29  ;;  %1330 = vrcp.f32 %v854_v28 }
 0x14c   : > { %v1315_v32 = vpop.eup %1314  ;;  %964 = vst.msk [vmem:[%s1512_s18 + $0xd0] sm:$0xff] %vm937_vm1, %v1313_v31  ;;  %1332 = vrcp.f32 %v870_v30 }
 0x14d   : > { %v1317_v33 = vpop.eup %1316  ;;  %949 = vst.msk [vmem:[%s1512_s18 + $0x58] sm:$0xff] %vm937_vm1, %v1315_v32 }
 0x14e   : > { %v1319_v34 = vpop.eup %1318  ;;  %965 = vst.msk [vmem:[%s1512_s18 + $0xd8] sm:$0xff] %vm937_vm1, %v1317_v33 }
 0x14f   : > { %v1321_v35 = vpop.eup %1320  ;;  %v855_v36 = vadd.f32 1.0, %v1319_v34 }
 0x150   : > { %v1323_v37 = vpop.eup %1322  ;;  %v871_v38 = vadd.f32 1.0, %v1321_v35 }
 0x151   : > { %v1325_v39 = vpop.eup %1324  ;;  %1334 = vrcp.f32 %v855_v36  ;;  %v856_v40 = vadd.f32 1.0, %v1323_v37 }
 0x152   : > { %1336 = vrcp.f32 %v871_v38  ;;  %v872_v41 = vadd.f32 1.0, %v1325_v39 }
 0x153   : > { %v1327_v42 = vpop.eup %1326  ;;  %1338 = vrcp.f32 %v856_v40 }
 0x154   : > { %v1329_v43 = vpop.eup %1328  ;;  %950 = vst.msk [vmem:[%s1512_s18 + $0x60] sm:$0xff] %vm937_vm1, %v1327_v42  ;;  %1340 = vrcp.f32 %v872_v41 }
 0x155   : > { %v1331_v45 = vpop.eup %1330  ;;  %966 = vst.msk [vmem:[%s1512_s18 + $0xe0] sm:$0xff] %vm937_vm1, %v1329_v43 }
 0x156   : > { %v1333_v47 = vpop.eup %1332  ;;  %951 = vst.msk [vmem:[%s1512_s18 + $0x68] sm:$0xff] %vm937_vm1, %v1331_v45 }
 0x157   : > { %967 = vst.msk [vmem:[%s1512_s18 + $0xe8] sm:$0xff] %vm937_vm1, %v1333_v47 }
 0x15b   : > { %v1335_v48 = vpop.eup %1334 }
 0x15c   : > { %v1337_v49 = vpop.eup %1336  ;;  %952 = vst.msk [vmem:[%s1512_s18 + $0x70] sm:$0xff] %vm937_vm1, %v1335_v48 }
 0x15d   : > { %v1339_v50 = vpop.eup %1338  ;;  %968 = vst.msk [vmem:[%s1512_s18 + $0xf0] sm:$0xff] %vm937_vm1, %v1337_v49 }
 0x15e   : > { %v1341_v51 = vpop.eup %1340  ;;  %953 = vst.msk [vmem:[%s1512_s18 + $0x78] sm:$0xff] %vm937_vm1, %v1339_v50 }
 0x15f   : > { %969 = vst.msk [vmem:[%s1512_s18 + $0xf8] sm:$0xff] %vm937_vm1, %v1341_v51 }
 0x160 PF: > { %s18_s19 = sadd.s32 1, %s1348_s19  }
 0x161   : > { %p15_p4 = scmp.ge.s32.totalorder %s18_s19, 4  }
 0x163   :  { %17 = sbr.rel (!%p15_p4) target bundleno = 3 (0x3), region = 66 }

// kernel: ega_forward.13
= control target key start
LH: loop header
LB: loop body
LE: loop exit
PB: predicated region body
PF: predicated region fallthrough
CT: control target
= control target key end

     0   :  { %s502_s6 = smov 0   ;;  %s693_s0 = inlined_call_operand.vmem [shape: f32[2,20,20], index: 0, kind: input, shape index: {}]   ;;  %s694_s1 = inlined_call_operand.vmem [shape: f32[2,16,16], index: 1, kind: output, shape index: {}]  }
   0x1 LB: > { %s456_s7 = sadd.s32 4294967295, %s486_s6   ;;  %p460_p0 = scmp.ge.s32.totalorder %s486_s6, 1  ;;  %s486_s6 = sphi %s502_s6, %s11_s6  }
   0x2   : > { %p87_p1 = scmp.lt.s32.totalorder %s486_s6, 3 }
   0x4   : > { %p88_p2 = pnand %p460_p0, %p87_p1 }
   0x5   : > { %p107_p3 = scmp.lt.s32.totalorder (!%p88_p2), %s456_s7, 1  ;;  %s488_s12 = smov (!%p88_p2), 126   ;;  %vm168_vm0 = vcmask (!%p88_p2), 1046528   ;;  %vm234_vm1 = vcmask (!%p88_p2), 1045504   ;;  %vm292_vm2 = vcmask (!%p88_p2), 1044480   ;;  %vm346_vm3 = vcmask (!%p88_p2), 1043456  }
   0x6   : > { %91 = sbr.rel (%p88_p2) target bundleno = 214 (0xd6), region = 24  ;;  %s489_s13 = smov (!%p88_p2), 127   ;;  %vm398_vm4 = vcmask (!%p88_p2), 130048  }
   0x7   : > { %s490_s14 = smov (!%p88_p2), 125   ;;  %s491_s15 = smov (!%p88_p2), 124  }
   0xd   : > { %s696_s7 = smov (!%p107_p3, %s456_s7), 1 }
   0xe   : > { %s467_s8 = smul.u32 24, %s696_s7  ;;  %s466_s16 = sshll.u32 %s696_s7, 4 }
   0xf   : > { %s116_s19 = scalar_lea.vmem %s694_s1, %s466_s16 }
  0x10   : > { %s111_s11 = scalar_lea.vmem %s693_s0, %s467_s8 }
  0x11   : > { %v117_v0 = vld [vmem:[%s111_s11] sm:$0xff]  ;;  %v118_v1 = vld [vmem:[%s111_s11 + $0x8] sm:$0xff]  ;;  %v528_v6 = vld [vmem:[%s111_s11 + $0x10] sm:$0xf] }
  0x12   : > { %v516_v2 = vmul.f32 0.09375, %v117_v0  ;;  %v518_v3 = vmul.f32 0.0625, %v117_v0  ;;  %v524_v4 = vmul.f32 0.09375, %v118_v1  ;;  %v526_v5 = vmul.f32 0.0625, %v118_v1 }
  0x13   : > { %v534_v7 = vmul.f32 0.25, %v118_v1  ;;  %v537_v8 = vmul.f32 0.25, %v528_v6  ;;  %v539_v9 = vmul.f32 0.25, %v117_v0  ;;  %v545_v10 = vmul.f32 0.015625, %v118_v1 }
  0x14   : > { %140 = vrot.lane.b32.xlu1 %v516_v2, %s488_s12  ;;  %128 = vrot.lane.b32.xlu0 %v518_v3, %s489_s13  ;;  %v547_v11 = vmul.f32 0.015625, %v117_v0  ;;  %v549_v12 = vmul.f32 0.375, %v118_v1  ;;  %v552_v13 = vmul.f32 0.375, %v528_v6  ;;  %v557_v17 = vmul.f32 0.375, %v117_v0 }
  0x15   : > { %v185_v14 = vrot.slane %v534_v7, 1  ;;  %v187_v15 = vrot.slane %v537_v8, 1  ;;  %v184_v16 = vrot.slane %v539_v9, 1  ;;  %v571_v23 = vmul.f32 0.0625, %v528_v6 }
  0x16   : > { %v204_v18 = vrot.slane %v549_v12, 1  ;;  %v206_v21 = vrot.slane %v552_v13, 1  ;;  %v203_v22 = vrot.slane %v557_v17, 1  ;;  %v170_v26 = vrot.slane %v526_v5, 1 }
  0x17   : > { %v188_v19 = vsel %vm168_vm0, %v185_v14, %v187_v15  ;;  %v186_v20 = vsel %vm168_vm0, %v184_v16, %v185_v14  ;;  %v172_v27 = vrot.slane %v571_v23, 1  ;;  %v169_v28 = vrot.slane %v518_v3, 1 }
  0x18   : > { %142 = vrot.lane.b32.xlu1 %v524_v4, %s488_s12  ;;  %130 = vrot.lane.b32.xlu0 %v526_v5, %s489_s13  ;;  %v207_v24 = vsel %vm168_vm0, %v204_v18, %v206_v21  ;;  %v205_v25 = vsel %vm168_vm0, %v203_v22, %v204_v18  ;;  %v245_v31 = vrot.slane %v549_v12, 2  ;;  %v247_v32 = vrot.slane %v552_v13, 2 }
  0x19   : > { %v583_v29 = vsel %vm168_vm0, %v170_v26, %v172_v27  ;;  %v586_v30 = vsel %vm168_vm0, %v169_v28, %v170_v26  ;;  %v244_v33 = vrot.slane %v557_v17, 2  ;;  %v258_v34 = vmul.f32 0.5625, %v118_v1 }
  0x1a   : > { %v259_v35 = vmul.f32 0.5625, %v528_v6  ;;  %v257_v36 = vmul.f32 0.5625, %v117_v0  ;;  %v248_v37 = vsel %vm234_vm1, %v245_v31, %v247_v32  ;;  %v232_v44 = vmul.f32 0.09375, %v528_v6 }
  0x1b   : > { %v246_v38 = vsel %vm234_vm1, %v244_v33, %v245_v31  ;;  %v264_v39 = vrot.slane %v258_v34, 2  ;;  %v236_v45 = vrot.slane %v524_v4, 2  ;;  %v235_v47 = vrot.slane %v516_v2, 2 }
  0x1c   : > { %150 = vrot.lane.b32.xlu1 %v526_v5, %s490_s14  ;;  %148 = vrot.lane.b32.xlu0 %v518_v3, %s490_s14  ;;  %v266_v40 = vrot.slane %v259_v35, 2  ;;  %v263_v41 = vrot.slane %v257_v36, 2  ;;  %v238_v46 = vrot.slane %v232_v44, 2  ;;  %v303_v48 = vrot.slane %v534_v7, 3 }
  0x1d   : > { %v614_v50 = vsel %vm234_vm1, %v235_v47, %v236_v45  ;;  %v305_v51 = vrot.slane %v537_v8, 3  ;;  %v302_v52 = vrot.slane %v539_v9, 3  ;;  %v316_v53 = vrot.slane %v549_v12, 3 }
  0x1e   : > { %v267_v42 = vsel %vm234_vm1, %v264_v39, %v266_v40  ;;  %v265_v43 = vsel %vm234_vm1, %v263_v41, %v264_v39  ;;  %v611_v49 = vsel %vm234_vm1, %v236_v45, %v238_v46  ;;  %v318_v56 = vrot.slane %v552_v13, 3 }
  0x1f   : > { %v306_v54 = vsel %vm292_vm2, %v303_v48, %v305_v51  ;;  %v304_v55 = vsel %vm292_vm2, %v302_v52, %v303_v48  ;;  %v315_v57 = vrot.slane %v557_v17, 3  ;;  %v294_v60 = vrot.slane %v526_v5, 3 }
  0x20   : > { %160 = vrot.lane.b32.xlu1 %v545_v10, %s491_s15  ;;  %158 = vrot.lane.b32.xlu0 %v547_v11, %s491_s15  ;;  %v319_v58 = vsel %vm292_vm2, %v316_v53, %v318_v56  ;;  %v296_v61 = vrot.slane %v571_v23, 3  ;;  %v293_v62 = vrot.slane %v518_v3, 3  ;;  %v357_v63 = vrot.slane %v526_v5, 4 }
  0x21   : > { %v317_v59 = vsel %vm292_vm2, %v315_v57, %v316_v53  ;;  %v359_v7 = vrot.slane %v571_v23, 4  ;;  %v356_v8 = vrot.slane %v518_v3, 4  ;;  %v370_v9 = vrot.slane %v524_v4, 4 }
  0x22   : > { %v640_v0 = vsel %vm292_vm2, %v294_v60, %v296_v61  ;;  %v643_v1 = vsel %vm292_vm2, %v293_v62, %v294_v60  ;;  %v372_v13 = vrot.slane %v232_v44, 4  ;;  %v369_v14 = vrot.slane %v516_v2, 4 }
  0x23   : > { %v360_v5 = vsel %vm346_vm3, %v357_v63, %v359_v7  ;;  %v358_v12 = vsel %vm346_vm3, %v356_v8, %v357_v63  ;;  %v344_v16 = vmul.f32 0.015625, %v528_v6  ;;  %v348_v4 = vrot.slane %v545_v10, 4 }
  0x24   : > { %191 = vrot.lane.b32.xlu1 %v188_v19, %s489_s13  ;;  %189 = vrot.lane.b32.xlu0 %v186_v20, %s489_s13  ;;  %v373_v3 = vsel %vm346_vm3, %v370_v9, %v372_v13  ;;  %v371_v15 = vsel %vm346_vm3, %v369_v14, %v370_v9  ;;  %v347_v18 = vrot.slane %v547_v11, 4 }
  0x25   : > { %v350_v17 = vrot.slane %v344_v16, 4 }
  0x27   : > { %v667_v2 = vsel %vm346_vm3, %v348_v4, %v350_v17 }
  0x28   : > { %210 = vrot.lane.b32.xlu1 %v207_v24, %s488_s12  ;;  %208 = vrot.lane.b32.xlu0 %v205_v25, %s488_s12 }
  0x2c   : > { %218 = vrot.lane.b32.xlu1 %v188_v19, %s490_s14  ;;  %216 = vrot.lane.b32.xlu0 %v186_v20, %s490_s14  ;;  %v670_v19 = vsel %vm346_vm3, %v347_v18, %v348_v4 }
  0x30   : > { %226 = vrot.lane.b32.xlu1 %v583_v29, %s491_s15  ;;  %224 = vrot.lane.b32.xlu0 %v586_v30, %s491_s15 }
  0x34   : > { %251 = vrot.lane.b32.xlu1 %v248_v37, %s489_s13  ;;  %249 = vrot.lane.b32.xlu0 %v246_v38, %s489_s13 }
  0x38   : > { %270 = vrot.lane.b32.xlu1 %v267_v42, %s488_s12  ;;  %268 = vrot.lane.b32.xlu0 %v265_v43, %s488_s12 }
  0x3c   : > { %278 = vrot.lane.b32.xlu1 %v248_v37, %s490_s14  ;;  %276 = vrot.lane.b32.xlu0 %v246_v38, %s490_s14 }
  0x40   : > { %286 = vrot.lane.b32.xlu1 %v611_v49, %s491_s15  ;;  %284 = vrot.lane.b32.xlu0 %v614_v50, %s491_s15 }
  0x44   : > { %309 = vrot.lane.b32.xlu1 %v306_v54, %s489_s13  ;;  %307 = vrot.lane.b32.xlu0 %v304_v55, %s489_s13 }
  0x48   : > { %322 = vrot.lane.b32.xlu1 %v319_v58, %s488_s12  ;;  %320 = vrot.lane.b32.xlu0 %v317_v59, %s488_s12 }
  0x4c   : > { %330 = vrot.lane.b32.xlu1 %v306_v54, %s490_s14  ;;  %328 = vrot.lane.b32.xlu0 %v304_v55, %s490_s14 }
  0x50   : > { %338 = vrot.lane.b32.xlu1 %v640_v0, %s491_s15  ;;  %336 = vrot.lane.b32.xlu0 %v643_v1, %s491_s15 }
  0x54   : > { %363 = vrot.lane.b32.xlu1 %v360_v5, %s489_s13  ;;  %361 = vrot.lane.b32.xlu0 %v358_v12, %s489_s13 }
  0x58   : > { %376 = vrot.lane.b32.xlu1 %v373_v3, %s488_s12  ;;  %374 = vrot.lane.b32.xlu0 %v371_v15, %s488_s12 }
  0x5c   : > { %384 = vrot.lane.b32.xlu1 %v360_v5, %s490_s14  ;;  %382 = vrot.lane.b32.xlu0 %v358_v12, %s490_s14 }
  0x60   : > { %392 = vrot.lane.b32.xlu1 %v667_v2, %s491_s15  ;;  %390 = vrot.lane.b32.xlu0 %v670_v19, %s491_s15 }
  0x86   : > { %v141_v6 = vpop.permute.xlu1 %140  ;;  %v129_v20 = vpop.permute.xlu0 %128 }
  0x87   : > { %v134_v28 = vadd.f32 %v129_v20, %v547_v11 }
  0x89   : > { %v146_v34 = vadd.f32 %v141_v6, %v134_v28 }
  0x8a   : > { %v143_v21 = vpop.permute.xlu1 %142  ;;  %v131_v22 = vpop.permute.xlu0 %130 }
  0x8b   : > { %v135_v25 = vadd.f32 %v131_v22, %v545_v10 }
  0x8d   : > { %v147_v31 = vadd.f32 %v143_v21, %v135_v25 }
  0x8e   : > { %v151_v23 = vpop.permute.xlu1 %150  ;;  %v149_v24 = vpop.permute.xlu0 %148 }
  0x8f   : > { %v155_v35 = vadd.f32 %v151_v23, %v147_v31  ;;  %v154_v36 = vadd.f32 %v149_v24, %v146_v34 }
  0x92   : > { %v161_v26 = vpop.permute.xlu1 %160  ;;  %v159_v27 = vpop.permute.xlu0 %158 }
  0x93   : > { %v165_v39 = vadd.f32 %v161_v26, %v155_v35  ;;  %v164_v40 = vadd.f32 %v159_v27, %v154_v36 }
  0x95   : > { %v177_v43 = vadd.f32 %v583_v29, %v165_v39  ;;  %v176_v10 = vadd.f32 %v586_v30, %v164_v40 }
  0x96   : > { %v192_v32 = vpop.permute.xlu1 %191  ;;  %v190_v33 = vpop.permute.xlu0 %189 }
  0x97   : > { %v196_v46 = vadd.f32 %v192_v32, %v177_v43  ;;  %v195_v11 = vadd.f32 %v190_v33, %v176_v10 }
  0x9a   : > { %v211_v37 = vpop.permute.xlu1 %210  ;;  %v209_v38 = vpop.permute.xlu0 %208 }
  0x9b   : > { %v215_v47 = vadd.f32 %v211_v37, %v196_v46  ;;  %v214_v48 = vadd.f32 %v209_v38, %v195_v11 }
  0x9e   : > { %v219_v41 = vpop.permute.xlu1 %218  ;;  %v217_v42 = vpop.permute.xlu0 %216 }
  0x9f   : > { %v223_v53 = vadd.f32 %v219_v41, %v215_v47  ;;  %v222_v54 = vadd.f32 %v217_v42, %v214_v48 }
  0xa2   : > { %v227_v44 = vpop.permute.xlu1 %226  ;;  %v225_v45 = vpop.permute.xlu0 %224 }
  0xa3   : > { %v231_v55 = vadd.f32 %v227_v44, %v223_v53  ;;  %v230_v56 = vadd.f32 %v225_v45, %v222_v54 }
  0xa5   : > { %v243_v59 = vadd.f32 %v611_v49, %v231_v55  ;;  %v242_v29 = vadd.f32 %v614_v50, %v230_v56 }
  0xa6   : > { %v252_v51 = vpop.permute.xlu1 %251  ;;  %v250_v52 = vpop.permute.xlu0 %249 }
  0xa7   : > { %v256_v61 = vadd.f32 %v252_v51, %v243_v59  ;;  %v255_v62 = vadd.f32 %v250_v52, %v242_v29 }
  0xaa   : > { %v271_v57 = vpop.permute.xlu1 %270  ;;  %v269_v58 = vpop.permute.xlu0 %268 }
  0xab   : > { %v275_v8 = vadd.f32 %v271_v57, %v256_v61  ;;  %v274_v9 = vadd.f32 %v269_v58, %v255_v62 }
  0xae   : > { %v279_v60 = vpop.permute.xlu1 %278  ;;  %v277_v30 = vpop.permute.xlu0 %276 }
  0xaf   : > { %v283_v5 = vadd.f32 %v279_v60, %v275_v8  ;;  %v282_v12 = vadd.f32 %v277_v30, %v274_v9 }
  0xb2   : > { %v287_v63 = vpop.permute.xlu1 %286  ;;  %v285_v7 = vpop.permute.xlu0 %284 }
  0xb3   : > { %v291_v3 = vadd.f32 %v287_v63, %v283_v5  ;;  %v290_v15 = vadd.f32 %v285_v7, %v282_v12 }
  0xb5   : > { %v301_v49 = vadd.f32 %v640_v0, %v291_v3  ;;  %v300_v50 = vadd.f32 %v643_v1, %v290_v15 }
  0xb6   : > { %v310_v13 = vpop.permute.xlu1 %309  ;;  %v308_v14 = vpop.permute.xlu0 %307 }
  0xb7   : > { %v314_v6 = vadd.f32 %v310_v13, %v301_v49  ;;  %v313_v20 = vadd.f32 %v308_v14, %v300_v50 }
  0xba   : > { %v323_v16 = vpop.permute.xlu1 %322  ;;  %v321_v4 = vpop.permute.xlu0 %320 }
  0xbb   : > { %v327_v21 = vadd.f32 %v323_v16, %v314_v6  ;;  %v326_v22 = vadd.f32 %v321_v4, %v313_v20 }
  0xbe   : > { %v331_v17 = vpop.permute.xlu1 %330  ;;  %v329_v18 = vpop.permute.xlu0 %328 }
  0xbf   : > { %v335_v25 = vadd.f32 %v331_v17, %v327_v21  ;;  %v334_v26 = vadd.f32 %v329_v18, %v326_v22 }
  0xc2   : > { %v339_v23 = vpop.permute.xlu1 %338  ;;  %v337_v24 = vpop.permute.xlu0 %336 }
  0xc3   : > { %v343_v27 = vadd.f32 %v339_v23, %v335_v25  ;;  %v342_v28 = vadd.f32 %v337_v24, %v334_v26 }
  0xc5   : > { %v355_v33 = vadd.f32 %v667_v2, %v343_v27  ;;  %v354_v0 = vadd.f32 %v670_v19, %v342_v28 }
  0xc6   : > { %v364_v31 = vpop.permute.xlu1 %363  ;;  %v362_v32 = vpop.permute.xlu0 %361 }
  0xc7   : > { %v368_v35 = vadd.f32 %v364_v31, %v355_v33  ;;  %v367_v36 = vadd.f32 %v362_v32, %v354_v0 }
  0xca   : > { %v377_v1 = vpop.permute.xlu1 %376  ;;  %v375_v34 = vpop.permute.xlu0 %374 }
  0xcb   : > { %v381_v39 = vadd.f32 %v377_v1, %v368_v35  ;;  %v380_v40 = vadd.f32 %v375_v34, %v367_v36 }
  0xce   : > { %v385_v37 = vpop.permute.xlu1 %384  ;;  %v383_v38 = vpop.permute.xlu0 %382 }
  0xcf   : > { %v389_v41 = vadd.f32 %v385_v37, %v381_v39  ;;  %v388_v42 = vadd.f32 %v383_v38, %v380_v40 }
  0xd2   : > { %v393_v43 = vpop.permute.xlu1 %392  ;;  %v391_v2 = vpop.permute.xlu0 %390 }
  0xd3   : > { %v397_v10 = vadd.f32 %v393_v43, %v389_v41  ;;  %v396_v19 = vadd.f32 %v391_v2, %v388_v42 }
  0xd5   : > { %400 = vst.msk [vmem:[%s116_s19 + $0x8] sm:$0xff] %vm398_vm4, %v397_v10  ;;  %399 = vst.msk [vmem:[%s116_s19] sm:$0xff] %vm398_vm4, %v396_v19 }
  0xd6 PF: > { %s11_s6 = sadd.s32 1, %s486_s6  }
  0xd7   : > { %p8_p4 = scmp.ge.s32.totalorder %s11_s6, 4  }
  0xd9   :  { %10 = sbr.rel (!%p8_p4) target bundleno = 1 (0x1), region = 54 }

// kernel: ega_forward.14
= control target key start
LH: loop header
LB: loop body
LE: loop exit
PB: predicated region body
PF: predicated region fallthrough
CT: control target
= control target key end

     0   :  { %s1996_s15 = smov 0   ;;  %s2714_s0 = inlined_call_operand.vmem [shape: f32[512,16], index: 0, kind: input, shape index: {}]   ;;  %s2715_s1 = inlined_call_operand.vmem [shape: f32[512,1], index: 1, kind: input, shape index: {}]   ;;  %s2716_s2 = inlined_call_operand.vmem [shape: f32[512,1], index: 2, kind: input, shape index: {}]   ;;  %s2717_s3 = inlined_call_operand.vmem [shape: f32[512,1], index: 3, kind: input, shape index: {}]   ;;  %s2718_s4 = inlined_call_operand.vmem [shape: bf16[512,48], index: 4, kind: output, shape index: {}]  }
   0x1 LB: > { %s1738_s16 = sadd.s32 4294967295, %s1966_s15   ;;  %p1742_p0 = scmp.ge.s32.totalorder %s1966_s15, 1  ;;  %s1966_s15 = sphi %s1996_s15, %s14_s15  }
   0x2   : > { %p196_p1 = scmp.lt.s32.totalorder %s1966_s15, 3 }
   0x4   : > { %p197_p2 = pnand %p1742_p0, %p196_p1 }
   0x5   : > { %s1743_s17 = sshll.u32 (!%p197_p2), %s1738_s16, 5  ;;  %v1968_v0 = vmov (!%p197_p2), 0   ;;  %vm683_vm0 = vcmask (!%p197_p2), 125952   ;;  %s1969_s6 = smov (!%p197_p2), 16   ;;  %vm1164_vm1 = vcmask (!%p197_p2), 257152   ;;  %vm1613_vm2 = vcmask (!%p197_p2), 388352  }
   0x6   : > { %200 = sbr.rel (%p197_p2) target bundleno = 587 (0x24b), region = 36  ;;  %1959 = vset.pattern.permute.xlu1 (!%p197_p2), %v1968_v0  ;;  %1958 = vset.pattern.permute.xlu0 (!%p197_p2), %v1968_v0  ;;  %p238_p3 = scmp.lt.s32.totalorder (!%p197_p2), %s1743_s17, 63 }
   0x7   : > { %s1970_s10 = smov (!%p197_p2), 32  }
   0xd   : > { %s2720_s17 = smov (!%p238_p3, %s1743_s17), 63 }
   0xe   : > { %s2007_s18 = sshll.u32 %s2720_s17, 3  ;;  %s1752_s28 = sshll.u32 %s2720_s17, 2 }
   0xf   : > { %s2013_s21 = scalar_lea.vmem %s2715_s1, %s2007_s18  ;;  %s2145_s24 = scalar_lea.vmem %s2716_s2, %s2007_s18 }
  0x10   : > { %v2016_v1 = vld [vmem:[%s2013_s21 + $0x10] sm:$0xff]  ;;  %v2019_v2 = vld [vmem:[%s2013_s21] sm:$0xff]  ;;  %v2024_v5 = vld [vmem:[%s2013_s21 + $0x18] sm:$0xff]  ;;  %s2217_s27 = scalar_lea.vmem %s2714_s0, %s2007_s18  ;;  %s2231_s5 = scalar_lea.vmem %s2718_s4, %s1752_s28 }
  0x11   : > { %v333_v3 = vsub.f32 1.0, %v2016_v1  ;;  %v331_v4 = vsub.f32 1.0, %v2019_v2  ;;  %v2027_v6 = vld [vmem:[%s2013_s21 + $0x8] sm:$0xff]  ;;  %v334_v7 = vsub.f32 1.0, %v2024_v5  ;;  %v2035_v10 = vld [vmem:[%s2013_s21 + $0x20] sm:$0xff]  ;;  %v2040_v13 = vld [vmem:[%s2013_s21 + $0x38] sm:$0xff]  ;;  %s2483_s9 = scalar_lea.vmem %s2717_s3, %s2007_s18 }
  0x12   : > { %v332_v8 = vsub.f32 1.0, %v2027_v6  ;;  %v2032_v9 = vld [vmem:[%s2013_s21 + $0x28] sm:$0xff]  ;;  %v335_v12 = vsub.f32 1.0, %v2035_v10  ;;  %v2043_v14 = vld [vmem:[%s2013_s21 + $0x30] sm:$0xff]  ;;  %v338_v15 = vsub.f32 1.0, %v2040_v13  ;;  %v2051_v18 = vld [vmem:[%s2013_s21 + $0x40] sm:$0xff] }
  0x13   : > { %375 = vperm.xlu1 %1959, %v333_v3   ;;  %365 = vperm.xlu0 %1958, %v331_v4   ;;  %v336_v11 = vsub.f32 1.0, %v2032_v9  ;;  %v337_v16 = vsub.f32 1.0, %v2043_v14  ;;  %v2048_v17 = vld [vmem:[%s2013_s21 + $0x48] sm:$0xff]  ;;  %v339_v20 = vsub.f32 1.0, %v2051_v18  ;;  %v2056_v21 = vld [vmem:[%s2013_s21 + $0x58] sm:$0xff]  ;;  %v2059_v22 = vld [vmem:[%s2013_s21 + $0x50] sm:$0xff] }
  0x14   : > { %v340_v19 = vsub.f32 1.0, %v2048_v17  ;;  %v342_v23 = vsub.f32 1.0, %v2056_v21  ;;  %v341_v24 = vsub.f32 1.0, %v2059_v22  ;;  %v2064_v25 = vld [vmem:[%s2013_s21 + $0x68] sm:$0xff]  ;;  %v2067_v26 = vld [vmem:[%s2013_s21 + $0x60] sm:$0xff]  ;;  %v2072_v29 = vld [vmem:[%s2013_s21 + $0x78] sm:$0xff] }
  0x15   : > { %v344_v27 = vsub.f32 1.0, %v2064_v25  ;;  %v343_v28 = vsub.f32 1.0, %v2067_v26  ;;  %v2075_v30 = vld [vmem:[%s2013_s21 + $0x70] sm:$0xff]  ;;  %v346_v31 = vsub.f32 1.0, %v2072_v29  ;;  %v2080_v33 = vld [vmem:[%s2013_s21 + $0x88] sm:$0xff]  ;;  %v2083_v34 = vld [vmem:[%s2013_s21 + $0x80] sm:$0xff] }
  0x16   : > { %v345_v32 = vsub.f32 1.0, %v2075_v30  ;;  %v348_v35 = vsub.f32 1.0, %v2080_v33  ;;  %v347_v36 = vsub.f32 1.0, %v2083_v34  ;;  %v2088_v37 = vld [vmem:[%s2013_s21 + $0x98] sm:$0xff]  ;;  %v2091_v38 = vld [vmem:[%s2013_s21 + $0x90] sm:$0xff]  ;;  %v2096_v41 = vld [vmem:[%s2013_s21 + $0xa8] sm:$0xff] }
  0x17   : > { %380 = vperm.xlu1 %1959, %v334_v7   ;;  %370 = vperm.xlu0 %1958, %v332_v8   ;;  %v350_v39 = vsub.f32 1.0, %v2088_v37  ;;  %v349_v40 = vsub.f32 1.0, %v2091_v38  ;;  %v2099_v42 = vld [vmem:[%s2013_s21 + $0xa0] sm:$0xff]  ;;  %v352_v43 = vsub.f32 1.0, %v2096_v41  ;;  %v2104_v45 = vld [vmem:[%s2013_s21 + $0xb8] sm:$0xff]  ;;  %v2107_v46 = vld [vmem:[%s2013_s21 + $0xb0] sm:$0xff] }
  0x18   : > { %v351_v44 = vsub.f32 1.0, %v2099_v42  ;;  %v354_v47 = vsub.f32 1.0, %v2104_v45  ;;  %v353_v48 = vsub.f32 1.0, %v2107_v46  ;;  %v2112_v49 = vld [vmem:[%s2013_s21 + $0xc8] sm:$0xff]  ;;  %v2115_v50 = vld [vmem:[%s2013_s21 + $0xc0] sm:$0xff]  ;;  %v2120_v53 = vld [vmem:[%s2013_s21 + $0xd8] sm:$0xff] }
  0x19   : > { %v356_v51 = vsub.f32 1.0, %v2112_v49  ;;  %v355_v52 = vsub.f32 1.0, %v2115_v50  ;;  %v2123_v54 = vld [vmem:[%s2013_s21 + $0xd0] sm:$0xff]  ;;  %v358_v55 = vsub.f32 1.0, %v2120_v53  ;;  %v2128_v57 = vld [vmem:[%s2013_s21 + $0xe8] sm:$0xff]  ;;  %v2131_v58 = vld [vmem:[%s2013_s21 + $0xe0] sm:$0xff] }
  0x1a   : > { %v357_v56 = vsub.f32 1.0, %v2123_v54  ;;  %v360_v59 = vsub.f32 1.0, %v2128_v57  ;;  %v359_v60 = vsub.f32 1.0, %v2131_v58  ;;  %v2136_v61 = vld [vmem:[%s2013_s21 + $0xf8] sm:$0xff]  ;;  %v2139_v62 = vld [vmem:[%s2013_s21 + $0xf0] sm:$0xff]  ;;  %v716_v3 = vld [vmem:[%s2145_s24] sm:$0xff] }
  0x1b   : > { %390 = vperm.xlu1 %1959, %v336_v11   ;;  %385 = vperm.xlu0 %1958, %v335_v12   ;;  %v362_v63 = vsub.f32 1.0, %v2136_v61  ;;  %v361_v0 = vsub.f32 1.0, %v2139_v62  ;;  %v717_v4 = vld [vmem:[%s2145_s24 + $0x8] sm:$0xff]  ;;  %v748_v7 = vsub.f32 %v2019_v2, %v716_v3  ;;  %v718_v11 = vld [vmem:[%s2145_s24 + $0x10] sm:$0xff]  ;;  %v719_v12 = vld [vmem:[%s2145_s24 + $0x18] sm:$0xff] }
  0x1c   : > { %v749_v8 = vsub.f32 %v2027_v6, %v717_v4  ;;  %v744_v4 = vld [vmem:[%s2145_s24 + $0xe0] sm:$0xff] }
  0x1f   : > { %400 = vperm.xlu1 %1959, %v338_v15   ;;  %395 = vperm.xlu0 %1958, %v337_v16   ;;  %v750_v15 = vsub.f32 %v2016_v1, %v718_v11  ;;  %v751_v16 = vsub.f32 %v2024_v5, %v719_v12 }
  0x23   : > { %410 = vperm.xlu1 %1959, %v340_v19   ;;  %405 = vperm.xlu0 %1958, %v339_v20   ;;  %v721_v19 = vld [vmem:[%s2145_s24 + $0x28] sm:$0xff]  ;;  %v720_v20 = vld [vmem:[%s2145_s24 + $0x20] sm:$0xff] }
  0x24   : > { %v753_v2 = vsub.f32 %v2032_v9, %v721_v19  ;;  %v752_v6 = vsub.f32 %v2035_v10, %v720_v20 }
  0x27   : > { %420 = vperm.xlu1 %1959, %v342_v23   ;;  %415 = vperm.xlu0 %1958, %v341_v24   ;;  %v723_v23 = vld [vmem:[%s2145_s24 + $0x38] sm:$0xff]  ;;  %v722_v24 = vld [vmem:[%s2145_s24 + $0x30] sm:$0xff] }
  0x28   : > { %v755_v1 = vsub.f32 %v2040_v13, %v723_v23  ;;  %v754_v5 = vsub.f32 %v2043_v14, %v722_v24 }
  0x2b   : > { %430 = vperm.xlu1 %1959, %v344_v27   ;;  %425 = vperm.xlu0 %1958, %v343_v28   ;;  %v725_v27 = vld [vmem:[%s2145_s24 + $0x48] sm:$0xff]  ;;  %v724_v28 = vld [vmem:[%s2145_s24 + $0x40] sm:$0xff] }
  0x2c   : > { %v757_v9 = vsub.f32 %v2048_v17, %v725_v27  ;;  %v756_v10 = vsub.f32 %v2051_v18, %v724_v28 }
  0x2f   : > { %440 = vperm.xlu1 %1959, %v346_v31   ;;  %435 = vperm.xlu0 %1958, %v345_v32   ;;  %v727_v31 = vld [vmem:[%s2145_s24 + $0x58] sm:$0xff]  ;;  %v726_v32 = vld [vmem:[%s2145_s24 + $0x50] sm:$0xff] }
  0x30   : > { %v759_v13 = vsub.f32 %v2056_v21, %v727_v31  ;;  %v758_v14 = vsub.f32 %v2059_v22, %v726_v32 }
  0x33   : > { %450 = vperm.xlu1 %1959, %v348_v35   ;;  %445 = vperm.xlu0 %1958, %v347_v36   ;;  %v729_v35 = vld [vmem:[%s2145_s24 + $0x68] sm:$0xff]  ;;  %v728_v36 = vld [vmem:[%s2145_s24 + $0x60] sm:$0xff] }
  0x34   : > { %v761_v17 = vsub.f32 %v2064_v25, %v729_v35  ;;  %v760_v18 = vsub.f32 %v2067_v26, %v728_v36 }
  0x37   : > { %460 = vperm.xlu1 %1959, %v350_v39   ;;  %455 = vperm.xlu0 %1958, %v349_v40   ;;  %v731_v39 = vld [vmem:[%s2145_s24 + $0x78] sm:$0xff]  ;;  %v730_v40 = vld [vmem:[%s2145_s24 + $0x70] sm:$0xff] }
  0x38   : > { %v763_v21 = vsub.f32 %v2072_v29, %v731_v39  ;;  %v762_v22 = vsub.f32 %v2075_v30, %v730_v40 }
  0x3b   : > { %470 = vperm.xlu1 %1959, %v352_v43   ;;  %465 = vperm.xlu0 %1958, %v351_v44   ;;  %v733_v43 = vld [vmem:[%s2145_s24 + $0x88] sm:$0xff]  ;;  %v732_v44 = vld [vmem:[%s2145_s24 + $0x80] sm:$0xff] }
  0x3c   : > { %v765_v25 = vsub.f32 %v2080_v33, %v733_v43  ;;  %v764_v26 = vsub.f32 %v2083_v34, %v732_v44 }
  0x3f   : > { %480 = vperm.xlu1 %1959, %v354_v47   ;;  %475 = vperm.xlu0 %1958, %v353_v48   ;;  %v735_v47 = vld [vmem:[%s2145_s24 + $0x98] sm:$0xff]  ;;  %v734_v48 = vld [vmem:[%s2145_s24 + $0x90] sm:$0xff] }
  0x40   : > { %v767_v29 = vsub.f32 %v2088_v37, %v735_v47  ;;  %v766_v30 = vsub.f32 %v2091_v38, %v734_v48 }
  0x43   : > { %490 = vperm.xlu1 %1959, %v356_v51   ;;  %485 = vperm.xlu0 %1958, %v355_v52   ;;  %v737_v51 = vld [vmem:[%s2145_s24 + $0xa8] sm:$0xff]  ;;  %v736_v52 = vld [vmem:[%s2145_s24 + $0xa0] sm:$0xff] }
  0x44   : > { %v769_v33 = vsub.f32 %v2096_v41, %v737_v51  ;;  %v768_v34 = vsub.f32 %v2099_v42, %v736_v52 }
  0x47   : > { %500 = vperm.xlu1 %1959, %v358_v55   ;;  %495 = vperm.xlu0 %1958, %v357_v56   ;;  %v739_v55 = vld [vmem:[%s2145_s24 + $0xb8] sm:$0xff]  ;;  %v738_v56 = vld [vmem:[%s2145_s24 + $0xb0] sm:$0xff] }
  0x48   : > { %v771_v37 = vsub.f32 %v2104_v45, %v739_v55  ;;  %v770_v38 = vsub.f32 %v2107_v46, %v738_v56  ;;  %v745_v46 = vld [vmem:[%s2145_s24 + $0xe8] sm:$0xff] }
  0x4b   : > { %510 = vperm.xlu1 %1959, %v360_v59   ;;  %505 = vperm.xlu0 %1958, %v359_v60   ;;  %v741_v59 = vld [vmem:[%s2145_s24 + $0xc8] sm:$0xff]  ;;  %v740_v60 = vld [vmem:[%s2145_s24 + $0xc0] sm:$0xff] }
  0x4c   : > { %v773_v41 = vsub.f32 %v2112_v49, %v741_v59  ;;  %v772_v42 = vsub.f32 %v2115_v50, %v740_v60  ;;  %v776_v49 = vsub.f32 %v2131_v58, %v744_v4  ;;  %v746_v50 = vld [vmem:[%s2145_s24 + $0xf0] sm:$0xff] }
  0x4d   : > { %v778_v12 = vsub.f32 %v2139_v62, %v746_v50 }
  0x4f   : > { %520 = vperm.xlu1 %1959, %v362_v63   ;;  %515 = vperm.xlu0 %1958, %v361_v0   ;;  %v743_v63 = vld [vmem:[%s2145_s24 + $0xd8] sm:$0xff]  ;;  %v742_v0 = vld [vmem:[%s2145_s24 + $0xd0] sm:$0xff] }
  0x50   : > { %v775_v3 = vsub.f32 %v2120_v53, %v743_v63  ;;  %v774_v45 = vsub.f32 %v2123_v54, %v742_v0  ;;  %v2220_v53 = vld [vmem:[%s2217_s27 + $0x10] sm:$0xff]  ;;  %v2223_v54 = vld [vmem:[%s2217_s27] sm:$0xff] }
  0x53   : > { %787 = vperm.xlu1 %1959, %v749_v8   ;;  %782 = vperm.xlu0 %1958, %v748_v7   ;;  %v777_v7 = vsub.f32 %v2128_v57, %v745_v46  ;;  %v747_v8 = vld [vmem:[%s2145_s24 + $0xf8] sm:$0xff] }
  0x54   : > { %v779_v11 = vsub.f32 %v2136_v61, %v747_v8 }
  0x57   : > { %797 = vperm.xlu1 %1959, %v751_v16   ;;  %792 = vperm.xlu0 %1958, %v750_v15   ;;  %v2234_v15 = vld [vmem:[%s2217_s27 + $0x18] sm:$0xff]  ;;  %v2237_v16 = vld [vmem:[%s2217_s27 + $0x8] sm:$0xff] }
  0x5b   : > { %807 = vperm.xlu1 %1959, %v753_v2   ;;  %802 = vperm.xlu0 %1958, %v752_v6  }
  0x5f   : > { %817 = vperm.xlu1 %1959, %v755_v1   ;;  %812 = vperm.xlu0 %1958, %v754_v5   ;;  %v2246_v1 = vld [vmem:[%s2217_s27 + $0x28] sm:$0xff]  ;;  %v2249_v5 = vld [vmem:[%s2217_s27 + $0x20] sm:$0xff] }
  0x63   : > { %827 = vperm.xlu1 %1959, %v757_v9   ;;  %822 = vperm.xlu0 %1958, %v756_v10  }
  0x67   : > { %837 = vperm.xlu1 %1959, %v759_v13   ;;  %832 = vperm.xlu0 %1958, %v758_v14   ;;  %v2258_v13 = vld [vmem:[%s2217_s27 + $0x38] sm:$0xff]  ;;  %v2261_v14 = vld [vmem:[%s2217_s27 + $0x30] sm:$0xff] }
  0x6b   : > { %847 = vperm.xlu1 %1959, %v761_v17   ;;  %842 = vperm.xlu0 %1958, %v760_v18  }
  0x6f   : > { %857 = vperm.xlu1 %1959, %v763_v21   ;;  %852 = vperm.xlu0 %1958, %v762_v22   ;;  %v2270_v21 = vld [vmem:[%s2217_s27 + $0x48] sm:$0xff]  ;;  %v2273_v22 = vld [vmem:[%s2217_s27 + $0x40] sm:$0xff] }
  0x73   : > { %867 = vperm.xlu1 %1959, %v765_v25   ;;  %862 = vperm.xlu0 %1958, %v764_v26  }
  0x77   : > { %877 = vperm.xlu1 %1959, %v767_v29   ;;  %872 = vperm.xlu0 %1958, %v766_v30   ;;  %v2282_v29 = vld [vmem:[%s2217_s27 + $0x58] sm:$0xff]  ;;  %v2285_v30 = vld [vmem:[%s2217_s27 + $0x50] sm:$0xff] }
  0x7b   : > { %887 = vperm.xlu1 %1959, %v769_v33   ;;  %882 = vperm.xlu0 %1958, %v768_v34  }
  0x7f   : > { %897 = vperm.xlu1 %1959, %v771_v37   ;;  %892 = vperm.xlu0 %1958, %v770_v38   ;;  %v2294_v37 = vld [vmem:[%s2217_s27 + $0x68] sm:$0xff]  ;;  %v2297_v38 = vld [vmem:[%s2217_s27 + $0x60] sm:$0xff] }
  0x83   : > { %907 = vperm.xlu1 %1959, %v773_v41   ;;  %902 = vperm.xlu0 %1958, %v772_v42  }
  0x87   : > { %917 = vperm.xlu1 %1959, %v775_v3   ;;  %912 = vperm.xlu0 %1958, %v774_v45   ;;  %v2306_v3 = vld [vmem:[%s2217_s27 + $0x78] sm:$0xff]  ;;  %v2309_v45 = vld [vmem:[%s2217_s27 + $0x70] sm:$0xff] }
  0x8b   : > { %927 = vperm.xlu1 %1959, %v777_v7   ;;  %922 = vperm.xlu0 %1958, %v776_v49  }
  0x8f   : > { %937 = vperm.xlu1 %1959, %v779_v11   ;;  %932 = vperm.xlu0 %1958, %v778_v12   ;;  %v2318_v11 = vld [vmem:[%s2217_s27 + $0x88] sm:$0xff]  ;;  %v2321_v12 = vld [vmem:[%s2217_s27 + $0x80] sm:$0xff] }
  0x92   : > { %v376_v57 = vpop.permute.xlu1 %375  ;;  %v366_v58 = vpop.permute.xlu0 %365 }
  0x93   : > { %v525_v61 = vmul.f32 %v376_v57, %v2220_v53  ;;  %v523_v62 = vmul.f32 %v366_v58, %v2223_v54 }
  0x95   : > { %v1853_v19 = vpack.c.bf16 %v525_v61, %v525_v61  ;;  %v1851_v20 = vpack.c.bf16 %v523_v62, %v523_v62 }
  0x96   : > { %v381_v2 = vpop.permute.xlu1 %380  ;;  %v371_v6 = vpop.permute.xlu0 %370 }
  0x97   : > { %686 = vst.msk [vmem:[%s2231_s5 + $0x8] sm:$0xf] %vm683_vm0, %v1853_v19  ;;  %684 = vst.msk [vmem:[%s2231_s5] sm:$0xf] %vm683_vm0, %v1851_v20  ;;  %v526_v23 = vmul.f32 %v381_v2, %v2234_v15  ;;  %v524_v24 = vmul.f32 %v371_v6, %v2237_v16  ;;  %v2330_v2 = vld [vmem:[%s2217_s27 + $0x98] sm:$0xff]  ;;  %v2333_v6 = vld [vmem:[%s2217_s27 + $0x90] sm:$0xff] }
  0x99   : > { %v1854_v27 = vpack.c.bf16 %v526_v23, %v526_v23  ;;  %v1852_v28 = vpack.c.bf16 %v524_v24, %v524_v24 }
  0x9a   : > { %v391_v9 = vpop.permute.xlu1 %390  ;;  %v386_v10 = vpop.permute.xlu0 %385 }
  0x9b   : > { %687 = vst.msk [vmem:[%s2231_s5 + $0xc] sm:$0xf] %vm683_vm0, %v1854_v27  ;;  %685 = vst.msk [vmem:[%s2231_s5 + $0x4] sm:$0xf] %vm683_vm0, %v1852_v28  ;;  %v528_v31 = vmul.f32 %v391_v9, %v2246_v1  ;;  %v527_v32 = vmul.f32 %v386_v10, %v2249_v5 }
  0x9d   : > { %v1856_v35 = vpack.c.bf16 %v528_v31, %v528_v31  ;;  %v1855_v36 = vpack.c.bf16 %v527_v32, %v527_v32  ;;  %v2342_v31 = vld [vmem:[%s2217_s27 + $0xa8] sm:$0xff]  ;;  %v2345_v32 = vld [vmem:[%s2217_s27 + $0xa0] sm:$0xff] }
  0x9e   : > { %v401_v17 = vpop.permute.xlu1 %400  ;;  %v396_v18 = vpop.permute.xlu0 %395 }
  0x9f   : > { %689 = vst.msk [vmem:[%s2231_s5 + $0x14] sm:$0xf] %vm683_vm0, %v1856_v35  ;;  %688 = vst.msk [vmem:[%s2231_s5 + $0x10] sm:$0xf] %vm683_vm0, %v1855_v36  ;;  %v530_v39 = vmul.f32 %v401_v17, %v2258_v13  ;;  %v529_v40 = vmul.f32 %v396_v18, %v2261_v14 }
  0xa1   : > { %v1858_v43 = vpack.c.bf16 %v530_v39, %v530_v39  ;;  %v1857_v44 = vpack.c.bf16 %v529_v40, %v529_v40 }
  0xa2   : > { %v411_v25 = vpop.permute.xlu1 %410  ;;  %v406_v26 = vpop.permute.xlu0 %405 }
  0xa3   : > { %691 = vst.msk [vmem:[%s2231_s5 + $0x1c] sm:$0xf] %vm683_vm0, %v1858_v43  ;;  %690 = vst.msk [vmem:[%s2231_s5 + $0x18] sm:$0xf] %vm683_vm0, %v1857_v44  ;;  %v532_v47 = vmul.f32 %v411_v25, %v2270_v21  ;;  %v531_v48 = vmul.f32 %v406_v26, %v2273_v22  ;;  %v2354_v43 = vld [vmem:[%s2217_s27 + $0xb8] sm:$0xff]  ;;  %v2357_v44 = vld [vmem:[%s2217_s27 + $0xb0] sm:$0xff] }
  0xa5   : > { %v1860_v51 = vpack.c.bf16 %v532_v47, %v532_v47  ;;  %v1859_v52 = vpack.c.bf16 %v531_v48, %v531_v48 }
  0xa6   : > { %v421_v33 = vpop.permute.xlu1 %420  ;;  %v416_v34 = vpop.permute.xlu0 %415 }
  0xa7   : > { %693 = vst.msk [vmem:[%s2231_s5 + $0x24] sm:$0xf] %vm683_vm0, %v1860_v51  ;;  %692 = vst.msk [vmem:[%s2231_s5 + $0x20] sm:$0xf] %vm683_vm0, %v1859_v52  ;;  %v534_v55 = vmul.f32 %v421_v33, %v2282_v29  ;;  %v533_v56 = vmul.f32 %v416_v34, %v2285_v30  ;;  %v2366_v33 = vld [vmem:[%s2217_s27 + $0xc8] sm:$0xff]  ;;  %v2369_v34 = vld [vmem:[%s2217_s27 + $0xc0] sm:$0xff] }
  0xa9   : > { %v1862_v59 = vpack.c.bf16 %v534_v55, %v534_v55  ;;  %v1861_v60 = vpack.c.bf16 %v533_v56, %v533_v56 }
  0xaa   : > { %v431_v41 = vpop.permute.xlu1 %430  ;;  %v426_v42 = vpop.permute.xlu0 %425 }
  0xab   : > { %695 = vst.msk [vmem:[%s2231_s5 + $0x2c] sm:$0xf] %vm683_vm0, %v1862_v59  ;;  %694 = vst.msk [vmem:[%s2231_s5 + $0x28] sm:$0xf] %vm683_vm0, %v1861_v60  ;;  %v536_v63 = vmul.f32 %v431_v41, %v2294_v37  ;;  %v535_v0 = vmul.f32 %v426_v42, %v2297_v38 }
  0xad   : > { %v1864_v46 = vpack.c.bf16 %v536_v63, %v536_v63  ;;  %v1863_v4 = vpack.c.bf16 %v535_v0, %v535_v0  ;;  %v2378_v63 = vld [vmem:[%s2217_s27 + $0xd8] sm:$0xff]  ;;  %v2381_v0 = vld [vmem:[%s2217_s27 + $0xd0] sm:$0xff] }
  0xae   : > { %v441_v7 = vpop.permute.xlu1 %440  ;;  %v436_v49 = vpop.permute.xlu0 %435 }
  0xaf   : > { %697 = vst.msk [vmem:[%s2231_s5 + $0x34] sm:$0xf] %vm683_vm0, %v1864_v46  ;;  %696 = vst.msk [vmem:[%s2231_s5 + $0x30] sm:$0xf] %vm683_vm0, %v1863_v4  ;;  %v538_v8 = vmul.f32 %v441_v7, %v2306_v3  ;;  %v537_v50 = vmul.f32 %v436_v49, %v2309_v45 }
  0xb1   : > { %v1866_v57 = vpack.c.bf16 %v538_v8, %v538_v8  ;;  %v1865_v58 = vpack.c.bf16 %v537_v50, %v537_v50 }
  0xb2   : > { %v451_v61 = vpop.permute.xlu1 %450  ;;  %v446_v62 = vpop.permute.xlu0 %445 }
  0xb3   : > { %699 = vst.msk [vmem:[%s2231_s5 + $0x3c] sm:$0xf] %vm683_vm0, %v1866_v57  ;;  %698 = vst.msk [vmem:[%s2231_s5 + $0x38] sm:$0xf] %vm683_vm0, %v1865_v58  ;;  %v540_v19 = vmul.f32 %v451_v61, %v2318_v11  ;;  %v539_v20 = vmul.f32 %v446_v62, %v2321_v12  ;;  %v2390_v57 = vld [vmem:[%s2217_s27 + $0xe8] sm:$0xff]  ;;  %v2393_v58 = vld [vmem:[%s2217_s27 + $0xe0] sm:$0xff] }
  0xb5   : > { %v1868_v23 = vpack.c.bf16 %v540_v19, %v540_v19  ;;  %v1867_v24 = vpack.c.bf16 %v539_v20, %v539_v20 }
  0xb6   : > { %v461_v27 = vpop.permute.xlu1 %460  ;;  %v456_v28 = vpop.permute.xlu0 %455 }
  0xb7   : > { %701 = vst.msk [vmem:[%s2231_s5 + $0x44] sm:$0xf] %vm683_vm0, %v1868_v23  ;;  %700 = vst.msk [vmem:[%s2231_s5 + $0x40] sm:$0xf] %vm683_vm0, %v1867_v24  ;;  %v542_v9 = vmul.f32 %v461_v27, %v2330_v2  ;;  %v541_v10 = vmul.f32 %v456_v28, %v2333_v6  ;;  %v2402_v27 = vld [vmem:[%s2217_s27 + $0xf8] sm:$0xff]  ;;  %v2405_v28 = vld [vmem:[%s2217_s27 + $0xf0] sm:$0xff] }
  0xb9   : > { %v1870_v35 = vpack.c.bf16 %v542_v9, %v542_v9  ;;  %v1869_v36 = vpack.c.bf16 %v541_v10, %v541_v10 }
  0xba   : > { %v471_v17 = vpop.permute.xlu1 %470  ;;  %v466_v18 = vpop.permute.xlu0 %465 }
  0xbb   : > { %703 = vst.msk [vmem:[%s2231_s5 + $0x4c] sm:$0xf] %vm683_vm0, %v1870_v35  ;;  %702 = vst.msk [vmem:[%s2231_s5 + $0x48] sm:$0xf] %vm683_vm0, %v1869_v36  ;;  %v544_v39 = vmul.f32 %v471_v17, %v2342_v31  ;;  %v543_v40 = vmul.f32 %v466_v18, %v2345_v32 }
  0xbd   : > { %v1872_v25 = vpack.c.bf16 %v544_v39, %v544_v39  ;;  %v1871_v26 = vpack.c.bf16 %v543_v40, %v543_v40 }
  0xbe   : > { %v481_v47 = vpop.permute.xlu1 %480  ;;  %v476_v48 = vpop.permute.xlu0 %475 }
  0xbf   : > { %705 = vst.msk [vmem:[%s2231_s5 + $0x54] sm:$0xf] %vm683_vm0, %v1872_v25  ;;  %704 = vst.msk [vmem:[%s2231_s5 + $0x50] sm:$0xf] %vm683_vm0, %v1871_v26  ;;  %v546_v51 = vmul.f32 %v481_v47, %v2354_v43  ;;  %v545_v52 = vmul.f32 %v476_v48, %v2357_v44 }
  0xc1   : > { %v1874_v55 = vpack.c.bf16 %v546_v51, %v546_v51  ;;  %v1873_v56 = vpack.c.bf16 %v545_v52, %v545_v52 }
  0xc2   : > { %v491_v59 = vpop.permute.xlu1 %490  ;;  %v486_v60 = vpop.permute.xlu0 %485 }
  0xc3   : > { %707 = vst.msk [vmem:[%s2231_s5 + $0x5c] sm:$0xf] %vm683_vm0, %v1874_v55  ;;  %706 = vst.msk [vmem:[%s2231_s5 + $0x58] sm:$0xf] %vm683_vm0, %v1873_v56  ;;  %v548_v41 = vmul.f32 %v491_v59, %v2366_v33  ;;  %v547_v42 = vmul.f32 %v486_v60, %v2369_v34 }
  0xc5   : > { %v1876_v46 = vpack.c.bf16 %v548_v41, %v548_v41  ;;  %v1875_v4 = vpack.c.bf16 %v547_v42, %v547_v42 }
  0xc6   : > { %v501_v7 = vpop.permute.xlu1 %500  ;;  %v496_v49 = vpop.permute.xlu0 %495 }
  0xc7   : > { %709 = vst.msk [vmem:[%s2231_s5 + $0x64] sm:$0xf] %vm683_vm0, %v1876_v46  ;;  %708 = vst.msk [vmem:[%s2231_s5 + $0x60] sm:$0xf] %vm683_vm0, %v1875_v4  ;;  %v550_v8 = vmul.f32 %v501_v7, %v2378_v63  ;;  %v549_v50 = vmul.f32 %v496_v49, %v2381_v0 }
  0xc9   : > { %v1878_v61 = vpack.c.bf16 %v550_v8, %v550_v8  ;;  %v1877_v62 = vpack.c.bf16 %v549_v50, %v549_v50 }
  0xca   : > { %v511_v19 = vpop.permute.xlu1 %510  ;;  %v506_v20 = vpop.permute.xlu0 %505 }
  0xcb   : > { %711 = vst.msk [vmem:[%s2231_s5 + $0x6c] sm:$0xf] %vm683_vm0, %v1878_v61  ;;  %710 = vst.msk [vmem:[%s2231_s5 + $0x68] sm:$0xf] %vm683_vm0, %v1877_v62  ;;  %v552_v23 = vmul.f32 %v511_v19, %v2390_v57  ;;  %v551_v24 = vmul.f32 %v506_v20, %v2393_v58 }
  0xcd   : > { %v1880_v9 = vpack.c.bf16 %v552_v23, %v552_v23  ;;  %v1879_v10 = vpack.c.bf16 %v551_v24, %v551_v24 }
  0xce   : > { %v521_v35 = vpop.permute.xlu1 %520  ;;  %v516_v36 = vpop.permute.xlu0 %515 }
  0xcf   : > { %713 = vst.msk [vmem:[%s2231_s5 + $0x74] sm:$0xf] %vm683_vm0, %v1880_v9  ;;  %712 = vst.msk [vmem:[%s2231_s5 + $0x70] sm:$0xf] %vm683_vm0, %v1879_v10  ;;  %v554_v17 = vmul.f32 %v521_v35, %v2402_v27  ;;  %v553_v18 = vmul.f32 %v516_v36, %v2405_v28 }
  0xd1   : > { %v1882_v39 = vpack.c.bf16 %v554_v17, %v554_v17  ;;  %v1881_v40 = vpack.c.bf16 %v553_v18, %v553_v18 }
  0xd2   : > { %v788_v25 = vpop.permute.xlu1 %787  ;;  %v783_v26 = vpop.permute.xlu0 %782 }
  0xd3   : > { %715 = vst.msk [vmem:[%s2231_s5 + $0x7c] sm:$0xf] %vm683_vm0, %v1882_v39  ;;  %714 = vst.msk [vmem:[%s2231_s5 + $0x78] sm:$0xf] %vm683_vm0, %v1881_v40  ;;  %v941_v47 = vmul.f32 %v788_v25, %v2237_v16  ;;  %v940_v48 = vmul.f32 %v783_v26, %v2223_v54 }
  0xd5   : > { %v1884_v51 = vpack.c.bf16 %v941_v47, %v941_v47  ;;  %v1883_v52 = vpack.c.bf16 %v940_v48, %v940_v48 }
  0xd6   : > { %v798_v55 = vpop.permute.xlu1 %797  ;;  %v793_v56 = vpop.permute.xlu0 %792 }
  0xd7   : > { %v943_v59 = vmul.f32 %v798_v55, %v2234_v15  ;;  %v942_v60 = vmul.f32 %v793_v56, %v2220_v53  ;;  %1070 = vrot.lane.b32.xlu1 %v1884_v51, %s1969_s6  ;;  %1068 = vrot.lane.b32.xlu0 %v1883_v52, %s1969_s6 }
  0xd9   : > { %v1886_v41 = vpack.c.bf16 %v943_v59, %v943_v59  ;;  %v1885_v42 = vpack.c.bf16 %v942_v60, %v942_v60 }
  0xda   : > { %v808_v46 = vpop.permute.xlu1 %807  ;;  %v803_v4 = vpop.permute.xlu0 %802 }
  0xdb   : > { %v945_v7 = vmul.f32 %v808_v46, %v2246_v1  ;;  %v944_v49 = vmul.f32 %v803_v4, %v2249_v5  ;;  %1074 = vrot.lane.b32.xlu1 %v1886_v41, %s1969_s6  ;;  %1072 = vrot.lane.b32.xlu0 %v1885_v42, %s1969_s6 }
  0xdd   : > { %v1888_v8 = vpack.c.bf16 %v945_v7, %v945_v7  ;;  %v1887_v50 = vpack.c.bf16 %v944_v49, %v944_v49 }
  0xde   : > { %v818_v61 = vpop.permute.xlu1 %817  ;;  %v813_v62 = vpop.permute.xlu0 %812 }
  0xdf   : > { %v947_v19 = vmul.f32 %v818_v61, %v2258_v13  ;;  %v946_v20 = vmul.f32 %v813_v62, %v2261_v14  ;;  %1078 = vrot.lane.b32.xlu1 %v1888_v8, %s1969_s6  ;;  %1076 = vrot.lane.b32.xlu0 %v1887_v50, %s1969_s6 }
  0xe1   : > { %v1890_v23 = vpack.c.bf16 %v947_v19, %v947_v19  ;;  %v1889_v24 = vpack.c.bf16 %v946_v20, %v946_v20 }
  0xe2   : > { %v828_v9 = vpop.permute.xlu1 %827  ;;  %v823_v10 = vpop.permute.xlu0 %822 }
  0xe3   : > { %v949_v35 = vmul.f32 %v828_v9, %v2270_v21  ;;  %v948_v36 = vmul.f32 %v823_v10, %v2273_v22  ;;  %1082 = vrot.lane.b32.xlu1 %v1890_v23, %s1969_s6  ;;  %1080 = vrot.lane.b32.xlu0 %v1889_v24, %s1969_s6 }
  0xe5   : > { %v1892_v17 = vpack.c.bf16 %v949_v35, %v949_v35  ;;  %v1891_v18 = vpack.c.bf16 %v948_v36, %v948_v36 }
  0xe6   : > { %v838_v39 = vpop.permute.xlu1 %837  ;;  %v833_v40 = vpop.permute.xlu0 %832 }
  0xe7   : > { %v951_v25 = vmul.f32 %v838_v39, %v2282_v29  ;;  %v950_v26 = vmul.f32 %v833_v40, %v2285_v30  ;;  %1086 = vrot.lane.b32.xlu1 %v1892_v17, %s1969_s6  ;;  %1084 = vrot.lane.b32.xlu0 %v1891_v18, %s1969_s6 }
  0xe9   : > { %v1894_v47 = vpack.c.bf16 %v951_v25, %v951_v25  ;;  %v1893_v48 = vpack.c.bf16 %v950_v26, %v950_v26 }
  0xea   : > { %v848_v51 = vpop.permute.xlu1 %847  ;;  %v843_v52 = vpop.permute.xlu0 %842 }
  0xeb   : > { %v953_v55 = vmul.f32 %v848_v51, %v2294_v37  ;;  %v952_v56 = vmul.f32 %v843_v52, %v2297_v38  ;;  %1090 = vrot.lane.b32.xlu1 %v1894_v47, %s1969_s6  ;;  %1088 = vrot.lane.b32.xlu0 %v1893_v48, %s1969_s6 }
  0xed   : > { %v1896_v59 = vpack.c.bf16 %v953_v55, %v953_v55  ;;  %v1895_v60 = vpack.c.bf16 %v952_v56, %v952_v56 }
  0xee   : > { %v858_v41 = vpop.permute.xlu1 %857  ;;  %v853_v42 = vpop.permute.xlu0 %852 }
  0xef   : > { %v955_v46 = vmul.f32 %v858_v41, %v2306_v3  ;;  %v954_v4 = vmul.f32 %v853_v42, %v2309_v45  ;;  %1094 = vrot.lane.b32.xlu1 %v1896_v59, %s1969_s6  ;;  %1092 = vrot.lane.b32.xlu0 %v1895_v60, %s1969_s6 }
  0xf1   : > { %v1898_v7 = vpack.c.bf16 %v955_v46, %v955_v46  ;;  %v1897_v49 = vpack.c.bf16 %v954_v4, %v954_v4 }
  0xf2   : > { %v868_v8 = vpop.permute.xlu1 %867  ;;  %v863_v50 = vpop.permute.xlu0 %862 }
  0xf3   : > { %v957_v61 = vmul.f32 %v868_v8, %v2318_v11  ;;  %v956_v62 = vmul.f32 %v863_v50, %v2321_v12  ;;  %1098 = vrot.lane.b32.xlu1 %v1898_v7, %s1969_s6  ;;  %1096 = vrot.lane.b32.xlu0 %v1897_v49, %s1969_s6 }
  0xf5   : > { %v1900_v19 = vpack.c.bf16 %v957_v61, %v957_v61  ;;  %v1899_v20 = vpack.c.bf16 %v956_v62, %v956_v62 }
  0xf6   : > { %v878_v23 = vpop.permute.xlu1 %877  ;;  %v873_v24 = vpop.permute.xlu0 %872 }
  0xf7   : > { %v959_v9 = vmul.f32 %v878_v23, %v2330_v2  ;;  %v958_v10 = vmul.f32 %v873_v24, %v2333_v6  ;;  %1102 = vrot.lane.b32.xlu1 %v1900_v19, %s1969_s6  ;;  %1100 = vrot.lane.b32.xlu0 %v1899_v20, %s1969_s6 }
  0xf9   : > { %v1902_v35 = vpack.c.bf16 %v959_v9, %v959_v9  ;;  %v1901_v36 = vpack.c.bf16 %v958_v10, %v958_v10 }
  0xfa   : > { %v888_v17 = vpop.permute.xlu1 %887  ;;  %v883_v18 = vpop.permute.xlu0 %882 }
  0xfb   : > { %v961_v39 = vmul.f32 %v888_v17, %v2342_v31  ;;  %v960_v40 = vmul.f32 %v883_v18, %v2345_v32  ;;  %1106 = vrot.lane.b32.xlu1 %v1902_v35, %s1969_s6  ;;  %1104 = vrot.lane.b32.xlu0 %v1901_v36, %s1969_s6 }
  0xfd   : > { %v1904_v25 = vpack.c.bf16 %v961_v39, %v961_v39  ;;  %v1903_v26 = vpack.c.bf16 %v960_v40, %v960_v40 }
  0xfe   : > { %v898_v47 = vpop.permute.xlu1 %897  ;;  %v893_v48 = vpop.permute.xlu0 %892 }
  0xff   : > { %v963_v51 = vmul.f32 %v898_v47, %v2354_v43  ;;  %v962_v52 = vmul.f32 %v893_v48, %v2357_v44  ;;  %1110 = vrot.lane.b32.xlu1 %v1904_v25, %s1969_s6  ;;  %1108 = vrot.lane.b32.xlu0 %v1903_v26, %s1969_s6  ;;  %v1198_v25 = vld [vmem:[%s2483_s9 + $0x8] sm:$0xff]  ;;  %v1197_v26 = vld [vmem:[%s2483_s9] sm:$0xff] }
 0x100   : > { %v1200_v47 = vld [vmem:[%s2483_s9 + $0x18] sm:$0xff]  ;;  %v1199_v48 = vld [vmem:[%s2483_s9 + $0x10] sm:$0xff] }
 0x101   : > { %v1906_v55 = vpack.c.bf16 %v963_v51, %v963_v51  ;;  %v1905_v56 = vpack.c.bf16 %v962_v52, %v962_v52  ;;  %v1202_v51 = vld [vmem:[%s2483_s9 + $0x28] sm:$0xff]  ;;  %v1201_v52 = vld [vmem:[%s2483_s9 + $0x20] sm:$0xff] }
 0x102   : > { %v908_v59 = vpop.permute.xlu1 %907  ;;  %v903_v60 = vpop.permute.xlu0 %902 }
 0x103   : > { %v965_v41 = vmul.f32 %v908_v59, %v2366_v33  ;;  %v964_v42 = vmul.f32 %v903_v60, %v2369_v34  ;;  %1114 = vrot.lane.b32.xlu1 %v1906_v55, %s1969_s6  ;;  %1112 = vrot.lane.b32.xlu0 %v1905_v56, %s1969_s6  ;;  %v1204_v55 = vld [vmem:[%s2483_s9 + $0x38] sm:$0xff]  ;;  %v1203_v56 = vld [vmem:[%s2483_s9 + $0x30] sm:$0xff] }
 0x104   : > { %v1206_v59 = vld [vmem:[%s2483_s9 + $0x48] sm:$0xff]  ;;  %v1205_v60 = vld [vmem:[%s2483_s9 + $0x40] sm:$0xff] }
 0x105   : > { %v1908_v46 = vpack.c.bf16 %v965_v41, %v965_v41  ;;  %v1907_v4 = vpack.c.bf16 %v964_v42, %v964_v42  ;;  %v1208_v41 = vld [vmem:[%s2483_s9 + $0x58] sm:$0xff]  ;;  %v1207_v42 = vld [vmem:[%s2483_s9 + $0x50] sm:$0xff] }
 0x106   : > { %v918_v7 = vpop.permute.xlu1 %917  ;;  %v913_v49 = vpop.permute.xlu0 %912 }
 0x107   : > { %v967_v8 = vmul.f32 %v918_v7, %v2378_v63  ;;  %v966_v50 = vmul.f32 %v913_v49, %v2381_v0  ;;  %1118 = vrot.lane.b32.xlu1 %v1908_v46, %s1969_s6  ;;  %1116 = vrot.lane.b32.xlu0 %v1907_v4, %s1969_s6  ;;  %v1210_v46 = vld [vmem:[%s2483_s9 + $0x68] sm:$0xff]  ;;  %v1209_v4 = vld [vmem:[%s2483_s9 + $0x60] sm:$0xff] }
 0x108   : > { %v1212_v7 = vld [vmem:[%s2483_s9 + $0x78] sm:$0xff]  ;;  %v1211_v49 = vld [vmem:[%s2483_s9 + $0x70] sm:$0xff] }
 0x109   : > { %v1910_v61 = vpack.c.bf16 %v967_v8, %v967_v8  ;;  %v1909_v62 = vpack.c.bf16 %v966_v50, %v966_v50  ;;  %v1214_v8 = vld [vmem:[%s2483_s9 + $0x88] sm:$0xff]  ;;  %v1213_v50 = vld [vmem:[%s2483_s9 + $0x80] sm:$0xff] }
 0x10a   : > { %v928_v19 = vpop.permute.xlu1 %927  ;;  %v923_v20 = vpop.permute.xlu0 %922 }
 0x10b   : > { %v969_v23 = vmul.f32 %v928_v19, %v2390_v57  ;;  %v968_v24 = vmul.f32 %v923_v20, %v2393_v58  ;;  %1122 = vrot.lane.b32.xlu1 %v1910_v61, %s1969_s6  ;;  %1120 = vrot.lane.b32.xlu0 %v1909_v62, %s1969_s6  ;;  %v1216_v61 = vld [vmem:[%s2483_s9 + $0x98] sm:$0xff]  ;;  %v1215_v62 = vld [vmem:[%s2483_s9 + $0x90] sm:$0xff] }
 0x10c   : > { %v1218_v19 = vld [vmem:[%s2483_s9 + $0xa8] sm:$0xff]  ;;  %v1217_v20 = vld [vmem:[%s2483_s9 + $0xa0] sm:$0xff] }
 0x10d   : > { %v1912_v9 = vpack.c.bf16 %v969_v23, %v969_v23  ;;  %v1911_v10 = vpack.c.bf16 %v968_v24, %v968_v24  ;;  %v1220_v23 = vld [vmem:[%s2483_s9 + $0xb8] sm:$0xff]  ;;  %v1219_v24 = vld [vmem:[%s2483_s9 + $0xb0] sm:$0xff] }
 0x10e   : > { %v938_v35 = vpop.permute.xlu1 %937  ;;  %v933_v36 = vpop.permute.xlu0 %932 }
 0x10f   : > { %v971_v17 = vmul.f32 %v938_v35, %v2402_v27  ;;  %v970_v18 = vmul.f32 %v933_v36, %v2405_v28  ;;  %1126 = vrot.lane.b32.xlu1 %v1912_v9, %s1969_s6  ;;  %1124 = vrot.lane.b32.xlu0 %v1911_v10, %s1969_s6  ;;  %v1222_v9 = vld [vmem:[%s2483_s9 + $0xc8] sm:$0xff]  ;;  %v1221_v10 = vld [vmem:[%s2483_s9 + $0xc0] sm:$0xff] }
 0x110   : > { %v1224_v35 = vld [vmem:[%s2483_s9 + $0xd8] sm:$0xff]  ;;  %v1223_v36 = vld [vmem:[%s2483_s9 + $0xd0] sm:$0xff] }
 0x111   : > { %v1914_v39 = vpack.c.bf16 %v971_v17, %v971_v17  ;;  %v1913_v40 = vpack.c.bf16 %v970_v18, %v970_v18 }
 0x113   : > { %1130 = vrot.lane.b32.xlu1 %v1914_v39, %s1969_s6  ;;  %1128 = vrot.lane.b32.xlu0 %v1913_v40, %s1969_s6  ;;  %v1226_v39 = vld [vmem:[%s2483_s9 + $0xe8] sm:$0xff]  ;;  %v1225_v40 = vld [vmem:[%s2483_s9 + $0xe0] sm:$0xff] }
 0x117   : > { %1236 = vperm.xlu1 %1959, %v1198_v25   ;;  %1231 = vperm.xlu0 %1958, %v1197_v26  }
 0x11b   : > { %1246 = vperm.xlu1 %1959, %v1200_v47   ;;  %1241 = vperm.xlu0 %1958, %v1199_v48   ;;  %v1228_v47 = vld [vmem:[%s2483_s9 + $0xf8] sm:$0xff]  ;;  %v1227_v48 = vld [vmem:[%s2483_s9 + $0xf0] sm:$0xff] }
 0x11f   : > { %1256 = vperm.xlu1 %1959, %v1202_v51   ;;  %1251 = vperm.xlu0 %1958, %v1201_v52  }
 0x123   : > { %1266 = vperm.xlu1 %1959, %v1204_v55   ;;  %1261 = vperm.xlu0 %1958, %v1203_v56  }
 0x127   : > { %1276 = vperm.xlu1 %1959, %v1206_v59   ;;  %1271 = vperm.xlu0 %1958, %v1205_v60  }
 0x12b   : > { %1286 = vperm.xlu1 %1959, %v1208_v41   ;;  %1281 = vperm.xlu0 %1958, %v1207_v42  }
 0x12f   : > { %1296 = vperm.xlu1 %1959, %v1210_v46   ;;  %1291 = vperm.xlu0 %1958, %v1209_v4  }
 0x133   : > { %1306 = vperm.xlu1 %1959, %v1212_v7   ;;  %1301 = vperm.xlu0 %1958, %v1211_v49  }
 0x137   : > { %1316 = vperm.xlu1 %1959, %v1214_v8   ;;  %1311 = vperm.xlu0 %1958, %v1213_v50  }
 0x13b   : > { %1326 = vperm.xlu1 %1959, %v1216_v61   ;;  %1321 = vperm.xlu0 %1958, %v1215_v62  }
 0x13f   : > { %1336 = vperm.xlu1 %1959, %v1218_v19   ;;  %1331 = vperm.xlu0 %1958, %v1217_v20  }
 0x143   : > { %1346 = vperm.xlu1 %1959, %v1220_v23   ;;  %1341 = vperm.xlu0 %1958, %v1219_v24  }
 0x147   : > { %1356 = vperm.xlu1 %1959, %v1222_v9   ;;  %1351 = vperm.xlu0 %1958, %v1221_v10  }
 0x149   : > { %v1071_v17 = vpop.permute.xlu1 %1070  ;;  %v1069_v18 = vpop.permute.xlu0 %1068 }
 0x14a   : > { %1166 = vst.msk [vmem:[%s2231_s5 + $0x4] sm:$0xf] %vm1164_vm1, %v1071_v17  ;;  %1165 = vst.msk [vmem:[%s2231_s5] sm:$0xf] %vm1164_vm1, %v1069_v18 }
 0x14b   : > { %1366 = vperm.xlu1 %1959, %v1224_v35   ;;  %1361 = vperm.xlu0 %1958, %v1223_v36  }
 0x14d   : > { %v1075_v25 = vpop.permute.xlu1 %1074  ;;  %v1073_v26 = vpop.permute.xlu0 %1072 }
 0x14e   : > { %1168 = vst.msk [vmem:[%s2231_s5 + $0xc] sm:$0xf] %vm1164_vm1, %v1075_v25  ;;  %1167 = vst.msk [vmem:[%s2231_s5 + $0x8] sm:$0xf] %vm1164_vm1, %v1073_v26 }
 0x14f   : > { %1376 = vperm.xlu1 %1959, %v1226_v39   ;;  %1371 = vperm.xlu0 %1958, %v1225_v40  }
 0x151   : > { %v1079_v51 = vpop.permute.xlu1 %1078  ;;  %v1077_v52 = vpop.permute.xlu0 %1076 }
 0x152   : > { %1170 = vst.msk [vmem:[%s2231_s5 + $0x14] sm:$0xf] %vm1164_vm1, %v1079_v51  ;;  %1169 = vst.msk [vmem:[%s2231_s5 + $0x10] sm:$0xf] %vm1164_vm1, %v1077_v52 }
 0x153   : > { %1386 = vperm.xlu1 %1959, %v1228_v47   ;;  %1381 = vperm.xlu0 %1958, %v1227_v48  }
 0x155   : > { %v1083_v55 = vpop.permute.xlu1 %1082  ;;  %v1081_v56 = vpop.permute.xlu0 %1080 }
 0x156   : > { %1172 = vst.msk [vmem:[%s2231_s5 + $0x1c] sm:$0xf] %vm1164_vm1, %v1083_v55  ;;  %1171 = vst.msk [vmem:[%s2231_s5 + $0x18] sm:$0xf] %vm1164_vm1, %v1081_v56 }
 0x159   : > { %v1087_v59 = vpop.permute.xlu1 %1086  ;;  %v1085_v60 = vpop.permute.xlu0 %1084 }
 0x15a   : > { %1174 = vst.msk [vmem:[%s2231_s5 + $0x24] sm:$0xf] %vm1164_vm1, %v1087_v59  ;;  %1173 = vst.msk [vmem:[%s2231_s5 + $0x20] sm:$0xf] %vm1164_vm1, %v1085_v60 }
 0x15d   : > { %v1091_v41 = vpop.permute.xlu1 %1090  ;;  %v1089_v42 = vpop.permute.xlu0 %1088 }
 0x15e   : > { %1176 = vst.msk [vmem:[%s2231_s5 + $0x2c] sm:$0xf] %vm1164_vm1, %v1091_v41  ;;  %1175 = vst.msk [vmem:[%s2231_s5 + $0x28] sm:$0xf] %vm1164_vm1, %v1089_v42 }
 0x161   : > { %v1095_v46 = vpop.permute.xlu1 %1094  ;;  %v1093_v4 = vpop.permute.xlu0 %1092 }
 0x162   : > { %1178 = vst.msk [vmem:[%s2231_s5 + $0x34] sm:$0xf] %vm1164_vm1, %v1095_v46  ;;  %1177 = vst.msk [vmem:[%s2231_s5 + $0x30] sm:$0xf] %vm1164_vm1, %v1093_v4 }
 0x165   : > { %v1099_v7 = vpop.permute.xlu1 %1098  ;;  %v1097_v49 = vpop.permute.xlu0 %1096 }
 0x166   : > { %1180 = vst.msk [vmem:[%s2231_s5 + $0x3c] sm:$0xf] %vm1164_vm1, %v1099_v7  ;;  %1179 = vst.msk [vmem:[%s2231_s5 + $0x38] sm:$0xf] %vm1164_vm1, %v1097_v49 }
 0x169   : > { %v1103_v8 = vpop.permute.xlu1 %1102  ;;  %v1101_v50 = vpop.permute.xlu0 %1100 }
 0x16a   : > { %1182 = vst.msk [vmem:[%s2231_s5 + $0x44] sm:$0xf] %vm1164_vm1, %v1103_v8  ;;  %1181 = vst.msk [vmem:[%s2231_s5 + $0x40] sm:$0xf] %vm1164_vm1, %v1101_v50 }
 0x16d   : > { %v1107_v61 = vpop.permute.xlu1 %1106  ;;  %v1105_v62 = vpop.permute.xlu0 %1104 }
 0x16e   : > { %1184 = vst.msk [vmem:[%s2231_s5 + $0x4c] sm:$0xf] %vm1164_vm1, %v1107_v61  ;;  %1183 = vst.msk [vmem:[%s2231_s5 + $0x48] sm:$0xf] %vm1164_vm1, %v1105_v62 }
 0x171   : > { %v1111_v19 = vpop.permute.xlu1 %1110  ;;  %v1109_v20 = vpop.permute.xlu0 %1108 }
 0x172   : > { %1186 = vst.msk [vmem:[%s2231_s5 + $0x54] sm:$0xf] %vm1164_vm1, %v1111_v19  ;;  %1185 = vst.msk [vmem:[%s2231_s5 + $0x50] sm:$0xf] %vm1164_vm1, %v1109_v20 }
 0x175   : > { %v1115_v23 = vpop.permute.xlu1 %1114  ;;  %v1113_v24 = vpop.permute.xlu0 %1112 }
 0x176   : > { %1188 = vst.msk [vmem:[%s2231_s5 + $0x5c] sm:$0xf] %vm1164_vm1, %v1115_v23  ;;  %1187 = vst.msk [vmem:[%s2231_s5 + $0x58] sm:$0xf] %vm1164_vm1, %v1113_v24 }
 0x179   : > { %v1119_v9 = vpop.permute.xlu1 %1118  ;;  %v1117_v10 = vpop.permute.xlu0 %1116 }
 0x17a   : > { %1190 = vst.msk [vmem:[%s2231_s5 + $0x64] sm:$0xf] %vm1164_vm1, %v1119_v9  ;;  %1189 = vst.msk [vmem:[%s2231_s5 + $0x60] sm:$0xf] %vm1164_vm1, %v1117_v10 }
 0x17d   : > { %v1123_v35 = vpop.permute.xlu1 %1122  ;;  %v1121_v36 = vpop.permute.xlu0 %1120 }
 0x17e   : > { %1192 = vst.msk [vmem:[%s2231_s5 + $0x6c] sm:$0xf] %vm1164_vm1, %v1123_v35  ;;  %1191 = vst.msk [vmem:[%s2231_s5 + $0x68] sm:$0xf] %vm1164_vm1, %v1121_v36 }
 0x181   : > { %v1127_v17 = vpop.permute.xlu1 %1126  ;;  %v1125_v18 = vpop.permute.xlu0 %1124 }
 0x182   : > { %1194 = vst.msk [vmem:[%s2231_s5 + $0x74] sm:$0xf] %vm1164_vm1, %v1127_v17  ;;  %1193 = vst.msk [vmem:[%s2231_s5 + $0x70] sm:$0xf] %vm1164_vm1, %v1125_v18 }
 0x185   : > { %v1131_v39 = vpop.permute.xlu1 %1130  ;;  %v1129_v40 = vpop.permute.xlu0 %1128 }
 0x186   : > { %1196 = vst.msk [vmem:[%s2231_s5 + $0x7c] sm:$0xf] %vm1164_vm1, %v1131_v39  ;;  %1195 = vst.msk [vmem:[%s2231_s5 + $0x78] sm:$0xf] %vm1164_vm1, %v1129_v40 }
 0x196   : > { %v1237_v25 = vpop.permute.xlu1 %1236  ;;  %v1232_v26 = vpop.permute.xlu0 %1231 }
 0x197   : > { %v1390_v47 = vmul.f32 %v1237_v25, %v2237_v16  ;;  %v1389_v48 = vmul.f32 %v1232_v26, %v2223_v54 }
 0x199   : > { %v1916_v51 = vpack.c.bf16 %v1390_v47, %v1390_v47  ;;  %v1915_v52 = vpack.c.bf16 %v1389_v48, %v1389_v48 }
 0x19a   : > { %v1247_v55 = vpop.permute.xlu1 %1246  ;;  %v1242_v56 = vpop.permute.xlu0 %1241 }
 0x19b   : > { %v1392_v59 = vmul.f32 %v1247_v55, %v2234_v15  ;;  %v1391_v60 = vmul.f32 %v1242_v56, %v2220_v53  ;;  %1519 = vrot.lane.b32.xlu1 %v1916_v51, %s1970_s10  ;;  %1517 = vrot.lane.b32.xlu0 %v1915_v52, %s1970_s10 }
 0x19d   : > { %v1918_v41 = vpack.c.bf16 %v1392_v59, %v1392_v59  ;;  %v1917_v42 = vpack.c.bf16 %v1391_v60, %v1391_v60 }
 0x19e   : > { %v1257_v46 = vpop.permute.xlu1 %1256  ;;  %v1252_v4 = vpop.permute.xlu0 %1251 }
 0x19f   : > { %v1394_v16 = vmul.f32 %v1257_v46, %v2246_v1  ;;  %v1393_v54 = vmul.f32 %v1252_v4, %v2249_v5  ;;  %1523 = vrot.lane.b32.xlu1 %v1918_v41, %s1970_s10  ;;  %1521 = vrot.lane.b32.xlu0 %v1917_v42, %s1970_s10 }
 0x1a1   : > { %v1920_v15 = vpack.c.bf16 %v1394_v16, %v1394_v16  ;;  %v1919_v7 = vpack.c.bf16 %v1393_v54, %v1393_v54 }
 0x1a2   : > { %v1267_v53 = vpop.permute.xlu1 %1266  ;;  %v1262_v49 = vpop.permute.xlu0 %1261 }
 0x1a3   : > { %v1396_v8 = vmul.f32 %v1267_v53, %v2258_v13  ;;  %v1395_v50 = vmul.f32 %v1262_v49, %v2261_v14  ;;  %1527 = vrot.lane.b32.xlu1 %v1920_v15, %s1970_s10  ;;  %1525 = vrot.lane.b32.xlu0 %v1919_v7, %s1970_s10 }
 0x1a5   : > { %v1922_v61 = vpack.c.bf16 %v1396_v8, %v1396_v8  ;;  %v1921_v1 = vpack.c.bf16 %v1395_v50, %v1395_v50 }
 0x1a6   : > { %v1277_v62 = vpop.permute.xlu1 %1276  ;;  %v1272_v5 = vpop.permute.xlu0 %1271 }
 0x1a7   : > { %v1398_v19 = vmul.f32 %v1277_v62, %v2270_v21  ;;  %v1397_v20 = vmul.f32 %v1272_v5, %v2273_v22  ;;  %1531 = vrot.lane.b32.xlu1 %v1922_v61, %s1970_s10  ;;  %1529 = vrot.lane.b32.xlu0 %v1921_v1, %s1970_s10 }
 0x1a9   : > { %v1924_v23 = vpack.c.bf16 %v1398_v19, %v1398_v19  ;;  %v1923_v13 = vpack.c.bf16 %v1397_v20, %v1397_v20 }
 0x1aa   : > { %v1287_v24 = vpop.permute.xlu1 %1286  ;;  %v1282_v14 = vpop.permute.xlu0 %1281 }
 0x1ab   : > { %v1400_v9 = vmul.f32 %v1287_v24, %v2282_v29  ;;  %v1399_v10 = vmul.f32 %v1282_v14, %v2285_v30  ;;  %1535 = vrot.lane.b32.xlu1 %v1924_v23, %s1970_s10  ;;  %1533 = vrot.lane.b32.xlu0 %v1923_v13, %s1970_s10 }
 0x1ad   : > { %v1926_v35 = vpack.c.bf16 %v1400_v9, %v1400_v9  ;;  %v1925_v21 = vpack.c.bf16 %v1399_v10, %v1399_v10 }
 0x1ae   : > { %v1297_v36 = vpop.permute.xlu1 %1296  ;;  %v1292_v22 = vpop.permute.xlu0 %1291 }
 0x1af   : > { %v1402_v17 = vmul.f32 %v1297_v36, %v2294_v37  ;;  %v1401_v18 = vmul.f32 %v1292_v22, %v2297_v38  ;;  %1539 = vrot.lane.b32.xlu1 %v1926_v35, %s1970_s10  ;;  %1537 = vrot.lane.b32.xlu0 %v1925_v21, %s1970_s10 }
 0x1b1   : > { %v1928_v39 = vpack.c.bf16 %v1402_v17, %v1402_v17  ;;  %v1927_v29 = vpack.c.bf16 %v1401_v18, %v1401_v18 }
 0x1b2   : > { %v1307_v40 = vpop.permute.xlu1 %1306  ;;  %v1302_v30 = vpop.permute.xlu0 %1301 }
 0x1b3   : > { %v1404_v25 = vmul.f32 %v1307_v40, %v2306_v3  ;;  %v1403_v26 = vmul.f32 %v1302_v30, %v2309_v45  ;;  %1543 = vrot.lane.b32.xlu1 %v1928_v39, %s1970_s10  ;;  %1541 = vrot.lane.b32.xlu0 %v1927_v29, %s1970_s10 }
 0x1b5   : > { %v1930_v47 = vpack.c.bf16 %v1404_v25, %v1404_v25  ;;  %v1929_v37 = vpack.c.bf16 %v1403_v26, %v1403_v26 }
 0x1b6   : > { %v1317_v48 = vpop.permute.xlu1 %1316  ;;  %v1312_v38 = vpop.permute.xlu0 %1311 }
 0x1b7   : > { %v1406_v51 = vmul.f32 %v1317_v48, %v2318_v11  ;;  %v1405_v52 = vmul.f32 %v1312_v38, %v2321_v12  ;;  %1547 = vrot.lane.b32.xlu1 %v1930_v47, %s1970_s10  ;;  %1545 = vrot.lane.b32.xlu0 %v1929_v37, %s1970_s10 }
 0x1b9   : > { %v1932_v55 = vpack.c.bf16 %v1406_v51, %v1406_v51  ;;  %v1931_v3 = vpack.c.bf16 %v1405_v52, %v1405_v52 }
 0x1ba   : > { %v1327_v56 = vpop.permute.xlu1 %1326  ;;  %v1322_v45 = vpop.permute.xlu0 %1321 }
 0x1bb   : > { %v1408_v59 = vmul.f32 %v1327_v56, %v2330_v2  ;;  %v1407_v60 = vmul.f32 %v1322_v45, %v2333_v6  ;;  %1551 = vrot.lane.b32.xlu1 %v1932_v55, %s1970_s10  ;;  %1549 = vrot.lane.b32.xlu0 %v1931_v3, %s1970_s10 }
 0x1bd   : > { %v1934_v41 = vpack.c.bf16 %v1408_v59, %v1408_v59  ;;  %v1933_v11 = vpack.c.bf16 %v1407_v60, %v1407_v60 }
 0x1be   : > { %v1337_v42 = vpop.permute.xlu1 %1336  ;;  %v1332_v12 = vpop.permute.xlu0 %1331 }
 0x1bf   : > { %v1410_v46 = vmul.f32 %v1337_v42, %v2342_v31  ;;  %v1409_v4 = vmul.f32 %v1332_v12, %v2345_v32  ;;  %1555 = vrot.lane.b32.xlu1 %v1934_v41, %s1970_s10  ;;  %1553 = vrot.lane.b32.xlu0 %v1933_v11, %s1970_s10 }
 0x1c1   : > { %v1936_v16 = vpack.c.bf16 %v1410_v46, %v1410_v46  ;;  %v1935_v2 = vpack.c.bf16 %v1409_v4, %v1409_v4 }
 0x1c2   : > { %v1347_v54 = vpop.permute.xlu1 %1346  ;;  %v1342_v6 = vpop.permute.xlu0 %1341 }
 0x1c3   : > { %v1412_v15 = vmul.f32 %v1347_v54, %v2354_v43  ;;  %v1411_v7 = vmul.f32 %v1342_v6, %v2357_v44  ;;  %1559 = vrot.lane.b32.xlu1 %v1936_v16, %s1970_s10  ;;  %1557 = vrot.lane.b32.xlu0 %v1935_v2, %s1970_s10 }
 0x1c5   : > { %v1938_v53 = vpack.c.bf16 %v1412_v15, %v1412_v15  ;;  %v1937_v31 = vpack.c.bf16 %v1411_v7, %v1411_v7 }
 0x1c6   : > { %v1357_v49 = vpop.permute.xlu1 %1356  ;;  %v1352_v32 = vpop.permute.xlu0 %1351 }
 0x1c7   : > { %v1414_v8 = vmul.f32 %v1357_v49, %v2366_v33  ;;  %v1413_v50 = vmul.f32 %v1352_v32, %v2369_v34  ;;  %1563 = vrot.lane.b32.xlu1 %v1938_v53, %s1970_s10  ;;  %1561 = vrot.lane.b32.xlu0 %v1937_v31, %s1970_s10 }
 0x1c9   : > { %v1940_v61 = vpack.c.bf16 %v1414_v8, %v1414_v8  ;;  %v1939_v43 = vpack.c.bf16 %v1413_v50, %v1413_v50 }
 0x1ca   : > { %v1367_v1 = vpop.permute.xlu1 %1366  ;;  %v1362_v44 = vpop.permute.xlu0 %1361 }
 0x1cb   : > { %v1416_v62 = vmul.f32 %v1367_v1, %v2378_v63  ;;  %v1415_v5 = vmul.f32 %v1362_v44, %v2381_v0  ;;  %1567 = vrot.lane.b32.xlu1 %v1940_v61, %s1970_s10  ;;  %1565 = vrot.lane.b32.xlu0 %v1939_v43, %s1970_s10 }
 0x1cd   : > { %v1942_v19 = vpack.c.bf16 %v1416_v62, %v1416_v62  ;;  %v1941_v33 = vpack.c.bf16 %v1415_v5, %v1415_v5 }
 0x1ce   : > { %v1377_v20 = vpop.permute.xlu1 %1376  ;;  %v1372_v34 = vpop.permute.xlu0 %1371 }
 0x1cf   : > { %v1418_v23 = vmul.f32 %v1377_v20, %v2390_v57  ;;  %v1417_v13 = vmul.f32 %v1372_v34, %v2393_v58  ;;  %1571 = vrot.lane.b32.xlu1 %v1942_v19, %s1970_s10  ;;  %1569 = vrot.lane.b32.xlu0 %v1941_v33, %s1970_s10 }
 0x1d1   : > { %v1944_v63 = vpack.c.bf16 %v1418_v23, %v1418_v23  ;;  %v1943_v0 = vpack.c.bf16 %v1417_v13, %v1417_v13 }
 0x1d2   : > { %v1387_v24 = vpop.permute.xlu1 %1386  ;;  %v1382_v14 = vpop.permute.xlu0 %1381 }
 0x1d3   : > { %v1420_v9 = vmul.f32 %v1387_v24, %v2402_v27  ;;  %v1419_v10 = vmul.f32 %v1382_v14, %v2405_v28  ;;  %1575 = vrot.lane.b32.xlu1 %v1944_v63, %s1970_s10  ;;  %1573 = vrot.lane.b32.xlu0 %v1943_v0, %s1970_s10 }
 0x1d5   : > { %v1946_v57 = vpack.c.bf16 %v1420_v9, %v1420_v9  ;;  %v1945_v58 = vpack.c.bf16 %v1419_v10, %v1419_v10 }
 0x1d7   : > { %1579 = vrot.lane.b32.xlu1 %v1946_v57, %s1970_s10  ;;  %1577 = vrot.lane.b32.xlu0 %v1945_v58, %s1970_s10 }
 0x20d   : > { %v1520_v35 = vpop.permute.xlu1 %1519  ;;  %v1518_v27 = vpop.permute.xlu0 %1517 }
 0x20e   : > { %1615 = vst.msk [vmem:[%s2231_s5 + $0x4] sm:$0xf] %vm1613_vm2, %v1520_v35  ;;  %1614 = vst.msk [vmem:[%s2231_s5] sm:$0xf] %vm1613_vm2, %v1518_v27 }
 0x211   : > { %v1524_v28 = vpop.permute.xlu1 %1523  ;;  %v1522_v21 = vpop.permute.xlu0 %1521 }
 0x212   : > { %1617 = vst.msk [vmem:[%s2231_s5 + $0xc] sm:$0xf] %vm1613_vm2, %v1524_v28  ;;  %1616 = vst.msk [vmem:[%s2231_s5 + $0x8] sm:$0xf] %vm1613_vm2, %v1522_v21 }
 0x215   : > { %v1528_v36 = vpop.permute.xlu1 %1527  ;;  %v1526_v22 = vpop.permute.xlu0 %1525 }
 0x216   : > { %1619 = vst.msk [vmem:[%s2231_s5 + $0x14] sm:$0xf] %vm1613_vm2, %v1528_v36  ;;  %1618 = vst.msk [vmem:[%s2231_s5 + $0x10] sm:$0xf] %vm1613_vm2, %v1526_v22 }
 0x219   : > { %v1532_v17 = vpop.permute.xlu1 %1531  ;;  %v1530_v18 = vpop.permute.xlu0 %1529 }
 0x21a   : > { %1621 = vst.msk [vmem:[%s2231_s5 + $0x1c] sm:$0xf] %vm1613_vm2, %v1532_v17  ;;  %1620 = vst.msk [vmem:[%s2231_s5 + $0x18] sm:$0xf] %vm1613_vm2, %v1530_v18 }
 0x21d   : > { %v1536_v39 = vpop.permute.xlu1 %1535  ;;  %v1534_v29 = vpop.permute.xlu0 %1533 }
 0x21e   : > { %1623 = vst.msk [vmem:[%s2231_s5 + $0x24] sm:$0xf] %vm1613_vm2, %v1536_v39  ;;  %1622 = vst.msk [vmem:[%s2231_s5 + $0x20] sm:$0xf] %vm1613_vm2, %v1534_v29 }
 0x221   : > { %v1540_v40 = vpop.permute.xlu1 %1539  ;;  %v1538_v30 = vpop.permute.xlu0 %1537 }
 0x222   : > { %1625 = vst.msk [vmem:[%s2231_s5 + $0x2c] sm:$0xf] %vm1613_vm2, %v1540_v40  ;;  %1624 = vst.msk [vmem:[%s2231_s5 + $0x28] sm:$0xf] %vm1613_vm2, %v1538_v30 }
 0x225   : > { %v1544_v25 = vpop.permute.xlu1 %1543  ;;  %v1542_v26 = vpop.permute.xlu0 %1541 }
 0x226   : > { %1627 = vst.msk [vmem:[%s2231_s5 + $0x34] sm:$0xf] %vm1613_vm2, %v1544_v25  ;;  %1626 = vst.msk [vmem:[%s2231_s5 + $0x30] sm:$0xf] %vm1613_vm2, %v1542_v26 }
 0x229   : > { %v1548_v47 = vpop.permute.xlu1 %1547  ;;  %v1546_v37 = vpop.permute.xlu0 %1545 }
 0x22a   : > { %1629 = vst.msk [vmem:[%s2231_s5 + $0x3c] sm:$0xf] %vm1613_vm2, %v1548_v47  ;;  %1628 = vst.msk [vmem:[%s2231_s5 + $0x38] sm:$0xf] %vm1613_vm2, %v1546_v37 }
 0x22d   : > { %v1552_v48 = vpop.permute.xlu1 %1551  ;;  %v1550_v38 = vpop.permute.xlu0 %1549 }
 0x22e   : > { %1631 = vst.msk [vmem:[%s2231_s5 + $0x44] sm:$0xf] %vm1613_vm2, %v1552_v48  ;;  %1630 = vst.msk [vmem:[%s2231_s5 + $0x40] sm:$0xf] %vm1613_vm2, %v1550_v38 }
 0x231   : > { %v1556_v51 = vpop.permute.xlu1 %1555  ;;  %v1554_v52 = vpop.permute.xlu0 %1553 }
 0x232   : > { %1633 = vst.msk [vmem:[%s2231_s5 + $0x4c] sm:$0xf] %vm1613_vm2, %v1556_v51  ;;  %1632 = vst.msk [vmem:[%s2231_s5 + $0x48] sm:$0xf] %vm1613_vm2, %v1554_v52 }
 0x235   : > { %v1560_v55 = vpop.permute.xlu1 %1559  ;;  %v1558_v3 = vpop.permute.xlu0 %1557 }
 0x236   : > { %1635 = vst.msk [vmem:[%s2231_s5 + $0x54] sm:$0xf] %vm1613_vm2, %v1560_v55  ;;  %1634 = vst.msk [vmem:[%s2231_s5 + $0x50] sm:$0xf] %vm1613_vm2, %v1558_v3 }
 0x239   : > { %v1564_v56 = vpop.permute.xlu1 %1563  ;;  %v1562_v45 = vpop.permute.xlu0 %1561 }
 0x23a   : > { %1637 = vst.msk [vmem:[%s2231_s5 + $0x5c] sm:$0xf] %vm1613_vm2, %v1564_v56  ;;  %1636 = vst.msk [vmem:[%s2231_s5 + $0x58] sm:$0xf] %vm1613_vm2, %v1562_v45 }
 0x23d   : > { %v1568_v59 = vpop.permute.xlu1 %1567  ;;  %v1566_v60 = vpop.permute.xlu0 %1565 }
 0x23e   : > { %1639 = vst.msk [vmem:[%s2231_s5 + $0x64] sm:$0xf] %vm1613_vm2, %v1568_v59  ;;  %1638 = vst.msk [vmem:[%s2231_s5 + $0x60] sm:$0xf] %vm1613_vm2, %v1566_v60 }
 0x241   : > { %v1572_v41 = vpop.permute.xlu1 %1571  ;;  %v1570_v11 = vpop.permute.xlu0 %1569 }
 0x242   : > { %1641 = vst.msk [vmem:[%s2231_s5 + $0x6c] sm:$0xf] %vm1613_vm2, %v1572_v41  ;;  %1640 = vst.msk [vmem:[%s2231_s5 + $0x68] sm:$0xf] %vm1613_vm2, %v1570_v11 }
 0x245   : > { %v1576_v42 = vpop.permute.xlu1 %1575  ;;  %v1574_v12 = vpop.permute.xlu0 %1573 }
 0x246   : > { %1643 = vst.msk [vmem:[%s2231_s5 + $0x74] sm:$0xf] %vm1613_vm2, %v1576_v42  ;;  %1642 = vst.msk [vmem:[%s2231_s5 + $0x70] sm:$0xf] %vm1613_vm2, %v1574_v12 }
 0x249   : > { %v1580_v46 = vpop.permute.xlu1 %1579  ;;  %v1578_v4 = vpop.permute.xlu0 %1577 }
 0x24a   : > { %1645 = vst.msk [vmem:[%s2231_s5 + $0x7c] sm:$0xf] %vm1613_vm2, %v1580_v46  ;;  %1644 = vst.msk [vmem:[%s2231_s5 + $0x78] sm:$0xf] %vm1613_vm2, %v1578_v4 }
 0x24b PF: > { %s14_s15 = sadd.s32 1, %s1966_s15  }
 0x24c   : > { %p11_p4 = scmp.ge.s32.totalorder %s14_s15, 4  }
 0x24e   :  { %13 = sbr.rel (!%p11_p4) target bundleno = 1 (0x1), region = 75 }

// kernel: ega_forward.15
= control target key start
LH: loop header
LB: loop body
LE: loop exit
PB: predicated region body
PF: predicated region fallthrough
CT: control target
= control target key end

     0   :  { %s1759_s15 = smov 0   ;;  %s2094_s0 = inlined_call_operand.vmem [shape: bf16[512,432], index: 0, kind: input, shape index: {}]   ;;  %s2095_s1 = inlined_call_operand.vmem [shape: bf16[432,16], index: 1, kind: input, shape index: {}]   ;;  %s2096_s2 = inlined_call_operand.vmem [shape: f32[1,16], index: 2, kind: input, shape index: {}]   ;;  %s2097_s3 = inlined_call_operand.vmem [shape: f32[1,16], index: 3, kind: input, shape index: {}]   ;;  %s2098_s4 = inlined_call_operand.vmem [shape: f32[512,16], index: 4, kind: output, shape index: {}]  }
   0x1 LB: > { %s1359_s16 = sadd.s32 4294967295, %s1731_s15   ;;  %p1363_p0 = scmp.ge.s32.totalorder %s1731_s15, 1  ;;  %s1731_s15 = sphi %s1759_s15, %s14_s15  }
   0x2   : > { %p164_p1 = scmp.lt.s32.totalorder %s1731_s15, 3 }
   0x4   : > { %p165_p2 = pnand %p1363_p0, %p164_p1 }
   0x5   : > { %v1602_v0 = vld [vmem:[%s2095_s1 + $0x80] sm:$0xff] (!%p165_p2)   ;;  %v1733_v1 = vmov (!%p165_p2), 0   ;;  %v1603_v2 = vld [vmem:[%s2095_s1 + $0x88] sm:$0xff] (!%p165_p2)   ;;  %v1606_v5 = vld [vmem:[%s2095_s1 + $0x90] sm:$0xff] (!%p165_p2)   ;;  %s1364_s9 = sshll.u32 (!%p165_p2), %s1359_s16, 5  ;;  %vm789_vm0 = vcmask (!%p165_p2), 392192  }
   0x6   : > { %168 = sbr.rel (%p165_p2) target bundleno = 393 (0x189), region = 36  ;;  %999 = vmatprep.subr.bf16.mxu1 (!%p165_p2), %v1733_v1  ;;  %v1604_v3 = vld [vmem:[%s2095_s1 + $0x40] sm:$0xff] (!%p165_p2)   ;;  %v1607_v6 = vld [vmem:[%s2095_s1 + $0x48] sm:$0xff] (!%p165_p2)   ;;  %v1610_v8 = vld [vmem:[%s2095_s1 + $0x50] sm:$0xff] (!%p165_p2)   ;;  %p192_p3 = scmp.lt.s32.totalorder (!%p165_p2), %s1364_s9, 63  ;;  %vm1270_vm1 = vcmask (!%p165_p2), 130048  }
   0x7   : > { %1000 = vmatpush1.bf16.msra.mxu1 (!%p165_p2), %v1602_v0  ;;  %v1605_v4 = vld [vmem:[%s2095_s1] sm:$0xff] (!%p165_p2)   ;;  %1481 = vmatprep.subr.bf16.mxu0 (!%p165_p2), %v1604_v3  ;;  %v1608_v7 = vld [vmem:[%s2095_s1 + $0x8] sm:$0xff] (!%p165_p2)   ;;  %v1611_v9 = vld [vmem:[%s2095_s1 + $0x10] sm:$0xff] (!%p165_p2)  }
   0x8   : > { %1001 = vmatprep.subr.bf16.mxu1 (!%p165_p2), %v1733_v1  ;;  %1482 = vmatpush3.bf16.msra.mxu0 (!%p165_p2), %v1605_v4  ;;  %v1609_v10 = vld [vmem:[%s2095_s1 + $0x98] sm:$0xff] (!%p165_p2)   ;;  %v1612_v12 = vld [vmem:[%s2095_s1 + $0xa0] sm:$0xff] (!%p165_p2)   ;;  %v1615_v15 = vld [vmem:[%s2095_s1 + $0xa8] sm:$0xff] (!%p165_p2)  }
   0x9   : > { %1483 = vmatprep.subr.bf16.mxu0 (!%p165_p2), %v1607_v6  ;;  %v1613_v11 = vld [vmem:[%s2095_s1 + $0x58] sm:$0xff] (!%p165_p2)   ;;  %v1616_v14 = vld [vmem:[%s2095_s1 + $0x60] sm:$0xff] (!%p165_p2)   ;;  %v1619_v17 = vld [vmem:[%s2095_s1 + $0x68] sm:$0xff] (!%p165_p2)  }
   0xa   : > { %v1614_v13 = vld [vmem:[%s2095_s1 + $0x18] sm:$0xff] (!%p165_p2)   ;;  %v1617_v16 = vld [vmem:[%s2095_s1 + $0x20] sm:$0xff] (!%p165_p2)   ;;  %v1618_v18 = vld [vmem:[%s2095_s1 + $0xb0] sm:$0xff] (!%p165_p2)  }
   0xb   : > { %1002 = vmatpush1.bf16.msra.mxu1 (!%p165_p2), %v1603_v2  ;;  %v1620_v19 = vld [vmem:[%s2095_s1 + $0x28] sm:$0xff] (!%p165_p2)   ;;  %v1622_v20 = vld [vmem:[%s2095_s1 + $0x70] sm:$0xff] (!%p165_p2)   ;;  %v1621_v21 = vld [vmem:[%s2095_s1 + $0xb8] sm:$0xff] (!%p165_p2)  }
   0xc   : > { %1003 = vmatprep.subr.bf16.mxu1 (!%p165_p2), %v1733_v1  ;;  %1484 = vmatpush3.bf16.msra.mxu0 (!%p165_p2), %v1608_v7  ;;  %v1623_v22 = vld [vmem:[%s2095_s1 + $0x30] sm:$0xff] (!%p165_p2)   ;;  %v1625_v23 = vld [vmem:[%s2095_s1 + $0x78] sm:$0xff] (!%p165_p2)   ;;  %v1624_v27 = vld [vmem:[%s2095_s1 + $0xc0] sm:$0xff] (!%p165_p2)  }
   0xd   : > { %1485 = vmatprep.subr.bf16.mxu0 %v1610_v8  ;;  %s2100_s9 = smov (!%p192_p3, %s1364_s9), 63  ;;  %v1626_v25 = vld [vmem:[%s2095_s1 + $0x38] sm:$0xff]   ;;  %v1630_v30 = vld [vmem:[%s2095_s1 + $0xc8] sm:$0xff]   ;;  %v1631_v31 = vld [vmem:[%s2095_s1 + $0xd0] sm:$0xff]  }
   0xe   : > { %s1480_s29 = sshll.u32 %s2100_s9, 4  ;;  %s1368_s5 = sshll.u32 %s2100_s9, 3 }
   0xf   : > { %1004 = vmatpush1.bf16.msra.mxu1 %v1606_v5  ;;  %s1840_s11 = scalar_lea.vmem %s2094_s0, %s1480_s29  ;;  %s1964_s8 = scalar_lea.vmem %s2098_s4, %s1368_s5 }
  0x10   : > { %1005 = vmatprep.subr.bf16.mxu1 %v1733_v1  ;;  %1486 = vmatpush3.bf16.msra.mxu0 %v1611_v9  ;;  %v1629_v24 = vld [vmem:[%s1840_s11 + $0x4] ss:$16 sps:$4 sm:$0xff]   ;;  %v1634_v26 = vld [vmem:[%s1840_s11 + $0xc] ss:$16 sps:$4 sm:$0xff]   ;;  %v1627_v28 = vld [vmem:[%s1840_s11] ss:$16 sps:$4 sm:$0xff]  }
  0x11   : > { %1487 = vmatprep.subr.bf16.mxu0 %v1613_v11  ;;  %870 = vmatprep.mubr.bf16.mxu0 %v1629_v24  ;;  %v1635_v29 = vld [vmem:[%s1840_s11 + $0x24] ss:$16 sps:$4 sm:$0xff]   ;;  %v1637_v32 = vld [vmem:[%s1840_s11 + $0x20] ss:$16 sps:$4 sm:$0xff]   ;;  %v1632_v33 = vld [vmem:[%s1840_s11 + $0x8] ss:$16 sps:$4 sm:$0xff]  }
  0x12   : > { %1460 = vmatprep.mubr.msk.bf16.mxu1 %vm789_vm0, %v1634_v26  ;;  %v1641_v34 = vld [vmem:[%s1840_s11 + $0x44] ss:$16 sps:$4 sm:$0xff]   ;;  %v1638_v35 = vld [vmem:[%s1840_s11 + $0x2c] ss:$16 sps:$4 sm:$0xff]   ;;  %v1643_v36 = vld [vmem:[%s1840_s11 + $0x40] ss:$16 sps:$4 sm:$0xff]  }
  0x13   : > { %1006 = vmatpush1.bf16.msra.mxu1 %v1609_v10  ;;  %v1640_v37 = vld [vmem:[%s1840_s11 + $0x28] ss:$16 sps:$4 sm:$0xff]   ;;  %v1647_v38 = vld [vmem:[%s1840_s11 + $0x64] ss:$16 sps:$4 sm:$0xff]   ;;  %v1644_v39 = vld [vmem:[%s1840_s11 + $0x4c] ss:$16 sps:$4 sm:$0xff]  }
  0x14   : > { %1007 = vmatprep.subr.bf16.mxu1 %v1733_v1  ;;  %1488 = vmatpush3.bf16.msra.mxu0 %v1614_v13  ;;  %v1649_v40 = vld [vmem:[%s1840_s11 + $0x60] ss:$16 sps:$4 sm:$0xff]   ;;  %v1646_v41 = vld [vmem:[%s1840_s11 + $0x48] ss:$16 sps:$4 sm:$0xff]   ;;  %v1653_v42 = vld [vmem:[%s1840_s11 + $0x84] ss:$16 sps:$4 sm:$0xff]  }
  0x15   : > { %1489 = vmatprep.subr.bf16.mxu0 %v1616_v14  ;;  %v1650_v43 = vld [vmem:[%s1840_s11 + $0x6c] ss:$16 sps:$4 sm:$0xff]   ;;  %v1655_v44 = vld [vmem:[%s1840_s11 + $0x80] ss:$16 sps:$4 sm:$0xff]   ;;  %v1652_v45 = vld [vmem:[%s1840_s11 + $0x68] ss:$16 sps:$4 sm:$0xff]  }
  0x16   : > { %v1659_v46 = vld [vmem:[%s1840_s11 + $0xa4] ss:$16 sps:$4 sm:$0xff]   ;;  %v1656_v47 = vld [vmem:[%s1840_s11 + $0x8c] ss:$16 sps:$4 sm:$0xff]   ;;  %v1661_v48 = vld [vmem:[%s1840_s11 + $0xa0] ss:$16 sps:$4 sm:$0xff]  }
  0x17   : > { %1008 = vmatpush1.bf16.msra.mxu1 %v1612_v12  ;;  %v1658_v49 = vld [vmem:[%s1840_s11 + $0x88] ss:$16 sps:$4 sm:$0xff]   ;;  %v1665_v50 = vld [vmem:[%s1840_s11 + $0xc4] ss:$16 sps:$4 sm:$0xff]   ;;  %v1662_v51 = vld [vmem:[%s1840_s11 + $0xac] ss:$16 sps:$4 sm:$0xff]  }
  0x18   : > { %1009 = vmatprep.subr.bf16.mxu1 %v1733_v1  ;;  %1490 = vmatpush3.bf16.msra.mxu0 %v1617_v16  ;;  %v1667_v52 = vld [vmem:[%s1840_s11 + $0xc0] ss:$16 sps:$4 sm:$0xff]   ;;  %v1664_v53 = vld [vmem:[%s1840_s11 + $0xa8] ss:$16 sps:$4 sm:$0xff]   ;;  %v1671_v54 = vld [vmem:[%s1840_s11 + $0xe4] ss:$16 sps:$4 sm:$0xff]  }
  0x19   : > { %1491 = vmatprep.subr.bf16.mxu0 %v1619_v17  ;;  %v1668_v55 = vld [vmem:[%s1840_s11 + $0xcc] ss:$16 sps:$4 sm:$0xff]   ;;  %v1673_v56 = vld [vmem:[%s1840_s11 + $0xe0] ss:$16 sps:$4 sm:$0xff]   ;;  %v1670_v57 = vld [vmem:[%s1840_s11 + $0xc8] ss:$16 sps:$4 sm:$0xff]  }
  0x1a   : > { %v1677_v58 = vld [vmem:[%s1840_s11 + $0x104] ss:$16 sps:$4 sm:$0xff]   ;;  %v1674_v59 = vld [vmem:[%s1840_s11 + $0xec] ss:$16 sps:$4 sm:$0xff]   ;;  %v1679_v60 = vld [vmem:[%s1840_s11 + $0x100] ss:$16 sps:$4 sm:$0xff]  }
  0x1b   : > { %1010 = vmatpush1.bf16.msra.mxu1 %v1615_v15  ;;  %v1676_v61 = vld [vmem:[%s1840_s11 + $0xe8] ss:$16 sps:$4 sm:$0xff]   ;;  %v1683_v62 = vld [vmem:[%s1840_s11 + $0x124] ss:$16 sps:$4 sm:$0xff]   ;;  %v1680_v63 = vld [vmem:[%s1840_s11 + $0x10c] ss:$16 sps:$4 sm:$0xff]  }
  0x1c   : > { %1011 = vmatprep.subr.bf16.mxu1 %v1733_v1  ;;  %1492 = vmatpush3.bf16.msra.mxu0 %v1620_v19  ;;  %v1685_v0 = vld [vmem:[%s1840_s11 + $0x120] ss:$16 sps:$4 sm:$0xff]   ;;  %v1689_v2 = vld [vmem:[%s1840_s11 + $0x144] ss:$16 sps:$4 sm:$0xff]   ;;  %v1686_v3 = vld [vmem:[%s1840_s11 + $0x12c] ss:$16 sps:$4 sm:$0xff]  }
  0x1d   : > { %1493 = vmatprep.subr.bf16.mxu0 %v1622_v20  ;;  %v1691_v4 = vld [vmem:[%s1840_s11 + $0x140] ss:$16 sps:$4 sm:$0xff]   ;;  %v1688_v5 = vld [vmem:[%s1840_s11 + $0x128] ss:$16 sps:$4 sm:$0xff]   ;;  %v1695_v6 = vld [vmem:[%s1840_s11 + $0x164] ss:$16 sps:$4 sm:$0xff]  }
  0x1e   : > { %v1692_v7 = vld [vmem:[%s1840_s11 + $0x14c] ss:$16 sps:$4 sm:$0xff]   ;;  %v1697_v8 = vld [vmem:[%s1840_s11 + $0x160] ss:$16 sps:$4 sm:$0xff]   ;;  %v1694_v9 = vld [vmem:[%s1840_s11 + $0x148] ss:$16 sps:$4 sm:$0xff]  }
  0x1f   : > { %1012 = vmatpush1.bf16.msra.mxu1 %v1618_v18  ;;  %v1701_v10 = vld [vmem:[%s1840_s11 + $0x184] ss:$16 sps:$4 sm:$0xff]   ;;  %v1698_v11 = vld [vmem:[%s1840_s11 + $0x16c] ss:$16 sps:$4 sm:$0xff]   ;;  %v1703_v12 = vld [vmem:[%s1840_s11 + $0x180] ss:$16 sps:$4 sm:$0xff]  }
  0x20   : > { %1013 = vmatprep.subr.bf16.mxu1 %v1733_v1  ;;  %1494 = vmatpush3.bf16.msra.mxu0 %v1623_v22  ;;  %v1700_v13 = vld [vmem:[%s1840_s11 + $0x168] ss:$16 sps:$4 sm:$0xff]   ;;  %v1707_v14 = vld [vmem:[%s1840_s11 + $0x1a4] ss:$16 sps:$4 sm:$0xff]   ;;  %v1704_v15 = vld [vmem:[%s1840_s11 + $0x18c] ss:$16 sps:$4 sm:$0xff]  }
  0x21   : > { %1495 = vmatprep.subr.bf16.mxu0 %v1625_v23  ;;  %v1709_v16 = vld [vmem:[%s1840_s11 + $0x1a0] ss:$16 sps:$4 sm:$0xff]   ;;  %v1706_v17 = vld [vmem:[%s1840_s11 + $0x188] ss:$16 sps:$4 sm:$0xff]   ;;  %v1713_v18 = vld [vmem:[%s1840_s11 + $0x1c4] ss:$16 sps:$4 sm:$0xff]  }
  0x22   : > { %v1710_v19 = vld [vmem:[%s1840_s11 + $0x1ac] ss:$16 sps:$4 sm:$0xff]   ;;  %v1715_v20 = vld [vmem:[%s1840_s11 + $0x1c0] ss:$16 sps:$4 sm:$0xff]   ;;  %v1719_v22 = vld [vmem:[%s1840_s11 + $0x1e4] ss:$16 sps:$4 sm:$0xff]  }
  0x23   : > { %1014 = vmatpush1.bf16.msra.mxu1 %v1621_v21  ;;  %v1712_v21 = vld [vmem:[%s1840_s11 + $0x1a8] ss:$16 sps:$4 sm:$0xff]   ;;  %v1716_v23 = vld [vmem:[%s1840_s11 + $0x1cc] ss:$16 sps:$4 sm:$0xff]   ;;  %v1721_v24 = vld [vmem:[%s1840_s11 + $0x1e0] ss:$16 sps:$4 sm:$0xff]  }
  0x24   : > { %1015 = vmatprep.subr.bf16.mxu1 %v1733_v1  ;;  %1496 = vmatpush3.bf16.msra.mxu0 %v1626_v25  ;;  %v1718_v25 = vld [vmem:[%s1840_s11 + $0x1c8] ss:$16 sps:$4 sm:$0xff]   ;;  %v1722_v26 = vld [vmem:[%s1840_s11 + $0x1ec] ss:$16 sps:$4 sm:$0xff]  }
  0x27   : > { %1016 = vmatpush1.bf16.msra.mxu1 %v1624_v27  ;;  %871 = vmatmul.mubr.bf16.vlgmr.msra.gmra.mrb[0].mxu0 %v1627_v28  ;;  %v1724_v27 = vld [vmem:[%s1840_s11 + $0x1e8] ss:$16 sps:$4 sm:$0xff]  }
  0x28   : > { %1017 = vmatprep.subr.bf16.mxu1 %v1733_v1  ;;  %878 = vmatprep.mubr.bf16.mxu0 %v1635_v29 }
  0x2b   : > { %1018 = vmatpush1.bf16.msra.mxu1 %v1630_v30 }
  0x2c   : > { %1019 = vmatprep.subr.bf16.mxu1 %v1733_v1  ;;  %v1682_v1 = vld [vmem:[%s1840_s11 + $0x108] ss:$16 sps:$4 sm:$0xff]  }
  0x2f   : > { %1020 = vmatpush1.bf16.msra.mxu1 %v1631_v31  ;;  %879 = vmatmul.mubr.bf16.gmra.mrb[4].mxu0 %v1637_v32 }
  0x30   : > { %886 = vmatprep.mubr.bf16.mxu0 %v1641_v34 }
  0x32   : > { %1032 = vmatmul.mubr.bf16.vlgmr.msra.gmra.mrb[0].mxu1 %v1632_v33 }
  0x33   : > { %1461 = vmatprep.mubr.msk.bf16.mxu1 %vm789_vm0, %v1638_v35 }
  0x37   : > { %887 = vmatmul.mubr.bf16.gmra.mrb[8].mxu0 %v1643_v36  ;;  %v1950_v36 = vld [vmem:[%s2096_s2] ss:$0 sm:$0xff] }
  0x38   : > { %894 = vmatprep.mubr.bf16.mxu0 %v1647_v38 }
  0x3a   : > { %1040 = vmatmul.mubr.bf16.gmra.mrb[4].mxu1 %v1640_v37 }
  0x3b   : > { %1462 = vmatprep.mubr.msk.bf16.mxu1 %vm789_vm0, %v1644_v39 }
  0x3f   : > { %895 = vmatmul.mubr.bf16.gmra.mrb[12].mxu0 %v1649_v40 }
  0x40   : > { %902 = vmatprep.mubr.bf16.mxu0 %v1653_v42  ;;  %v1955_v42 = vld [vmem:[%s2097_s3] ss:$0 sm:$0xff] }
  0x42   : > { %1048 = vmatmul.mubr.bf16.gmra.mrb[8].mxu1 %v1646_v41 }
  0x43   : > { %1463 = vmatprep.mubr.msk.bf16.mxu1 %vm789_vm0, %v1650_v43 }
  0x47   : > { %903 = vmatmul.mubr.bf16.gmra.mrb[16].mxu0 %v1655_v44 }
  0x48   : > { %910 = vmatprep.mubr.bf16.mxu0 %v1659_v46 }
  0x4a   : > { %1056 = vmatmul.mubr.bf16.gmra.mrb[12].mxu1 %v1652_v45 }
  0x4b   : > { %1464 = vmatprep.mubr.msk.bf16.mxu1 %vm789_vm0, %v1656_v47 }
  0x4f   : > { %911 = vmatmul.mubr.bf16.gmra.mrb[20].mxu0 %v1661_v48 }
  0x50   : > { %918 = vmatprep.mubr.bf16.mxu0 %v1665_v50 }
  0x52   : > { %1064 = vmatmul.mubr.bf16.gmra.mrb[16].mxu1 %v1658_v49 }
  0x53   : > { %1465 = vmatprep.mubr.msk.bf16.mxu1 %vm789_vm0, %v1662_v51 }
  0x57   : > { %919 = vmatmul.mubr.bf16.gmra.mrb[24].mxu0 %v1667_v52 }
  0x58   : > { %926 = vmatprep.mubr.bf16.mxu0 %v1671_v54 }
  0x5a   : > { %1072 = vmatmul.mubr.bf16.gmra.mrb[20].mxu1 %v1664_v53 }
  0x5b   : > { %1466 = vmatprep.mubr.msk.bf16.mxu1 %vm789_vm0, %v1668_v55 }
  0x5f   : > { %927 = vmatmul.mubr.bf16.gmra.mrb[28].mxu0 %v1673_v56 }
  0x60   : > { %934 = vmatprep.mubr.bf16.mxu0 %v1677_v58 }
  0x62   : > { %1080 = vmatmul.mubr.bf16.gmra.mrb[24].mxu1 %v1670_v57 }
  0x63   : > { %1467 = vmatprep.mubr.msk.bf16.mxu1 %vm789_vm0, %v1674_v59 }
  0x67   : > { %935 = vmatmul.mubr.bf16.gmra.mrb[32].mxu0 %v1679_v60 }
  0x68   : > { %942 = vmatprep.mubr.bf16.mxu0 %v1683_v62 }
  0x6a   : > { %1088 = vmatmul.mubr.bf16.gmra.mrb[28].mxu1 %v1676_v61 }
  0x6b   : > { %1468 = vmatprep.mubr.msk.bf16.mxu1 %vm789_vm0, %v1680_v63 }
  0x6f   : > { %943 = vmatmul.mubr.bf16.gmra.mrb[36].mxu0 %v1685_v0 }
  0x70   : > { %950 = vmatprep.mubr.bf16.mxu0 %v1689_v2 }
  0x72   : > { %1096 = vmatmul.mubr.bf16.gmra.mrb[32].mxu1 %v1682_v1 }
  0x73   : > { %1469 = vmatprep.mubr.msk.bf16.mxu1 %vm789_vm0, %v1686_v3 }
  0x77   : > { %951 = vmatmul.mubr.bf16.gmra.mrb[40].mxu0 %v1691_v4 }
  0x78   : > { %958 = vmatprep.mubr.bf16.mxu0 %v1695_v6 }
  0x7a   : > { %1104 = vmatmul.mubr.bf16.gmra.mrb[36].mxu1 %v1688_v5 }
  0x7b   : > { %1470 = vmatprep.mubr.msk.bf16.mxu1 %vm789_vm0, %v1692_v7 }
  0x7f   : > { %959 = vmatmul.mubr.bf16.gmra.mrb[44].mxu0 %v1697_v8 }
  0x80   : > { %966 = vmatprep.mubr.bf16.mxu0 %v1701_v10 }
  0x82   : > { %1112 = vmatmul.mubr.bf16.gmra.mrb[40].mxu1 %v1694_v9 }
  0x83   : > { %1471 = vmatprep.mubr.msk.bf16.mxu1 %vm789_vm0, %v1698_v11 }
  0x87   : > { %967 = vmatmul.mubr.bf16.gmra.mrb[48].mxu0 %v1703_v12 }
  0x88   : > { %974 = vmatprep.mubr.bf16.mxu0 %v1707_v14 }
  0x8a   : > { %1120 = vmatmul.mubr.bf16.gmra.mrb[44].mxu1 %v1700_v13 }
  0x8b   : > { %1472 = vmatprep.mubr.msk.bf16.mxu1 %vm789_vm0, %v1704_v15 }
  0x8f   : > { %975 = vmatmul.mubr.bf16.gmra.mrb[52].mxu0 %v1709_v16 }
  0x90   : > { %982 = vmatprep.mubr.bf16.mxu0 %v1713_v18 }
  0x92   : > { %1128 = vmatmul.mubr.bf16.gmra.mrb[48].mxu1 %v1706_v17 }
  0x93   : > { %1473 = vmatprep.mubr.msk.bf16.mxu1 %vm789_vm0, %v1710_v19 }
  0x97   : > { %983 = vmatmul.mubr.bf16.gmra.mrb[56].mxu0 %v1715_v20 }
  0x98   : > { %990 = vmatprep.mubr.bf16.mxu0 %v1719_v22 }
  0x9a   : > { %1136 = vmatmul.mubr.bf16.gmra.mrb[52].mxu1 %v1712_v21 }
  0x9b   : > { %1474 = vmatprep.mubr.msk.bf16.mxu1 %vm789_vm0, %v1716_v23 }
  0x9f   : > { %991 = vmatmul.mubr.bf16.gmra.mrb[60].mxu0 %v1721_v24 }
  0xa2   : > { %1144 = vmatmul.mubr.bf16.gmra.mrb[56].mxu1 %v1718_v25 }
  0xa3   : > { %1475 = vmatprep.mubr.msk.bf16.mxu1 %vm789_vm0, %v1722_v26 }
  0xaa   : > { %1152 = vmatmul.mubr.bf16.gmra.mrb[60].mxu1 %v1724_v27 }
  0xfa   : > { %v1497_v28 = vpop.f32.mrb[0].mxu0 }
  0xfb   : > { %v1498_v29 = vpop.f32.mrb[1].mxu0 }
  0xfc   : > { %v1499_v30 = vadd.f32 %v1498_v29, %v1497_v28  ;;  %v1500_v31 = vpop.f32.mrb[2].mxu0 }
  0xfd   : > { %v1501_v32 = vpop.f32.mrb[3].mxu0 }
  0xfe   : > { %v1502_v33 = vadd.f32 %v1501_v32, %v1500_v31 }
 0x102   : > { %v1503_v34 = vpop.f32.mrb[4].mxu0 }
 0x103   : > { %v1504_v37 = vpop.f32.mrb[5].mxu0 }
 0x104   : > { %v1505_v40 = vadd.f32 %v1504_v37, %v1503_v34  ;;  %v1506_v41 = vpop.f32.mrb[6].mxu0 }
 0x105   : > { %v1033_v35 = vpop.f32.mrb[0].mxu1  ;;  %v1507_v44 = vpop.f32.mrb[7].mxu0 }
 0x106   : > { %v1034_v38 = vadd.f32 %v1499_v30, %v1033_v35  ;;  %v1035_v39 = vpop.f32.mrb[1].mxu1  ;;  %v1508_v48 = vadd.f32 %v1507_v44, %v1506_v41 }
 0x107   : > { %v1036_v43 = vpop.f32.mrb[2].mxu1 }
 0x108   : > { %v1167_v45 = vmul.f32 %v1950_v36, %v1034_v38  ;;  %v1037_v46 = vadd.f32 %v1502_v33, %v1036_v43  ;;  %v1038_v47 = vpop.f32.mrb[3].mxu1 }
 0x10a   : > { %v1206_v49 = vadd.f32 %v1955_v42, %v1167_v45  ;;  %v1168_v50 = vmul.f32 %v1950_v36, %v1037_v46  ;;  %v1509_v53 = vpop.f32.mrb[8].mxu0 }
 0x10b   : > { %v1510_v55 = vpop.f32.mrb[9].mxu0 }
 0x10c   : > { %v1238_v51 = vmax.f32 %v1206_v49, 0.0  ;;  %v1207_v52 = vadd.f32 %v1955_v42, %v1168_v50  ;;  %v1511_v59 = vadd.f32 %v1510_v55, %v1509_v53  ;;  %v1512_v60 = vpop.f32.mrb[10].mxu0 }
 0x10d   : > { %v1041_v54 = vpop.f32.mrb[4].mxu1  ;;  %v1513_v62 = vpop.f32.mrb[11].mxu0 }
 0x10e   : > { %1271 = vst.msk [vmem:[%s1964_s8] sm:$0xff] %vm1270_vm1, %v1238_v51  ;;  %v1239_v56 = vmax.f32 %v1207_v52, 0.0  ;;  %v1042_v57 = vadd.f32 %v1505_v40, %v1041_v54  ;;  %v1043_v58 = vpop.f32.mrb[5].mxu1  ;;  %v1514_v2 = vadd.f32 %v1513_v62, %v1512_v60 }
 0x10f   : > { %v1044_v61 = vpop.f32.mrb[6].mxu1 }
 0x110   : > { %1272 = vst.msk [vmem:[%s1964_s8 + $0x8] sm:$0xff] %vm1270_vm1, %v1239_v56  ;;  %v1169_v63 = vmul.f32 %v1950_v36, %v1042_v57  ;;  %v1045_v0 = vadd.f32 %v1508_v48, %v1044_v61  ;;  %v1046_v1 = vpop.f32.mrb[7].mxu1 }
 0x112   : > { %v1208_v3 = vadd.f32 %v1955_v42, %v1169_v63  ;;  %v1170_v4 = vmul.f32 %v1950_v36, %v1045_v0  ;;  %v1515_v7 = vpop.f32.mrb[12].mxu0 }
 0x113   : > { %v1516_v9 = vpop.f32.mrb[13].mxu0 }
 0x114   : > { %v1240_v5 = vmax.f32 %v1208_v3, 0.0  ;;  %v1209_v6 = vadd.f32 %v1955_v42, %v1170_v4  ;;  %v1517_v13 = vadd.f32 %v1516_v9, %v1515_v7  ;;  %v1518_v14 = vpop.f32.mrb[14].mxu0 }
 0x115   : > { %v1049_v8 = vpop.f32.mrb[8].mxu1  ;;  %v1519_v16 = vpop.f32.mrb[15].mxu0 }
 0x116   : > { %1273 = vst.msk [vmem:[%s1964_s8 + $0x10] sm:$0xff] %vm1270_vm1, %v1240_v5  ;;  %v1241_v10 = vmax.f32 %v1209_v6, 0.0  ;;  %v1050_v11 = vadd.f32 %v1511_v59, %v1049_v8  ;;  %v1051_v12 = vpop.f32.mrb[9].mxu1  ;;  %v1520_v20 = vadd.f32 %v1519_v16, %v1518_v14 }
 0x117   : > { %v1052_v15 = vpop.f32.mrb[10].mxu1 }
 0x118   : > { %1274 = vst.msk [vmem:[%s1964_s8 + $0x18] sm:$0xff] %vm1270_vm1, %v1241_v10  ;;  %v1171_v17 = vmul.f32 %v1950_v36, %v1050_v11  ;;  %v1053_v18 = vadd.f32 %v1514_v2, %v1052_v15  ;;  %v1054_v19 = vpop.f32.mrb[11].mxu1 }
 0x11a   : > { %v1210_v21 = vadd.f32 %v1955_v42, %v1171_v17  ;;  %v1172_v22 = vmul.f32 %v1950_v36, %v1053_v18  ;;  %v1521_v25 = vpop.f32.mrb[16].mxu0 }
 0x11b   : > { %v1522_v27 = vpop.f32.mrb[17].mxu0 }
 0x11c   : > { %v1242_v23 = vmax.f32 %v1210_v21, 0.0  ;;  %v1211_v24 = vadd.f32 %v1955_v42, %v1172_v22  ;;  %v1523_v31 = vadd.f32 %v1522_v27, %v1521_v25  ;;  %v1524_v32 = vpop.f32.mrb[18].mxu0 }
 0x11d   : > { %v1057_v26 = vpop.f32.mrb[12].mxu1  ;;  %v1525_v34 = vpop.f32.mrb[19].mxu0 }
 0x11e   : > { %1275 = vst.msk [vmem:[%s1964_s8 + $0x20] sm:$0xff] %vm1270_vm1, %v1242_v23  ;;  %v1243_v28 = vmax.f32 %v1211_v24, 0.0  ;;  %v1058_v29 = vadd.f32 %v1517_v13, %v1057_v26  ;;  %v1059_v30 = vpop.f32.mrb[13].mxu1  ;;  %v1526_v39 = vadd.f32 %v1525_v34, %v1524_v32 }
 0x11f   : > { %v1060_v33 = vpop.f32.mrb[14].mxu1 }
 0x120   : > { %1276 = vst.msk [vmem:[%s1964_s8 + $0x28] sm:$0xff] %vm1270_vm1, %v1243_v28  ;;  %v1173_v35 = vmul.f32 %v1950_v36, %v1058_v29  ;;  %v1061_v37 = vadd.f32 %v1520_v20, %v1060_v33  ;;  %v1062_v38 = vpop.f32.mrb[15].mxu1 }
 0x122   : > { %v1212_v40 = vadd.f32 %v1955_v42, %v1173_v35  ;;  %v1174_v41 = vmul.f32 %v1950_v36, %v1061_v37  ;;  %v1527_v45 = vpop.f32.mrb[20].mxu0 }
 0x123   : > { %v1528_v47 = vpop.f32.mrb[21].mxu0 }
 0x124   : > { %v1244_v43 = vmax.f32 %v1212_v40, 0.0  ;;  %v1213_v44 = vadd.f32 %v1955_v42, %v1174_v41  ;;  %v1529_v51 = vadd.f32 %v1528_v47, %v1527_v45  ;;  %v1530_v52 = vpop.f32.mrb[22].mxu0 }
 0x125   : > { %v1065_v46 = vpop.f32.mrb[16].mxu1  ;;  %v1531_v54 = vpop.f32.mrb[23].mxu0 }
 0x126   : > { %1277 = vst.msk [vmem:[%s1964_s8 + $0x30] sm:$0xff] %vm1270_vm1, %v1244_v43  ;;  %v1245_v48 = vmax.f32 %v1213_v44, 0.0  ;;  %v1066_v49 = vadd.f32 %v1523_v31, %v1065_v46  ;;  %v1067_v50 = vpop.f32.mrb[17].mxu1  ;;  %v1532_v58 = vadd.f32 %v1531_v54, %v1530_v52 }
 0x127   : > { %v1068_v53 = vpop.f32.mrb[18].mxu1 }
 0x128   : > { %1278 = vst.msk [vmem:[%s1964_s8 + $0x38] sm:$0xff] %vm1270_vm1, %v1245_v48  ;;  %v1175_v55 = vmul.f32 %v1950_v36, %v1066_v49  ;;  %v1069_v56 = vadd.f32 %v1526_v39, %v1068_v53  ;;  %v1070_v57 = vpop.f32.mrb[19].mxu1 }
 0x12a   : > { %v1214_v59 = vadd.f32 %v1955_v42, %v1175_v55  ;;  %v1176_v60 = vmul.f32 %v1950_v36, %v1069_v56  ;;  %v1533_v63 = vpop.f32.mrb[24].mxu0 }
 0x12b   : > { %v1534_v1 = vpop.f32.mrb[25].mxu0 }
 0x12c   : > { %v1246_v61 = vmax.f32 %v1214_v59, 0.0  ;;  %v1215_v62 = vadd.f32 %v1955_v42, %v1176_v60  ;;  %v1535_v5 = vadd.f32 %v1534_v1, %v1533_v63  ;;  %v1536_v6 = vpop.f32.mrb[26].mxu0 }
 0x12d   : > { %v1073_v0 = vpop.f32.mrb[20].mxu1  ;;  %v1537_v8 = vpop.f32.mrb[27].mxu0 }
 0x12e   : > { %1279 = vst.msk [vmem:[%s1964_s8 + $0x40] sm:$0xff] %vm1270_vm1, %v1246_v61  ;;  %v1247_v2 = vmax.f32 %v1215_v62, 0.0  ;;  %v1074_v3 = vadd.f32 %v1529_v51, %v1073_v0  ;;  %v1075_v4 = vpop.f32.mrb[21].mxu1  ;;  %v1538_v12 = vadd.f32 %v1537_v8, %v1536_v6 }
 0x12f   : > { %v1076_v7 = vpop.f32.mrb[22].mxu1 }
 0x130   : > { %1280 = vst.msk [vmem:[%s1964_s8 + $0x48] sm:$0xff] %vm1270_vm1, %v1247_v2  ;;  %v1177_v9 = vmul.f32 %v1950_v36, %v1074_v3  ;;  %v1077_v10 = vadd.f32 %v1532_v58, %v1076_v7  ;;  %v1078_v11 = vpop.f32.mrb[23].mxu1 }
 0x132   : > { %v1216_v13 = vadd.f32 %v1955_v42, %v1177_v9  ;;  %v1178_v14 = vmul.f32 %v1950_v36, %v1077_v10  ;;  %v1539_v17 = vpop.f32.mrb[28].mxu0 }
 0x133   : > { %v1540_v19 = vpop.f32.mrb[29].mxu0 }
 0x134   : > { %v1248_v15 = vmax.f32 %v1216_v13, 0.0  ;;  %v1217_v16 = vadd.f32 %v1955_v42, %v1178_v14  ;;  %v1541_v23 = vadd.f32 %v1540_v19, %v1539_v17  ;;  %v1542_v24 = vpop.f32.mrb[30].mxu0 }
 0x135   : > { %v1081_v18 = vpop.f32.mrb[24].mxu1  ;;  %v1543_v26 = vpop.f32.mrb[31].mxu0 }
 0x136   : > { %1281 = vst.msk [vmem:[%s1964_s8 + $0x50] sm:$0xff] %vm1270_vm1, %v1248_v15  ;;  %v1249_v20 = vmax.f32 %v1217_v16, 0.0  ;;  %v1082_v21 = vadd.f32 %v1535_v5, %v1081_v18  ;;  %v1083_v22 = vpop.f32.mrb[25].mxu1  ;;  %v1544_v30 = vadd.f32 %v1543_v26, %v1542_v24 }
 0x137   : > { %v1084_v25 = vpop.f32.mrb[26].mxu1 }
 0x138   : > { %1282 = vst.msk [vmem:[%s1964_s8 + $0x58] sm:$0xff] %vm1270_vm1, %v1249_v20  ;;  %v1179_v27 = vmul.f32 %v1950_v36, %v1082_v21  ;;  %v1085_v28 = vadd.f32 %v1538_v12, %v1084_v25  ;;  %v1086_v29 = vpop.f32.mrb[27].mxu1 }
 0x13a   : > { %v1218_v31 = vadd.f32 %v1955_v42, %v1179_v27  ;;  %v1180_v32 = vmul.f32 %v1950_v36, %v1085_v28  ;;  %v1545_v35 = vpop.f32.mrb[32].mxu0 }
 0x13b   : > { %v1546_v38 = vpop.f32.mrb[33].mxu0 }
 0x13c   : > { %v1250_v33 = vmax.f32 %v1218_v31, 0.0  ;;  %v1219_v34 = vadd.f32 %v1955_v42, %v1180_v32  ;;  %v1547_v43 = vadd.f32 %v1546_v38, %v1545_v35  ;;  %v1548_v44 = vpop.f32.mrb[34].mxu0 }
 0x13d   : > { %v1089_v37 = vpop.f32.mrb[28].mxu1  ;;  %v1549_v46 = vpop.f32.mrb[35].mxu0 }
 0x13e   : > { %1283 = vst.msk [vmem:[%s1964_s8 + $0x60] sm:$0xff] %vm1270_vm1, %v1250_v33  ;;  %v1251_v39 = vmax.f32 %v1219_v34, 0.0  ;;  %v1090_v40 = vadd.f32 %v1541_v23, %v1089_v37  ;;  %v1091_v41 = vpop.f32.mrb[29].mxu1  ;;  %v1550_v50 = vadd.f32 %v1549_v46, %v1548_v44 }
 0x13f   : > { %v1092_v45 = vpop.f32.mrb[30].mxu1 }
 0x140   : > { %1284 = vst.msk [vmem:[%s1964_s8 + $0x68] sm:$0xff] %vm1270_vm1, %v1251_v39  ;;  %v1181_v47 = vmul.f32 %v1950_v36, %v1090_v40  ;;  %v1093_v48 = vadd.f32 %v1544_v30, %v1092_v45  ;;  %v1094_v49 = vpop.f32.mrb[31].mxu1 }
 0x142   : > { %v1220_v51 = vadd.f32 %v1955_v42, %v1181_v47  ;;  %v1182_v52 = vmul.f32 %v1950_v36, %v1093_v48  ;;  %v1551_v55 = vpop.f32.mrb[36].mxu0 }
 0x143   : > { %v1552_v57 = vpop.f32.mrb[37].mxu0 }
 0x144   : > { %v1252_v53 = vmax.f32 %v1220_v51, 0.0  ;;  %v1221_v54 = vadd.f32 %v1955_v42, %v1182_v52  ;;  %v1553_v61 = vadd.f32 %v1552_v57, %v1551_v55  ;;  %v1554_v62 = vpop.f32.mrb[38].mxu0 }
 0x145   : > { %v1097_v56 = vpop.f32.mrb[32].mxu1  ;;  %v1555_v0 = vpop.f32.mrb[39].mxu0 }
 0x146   : > { %1285 = vst.msk [vmem:[%s1964_s8 + $0x70] sm:$0xff] %vm1270_vm1, %v1252_v53  ;;  %v1253_v58 = vmax.f32 %v1221_v54, 0.0  ;;  %v1098_v59 = vadd.f32 %v1547_v43, %v1097_v56  ;;  %v1099_v60 = vpop.f32.mrb[33].mxu1  ;;  %v1556_v4 = vadd.f32 %v1555_v0, %v1554_v62 }
 0x147   : > { %v1100_v63 = vpop.f32.mrb[34].mxu1 }
 0x148   : > { %1286 = vst.msk [vmem:[%s1964_s8 + $0x78] sm:$0xff] %vm1270_vm1, %v1253_v58  ;;  %v1183_v1 = vmul.f32 %v1950_v36, %v1098_v59  ;;  %v1101_v2 = vadd.f32 %v1550_v50, %v1100_v63  ;;  %v1102_v3 = vpop.f32.mrb[35].mxu1 }
 0x14a   : > { %v1222_v5 = vadd.f32 %v1955_v42, %v1183_v1  ;;  %v1184_v6 = vmul.f32 %v1950_v36, %v1101_v2  ;;  %v1557_v9 = vpop.f32.mrb[40].mxu0 }
 0x14b   : > { %v1558_v11 = vpop.f32.mrb[41].mxu0 }
 0x14c   : > { %v1254_v7 = vmax.f32 %v1222_v5, 0.0  ;;  %v1223_v8 = vadd.f32 %v1955_v42, %v1184_v6  ;;  %v1559_v15 = vadd.f32 %v1558_v11, %v1557_v9  ;;  %v1560_v16 = vpop.f32.mrb[42].mxu0 }
 0x14d   : > { %v1105_v10 = vpop.f32.mrb[36].mxu1  ;;  %v1561_v18 = vpop.f32.mrb[43].mxu0 }
 0x14e   : > { %1287 = vst.msk [vmem:[%s1964_s8 + $0x80] sm:$0xff] %vm1270_vm1, %v1254_v7  ;;  %v1255_v12 = vmax.f32 %v1223_v8, 0.0  ;;  %v1106_v13 = vadd.f32 %v1553_v61, %v1105_v10  ;;  %v1107_v14 = vpop.f32.mrb[37].mxu1  ;;  %v1562_v22 = vadd.f32 %v1561_v18, %v1560_v16 }
 0x14f   : > { %v1108_v17 = vpop.f32.mrb[38].mxu1 }
 0x150   : > { %1288 = vst.msk [vmem:[%s1964_s8 + $0x88] sm:$0xff] %vm1270_vm1, %v1255_v12  ;;  %v1185_v19 = vmul.f32 %v1950_v36, %v1106_v13  ;;  %v1109_v20 = vadd.f32 %v1556_v4, %v1108_v17  ;;  %v1110_v21 = vpop.f32.mrb[39].mxu1 }
 0x152   : > { %v1224_v23 = vadd.f32 %v1955_v42, %v1185_v19  ;;  %v1186_v24 = vmul.f32 %v1950_v36, %v1109_v20  ;;  %v1563_v27 = vpop.f32.mrb[44].mxu0 }
 0x153   : > { %v1564_v29 = vpop.f32.mrb[45].mxu0 }
 0x154   : > { %v1256_v25 = vmax.f32 %v1224_v23, 0.0  ;;  %v1225_v26 = vadd.f32 %v1955_v42, %v1186_v24  ;;  %v1565_v33 = vadd.f32 %v1564_v29, %v1563_v27  ;;  %v1566_v34 = vpop.f32.mrb[46].mxu0 }
 0x155   : > { %v1113_v28 = vpop.f32.mrb[40].mxu1  ;;  %v1567_v37 = vpop.f32.mrb[47].mxu0 }
 0x156   : > { %1289 = vst.msk [vmem:[%s1964_s8 + $0x90] sm:$0xff] %vm1270_vm1, %v1256_v25  ;;  %v1257_v30 = vmax.f32 %v1225_v26, 0.0  ;;  %v1114_v31 = vadd.f32 %v1559_v15, %v1113_v28  ;;  %v1115_v32 = vpop.f32.mrb[41].mxu1  ;;  %v1568_v41 = vadd.f32 %v1567_v37, %v1566_v34 }
 0x157   : > { %v1116_v35 = vpop.f32.mrb[42].mxu1 }
 0x158   : > { %1290 = vst.msk [vmem:[%s1964_s8 + $0x98] sm:$0xff] %vm1270_vm1, %v1257_v30  ;;  %v1187_v38 = vmul.f32 %v1950_v36, %v1114_v31  ;;  %v1117_v39 = vadd.f32 %v1562_v22, %v1116_v35  ;;  %v1118_v40 = vpop.f32.mrb[43].mxu1 }
 0x15a   : > { %v1226_v43 = vadd.f32 %v1955_v42, %v1187_v38  ;;  %v1188_v44 = vmul.f32 %v1950_v36, %v1117_v39  ;;  %v1569_v47 = vpop.f32.mrb[48].mxu0 }
 0x15b   : > { %v1570_v49 = vpop.f32.mrb[49].mxu0 }
 0x15c   : > { %v1258_v45 = vmax.f32 %v1226_v43, 0.0  ;;  %v1227_v46 = vadd.f32 %v1955_v42, %v1188_v44  ;;  %v1571_v53 = vadd.f32 %v1570_v49, %v1569_v47  ;;  %v1572_v54 = vpop.f32.mrb[50].mxu0 }
 0x15d   : > { %v1121_v48 = vpop.f32.mrb[44].mxu1  ;;  %v1573_v56 = vpop.f32.mrb[51].mxu0 }
 0x15e   : > { %1291 = vst.msk [vmem:[%s1964_s8 + $0xa0] sm:$0xff] %vm1270_vm1, %v1258_v45  ;;  %v1259_v50 = vmax.f32 %v1227_v46, 0.0  ;;  %v1122_v51 = vadd.f32 %v1565_v33, %v1121_v48  ;;  %v1123_v52 = vpop.f32.mrb[45].mxu1  ;;  %v1574_v60 = vadd.f32 %v1573_v56, %v1572_v54 }
 0x15f   : > { %v1124_v55 = vpop.f32.mrb[46].mxu1 }
 0x160   : > { %1292 = vst.msk [vmem:[%s1964_s8 + $0xa8] sm:$0xff] %vm1270_vm1, %v1259_v50  ;;  %v1189_v57 = vmul.f32 %v1950_v36, %v1122_v51  ;;  %v1125_v58 = vadd.f32 %v1568_v41, %v1124_v55  ;;  %v1126_v59 = vpop.f32.mrb[47].mxu1 }
 0x162   : > { %v1228_v61 = vadd.f32 %v1955_v42, %v1189_v57  ;;  %v1190_v62 = vmul.f32 %v1950_v36, %v1125_v58  ;;  %v1575_v1 = vpop.f32.mrb[52].mxu0 }
 0x163   : > { %v1576_v3 = vpop.f32.mrb[53].mxu0 }
 0x164   : > { %v1260_v63 = vmax.f32 %v1228_v61, 0.0  ;;  %v1229_v0 = vadd.f32 %v1955_v42, %v1190_v62  ;;  %v1577_v7 = vadd.f32 %v1576_v3, %v1575_v1  ;;  %v1578_v8 = vpop.f32.mrb[54].mxu0 }
 0x165   : > { %v1129_v2 = vpop.f32.mrb[48].mxu1  ;;  %v1579_v10 = vpop.f32.mrb[55].mxu0 }
 0x166   : > { %1293 = vst.msk [vmem:[%s1964_s8 + $0xb0] sm:$0xff] %vm1270_vm1, %v1260_v63  ;;  %v1261_v4 = vmax.f32 %v1229_v0, 0.0  ;;  %v1130_v5 = vadd.f32 %v1571_v53, %v1129_v2  ;;  %v1131_v6 = vpop.f32.mrb[49].mxu1  ;;  %v1580_v14 = vadd.f32 %v1579_v10, %v1578_v8 }
 0x167   : > { %v1132_v9 = vpop.f32.mrb[50].mxu1 }
 0x168   : > { %1294 = vst.msk [vmem:[%s1964_s8 + $0xb8] sm:$0xff] %vm1270_vm1, %v1261_v4  ;;  %v1191_v11 = vmul.f32 %v1950_v36, %v1130_v5  ;;  %v1133_v12 = vadd.f32 %v1574_v60, %v1132_v9  ;;  %v1134_v13 = vpop.f32.mrb[51].mxu1 }
 0x16a   : > { %v1230_v15 = vadd.f32 %v1955_v42, %v1191_v11  ;;  %v1192_v16 = vmul.f32 %v1950_v36, %v1133_v12  ;;  %v1581_v19 = vpop.f32.mrb[56].mxu0 }
 0x16b   : > { %v1582_v21 = vpop.f32.mrb[57].mxu0 }
 0x16c   : > { %v1262_v17 = vmax.f32 %v1230_v15, 0.0  ;;  %v1231_v18 = vadd.f32 %v1955_v42, %v1192_v16  ;;  %v1583_v25 = vadd.f32 %v1582_v21, %v1581_v19  ;;  %v1584_v26 = vpop.f32.mrb[58].mxu0 }
 0x16d   : > { %v1137_v20 = vpop.f32.mrb[52].mxu1  ;;  %v1585_v28 = vpop.f32.mrb[59].mxu0 }
 0x16e   : > { %1295 = vst.msk [vmem:[%s1964_s8 + $0xc0] sm:$0xff] %vm1270_vm1, %v1262_v17  ;;  %v1263_v22 = vmax.f32 %v1231_v18, 0.0  ;;  %v1138_v23 = vadd.f32 %v1577_v7, %v1137_v20  ;;  %v1139_v24 = vpop.f32.mrb[53].mxu1  ;;  %v1586_v32 = vadd.f32 %v1585_v28, %v1584_v26 }
 0x16f   : > { %v1140_v27 = vpop.f32.mrb[54].mxu1 }
 0x170   : > { %1296 = vst.msk [vmem:[%s1964_s8 + $0xc8] sm:$0xff] %vm1270_vm1, %v1263_v22  ;;  %v1193_v29 = vmul.f32 %v1950_v36, %v1138_v23  ;;  %v1141_v30 = vadd.f32 %v1580_v14, %v1140_v27  ;;  %v1142_v31 = vpop.f32.mrb[55].mxu1 }
 0x172   : > { %v1232_v33 = vadd.f32 %v1955_v42, %v1193_v29  ;;  %v1194_v34 = vmul.f32 %v1950_v36, %v1141_v30  ;;  %v1587_v38 = vpop.f32.mrb[60].mxu0 }
 0x173   : > { %v1588_v40 = vpop.f32.mrb[61].mxu0 }
 0x174   : > { %v1264_v35 = vmax.f32 %v1232_v33, 0.0  ;;  %v1233_v37 = vadd.f32 %v1955_v42, %v1194_v34  ;;  %v1589_v45 = vadd.f32 %v1588_v40, %v1587_v38  ;;  %v1590_v46 = vpop.f32.mrb[62].mxu0 }
 0x175   : > { %v1145_v39 = vpop.f32.mrb[56].mxu1  ;;  %v1591_v48 = vpop.f32.mrb[63].mxu0 }
 0x176   : > { %1297 = vst.msk [vmem:[%s1964_s8 + $0xd0] sm:$0xff] %vm1270_vm1, %v1264_v35  ;;  %v1265_v41 = vmax.f32 %v1233_v37, 0.0  ;;  %v1146_v43 = vadd.f32 %v1583_v25, %v1145_v39  ;;  %v1147_v44 = vpop.f32.mrb[57].mxu1  ;;  %v1592_v52 = vadd.f32 %v1591_v48, %v1590_v46 }
 0x177   : > { %v1148_v47 = vpop.f32.mrb[58].mxu1 }
 0x178   : > { %1298 = vst.msk [vmem:[%s1964_s8 + $0xd8] sm:$0xff] %vm1270_vm1, %v1265_v41  ;;  %v1195_v49 = vmul.f32 %v1950_v36, %v1146_v43  ;;  %v1149_v50 = vadd.f32 %v1586_v32, %v1148_v47  ;;  %v1150_v51 = vpop.f32.mrb[59].mxu1 }
 0x17a   : > { %v1234_v53 = vadd.f32 %v1955_v42, %v1195_v49  ;;  %v1196_v54 = vmul.f32 %v1950_v36, %v1149_v50 }
 0x17c   : > { %v1266_v55 = vmax.f32 %v1234_v53, 0.0  ;;  %v1235_v56 = vadd.f32 %v1955_v42, %v1196_v54 }
 0x17d   : > { %v1153_v57 = vpop.f32.mrb[60].mxu1 }
 0x17e   : > { %1299 = vst.msk [vmem:[%s1964_s8 + $0xe0] sm:$0xff] %vm1270_vm1, %v1266_v55  ;;  %v1267_v58 = vmax.f32 %v1235_v56, 0.0  ;;  %v1154_v59 = vadd.f32 %v1589_v45, %v1153_v57  ;;  %v1155_v60 = vpop.f32.mrb[61].mxu1 }
 0x17f   : > { %v1156_v61 = vpop.f32.mrb[62].mxu1 }
 0x180   : > { %1300 = vst.msk [vmem:[%s1964_s8 + $0xe8] sm:$0xff] %vm1270_vm1, %v1267_v58  ;;  %v1197_v62 = vmul.f32 %v1950_v36, %v1154_v59  ;;  %v1157_v63 = vadd.f32 %v1592_v52, %v1156_v61  ;;  %v1158_v0 = vpop.f32.mrb[63].mxu1 }
 0x182   : > { %v1236_v1 = vadd.f32 %v1955_v42, %v1197_v62  ;;  %v1198_v2 = vmul.f32 %v1950_v36, %v1157_v63 }
 0x184   : > { %v1268_v3 = vmax.f32 %v1236_v1, 0.0  ;;  %v1237_v4 = vadd.f32 %v1955_v42, %v1198_v2 }
 0x186   : > { %1301 = vst.msk [vmem:[%s1964_s8 + $0xf0] sm:$0xff] %vm1270_vm1, %v1268_v3  ;;  %v1269_v5 = vmax.f32 %v1237_v4, 0.0 }
 0x188   : > { %1302 = vst.msk [vmem:[%s1964_s8 + $0xf8] sm:$0xff] %vm1270_vm1, %v1269_v5 }
 0x189 PF: > { %s14_s15 = sadd.s32 1, %s1731_s15  }
 0x18a   : > { %p11_p4 = scmp.ge.s32.totalorder %s14_s15, 4  }
 0x18c   :  { %13 = sbr.rel (!%p11_p4) target bundleno = 1 (0x1), region = 66 }

// kernel: ega_forward.16
= control target key start
LH: loop header
LB: loop body
LE: loop exit
PB: predicated region body
PF: predicated region fallthrough
CT: control target
= control target key end

     0   :  { %s1807_s25 = smov 0   ;;  %s2115_s0 = inlined_call_operand.vmem [shape: bf16[512,144], index: 0, kind: input, shape index: {}]   ;;  %s2116_s1 = inlined_call_operand.vmem [shape: bf16[144,1], index: 1, kind: input, shape index: {}]   ;;  %s2117_s2 = inlined_call_operand.<no memory space> [shape: f32[1,1], index: 2, kind: input, shape index: {}]   ;;  %s2118_s4 = inlined_call_operand.vmem [shape: f32[512,16], index: 4, kind: input, shape index: {}]   ;;  %s2119_s5 = inlined_call_operand.vmem [shape: f32[512,16], index: 5, kind: input, shape index: {}]   ;;  %s2120_s6 = inlined_call_operand.vmem [shape: f32[512,16], index: 6, kind: output, shape index: {}]   ;;  %s2121_s3 = inlined_call_operand.<no memory space> [shape: f32[1,1], index: 3, kind: input, shape index: {}]  }
   0x1   :  { %v11_v0 = vstv %s2117_s2  ;;  %v13_v1 = vstv %s2121_s3 }
   0x2   :  { %12 = vst [vmem:[#allocation2] sm:$0x1] %v11_v0  ;;  %14 = vst [vmem:[#allocation3] sm:$0x1] %v13_v1 }
   0x3 LB: > { %s1435_s26 = sadd.s32 4294967295, %s1763_s25   ;;  %p1439_p0 = scmp.ge.s32.totalorder %s1763_s25, 1  ;;  %s1763_s25 = sphi %s1807_s25, %s20_s25  }
   0x4   : > { %p240_p1 = scmp.lt.s32.totalorder %s1763_s25, 3 }
   0x6   : > { %p241_p2 = pnand %p1439_p0, %p240_p1 }
   0x7   : > { %v1572_v2 = vld [vmem:[%s2116_s1] sm:$0xff] (!%p241_p2)   ;;  %v1765_v3 = vmov (!%p241_p2), 0   ;;  %s1440_s3 = sshll.u32 (!%p241_p2), %s1435_s26, 5  ;;  %v1573_v4 = vld [vmem:[%s2116_s1 + $0x8] sm:$0xff] (!%p241_p2)   ;;  %v1574_v5 = vld [vmem:[%s2116_s1 + $0x10] sm:$0xff] (!%p241_p2)   ;;  %vm555_vm0 = vcmask (!%p241_p2), 130048  }
   0x8   : > { %244 = sbr.rel (%p241_p2) target bundleno = 486 (0x1e6), region = 44  ;;  %604 = vmatprep.subr.bf16.mxu0 (!%p241_p2), %v1765_v3  ;;  %1543 = vmatprep.subr.bf16.mxu1 (!%p241_p2), %v1765_v3  ;;  %p282_p3 = scmp.lt.s32.totalorder (!%p241_p2), %s1440_s3, 63  ;;  %v1575_v6 = vld [vmem:[%s2116_s1 + $0x18] sm:$0xff] (!%p241_p2)   ;;  %v1576_v9 = vld [vmem:[%s2116_s1 + $0x20] sm:$0xff] (!%p241_p2)   ;;  %v1577_v10 = vld [vmem:[%s2116_s1 + $0x28] sm:$0xff] (!%p241_p2)  }
   0x9   : > { %605 = vmatpush1.bf16.msra.mxu0 (!%p241_p2), %v1572_v2  ;;  %1552 = vmatpush1.bf16.msra.mxu1 (!%p241_p2), %v1572_v2  ;;  %v1578_v11 = vld [vmem:[%s2116_s1 + $0x30] sm:$0xff] (!%p241_p2)   ;;  %v1579_v12 = vld [vmem:[%s2116_s1 + $0x38] sm:$0xff] (!%p241_p2)   ;;  %v1580_v13 = vld [vmem:[%s2116_s1 + $0x40] sm:$0xff] (!%p241_p2)  }
   0xa   : > { %606 = vmatprep.subr.bf16.mxu0 (!%p241_p2), %v1765_v3  ;;  %1544 = vmatprep.subr.bf16.mxu1 (!%p241_p2), %v1765_v3  ;;  %v1898_v44 = vld [vmem:[#allocation2] ss:$0 sm:$0xff] (!%p241_p2)  ;;  %v1900_v46 = vld [vmem:[#allocation3] ss:$0 sm:$0xff] (!%p241_p2) }
   0xb   : > { %1570 = vset.pattern.permute.xlu0 (!%p241_p2), %v1765_v3  ;;  %1571 = vset.pattern.permute.xlu1 (!%p241_p2), %v1765_v3 }
   0xd   : > { %607 = vmatpush1.bf16.msra.mxu0 (!%p241_p2), %v1573_v4  ;;  %1553 = vmatpush1.bf16.msra.mxu1 (!%p241_p2), %v1573_v4 }
   0xe   : > { %608 = vmatprep.subr.bf16.mxu0 (!%p241_p2), %v1765_v3  ;;  %1545 = vmatprep.subr.bf16.mxu1 (!%p241_p2), %v1765_v3 }
   0xf   : > { %s2123_s3 = smov (!%p282_p3, %s1440_s3), 63 }
  0x10   : > { %s1824_s8 = sshll.u32 %s2123_s3, 3 }
  0x11   : > { %s1830_s11 = scalar_lea.vmem %s2115_s0, %s1824_s8  ;;  %609 = vmatpush1.bf16.msra.mxu0 %v1574_v5  ;;  %1554 = vmatpush1.bf16.msra.mxu1 %v1574_v5  ;;  %s1970_s2 = scalar_lea.vmem %s2118_s4, %s1824_s8 }
  0x12   : > { %v1583_v7 = vld [vmem:[%s1830_s11 + $0x4] ss:$8 sps:$4 sm:$0xff]   ;;  %610 = vmatprep.subr.bf16.mxu0 %v1765_v3  ;;  %1546 = vmatprep.subr.bf16.mxu1 %v1765_v3  ;;  %v1581_v14 = vld [vmem:[%s1830_s11] ss:$8 sps:$4 sm:$0xff]   ;;  %v1587_v16 = vld [vmem:[%s1830_s11 + $0x14] ss:$8 sps:$4 sm:$0xff]   ;;  %s1976_s28 = scalar_lea.vmem %s2119_s5, %s1824_s8  ;;  %s1985_s7 = scalar_lea.vmem %s2120_s6, %s1824_s8 }
  0x13   : > { %v1586_v8 = vld [vmem:[%s1830_s11 + $0x84] ss:$8 sps:$4 sm:$0xff]   ;;  %1490 = vmatprep.mubr.msk.bf16.mxu0 %vm555_vm0, %v1583_v7  ;;  %v1584_v15 = vld [vmem:[%s1830_s11 + $0x80] ss:$8 sps:$4 sm:$0xff]   ;;  %v1590_v17 = vld [vmem:[%s1830_s11 + $0x94] ss:$8 sps:$4 sm:$0xff]  }
  0x14   : > { %1498 = vmatprep.mubr.msk.bf16.mxu1 %vm555_vm0, %v1586_v8  ;;  %v1589_v18 = vld [vmem:[%s1830_s11 + $0x10] ss:$8 sps:$4 sm:$0xff]   ;;  %v1593_v20 = vld [vmem:[%s1830_s11 + $0x24] ss:$8 sps:$4 sm:$0xff]   ;;  %v1595_v22 = vld [vmem:[%s1830_s11 + $0x20] ss:$8 sps:$4 sm:$0xff]  }
  0x15   : > { %611 = vmatpush1.bf16.msra.mxu0 %v1575_v6  ;;  %1555 = vmatpush1.bf16.msra.mxu1 %v1575_v6  ;;  %v1592_v19 = vld [vmem:[%s1830_s11 + $0x90] ss:$8 sps:$4 sm:$0xff]   ;;  %v1596_v21 = vld [vmem:[%s1830_s11 + $0xa4] ss:$8 sps:$4 sm:$0xff]   ;;  %v1598_v23 = vld [vmem:[%s1830_s11 + $0xa0] ss:$8 sps:$4 sm:$0xff]  }
  0x16   : > { %612 = vmatprep.subr.bf16.mxu0 %v1765_v3  ;;  %1547 = vmatprep.subr.bf16.mxu1 %v1765_v3  ;;  %v1599_v24 = vld [vmem:[%s1830_s11 + $0x34] ss:$8 sps:$4 sm:$0xff]   ;;  %v1601_v26 = vld [vmem:[%s1830_s11 + $0x30] ss:$8 sps:$4 sm:$0xff]   ;;  %v1605_v28 = vld [vmem:[%s1830_s11 + $0x44] ss:$8 sps:$4 sm:$0xff]  }
  0x17   : > { %v1602_v25 = vld [vmem:[%s1830_s11 + $0xb4] ss:$8 sps:$4 sm:$0xff]   ;;  %v1604_v27 = vld [vmem:[%s1830_s11 + $0xb0] ss:$8 sps:$4 sm:$0xff]   ;;  %v1608_v29 = vld [vmem:[%s1830_s11 + $0xc4] ss:$8 sps:$4 sm:$0xff]  }
  0x18   : > { %v1607_v30 = vld [vmem:[%s1830_s11 + $0x40] ss:$8 sps:$4 sm:$0xff]   ;;  %v1611_v32 = vld [vmem:[%s1830_s11 + $0x54] ss:$8 sps:$4 sm:$0xff]   ;;  %v1613_v34 = vld [vmem:[%s1830_s11 + $0x50] ss:$8 sps:$4 sm:$0xff]  }
  0x19   : > { %613 = vmatpush1.bf16.msra.mxu0 %v1576_v9  ;;  %1556 = vmatpush1.bf16.msra.mxu1 %v1576_v9  ;;  %v1610_v31 = vld [vmem:[%s1830_s11 + $0xc0] ss:$8 sps:$4 sm:$0xff]   ;;  %v1614_v33 = vld [vmem:[%s1830_s11 + $0xd4] ss:$8 sps:$4 sm:$0xff]   ;;  %v1616_v35 = vld [vmem:[%s1830_s11 + $0xd0] ss:$8 sps:$4 sm:$0xff]  }
  0x1a   : > { %614 = vmatprep.subr.bf16.mxu0 %v1765_v3  ;;  %1548 = vmatprep.subr.bf16.mxu1 %v1765_v3  ;;  %v1617_v36 = vld [vmem:[%s1830_s11 + $0x64] ss:$8 sps:$4 sm:$0xff]   ;;  %v1619_v38 = vld [vmem:[%s1830_s11 + $0x60] ss:$8 sps:$4 sm:$0xff]   ;;  %v1623_v40 = vld [vmem:[%s1830_s11 + $0x74] ss:$8 sps:$4 sm:$0xff]  }
  0x1b   : > { %v1620_v37 = vld [vmem:[%s1830_s11 + $0xe4] ss:$8 sps:$4 sm:$0xff]   ;;  %v1622_v39 = vld [vmem:[%s1830_s11 + $0xe0] ss:$8 sps:$4 sm:$0xff]   ;;  %v1626_v41 = vld [vmem:[%s1830_s11 + $0xf4] ss:$8 sps:$4 sm:$0xff]  }
  0x1c   : > { %v1625_v42 = vld [vmem:[%s1830_s11 + $0x70] ss:$8 sps:$4 sm:$0xff]  }
  0x1d   : > { %615 = vmatpush1.bf16.msra.mxu0 %v1577_v10  ;;  %1557 = vmatpush1.bf16.msra.mxu1 %v1577_v10  ;;  %v1628_v43 = vld [vmem:[%s1830_s11 + $0xf0] ss:$8 sps:$4 sm:$0xff]  }
  0x1e   : > { %616 = vmatprep.subr.bf16.mxu0 %v1765_v3  ;;  %1549 = vmatprep.subr.bf16.mxu1 %v1765_v3 }
  0x21   : > { %617 = vmatpush1.bf16.msra.mxu0 %v1578_v11  ;;  %1558 = vmatpush1.bf16.msra.mxu1 %v1578_v11 }
  0x22   : > { %618 = vmatprep.subr.bf16.mxu0 %v1765_v3  ;;  %1550 = vmatprep.subr.bf16.mxu1 %v1765_v3 }
  0x25   : > { %619 = vmatpush1.bf16.msra.mxu0 %v1579_v12  ;;  %1559 = vmatpush1.bf16.msra.mxu1 %v1579_v12 }
  0x26   : > { %620 = vmatprep.subr.bf16.mxu0 %v1765_v3  ;;  %1551 = vmatprep.subr.bf16.mxu1 %v1765_v3 }
  0x29   : > { %621 = vmatpush1.bf16.msra.mxu0 %v1580_v13  ;;  %1560 = vmatpush1.bf16.msra.mxu1 %v1580_v13 }
  0x2c   : > { %637 = vmatmul.mubr.bf16.vlgmr.msra.gmra.mrb[0].mxu0 %v1581_v14  ;;  %701 = vmatmul.mubr.bf16.vlgmr.msra.gmra.mrb[0].mxu1 %v1584_v15 }
  0x2d   : > { %1491 = vmatprep.mubr.msk.bf16.mxu0 %vm555_vm0, %v1587_v16  ;;  %1499 = vmatprep.mubr.msk.bf16.mxu1 %vm555_vm0, %v1590_v17 }
  0x34   : > { %645 = vmatmul.mubr.bf16.gmra.mrb[4].mxu0 %v1589_v18  ;;  %709 = vmatmul.mubr.bf16.gmra.mrb[4].mxu1 %v1592_v19 }
  0x35   : > { %1492 = vmatprep.mubr.msk.bf16.mxu0 %vm555_vm0, %v1593_v20  ;;  %1500 = vmatprep.mubr.msk.bf16.mxu1 %vm555_vm0, %v1596_v21 }
  0x3c   : > { %653 = vmatmul.mubr.bf16.gmra.mrb[8].mxu0 %v1595_v22  ;;  %717 = vmatmul.mubr.bf16.gmra.mrb[8].mxu1 %v1598_v23 }
  0x3d   : > { %1493 = vmatprep.mubr.msk.bf16.mxu0 %vm555_vm0, %v1599_v24  ;;  %1501 = vmatprep.mubr.msk.bf16.mxu1 %vm555_vm0, %v1602_v25 }
  0x44   : > { %661 = vmatmul.mubr.bf16.gmra.mrb[12].mxu0 %v1601_v26  ;;  %725 = vmatmul.mubr.bf16.gmra.mrb[12].mxu1 %v1604_v27 }
  0x45   : > { %1494 = vmatprep.mubr.msk.bf16.mxu0 %vm555_vm0, %v1605_v28  ;;  %1502 = vmatprep.mubr.msk.bf16.mxu1 %vm555_vm0, %v1608_v29 }
  0x4c   : > { %669 = vmatmul.mubr.bf16.gmra.mrb[16].mxu0 %v1607_v30  ;;  %733 = vmatmul.mubr.bf16.gmra.mrb[16].mxu1 %v1610_v31 }
  0x4d   : > { %1495 = vmatprep.mubr.msk.bf16.mxu0 %vm555_vm0, %v1611_v32  ;;  %1503 = vmatprep.mubr.msk.bf16.mxu1 %vm555_vm0, %v1614_v33 }
  0x54   : > { %677 = vmatmul.mubr.bf16.gmra.mrb[20].mxu0 %v1613_v34  ;;  %741 = vmatmul.mubr.bf16.gmra.mrb[20].mxu1 %v1616_v35 }
  0x55   : > { %1496 = vmatprep.mubr.msk.bf16.mxu0 %vm555_vm0, %v1617_v36  ;;  %1504 = vmatprep.mubr.msk.bf16.mxu1 %vm555_vm0, %v1620_v37 }
  0x5c   : > { %685 = vmatmul.mubr.bf16.gmra.mrb[24].mxu0 %v1619_v38  ;;  %749 = vmatmul.mubr.bf16.gmra.mrb[24].mxu1 %v1622_v39 }
  0x5d   : > { %1497 = vmatprep.mubr.msk.bf16.mxu0 %vm555_vm0, %v1623_v40  ;;  %1505 = vmatprep.mubr.msk.bf16.mxu1 %vm555_vm0, %v1626_v41 }
  0x64   : > { %693 = vmatmul.mubr.bf16.gmra.mrb[28].mxu0 %v1625_v42  ;;  %757 = vmatmul.mubr.bf16.gmra.mrb[28].mxu1 %v1628_v43 }
  0xff   : > { %v638_v45 = vpop.f32.mrb[0].mxu0  ;;  %v702_v47 = vpop.f32.mrb[0].mxu1 }
 0x100   : > { %v772_v48 = vmul.f32 %v1898_v44, %v638_v45  ;;  %v788_v49 = vmul.f32 %v1898_v44, %v702_v47  ;;  %v640_v50 = vpop.f32.mrb[1].mxu0  ;;  %v704_v51 = vpop.f32.mrb[1].mxu1 }
 0x101   : > { %v641_v52 = vpop.f32.mrb[2].mxu0  ;;  %v705_v53 = vpop.f32.mrb[2].mxu1 }
 0x102   : > { %v811_v54 = vadd.f32 %v1900_v46, %v772_v48  ;;  %v827_v55 = vadd.f32 %v1900_v46, %v788_v49  ;;  %v773_v56 = vmul.f32 %v1898_v44, %v641_v52  ;;  %v789_v57 = vmul.f32 %v1898_v44, %v705_v53  ;;  %v643_v58 = vpop.f32.mrb[3].mxu0  ;;  %v707_v59 = vpop.f32.mrb[3].mxu1 }
 0x104   : > { %v1508_v60 = vmul.f32 -1.442695, %v811_v54  ;;  %v1524_v61 = vmul.f32 -1.442695, %v827_v55  ;;  %v812_v62 = vadd.f32 %v1900_v46, %v773_v56  ;;  %v828_v63 = vadd.f32 %v1900_v46, %v789_v57 }
 0x106   : > { %1629 = vpow2.f32 %v1508_v60  ;;  %v1509_v0 = vmul.f32 -1.442695, %v812_v62  ;;  %v1525_v1 = vmul.f32 -1.442695, %v828_v63 }
 0x107   : > { %1631 = vpow2.f32 %v1524_v61  ;;  %v646_v2 = vpop.f32.mrb[4].mxu0  ;;  %v710_v3 = vpop.f32.mrb[4].mxu1 }
 0x108   : > { %1633 = vpow2.f32 %v1509_v0  ;;  %v774_v4 = vmul.f32 %v1898_v44, %v646_v2  ;;  %v648_v5 = vpop.f32.mrb[5].mxu0  ;;  %v790_v6 = vmul.f32 %v1898_v44, %v710_v3  ;;  %v712_v7 = vpop.f32.mrb[5].mxu1 }
 0x109   : > { %1635 = vpow2.f32 %v1525_v1  ;;  %v649_v8 = vpop.f32.mrb[6].mxu0  ;;  %v713_v9 = vpop.f32.mrb[6].mxu1 }
 0x10a   : > { %v813_v10 = vadd.f32 %v1900_v46, %v774_v4  ;;  %v775_v11 = vmul.f32 %v1898_v44, %v649_v8  ;;  %v651_v12 = vpop.f32.mrb[7].mxu0  ;;  %v829_v13 = vadd.f32 %v1900_v46, %v790_v6  ;;  %v791_v14 = vmul.f32 %v1898_v44, %v713_v9  ;;  %v715_v15 = vpop.f32.mrb[7].mxu1 }
 0x10c   : > { %v1510_v16 = vmul.f32 -1.442695, %v813_v10  ;;  %v814_v17 = vadd.f32 %v1900_v46, %v775_v11  ;;  %v1526_v18 = vmul.f32 -1.442695, %v829_v13  ;;  %v830_v19 = vadd.f32 %v1900_v46, %v791_v14 }
 0x10e   : > { %1637 = vpow2.f32 %v1510_v16  ;;  %v1511_v20 = vmul.f32 -1.442695, %v814_v17  ;;  %v1527_v21 = vmul.f32 -1.442695, %v830_v19 }
 0x10f   : > { %1639 = vpow2.f32 %v1526_v18  ;;  %v654_v22 = vpop.f32.mrb[8].mxu0  ;;  %v718_v23 = vpop.f32.mrb[8].mxu1 }
 0x110   : > { %v1630_v24 = vpop.eup %1629  ;;  %1641 = vpow2.f32 %v1511_v20  ;;  %v776_v25 = vmul.f32 %v1898_v44, %v654_v22  ;;  %v656_v26 = vpop.f32.mrb[9].mxu0  ;;  %v792_v27 = vmul.f32 %v1898_v44, %v718_v23 }
 0x111   : > { %v720_v28 = vpop.f32.mrb[9].mxu1  ;;  %v1632_v29 = vpop.eup %1631  ;;  %v939_v30 = vadd.f32 1.0, %v1630_v24  ;;  %1643 = vpow2.f32 %v1527_v21 }
 0x112   : > { %v657_v31 = vpop.f32.mrb[10].mxu0  ;;  %v721_v32 = vpop.f32.mrb[10].mxu1  ;;  %v955_v34 = vadd.f32 1.0, %v1632_v29  ;;  %v815_v35 = vadd.f32 %v1900_v46, %v776_v25  ;;  %v831_v38 = vadd.f32 %v1900_v46, %v792_v27 }
 0x113   : > { %v1634_v33 = vpop.eup %1633  ;;  %v777_v36 = vmul.f32 %v1898_v44, %v657_v31  ;;  %v659_v37 = vpop.f32.mrb[11].mxu0  ;;  %1645 = vrcp.f32 %v939_v30  ;;  %v793_v42 = vmul.f32 %v1898_v44, %v721_v32 }
 0x114   : > { %v723_v39 = vpop.f32.mrb[11].mxu1  ;;  %v1636_v40 = vpop.eup %1635  ;;  %v940_v41 = vadd.f32 1.0, %v1634_v33  ;;  %1647 = vrcp.f32 %v955_v34  ;;  %v1512_v45 = vmul.f32 -1.442695, %v815_v35  ;;  %v1528_v48 = vmul.f32 -1.442695, %v831_v38 }
 0x115   : > { %v956_v43 = vadd.f32 1.0, %v1636_v40  ;;  %v816_v47 = vadd.f32 %v1900_v46, %v777_v36  ;;  %v832_v49 = vadd.f32 %v1900_v46, %v793_v42 }
 0x116   : > { %1649 = vrcp.f32 %v940_v41 }
 0x117   : > { %1651 = vrcp.f32 %v956_v43  ;;  %v1513_v50 = vmul.f32 -1.442695, %v816_v47  ;;  %v1529_v51 = vmul.f32 -1.442695, %v832_v49  ;;  %v662_v52 = vpop.f32.mrb[12].mxu0  ;;  %v726_v53 = vpop.f32.mrb[12].mxu1 }
 0x118   : > { %1653 = vpow2.f32 %v1512_v45  ;;  %v1638_v54 = vpop.eup %1637  ;;  %v778_v55 = vmul.f32 %v1898_v44, %v662_v52  ;;  %v664_v56 = vpop.f32.mrb[13].mxu0  ;;  %v794_v57 = vmul.f32 %v1898_v44, %v726_v53 }
 0x119   : > { %1655 = vpow2.f32 %v1513_v50  ;;  %v728_v58 = vpop.f32.mrb[13].mxu1  ;;  %v1640_v59 = vpop.eup %1639  ;;  %v941_v60 = vadd.f32 1.0, %v1638_v54 }
 0x11a   : > { %1657 = vpow2.f32 %v1528_v48  ;;  %v665_v61 = vpop.f32.mrb[14].mxu0  ;;  %v729_v62 = vpop.f32.mrb[14].mxu1  ;;  %v957_v0 = vadd.f32 1.0, %v1640_v59  ;;  %v817_v1 = vadd.f32 %v1900_v46, %v778_v55  ;;  %v833_v7 = vadd.f32 %v1900_v46, %v794_v57 }
 0x11b   : > { %v1642_v63 = vpop.eup %1641  ;;  %1659 = vpow2.f32 %v1529_v51  ;;  %v779_v2 = vmul.f32 %v1898_v44, %v665_v61  ;;  %v667_v3 = vpop.f32.mrb[15].mxu0  ;;  %v795_v8 = vmul.f32 %v1898_v44, %v729_v62 }
 0x11c   : > { %v731_v4 = vpop.f32.mrb[15].mxu1  ;;  %v1644_v5 = vpop.eup %1643  ;;  %1661 = vrcp.f32 %v941_v60  ;;  %v942_v6 = vadd.f32 1.0, %v1642_v63  ;;  %v1514_v9 = vmul.f32 -1.442695, %v817_v1  ;;  %v1530_v12 = vmul.f32 -1.442695, %v833_v7 }
 0x11d   : > { %v818_v10 = vadd.f32 %v1900_v46, %v779_v2  ;;  %v1646_v11 = vpop.eup %1645  ;;  %1663 = vrcp.f32 %v957_v0  ;;  %v834_v13 = vadd.f32 %v1900_v46, %v795_v8  ;;  %v958_v17 = vadd.f32 1.0, %v1644_v5 }
 0x11e   : > { %v1648_v14 = vpop.eup %1647  ;;  %1665 = vrcp.f32 %v942_v6  ;;  %1069 = vperm.xlu0 %1570, %v1646_v11  }
 0x11f   : > { %v1515_v15 = vmul.f32 -1.442695, %v818_v10  ;;  %1667 = vpow2.f32 %v1514_v9  ;;  %v1531_v18 = vmul.f32 -1.442695, %v834_v13  ;;  %v670_v19 = vpop.f32.mrb[16].mxu0  ;;  %v734_v20 = vpop.f32.mrb[16].mxu1 }
 0x120   : > { %v1650_v16 = vpop.eup %1649  ;;  %v780_v22 = vmul.f32 %v1898_v44, %v670_v19  ;;  %v672_v23 = vpop.f32.mrb[17].mxu0  ;;  %v796_v24 = vmul.f32 %v1898_v44, %v734_v20 }
 0x121   : > { %v1652_v21 = vpop.eup %1651  ;;  %1669 = vpow2.f32 %v1515_v15  ;;  %v736_v25 = vpop.f32.mrb[17].mxu1 }
 0x122   : > { %v1654_v26 = vpop.eup %1653  ;;  %1671 = vpow2.f32 %v1530_v12  ;;  %1154 = vperm.xlu1 %1571, %v1652_v21   ;;  %v673_v27 = vpop.f32.mrb[18].mxu0  ;;  %v819_v31 = vadd.f32 %v1900_v46, %v780_v22  ;;  %1149 = vperm.xlu0 %1570, %v1648_v14   ;;  %v835_v37 = vadd.f32 %v1900_v46, %v796_v24 }
 0x123   : > { %v737_v28 = vpop.f32.mrb[18].mxu1  ;;  %v1656_v29 = vpop.eup %1655  ;;  %v943_v30 = vadd.f32 1.0, %v1654_v26  ;;  %1673 = vpow2.f32 %v1531_v18  ;;  %v781_v32 = vmul.f32 %v1898_v44, %v673_v27 }
 0x124   : > { %v675_v33 = vpop.f32.mrb[19].mxu0  ;;  %v739_v34 = vpop.f32.mrb[19].mxu1  ;;  %1675 = vrcp.f32 %v958_v17  ;;  %v944_v36 = vadd.f32 1.0, %v1656_v29  ;;  %v797_v38 = vmul.f32 %v1898_v44, %v737_v28  ;;  %v1516_v41 = vmul.f32 -1.442695, %v819_v31 }
 0x125   : > { %v1658_v35 = vpop.eup %1657  ;;  %1677 = vrcp.f32 %v943_v30  ;;  %v820_v42 = vadd.f32 %v1900_v46, %v781_v32  ;;  %v1532_v49 = vmul.f32 -1.442695, %v835_v37 }
 0x126   : > { %v1660_v39 = vpop.eup %1659  ;;  %v959_v40 = vadd.f32 1.0, %v1658_v35  ;;  %1679 = vrcp.f32 %v944_v36  ;;  %v836_v47 = vadd.f32 %v1900_v46, %v797_v38  ;;  %1074 = vperm.xlu0 %1570, %v1650_v16  }
 0x127   : > { %v1662_v43 = vpop.eup %1661  ;;  %v960_v45 = vadd.f32 1.0, %v1660_v39  ;;  %v1517_v48 = vmul.f32 -1.442695, %v820_v42  ;;  %v678_v52 = vpop.f32.mrb[20].mxu0 }
 0x128   : > { %1681 = vrcp.f32 %v959_v40  ;;  %1079 = vperm.xlu1 %1571, %v1662_v43   ;;  %v1664_v50 = vpop.eup %1663  ;;  %v1533_v51 = vmul.f32 -1.442695, %v836_v47  ;;  %v742_v53 = vpop.f32.mrb[20].mxu1  ;;  %v782_v55 = vmul.f32 %v1898_v44, %v678_v52 }
 0x129   : > { %1683 = vrcp.f32 %v960_v45  ;;  %v1666_v54 = vpop.eup %1665  ;;  %v680_v56 = vpop.f32.mrb[21].mxu0  ;;  %v798_v57 = vmul.f32 %v1898_v44, %v742_v53 }
 0x12a   : > { %1685 = vpow2.f32 %v1516_v41  ;;  %v744_v58 = vpop.f32.mrb[21].mxu1  ;;  %v1668_v59 = vpop.eup %1667  ;;  %v821_v0 = vadd.f32 %v1900_v46, %v782_v55  ;;  %1159 = vperm.xlu0 %1570, %v1664_v50  }
 0x12b   : > { %1687 = vpow2.f32 %v1517_v48  ;;  %v681_v60 = vpop.f32.mrb[22].mxu0  ;;  %v745_v61 = vpop.f32.mrb[22].mxu1  ;;  %v945_v63 = vadd.f32 1.0, %v1668_v59  ;;  %v837_v6 = vadd.f32 %v1900_v46, %v798_v57 }
 0x12c   : > { %v1670_v62 = vpop.eup %1669  ;;  %1689 = vpow2.f32 %v1532_v49  ;;  %v783_v1 = vmul.f32 %v1898_v44, %v681_v60  ;;  %1084 = vperm.xlu1 %1571, %v1666_v54   ;;  %v683_v2 = vpop.f32.mrb[23].mxu0  ;;  %v799_v7 = vmul.f32 %v1898_v44, %v745_v61  ;;  %v1518_v10 = vmul.f32 -1.442695, %v821_v0 }
 0x12d   : > { %v747_v3 = vpop.f32.mrb[23].mxu1  ;;  %v1672_v4 = vpop.eup %1671  ;;  %v946_v5 = vadd.f32 1.0, %v1670_v62  ;;  %1691 = vpow2.f32 %v1533_v51  ;;  %v1534_v17 = vmul.f32 -1.442695, %v837_v6 }
 0x12e   : > { %v1674_v8 = vpop.eup %1673  ;;  %1693 = vrcp.f32 %v945_v63  ;;  %v961_v9 = vadd.f32 1.0, %v1672_v4  ;;  %v822_v11 = vadd.f32 %v1900_v46, %v783_v1  ;;  %v838_v14 = vadd.f32 %v1900_v46, %v799_v7 }
 0x12f   : > { %v1676_v12 = vpop.eup %1675  ;;  %1695 = vrcp.f32 %v946_v5  ;;  %v962_v13 = vadd.f32 1.0, %v1674_v8  ;;  %v686_v20 = vpop.f32.mrb[24].mxu0 }
 0x130   : > { %v1678_v15 = vpop.eup %1677  ;;  %1697 = vrcp.f32 %v961_v9  ;;  %v1519_v16 = vmul.f32 -1.442695, %v822_v11  ;;  %1164 = vperm.xlu1 %1571, %v1676_v12   ;;  %v1535_v19 = vmul.f32 -1.442695, %v838_v14  ;;  %v750_v21 = vpop.f32.mrb[24].mxu1  ;;  %v784_v23 = vmul.f32 %v1898_v44, %v686_v20 }
 0x131   : > { %v1680_v18 = vpop.eup %1679  ;;  %1699 = vrcp.f32 %v962_v13  ;;  %1089 = vperm.xlu0 %1570, %v1678_v15   ;;  %v688_v24 = vpop.f32.mrb[25].mxu0  ;;  %v800_v25 = vmul.f32 %v1898_v44, %v750_v21 }
 0x132   : > { %v1682_v22 = vpop.eup %1681  ;;  %1701 = vpow2.f32 %v1518_v10  ;;  %v752_v26 = vpop.f32.mrb[25].mxu1  ;;  %v823_v31 = vadd.f32 %v1900_v46, %v784_v23 }
 0x133   : > { %v1684_v27 = vpop.eup %1683  ;;  %1703 = vpow2.f32 %v1519_v16  ;;  %v689_v28 = vpop.f32.mrb[26].mxu0  ;;  %v839_v37 = vadd.f32 %v1900_v46, %v800_v25 }
 0x134   : > { %v753_v29 = vpop.f32.mrb[26].mxu1  ;;  %v1686_v30 = vpop.eup %1685  ;;  %1705 = vpow2.f32 %v1534_v17  ;;  %v785_v32 = vmul.f32 %v1898_v44, %v689_v28  ;;  %1094 = vperm.xlu1 %1571, %v1680_v18   ;;  %v1520_v45 = vmul.f32 -1.442695, %v823_v31 }
 0x135   : > { %v691_v33 = vpop.f32.mrb[27].mxu0  ;;  %v755_v34 = vpop.f32.mrb[27].mxu1  ;;  %v947_v36 = vadd.f32 1.0, %v1686_v30  ;;  %1707 = vpow2.f32 %v1535_v19  ;;  %1169 = vperm.xlu0 %1570, %v1682_v22   ;;  %v801_v38 = vmul.f32 %v1898_v44, %v753_v29  ;;  %v1536_v52 = vmul.f32 -1.442695, %v839_v37 }
 0x136   : > { %v1688_v35 = vpop.eup %1687  ;;  %v824_v41 = vadd.f32 %v1900_v46, %v785_v32 }
 0x137   : > { %v1690_v39 = vpop.eup %1689  ;;  %v948_v40 = vadd.f32 1.0, %v1688_v35  ;;  %1709 = vrcp.f32 %v947_v36  ;;  %v840_v47 = vadd.f32 %v1900_v46, %v801_v38  ;;  %v694_v53 = vpop.f32.mrb[28].mxu0 }
 0x138   : > { %v1692_v42 = vpop.eup %1691  ;;  %v963_v43 = vadd.f32 1.0, %v1690_v39  ;;  %v1521_v50 = vmul.f32 -1.442695, %v824_v41  ;;  %1174 = vperm.xlu1 %1571, %v1684_v27   ;;  %v758_v54 = vpop.f32.mrb[28].mxu1  ;;  %v786_v57 = vmul.f32 %v1898_v44, %v694_v53  ;;  %v1259_v53 = vld [vmem:[%s1976_s28] sm:$0xff] }
 0x139   : > { %v1694_v48 = vpop.eup %1693  ;;  %1711 = vrcp.f32 %v948_v40  ;;  %v964_v49 = vadd.f32 1.0, %v1692_v42  ;;  %v1537_v56 = vmul.f32 -1.442695, %v840_v47  ;;  %v696_v58 = vpop.f32.mrb[29].mxu0  ;;  %v802_v59 = vmul.f32 %v1898_v44, %v758_v54 }
 0x13a   : > { %v1696_v51 = vpop.eup %1695  ;;  %1713 = vrcp.f32 %v963_v43  ;;  %1099 = vperm.xlu0 %1570, %v1694_v48   ;;  %v760_v60 = vpop.f32.mrb[29].mxu1  ;;  %v825_v1 = vadd.f32 %v1900_v46, %v786_v57  ;;  %v1051_v57 = vld [vmem:[%s1970_s2 + $0x80] sm:$0xff] }
 0x13b   : > { %v1698_v55 = vpop.eup %1697  ;;  %1715 = vrcp.f32 %v964_v49  ;;  %v697_v62 = vpop.f32.mrb[30].mxu0  ;;  %v841_v7 = vadd.f32 %v1900_v46, %v802_v59  ;;  %v1276_v59 = vld [vmem:[%s1976_s28 + $0x88] sm:$0xff] }
 0x13c   : > { %v1700_v61 = vpop.eup %1699  ;;  %1717 = vpow2.f32 %v1520_v45  ;;  %v761_v63 = vpop.f32.mrb[30].mxu1  ;;  %v787_v2 = vmul.f32 %v1898_v44, %v697_v62  ;;  %1104 = vperm.xlu1 %1571, %v1696_v51   ;;  %v1522_v14 = vmul.f32 -1.442695, %v825_v1  ;;  %v1275_v62 = vld [vmem:[%s1976_s28 + $0x80] sm:$0xff] }
 0x13d   : > { %v1702_v0 = vpop.eup %1701  ;;  %1719 = vpow2.f32 %v1521_v50  ;;  %v699_v3 = vpop.f32.mrb[31].mxu0  ;;  %v803_v8 = vmul.f32 %v1898_v44, %v761_v63  ;;  %v1538_v19 = vmul.f32 -1.442695, %v841_v7  ;;  %v1261_v7 = vld [vmem:[%s1976_s28 + $0x10] sm:$0xff] }
 0x13e   : > { %v763_v4 = vpop.f32.mrb[31].mxu1  ;;  %v1704_v5 = vpop.eup %1703  ;;  %v949_v6 = vadd.f32 1.0, %v1702_v0  ;;  %1721 = vpow2.f32 %v1536_v52  ;;  %1179 = vperm.xlu0 %1570, %v1698_v55   ;;  %v826_v11 = vadd.f32 %v1900_v46, %v787_v2  ;;  %v1035_v52 = vld [vmem:[%s1970_s2] sm:$0xff]  ;;  %v1036_v2 = vld [vmem:[%s1970_s2 + $0x8] sm:$0xff]  ;;  %v1037_v3 = vld [vmem:[%s1970_s2 + $0x10] sm:$0xff] }
 0x13f   : > { %v1706_v9 = vpop.eup %1705  ;;  %v950_v10 = vadd.f32 1.0, %v1704_v5  ;;  %1723 = vpow2.f32 %v1537_v56  ;;  %v842_v15 = vadd.f32 %v1900_v46, %v803_v8  ;;  %v1052_v56 = vld [vmem:[%s1970_s2 + $0x88] sm:$0xff] }
 0x140   : > { %v1708_v12 = vpop.eup %1707  ;;  %1725 = vrcp.f32 %v949_v6  ;;  %v965_v13 = vadd.f32 1.0, %v1706_v9  ;;  %v1523_v17 = vmul.f32 -1.442695, %v826_v11  ;;  %1184 = vperm.xlu1 %1571, %v1700_v61   ;;  %v1260_v5 = vld [vmem:[%s1976_s28 + $0x8] sm:$0xff]  ;;  %v1053_v11 = vld [vmem:[%s1970_s2 + $0x90] sm:$0xff] }
 0x141   : > { %1727 = vrcp.f32 %v950_v10  ;;  %v966_v16 = vadd.f32 1.0, %v1708_v12  ;;  %v1710_v18 = vpop.eup %1709  ;;  %v1539_v44 = vmul.f32 -1.442695, %v842_v15  ;;  %v1038_v12 = vld [vmem:[%s1970_s2 + $0x18] sm:$0xff]  ;;  %v1277_v15 = vld [vmem:[%s1976_s28 + $0x90] sm:$0xff] }
 0x142   : > { %1729 = vrcp.f32 %v965_v13  ;;  %1109 = vperm.xlu0 %1570, %v1710_v18  }
 0x143   : > { %v1712_v20 = vpop.eup %1711  ;;  %1731 = vrcp.f32 %v966_v16 }
 0x144   : > { %v1714_v21 = vpop.eup %1713  ;;  %1733 = vpow2.f32 %v1522_v14  ;;  %1114 = vperm.xlu1 %1571, %v1712_v20  }
 0x145   : > { %v1716_v22 = vpop.eup %1715  ;;  %1735 = vpow2.f32 %v1523_v17  ;;  %v1262_v17 = vld [vmem:[%s1976_s28 + $0x18] sm:$0xff] }
 0x146   : > { %v1718_v23 = vpop.eup %1717  ;;  %1737 = vpow2.f32 %v1538_v19  ;;  %1189 = vperm.xlu0 %1570, %v1714_v21  }
 0x147   : > { %v1720_v24 = vpop.eup %1719  ;;  %v951_v46 = vadd.f32 1.0, %v1718_v23  ;;  %1739 = vpow2.f32 %v1539_v44  ;;  %v1054_v44 = vld [vmem:[%s1970_s2 + $0x98] sm:$0xff]  ;;  %v1039_v23 = vld [vmem:[%s1970_s2 + $0x20] sm:$0xff] }
 0x148   : > { %v1722_v25 = vpop.eup %1721  ;;  %v952_v26 = vadd.f32 1.0, %v1720_v24  ;;  %1194 = vperm.xlu1 %1571, %v1716_v22   ;;  %v1278_v24 = vld [vmem:[%s1976_s28 + $0x98] sm:$0xff] }
 0x149   : > { %v1724_v27 = vpop.eup %1723  ;;  %1741 = vrcp.f32 %v951_v46  ;;  %v967_v28 = vadd.f32 1.0, %v1722_v25 }
 0x14a   : > { %v1726_v29 = vpop.eup %1725  ;;  %1743 = vrcp.f32 %v952_v26  ;;  %v968_v30 = vadd.f32 1.0, %v1724_v27  ;;  %v1263_v26 = vld [vmem:[%s1976_s28 + $0x20] sm:$0xff] }
 0x14b   : > { %v1728_v31 = vpop.eup %1727  ;;  %1745 = vrcp.f32 %v967_v28  ;;  %1119 = vperm.xlu0 %1570, %v1726_v29   ;;  %v1040_v29 = vld [vmem:[%s1970_s2 + $0x28] sm:$0xff] }
 0x14c   : > { %v1730_v32 = vpop.eup %1729  ;;  %1124 = vperm.xlu1 %1571, %v1728_v31   ;;  %1747 = vrcp.f32 %v968_v30  ;;  %v1055_v31 = vld [vmem:[%s1970_s2 + $0xa0] sm:$0xff] }
 0x14d   : > { %v1732_v33 = vpop.eup %1731 }
 0x14e   : > { %v1734_v34 = vpop.eup %1733 }
 0x14f   : > { %v1736_v35 = vpop.eup %1735  ;;  %v953_v36 = vadd.f32 1.0, %v1734_v34  ;;  %1199 = vperm.xlu0 %1570, %v1730_v32  }
 0x150   : > { %v1738_v37 = vpop.eup %1737  ;;  %v954_v38 = vadd.f32 1.0, %v1736_v35  ;;  %1204 = vperm.xlu1 %1571, %v1732_v33   ;;  %v1264_v33 = vld [vmem:[%s1976_s28 + $0x28] sm:$0xff]  ;;  %v1279_v35 = vld [vmem:[%s1976_s28 + $0xa0] sm:$0xff] }
 0x151   : > { %v1740_v39 = vpop.eup %1739  ;;  %1749 = vrcp.f32 %v953_v36  ;;  %v969_v40 = vadd.f32 1.0, %v1738_v37 }
 0x152   : > { %1751 = vrcp.f32 %v954_v38  ;;  %v970_v41 = vadd.f32 1.0, %v1740_v39  ;;  %v1056_v39 = vld [vmem:[%s1970_s2 + $0xa8] sm:$0xff] }
 0x153   : > { %v1742_v42 = vpop.eup %1741  ;;  %1753 = vrcp.f32 %v969_v40 }
 0x154   : > { %v1744_v43 = vpop.eup %1743  ;;  %1129 = vperm.xlu0 %1570, %v1742_v42   ;;  %1755 = vrcp.f32 %v970_v41  ;;  %v1041_v41 = vld [vmem:[%s1970_s2 + $0x30] sm:$0xff] }
 0x155   : > { %v1746_v45 = vpop.eup %1745  ;;  %1134 = vperm.xlu1 %1571, %v1744_v43   ;;  %v1280_v43 = vld [vmem:[%s1976_s28 + $0xa8] sm:$0xff] }
 0x156   : > { %v1748_v47 = vpop.eup %1747 }
 0x158   : > { %1209 = vperm.xlu0 %1570, %v1746_v45  }
 0x159   : > { %1214 = vperm.xlu1 %1571, %v1748_v47  }
 0x15b   : > { %v1750_v48 = vpop.eup %1749 }
 0x15c   : > { %v1752_v49 = vpop.eup %1751  ;;  %1139 = vperm.xlu0 %1570, %v1750_v48   ;;  %v1265_v48 = vld [vmem:[%s1976_s28 + $0x30] sm:$0xff] }
 0x15d   : > { %v1754_v50 = vpop.eup %1753  ;;  %1144 = vperm.xlu1 %1571, %v1752_v49  }
 0x15e   : > { %v1756_v51 = vpop.eup %1755 }
 0x160   : > { %1219 = vperm.xlu0 %1570, %v1754_v50  }
 0x161   : > { %1224 = vperm.xlu1 %1571, %v1756_v51   ;;  %v1042_v51 = vld [vmem:[%s1970_s2 + $0x38] sm:$0xff] }
 0x19d   : > { %v1070_v54 = vpop.permute.xlu0 %1069 }
 0x19e   : > { %v1227_v55 = vmul.f32 %v1070_v54, %v1035_v52 }
 0x1a0   : > { %v1291_v58 = vadd.f32 %v1259_v53, %v1227_v55  ;;  %v1057_v53 = vld [vmem:[%s1970_s2 + $0xb0] sm:$0xff]  ;;  %v1266_v55 = vld [vmem:[%s1976_s28 + $0x38] sm:$0xff] }
 0x1a1   : > { %v1155_v60 = vpop.permute.xlu1 %1154  ;;  %v1150_v63 = vpop.permute.xlu0 %1149 }
 0x1a2   : > { %v1244_v61 = vmul.f32 %v1155_v60, %v1052_v56  ;;  %1323 = vst.msk [vmem:[%s1985_s7] sm:$0xff] %vm555_vm0, %v1291_v58  ;;  %v1243_v0 = vmul.f32 %v1150_v63, %v1051_v57  ;;  %v1281_v57 = vld [vmem:[%s1976_s28 + $0xb0] sm:$0xff] }
 0x1a4   : > { %v1308_v1 = vadd.f32 %v1276_v59, %v1244_v61  ;;  %v1307_v4 = vadd.f32 %v1275_v62, %v1243_v0  ;;  %v1058_v61 = vld [vmem:[%s1970_s2 + $0xb8] sm:$0xff] }
 0x1a5   : > { %v1075_v6 = vpop.permute.xlu0 %1074  ;;  %v1282_v0 = vld [vmem:[%s1976_s28 + $0xb8] sm:$0xff] }
 0x1a6   : > { %1340 = vst.msk [vmem:[%s1985_s7 + $0x88] sm:$0xff] %vm555_vm0, %v1308_v1  ;;  %1339 = vst.msk [vmem:[%s1985_s7 + $0x80] sm:$0xff] %vm555_vm0, %v1307_v4  ;;  %v1228_v9 = vmul.f32 %v1075_v6, %v1036_v2  ;;  %v1043_v2 = vld [vmem:[%s1970_s2 + $0x40] sm:$0xff]  ;;  %v1044_v6 = vld [vmem:[%s1970_s2 + $0x48] sm:$0xff] }
 0x1a7   : > { %v1080_v8 = vpop.permute.xlu1 %1079  ;;  %v1267_v4 = vld [vmem:[%s1976_s28 + $0x40] sm:$0xff] }
 0x1a8   : > { %v1229_v10 = vmul.f32 %v1080_v8, %v1037_v3  ;;  %v1292_v13 = vadd.f32 %v1260_v5, %v1228_v9  ;;  %v1059_v9 = vld [vmem:[%s1970_s2 + $0xc0] sm:$0xff] }
 0x1a9   : > { %v1160_v16 = vpop.permute.xlu0 %1159 }
 0x1aa   : > { %v1293_v14 = vadd.f32 %v1261_v7, %v1229_v10  ;;  %1324 = vst.msk [vmem:[%s1985_s7 + $0x8] sm:$0xff] %vm555_vm0, %v1292_v13  ;;  %v1245_v19 = vmul.f32 %v1160_v16, %v1053_v11  ;;  %v1268_v10 = vld [vmem:[%s1976_s28 + $0x48] sm:$0xff] }
 0x1ab   : > { %v1085_v18 = vpop.permute.xlu1 %1084  ;;  %v1060_v16 = vld [vmem:[%s1970_s2 + $0xc8] sm:$0xff] }
 0x1ac   : > { %1325 = vst.msk [vmem:[%s1985_s7 + $0x10] sm:$0xff] %vm555_vm0, %v1293_v14  ;;  %v1230_v20 = vmul.f32 %v1085_v18, %v1038_v12  ;;  %v1309_v21 = vadd.f32 %v1277_v15, %v1245_v19  ;;  %v1283_v14 = vld [vmem:[%s1976_s28 + $0xc0] sm:$0xff]  ;;  %v1284_v19 = vld [vmem:[%s1976_s28 + $0xc8] sm:$0xff] }
 0x1ae   : > { %v1294_v22 = vadd.f32 %v1262_v17, %v1230_v20  ;;  %1341 = vst.msk [vmem:[%s1985_s7 + $0x90] sm:$0xff] %vm555_vm0, %v1309_v21 }
 0x1af   : > { %v1165_v46 = vpop.permute.xlu1 %1164 }
 0x1b0   : > { %1326 = vst.msk [vmem:[%s1985_s7 + $0x18] sm:$0xff] %vm555_vm0, %v1294_v22  ;;  %v1246_v25 = vmul.f32 %v1165_v46, %v1054_v44  ;;  %v1090_v27 = vpop.permute.xlu0 %1089  ;;  %v1045_v44 = vld [vmem:[%s1970_s2 + $0x50] sm:$0xff]  ;;  %v1046_v46 = vld [vmem:[%s1970_s2 + $0x58] sm:$0xff] }
 0x1b1   : > { %v1231_v28 = vmul.f32 %v1090_v27, %v1039_v23  ;;  %v1269_v23 = vld [vmem:[%s1976_s28 + $0x50] sm:$0xff] }
 0x1b2   : > { %v1310_v30 = vadd.f32 %v1278_v24, %v1246_v25  ;;  %v1061_v27 = vld [vmem:[%s1970_s2 + $0xd0] sm:$0xff] }
 0x1b3   : > { %v1295_v32 = vadd.f32 %v1263_v26, %v1231_v28  ;;  %v1095_v34 = vpop.permute.xlu1 %1094  ;;  %v1270_v28 = vld [vmem:[%s1976_s28 + $0x58] sm:$0xff] }
 0x1b4   : > { %1342 = vst.msk [vmem:[%s1985_s7 + $0x98] sm:$0xff] %vm555_vm0, %v1310_v30  ;;  %v1170_v36 = vpop.permute.xlu0 %1169  ;;  %v1232_v37 = vmul.f32 %v1095_v34, %v1040_v29  ;;  %v1062_v34 = vld [vmem:[%s1970_s2 + $0xd8] sm:$0xff] }
 0x1b5   : > { %1327 = vst.msk [vmem:[%s1985_s7 + $0x20] sm:$0xff] %vm555_vm0, %v1295_v32  ;;  %v1247_v38 = vmul.f32 %v1170_v36, %v1055_v31  ;;  %v1285_v32 = vld [vmem:[%s1976_s28 + $0xd0] sm:$0xff] }
 0x1b6   : > { %v1296_v40 = vadd.f32 %v1264_v33, %v1232_v37  ;;  %v1286_v37 = vld [vmem:[%s1976_s28 + $0xd8] sm:$0xff] }
 0x1b7   : > { %v1311_v42 = vadd.f32 %v1279_v35, %v1247_v38  ;;  %v1175_v45 = vpop.permute.xlu1 %1174 }
 0x1b8   : > { %1328 = vst.msk [vmem:[%s1985_s7 + $0x28] sm:$0xff] %vm555_vm0, %v1296_v40  ;;  %v1248_v47 = vmul.f32 %v1175_v45, %v1056_v39  ;;  %v1271_v45 = vld [vmem:[%s1976_s28 + $0x60] sm:$0xff] }
 0x1b9   : > { %v1100_v49 = vpop.permute.xlu0 %1099  ;;  %1343 = vst.msk [vmem:[%s1985_s7 + $0xa0] sm:$0xff] %vm555_vm0, %v1311_v42  ;;  %v1048_v42 = vld [vmem:[%s1970_s2 + $0x68] sm:$0xff] }
 0x1ba   : > { %v1233_v50 = vmul.f32 %v1100_v49, %v1041_v41  ;;  %v1312_v52 = vadd.f32 %v1280_v43, %v1248_v47  ;;  %v1047_v41 = vld [vmem:[%s1970_s2 + $0x60] sm:$0xff]  ;;  %v1272_v49 = vld [vmem:[%s1976_s28 + $0x68] sm:$0xff] }
 0x1bb   : > { %v1105_v56 = vpop.permute.xlu1 %1104 }
 0x1bc   : > { %v1297_v54 = vadd.f32 %v1265_v48, %v1233_v50  ;;  %1344 = vst.msk [vmem:[%s1985_s7 + $0xa8] sm:$0xff] %vm555_vm0, %v1312_v52  ;;  %v1234_v59 = vmul.f32 %v1105_v56, %v1042_v51  ;;  %v1063_v51 = vld [vmem:[%s1970_s2 + $0xe0] sm:$0xff] }
 0x1bd   : > { %v1180_v58 = vpop.permute.xlu0 %1179 }
 0x1be   : > { %1329 = vst.msk [vmem:[%s1985_s7 + $0x30] sm:$0xff] %vm555_vm0, %v1297_v54  ;;  %v1249_v60 = vmul.f32 %v1180_v58, %v1057_v53  ;;  %v1298_v62 = vadd.f32 %v1266_v55, %v1234_v59  ;;  %v1064_v54 = vld [vmem:[%s1970_s2 + $0xe8] sm:$0xff]  ;;  %v1287_v55 = vld [vmem:[%s1976_s28 + $0xe0] sm:$0xff] }
 0x1bf   : > { %v1185_v1 = vpop.permute.xlu1 %1184  ;;  %v1288_v59 = vld [vmem:[%s1976_s28 + $0xe8] sm:$0xff] }
 0x1c0   : > { %v1313_v63 = vadd.f32 %v1281_v57, %v1249_v60  ;;  %1330 = vst.msk [vmem:[%s1985_s7 + $0x38] sm:$0xff] %vm555_vm0, %v1298_v62  ;;  %v1250_v3 = vmul.f32 %v1185_v1, %v1058_v61  ;;  %v1049_v62 = vld [vmem:[%s1970_s2 + $0x70] sm:$0xff] }
 0x1c1   : > { %v1110_v5 = vpop.permute.xlu0 %1109 }
 0x1c2   : > { %1345 = vst.msk [vmem:[%s1985_s7 + $0xb0] sm:$0xff] %vm555_vm0, %v1313_v63  ;;  %v1314_v7 = vadd.f32 %v1282_v0, %v1250_v3  ;;  %v1235_v8 = vmul.f32 %v1110_v5, %v1043_v2  ;;  %v1050_v0 = vld [vmem:[%s1970_s2 + $0x78] sm:$0xff]  ;;  %v1273_v2 = vld [vmem:[%s1976_s28 + $0x70] sm:$0xff] }
 0x1c3   : > { %v1115_v11 = vpop.permute.xlu1 %1114  ;;  %v1274_v5 = vld [vmem:[%s1976_s28 + $0x78] sm:$0xff] }
 0x1c4   : > { %1346 = vst.msk [vmem:[%s1985_s7 + $0xb8] sm:$0xff] %vm555_vm0, %v1314_v7  ;;  %v1299_v12 = vadd.f32 %v1267_v4, %v1235_v8  ;;  %v1236_v13 = vmul.f32 %v1115_v11, %v1044_v6  ;;  %v1065_v7 = vld [vmem:[%s1970_s2 + $0xf0] sm:$0xff] }
 0x1c5   : > { %v1190_v15 = vpop.permute.xlu0 %1189  ;;  %v1289_v11 = vld [vmem:[%s1976_s28 + $0xf0] sm:$0xff] }
 0x1c6   : > { %1331 = vst.msk [vmem:[%s1985_s7 + $0x40] sm:$0xff] %vm555_vm0, %v1299_v12  ;;  %v1251_v17 = vmul.f32 %v1190_v15, %v1059_v9  ;;  %v1300_v18 = vadd.f32 %v1268_v10, %v1236_v13  ;;  %v1066_v10 = vld [vmem:[%s1970_s2 + $0xf8] sm:$0xff] }
 0x1c7   : > { %v1195_v20 = vpop.permute.xlu1 %1194  ;;  %v1290_v15 = vld [vmem:[%s1976_s28 + $0xf8] sm:$0xff] }
 0x1c8   : > { %v1315_v21 = vadd.f32 %v1283_v14, %v1251_v17  ;;  %1332 = vst.msk [vmem:[%s1985_s7 + $0x48] sm:$0xff] %vm555_vm0, %v1300_v18  ;;  %v1252_v22 = vmul.f32 %v1195_v20, %v1060_v16 }
 0x1ca   : > { %v1120_v24 = vpop.permute.xlu0 %1119  ;;  %1347 = vst.msk [vmem:[%s1985_s7 + $0xc0] sm:$0xff] %vm555_vm0, %v1315_v21  ;;  %v1316_v25 = vadd.f32 %v1284_v19, %v1252_v22 }
 0x1cb   : > { %v1237_v26 = vmul.f32 %v1120_v24, %v1045_v44  ;;  %v1125_v29 = vpop.permute.xlu1 %1124 }
 0x1cc   : > { %1348 = vst.msk [vmem:[%s1985_s7 + $0xc8] sm:$0xff] %vm555_vm0, %v1316_v25  ;;  %v1238_v31 = vmul.f32 %v1125_v29, %v1046_v46 }
 0x1cd   : > { %v1301_v30 = vadd.f32 %v1269_v23, %v1237_v26 }
 0x1ce   : > { %v1200_v33 = vpop.permute.xlu0 %1199  ;;  %v1302_v36 = vadd.f32 %v1270_v28, %v1238_v31 }
 0x1cf   : > { %1333 = vst.msk [vmem:[%s1985_s7 + $0x50] sm:$0xff] %vm555_vm0, %v1301_v30  ;;  %v1253_v35 = vmul.f32 %v1200_v33, %v1061_v27  ;;  %v1205_v38 = vpop.permute.xlu1 %1204 }
 0x1d0   : > { %1334 = vst.msk [vmem:[%s1985_s7 + $0x58] sm:$0xff] %vm555_vm0, %v1302_v36  ;;  %v1254_v40 = vmul.f32 %v1205_v38, %v1062_v34 }
 0x1d1   : > { %v1317_v39 = vadd.f32 %v1285_v32, %v1253_v35 }
 0x1d2   : > { %v1318_v43 = vadd.f32 %v1286_v37, %v1254_v40 }
 0x1d3   : > { %1349 = vst.msk [vmem:[%s1985_s7 + $0xd0] sm:$0xff] %vm555_vm0, %v1317_v39  ;;  %v1130_v47 = vpop.permute.xlu0 %1129 }
 0x1d4   : > { %v1239_v48 = vmul.f32 %v1130_v47, %v1047_v41  ;;  %v1135_v50 = vpop.permute.xlu1 %1134  ;;  %1350 = vst.msk [vmem:[%s1985_s7 + $0xd8] sm:$0xff] %vm555_vm0, %v1318_v43 }
 0x1d5   : > { %v1240_v52 = vmul.f32 %v1135_v50, %v1048_v42 }
 0x1d6   : > { %v1303_v53 = vadd.f32 %v1271_v45, %v1239_v48 }
 0x1d7   : > { %v1210_v56 = vpop.permute.xlu0 %1209  ;;  %v1304_v57 = vadd.f32 %v1272_v49, %v1240_v52 }
 0x1d8   : > { %1335 = vst.msk [vmem:[%s1985_s7 + $0x60] sm:$0xff] %vm555_vm0, %v1303_v53  ;;  %v1255_v58 = vmul.f32 %v1210_v56, %v1063_v51  ;;  %v1215_v60 = vpop.permute.xlu1 %1214 }
 0x1d9   : > { %1336 = vst.msk [vmem:[%s1985_s7 + $0x68] sm:$0xff] %vm555_vm0, %v1304_v57  ;;  %v1256_v61 = vmul.f32 %v1215_v60, %v1064_v54 }
 0x1da   : > { %v1319_v63 = vadd.f32 %v1287_v55, %v1255_v58 }
 0x1db   : > { %v1320_v1 = vadd.f32 %v1288_v59, %v1256_v61  ;;  %v1140_v3 = vpop.permute.xlu0 %1139 }
 0x1dc   : > { %1351 = vst.msk [vmem:[%s1985_s7 + $0xe0] sm:$0xff] %vm555_vm0, %v1319_v63  ;;  %v1241_v4 = vmul.f32 %v1140_v3, %v1049_v62  ;;  %v1145_v6 = vpop.permute.xlu1 %1144 }
 0x1dd   : > { %1352 = vst.msk [vmem:[%s1985_s7 + $0xe8] sm:$0xff] %vm555_vm0, %v1320_v1  ;;  %v1242_v8 = vmul.f32 %v1145_v6, %v1050_v0 }
 0x1de   : > { %v1305_v9 = vadd.f32 %v1273_v2, %v1241_v4 }
 0x1df   : > { %v1220_v12 = vpop.permute.xlu0 %1219  ;;  %v1306_v13 = vadd.f32 %v1274_v5, %v1242_v8 }
 0x1e0   : > { %1337 = vst.msk [vmem:[%s1985_s7 + $0x70] sm:$0xff] %vm555_vm0, %v1305_v9  ;;  %v1257_v14 = vmul.f32 %v1220_v12, %v1065_v7  ;;  %v1225_v16 = vpop.permute.xlu1 %1224 }
 0x1e1   : > { %1338 = vst.msk [vmem:[%s1985_s7 + $0x78] sm:$0xff] %vm555_vm0, %v1306_v13  ;;  %v1258_v17 = vmul.f32 %v1225_v16, %v1066_v10 }
 0x1e2   : > { %v1321_v18 = vadd.f32 %v1289_v11, %v1257_v14 }
 0x1e3   : > { %v1322_v19 = vadd.f32 %v1290_v15, %v1258_v17 }
 0x1e4   : > { %1353 = vst.msk [vmem:[%s1985_s7 + $0xf0] sm:$0xff] %vm555_vm0, %v1321_v18 }
 0x1e5   : > { %1354 = vst.msk [vmem:[%s1985_s7 + $0xf8] sm:$0xff] %vm555_vm0, %v1322_v19 }
 0x1e6 PF: > { %s20_s25 = sadd.s32 1, %s1763_s25  }
 0x1e7   : > { %p17_p4 = scmp.ge.s32.totalorder %s20_s25, 4  }
 0x1e9   :  { %19 = sbr.rel (!%p17_p4) target bundleno = 3 (0x3), region = 80 }

// kernel: ega_forward.17
= control target key start
LH: loop header
LB: loop body
LE: loop exit
PB: predicated region body
PF: predicated region fallthrough
CT: control target
= control target key end

     0   :  { %s532_s9 = smov 0   ;;  %s534_s10 = smov 0   ;;  %s690_s0 = inlined_call_operand.vmem [shape: f32[2,256,16], index: 0, kind: input, shape index: {}]   ;;  %s691_s1 = inlined_call_operand.vmem [shape: f32[2,1,16], index: 1, kind: output, shape index: {0}]   ;;  %s692_s2 = inlined_call_operand.vmem [shape: f32[2,1,16], index: 2, kind: output, shape index: {1}]  }
   0x1   :  { %s536_s11 = smov 0  }
   0x2 LB: > { %s25_s12 = sadd.s32 1, %s511_s10  ;;  %p463_p0 = scmp.ge.s32.totalorder %s515_s11, 1  ;;  %s515_s11 = sphi %s536_s11, %s13_s11   ;;  %s511_s10 = sphi %s534_s10, %s694_s10   ;;  %s507_s9 = sphi %s532_s9, %s693_s9  }
   0x3   : > { %p27_p1 = scmp.ge.s32.totalorder %s25_s12, 2  ;;  %p134_p2 = scmp.lt.s32.totalorder %s515_s11, 3 }
   0x5   : > { %s696_s12 = smov (%p27_p1, %s25_s12), 0  ;;  %p135_p3 = pnand %p463_p0, %p134_p2 }
   0x6   : > { %p162_p4 = scmp.lt.s32.totalorder (!%p135_p3), %s507_s9, 1  ;;  %vm209_vm0 = vcmask (!%p135_p3), 130048   ;;  %vm352_vm1 = vcmask (!%p135_p3), 122880  }
   0x7   : > { %138 = sbr.rel (%p135_p3) target bundleno = 104 (0x68), region = 24 }
   0xe   : > { %s698_s9 = smov (!%p162_p4, %s507_s9), 1 }
   0xf   : > { %s468_s13 = sshll.u32 %s698_s9, 8  ;;  %s176_s19 = scalar_lea.vmem %s692_s2, %s698_s9 }
  0x10   : > { %s556_s16 = scalar_lea.vmem %s690_s0, %s468_s13  ;;  %s173_s22 = scalar_lea.vmem %s691_s1, %s698_s9 }
  0x11   : > { %v177_v0 = vld [vmem:[%s556_s16] sm:$0xff]  ;;  %v178_v1 = vld [vmem:[%s556_s16 + $0x8] sm:$0xff]  ;;  %v179_v2 = vld [vmem:[%s556_s16 + $0x10] sm:$0xff] }
  0x12   : > { %v180_v3 = vld [vmem:[%s556_s16 + $0x18] sm:$0xff]  ;;  %v210_v4 = vsel %vm209_vm0, %v177_v0, 0.0  ;;  %v211_v5 = vsel %vm209_vm0, %v178_v1, 0.0  ;;  %v213_v6 = vsel %vm209_vm0, %v179_v2, 0.0  ;;  %v181_v7 = vld [vmem:[%s556_s16 + $0x20] sm:$0xff]  ;;  %v182_v10 = vld [vmem:[%s556_s16 + $0x28] sm:$0xff] }
  0x13   : > { %v212_v8 = vadd.f32 %v211_v5, %v210_v4  ;;  %v215_v9 = vsel %vm209_vm0, %v180_v3, 0.0  ;;  %v183_v12 = vld [vmem:[%s556_s16 + $0x30] sm:$0xff]  ;;  %v217_v13 = vsel %vm209_vm0, %v181_v7, 0.0  ;;  %v184_v14 = vld [vmem:[%s556_s16 + $0x38] sm:$0xff]  ;;  %v185_v15 = vld [vmem:[%s556_s16 + $0x40] sm:$0xff]  ;;  %v219_v21 = vsel %vm209_vm0, %v182_v10, 0.0 }
  0x14   : > { %v186_v16 = vld [vmem:[%s556_s16 + $0x48] sm:$0xff]  ;;  %v187_v18 = vld [vmem:[%s556_s16 + $0x50] sm:$0xff]  ;;  %v188_v19 = vld [vmem:[%s556_s16 + $0x58] sm:$0xff]  ;;  %v221_v25 = vsel %vm209_vm0, %v183_v12, 0.0  ;;  %v223_v26 = vsel %vm209_vm0, %v184_v14, 0.0  ;;  %v225_v27 = vsel %vm209_vm0, %v185_v15, 0.0 }
  0x15   : > { %v214_v11 = vadd.f32 %v213_v6, %v212_v8  ;;  %v189_v20 = vld [vmem:[%s556_s16 + $0x60] sm:$0xff]  ;;  %v190_v22 = vld [vmem:[%s556_s16 + $0x68] sm:$0xff]  ;;  %v191_v23 = vld [vmem:[%s556_s16 + $0x70] sm:$0xff]  ;;  %v227_v28 = vsel %vm209_vm0, %v186_v16, 0.0  ;;  %v229_v31 = vsel %vm209_vm0, %v187_v18, 0.0  ;;  %v231_v32 = vsel %vm209_vm0, %v188_v19, 0.0 }
  0x16   : > { %v584_v29 = vld [vmem:[%s556_s16 + $0xf8] sm:$0xff]  ;;  %v589_v33 = vsel %vm209_vm0, %v189_v20, 0.0  ;;  %v592_v34 = vsel %vm209_vm0, %v190_v22, 0.0  ;;  %v595_v35 = vsel %vm209_vm0, %v191_v23, 0.0  ;;  %v279_v37 = vsel %vm209_vm0, %v177_v0, -inf  ;;  %v193_v63 = vld [vmem:[%s556_s16 + $0x80] sm:$0xff] }
  0x17   : > { %v216_v17 = vadd.f32 %v215_v9, %v214_v11  ;;  %v599_v36 = vsel %vm209_vm0, %v584_v29, -inf  ;;  %v280_v39 = vsel %vm209_vm0, %v178_v1, -inf  ;;  %v281_v40 = vsel %vm209_vm0, %v179_v2, -inf  ;;  %v192_v62 = vld [vmem:[%s556_s16 + $0x78] sm:$0xff]  ;;  %v194_v0 = vld [vmem:[%s556_s16 + $0x88] sm:$0xff]  ;;  %v195_v5 = vld [vmem:[%s556_s16 + $0x90] sm:$0xff] }
  0x18   : > { %v282_v41 = vsel %vm209_vm0, %v180_v3, -inf  ;;  %v283_v42 = vsel %vm209_vm0, %v181_v7, -inf  ;;  %v285_v43 = vsel %vm209_vm0, %v182_v10, -inf  ;;  %v287_v44 = vsel %vm209_vm0, %v183_v12, -inf  ;;  %v196_v10 = vld [vmem:[%s556_s16 + $0x98] sm:$0xff]  ;;  %v197_v11 = vld [vmem:[%s556_s16 + $0xa0] sm:$0xff] }
  0x19   : > { %v218_v24 = vadd.f32 %v217_v13, %v216_v17  ;;  %v289_v45 = vsel %vm209_vm0, %v184_v14, -inf  ;;  %v284_v47 = vmax.f32 %v279_v37, %v283_v42  ;;  %v286_v48 = vmax.f32 %v280_v39, %v285_v43  ;;  %v198_v12 = vld [vmem:[%s556_s16 + $0xa8] sm:$0xff]  ;;  %v203_v39 = vld [vmem:[%s556_s16 + $0xd0] sm:$0xff] }
  0x1a   : > { %v288_v49 = vmax.f32 %v281_v40, %v287_v44  ;;  %v290_v50 = vmax.f32 %v282_v41, %v289_v45  ;;  %v291_v51 = vsel %vm209_vm0, %v185_v15, -inf  ;;  %v293_v52 = vsel %vm209_vm0, %v186_v16, -inf  ;;  %v204_v40 = vld [vmem:[%s556_s16 + $0xd8] sm:$0xff]  ;;  %v205_v41 = vld [vmem:[%s556_s16 + $0xe0] sm:$0xff] }
  0x1b   : > { %v220_v30 = vadd.f32 %v219_v21, %v218_v24  ;;  %v295_v53 = vsel %vm209_vm0, %v187_v18, -inf  ;;  %v292_v55 = vmax.f32 %v284_v47, %v291_v51  ;;  %v294_v56 = vmax.f32 %v286_v48, %v293_v52  ;;  %v199_v21 = vld [vmem:[%s556_s16 + $0xb0] sm:$0xff] }
  0x1c   : > { %v296_v57 = vmax.f32 %v288_v49, %v295_v53  ;;  %v297_v58 = vsel %vm209_vm0, %v188_v19, -inf  ;;  %v299_v59 = vsel %vm209_vm0, %v189_v20, -inf  ;;  %v301_v60 = vsel %vm209_vm0, %v190_v22, -inf  ;;  %v200_v22 = vld [vmem:[%s556_s16 + $0xb8] sm:$0xff]  ;;  %v206_v49 = vld [vmem:[%s556_s16 + $0xe8] sm:$0xff] }
  0x1d   : > { %v222_v38 = vadd.f32 %v221_v25, %v220_v30  ;;  %v303_v61 = vsel %vm209_vm0, %v191_v23, -inf  ;;  %v298_v2 = vmax.f32 %v290_v50, %v297_v58  ;;  %v300_v3 = vmax.f32 %v292_v55, %v299_v59  ;;  %v201_v23 = vld [vmem:[%s556_s16 + $0xc0] sm:$0xff]  ;;  %v207_v50 = vld [vmem:[%s556_s16 + $0xf0] sm:$0xff] }
  0x1e   : > { %v302_v4 = vmax.f32 %v294_v56, %v301_v60  ;;  %v304_v6 = vmax.f32 %v296_v57, %v303_v61  ;;  %v305_v7 = vsel %vm209_vm0, %v192_v62, -inf  ;;  %v307_v8 = vsel %vm209_vm0, %v193_v63, -inf }
  0x1f   : > { %v224_v46 = vadd.f32 %v223_v26, %v222_v38  ;;  %v309_v9 = vsel %vm209_vm0, %v194_v0, -inf  ;;  %v306_v14 = vmax.f32 %v298_v2, %v305_v7  ;;  %v308_v15 = vmax.f32 %v300_v3, %v307_v8 }
  0x20   : > { %v310_v16 = vmax.f32 %v302_v4, %v309_v9  ;;  %v311_v17 = vsel %vm209_vm0, %v195_v5, -inf  ;;  %v313_v18 = vsel %vm209_vm0, %v196_v10, -inf  ;;  %v315_v19 = vsel %vm209_vm0, %v197_v11, -inf }
  0x21   : > { %v226_v54 = vadd.f32 %v225_v27, %v224_v46  ;;  %v317_v20 = vsel %vm209_vm0, %v198_v12, -inf  ;;  %v312_v25 = vmax.f32 %v304_v6, %v311_v17  ;;  %v314_v26 = vmax.f32 %v306_v14, %v313_v18 }
  0x22   : > { %v316_v27 = vmax.f32 %v308_v15, %v315_v19  ;;  %v318_v30 = vmax.f32 %v310_v16, %v317_v20  ;;  %v321_v37 = vsel %vm209_vm0, %v200_v22, -inf  ;;  %v323_v38 = vsel %vm209_vm0, %v201_v23, -inf }
  0x23   : > { %v228_v1 = vadd.f32 %v227_v28, %v226_v54  ;;  %v202_v28 = vld [vmem:[%s556_s16 + $0xc8] sm:$0xff]  ;;  %v327_v46 = vsel %vm209_vm0, %v203_v39, -inf  ;;  %v329_v47 = vsel %vm209_vm0, %v204_v40, -inf  ;;  %v331_v48 = vsel %vm209_vm0, %v205_v41, -inf }
  0x24   : > { %v324_v44 = vmax.f32 %v316_v27, %v323_v38  ;;  %v325_v45 = vsel %vm209_vm0, %v202_v28, -inf  ;;  %v333_v56 = vsel %vm209_vm0, %v206_v49, -inf  ;;  %v335_v57 = vsel %vm209_vm0, %v207_v50, -inf }
  0x25   : > { %v230_v13 = vadd.f32 %v229_v31, %v228_v1  ;;  %v319_v31 = vsel %vm209_vm0, %v199_v21, -inf  ;;  %v326_v52 = vmax.f32 %v318_v30, %v325_v45  ;;  %v241_v1 = vsel %vm209_vm0, %v193_v63, 0.0 }
  0x26   : > { %v320_v43 = vmax.f32 %v312_v25, %v319_v31  ;;  %v332_v55 = vmax.f32 %v324_v44, %v331_v48  ;;  %v243_v4 = vsel %vm209_vm0, %v194_v0, 0.0  ;;  %v245_v7 = vsel %vm209_vm0, %v195_v5, 0.0 }
  0x27   : > { %v232_v24 = vadd.f32 %v231_v32, %v230_v13  ;;  %v322_v32 = vmax.f32 %v314_v26, %v321_v37  ;;  %v334_v59 = vmax.f32 %v326_v52, %v333_v56  ;;  %v251_v16 = vsel %vm209_vm0, %v198_v12, 0.0 }
  0x28   : > { %v328_v53 = vmax.f32 %v320_v43, %v327_v46  ;;  %v253_v0 = vsel %vm209_vm0, %v199_v21, 0.0  ;;  %v255_v5 = vsel %vm209_vm0, %v200_v22, 0.0  ;;  %v259_v12 = vsel %vm209_vm0, %v202_v28, 0.0 }
  0x29   : > { %v234_v42 = vadd.f32 %v589_v33, %v232_v24  ;;  %v330_v54 = vmax.f32 %v322_v32, %v329_v47  ;;  %v239_v33 = vsel %vm209_vm0, %v192_v62, 0.0  ;;  %v261_v21 = vsel %vm209_vm0, %v203_v39, 0.0 }
  0x2a   : > { %v336_v60 = vmax.f32 %v328_v53, %v335_v57  ;;  %v263_v22 = vsel %vm209_vm0, %v204_v40, 0.0  ;;  %v265_v31 = vsel %vm209_vm0, %v205_v41, 0.0  ;;  %v267_v38 = vsel %vm209_vm0, %v206_v49, 0.0 }
  0x2b   : > { %v236_v51 = vadd.f32 %v592_v34, %v234_v42  ;;  %v338_v61 = vmax.f32 %v330_v54, %v599_v36  ;;  %v339_v34 = vmax.f32 %v332_v55, %v334_v59  ;;  %v249_v36 = vsel %vm209_vm0, %v197_v11, 0.0 }
  0x2c   : > { %v257_v11 = vsel %vm209_vm0, %v201_v23, 0.0  ;;  %v269_v42 = vsel %vm209_vm0, %v207_v50, 0.0  ;;  %v271_v28 = vsel %vm209_vm0, %v584_v29, 0.0 }
  0x2d   : > { %v238_v58 = vadd.f32 %v595_v35, %v236_v51  ;;  %v340_v3 = vmax.f32 %v336_v60, %v338_v61  ;;  %v247_v35 = vsel %vm209_vm0, %v196_v10, 0.0 }
  0x2f   : > { %v240_v2 = vadd.f32 %v239_v33, %v238_v58  ;;  %v341_v62 = vmax.f32 %v339_v34, %v340_v3 }
  0x31   : > { %v242_v6 = vadd.f32 %v241_v1, %v240_v2  ;;  %v342_v9 = vrot.slane %v341_v62, 4 }
  0x33   : > { %v244_v8 = vadd.f32 %v243_v4, %v242_v6  ;;  %v343_v14 = vmax.f32 %v341_v62, %v342_v9 }
  0x35   : > { %v246_v13 = vadd.f32 %v245_v7, %v244_v8  ;;  %v344_v63 = vrot.slane %v343_v14, 2 }
  0x37   : > { %v248_v15 = vadd.f32 %v247_v35, %v246_v13  ;;  %v345_v18 = vmax.f32 %v343_v14, %v344_v63 }
  0x39   : > { %v250_v17 = vadd.f32 %v249_v36, %v248_v15  ;;  %v346_v20 = vrot.slane %v345_v18, 1 }
  0x3b   : > { %v252_v19 = vadd.f32 %v251_v16, %v250_v17  ;;  %v347_v24 = vmax.f32 %v345_v18, %v346_v20 }
  0x3d   : > { %v254_v10 = vadd.f32 %v253_v0, %v252_v19  ;;  %354 = vst.msk [vmem:[%s176_s19] sm:$0x1] %vm352_vm1, %v347_v24 }
  0x3f   : > { %v256_v25 = vadd.f32 %v255_v5, %v254_v10 }
  0x41   : > { %v258_v26 = vadd.f32 %v257_v11, %v256_v25 }
  0x43   : > { %v260_v27 = vadd.f32 %v259_v12, %v258_v26 }
  0x45   : > { %v262_v30 = vadd.f32 %v261_v21, %v260_v27 }
  0x47   : > { %v264_v37 = vadd.f32 %v263_v22, %v262_v30 }
  0x49   : > { %v266_v23 = vadd.f32 %v265_v31, %v264_v37 }
  0x4b   : > { %v268_v43 = vadd.f32 %v267_v38, %v266_v23 }
  0x4d   : > { %v270_v32 = vadd.f32 %v269_v42, %v268_v43 }
  0x4f   : > { %v272_v44 = vadd.f32 %v271_v28, %v270_v32 }
  0x51   : > { %v273_v39 = vrot.slane %v272_v44, 4 }
  0x53   : > { %v274_v45 = vadd.f32 %v273_v39, %v272_v44 }
  0x55   : > { %v275_v46 = vrot.slane %v274_v45, 2 }
  0x57   : > { %v276_v40 = vadd.f32 %v275_v46, %v274_v45 }
  0x59   : > { %v277_v47 = vrot.slane %v276_v40, 1 }
  0x5b   : > { %v278_v41 = vadd.f32 %v277_v47, %v276_v40 }
  0x5d   : > { %353 = vst.msk [vmem:[%s173_s22] sm:$0x1] %vm352_vm1, %v278_v41 }
  0x64   : > { %v369_v48 = vld [vmem:[%s173_s22] sm:$0x1] }
  0x65   : > { %v370_v49 = vmul.f32 0.00390625, %v369_v48 }
  0x67   : > { %372 = vst.msk [vmem:[%s173_s22] sm:$0x1] %vm352_vm1, %v370_v49 }
  0x68 PF: > { %s13_s11 = sadd.s32 1, %s515_s11   ;;  %s693_s9 = smov %s511_s10 }
  0x69   : > { %p10_p5 = scmp.ge.s32.totalorder %s13_s11, 4   ;;  %s694_s10 = smov %s696_s12 }
  0x6b   :  { %12 = sbr.rel (!%p10_p5) target bundleno = 2 (0x2), region = 78 }

// kernel: ega_forward.18
= control target key start
LH: loop header
LB: loop body
LE: loop exit
PB: predicated region body
PF: predicated region fallthrough
CT: control target
= control target key end

     0   :  { %v113_v0 = vmov 0.0   ;;  %vm114_vm0 = vmmov 0   ;;  %vm31_vm1 = vcmask 130048   ;;  %vm92_vm2 = vcmask 7168   ;;  %s155_s1 = inlined_call_operand.vmem [shape: bf16[16,1], index: 1, kind: input, shape index: {}]   ;;  %s156_s0 = inlined_call_operand.vmem [shape: bf16[8,16], index: 0, kind: input, shape index: {}]   ;;  %s157_s2 = inlined_call_operand.<no memory space> [shape: f32[1,1], index: 2, kind: input, shape index: {}]   ;;  %s158_s3 = inlined_call_operand.<no memory space> [shape: f32[1,1], index: 3, kind: input, shape index: {}]   ;;  %s159_s4 = inlined_call_operand.vmem [shape: f32[8,1], index: 4, kind: output, shape index: {}]  }
   0x1   :  { %104 = vmatprep.subr.bf16.mxu0 %v113_v0  ;;  %v112_v1 = vld [vmem:[%s155_s1] sm:$0xff]   ;;  %106 = vmatprep.mubr.msk.bf16.mxu0 %vm114_vm0, %v113_v0  ;;  %v9_v2 = vstv %s157_s2  ;;  %v11_v3 = vstv %s158_s3 }
   0x2   :  { %10 = vst [vmem:[#allocation2] sm:$0x1] %v9_v2  ;;  %105 = vmatpush3.bf16.msra.mxu0 %v112_v1  ;;  %v22_v4 = vld [vmem:[%s156_s0] sm:$0xf]  ;;  %12 = vst [vmem:[#allocation3] sm:$0x1] %v11_v3 }
   0x5   :  { %107 = vmatmul.mubr.msk.bf16.vlgmr.msra.gmra.mrb[0].mxu0 %vm31_vm1, %v22_v4 }
   0x9   :  { %v100_v5 = vld [vmem:[#allocation2] ss:$0 sm:$0xff]  ;;  %v101_v7 = vld [vmem:[#allocation3] ss:$0 sm:$0xff] }
  0xd8   :  { %v69_v6 = vpop.f32.mrb[0].mxu0 }
  0xd9   :  { %v82_v8 = vmul.f32 %v100_v5, %v69_v6  ;;  %v108_v9 = vpop.f32.mrb[1].mxu0 }
  0xda   :  { %v72_v10 = vpop.f32.mrb[2].mxu0 }
  0xdb   :  { %v90_v11 = vadd.f32 %v101_v7, %v82_v8  ;;  %v109_v12 = vpop.f32.mrb[3].mxu0 }
  0xdd   :  { %v91_v13 = vmax.f32 %v90_v11, 0.0 }
  0xdf   :  { %93 = vst.msk [vmem:[%s159_s4] sm:$0xff] %vm92_vm2, %v91_v13 }

// kernel: ega_forward.19
= control target key start
LH: loop header
LB: loop body
LE: loop exit
PB: predicated region body
PF: predicated region fallthrough
CT: control target
= control target key end

     0   :  { %vm24_vm0 = vcmask 1040384   ;;  %v106_v0 = vmov 0.0   ;;  %v107_v2 = vmov 0   ;;  %vm108_vm1 = vmmov 0   ;;  %s149_s1 = inlined_call_operand.vmem [shape: bf16[1,16], index: 1, kind: input, shape index: {}]   ;;  %s150_s0 = inlined_call_operand.vmem [shape: bf16[8,1], index: 0, kind: input, shape index: {}]   ;;  %s151_s2 = inlined_call_operand.vmem [shape: f32[1,16], index: 2, kind: input, shape index: {}]   ;;  %s152_s3 = inlined_call_operand.vmem [shape: f32[1,16], index: 3, kind: input, shape index: {}]   ;;  %s153_s4 = inlined_call_operand.vmem [shape: f32[8,16], index: 4, kind: output, shape index: {}]  }
   0x1   :  { %97 = vmatprep.subr.bf16.mxu0 %v106_v0  ;;  %v19_v1 = vld [vmem:[%s149_s1] sm:$0x1]  ;;  %v26_v3 = vsel %vm24_vm0, 65535, %v107_v2  ;;  %99 = vmatprep.mubr.msk.bf16.mxu0 %vm108_vm1, %v106_v0  ;;  %vm20_vm2 = vcmask 7168   ;;  %vm86_vm3 = vcmask 130048  }
   0x2   :  { %v28_v4 = vand.u32 %v26_v3, %v19_v1  ;;  %v18_v5 = vld [vmem:[%s150_s0] sm:$0xf] }
   0x3   :  { %v93_v6 = vld [vmem:[%s151_s2] ss:$0 sm:$0xff] }
   0x4   :  { %98 = vmatpush3.bf16.msra.mxu0 %v28_v4  ;;  %v94_v8 = vld [vmem:[%s152_s3] ss:$0 sm:$0xff] }
   0x7   :  { %100 = vmatmul.mubr.msk.bf16.vlgmr.msra.gmra.mrb[0].mxu0 %vm20_vm2, %v18_v5 }
  0xda   :  { %v64_v7 = vpop.f32.mrb[0].mxu0 }
  0xdb   :  { %v77_v9 = vmul.f32 %v93_v6, %v64_v7  ;;  %v101_v10 = vpop.f32.mrb[1].mxu0 }
  0xdc   :  { %v67_v11 = vpop.f32.mrb[2].mxu0 }
  0xdd   :  { %v85_v12 = vadd.f32 %v94_v8, %v77_v9  ;;  %v102_v13 = vpop.f32.mrb[3].mxu0 }
  0xdf   :  { %87 = vst.msk [vmem:[%s153_s4] sm:$0xff] %vm86_vm3, %v85_v12 }

// kernel: ega_forward.20
= control target key start
LH: loop header
LB: loop body
LE: loop exit
PB: predicated region body
PF: predicated region fallthrough
CT: control target
= control target key end

     0   :  { %s941_s15 = smov 0   ;;  %s943_s16 = smov 0   ;;  %s1547_s0 = inlined_call_operand.vmem [shape: f32[2,256,16], index: 0, kind: input, shape index: {}]   ;;  %s1548_s1 = inlined_call_operand.vmem [shape: f32[2,1,16], index: 1, kind: input, shape index: {}]   ;;  %s1549_s2 = inlined_call_operand.vmem [shape: f32[2,1,16], index: 2, kind: input, shape index: {}]   ;;  %s1550_s3 = inlined_call_operand.vmem [shape: f32[2,256,16], index: 3, kind: output, shape index: {0}]   ;;  %s1551_s4 = inlined_call_operand.vmem [shape: f32[2,256,2], index: 4, kind: output, shape index: {1}]  }
   0x1   :  { %s945_s17 = smov 0  }
   0x2 LB: > { %s27_s18 = sadd.s32 1, %s910_s16  ;;  %p851_p0 = scmp.ge.s32.totalorder %s914_s17, 1  ;;  %s914_s17 = sphi %s945_s17, %s15_s17   ;;  %s910_s16 = sphi %s943_s16, %s1553_s16   ;;  %s906_s15 = sphi %s941_s15, %s1552_s15  }
   0x3   : > { %p29_p1 = scmp.ge.s32.totalorder %s27_s18, 2  ;;  %p204_p2 = scmp.lt.s32.totalorder %s914_s17, 3 }
   0x5   : > { %s1555_s18 = smov (%p29_p1, %s27_s18), 0  ;;  %p205_p3 = pnand %p851_p0, %p204_p2 }
   0x6   : > { %p254_p4 = scmp.lt.s32.totalorder (!%p205_p3), %s906_s15, 1  ;;  %v331_v6 = vlaneseq (!%p205_p3)  ;;  %vm368_vm0 = vcmask (!%p205_p3), 130048   ;;  %vm497_vm1 = vcmask (!%p205_p3), 7168   ;;  %vm659_vm2 = vcmask (!%p205_p3), 15368  }
   0x7   : > { %208 = sbr.rel (%p205_p3) target bundleno = 319 (0x13f), region = 32 }
   0x8   : > { %v332_v7 = vshrl.u32 (!%p205_p3), %v331_v6, 7 }
   0xa   : > { %v333_v8 = vsub.s32 (!%p205_p3), 0, %v332_v7 }
   0xe   : > { %s1557_s15 = smov (!%p254_p4, %s906_s15), 1 }
   0xf   : > { %s265_s21 = scalar_lea.vmem %s1548_s1, %s1557_s15  ;;  %s268_s24 = scalar_lea.vmem %s1549_s2, %s1557_s15 }
  0x10   : > { %v289_v0 = vld [vmem:[%s265_s21] sm:$0x1]  ;;  %s965_s25 = sshll.u32 %s1557_s15, 8 }
  0x11   : > { %v290_v1 = vld [vmem:[%s268_s24] sm:$0x1]  ;;  %s971_s28 = scalar_lea.vmem %s1547_s0, %s965_s25  ;;  %s987_s5 = scalar_lea.vmem %s1550_s3, %s965_s25 }
  0x12   : > { %v291_v2 = vadd.f32 %v290_v1, %v289_v0  ;;  %v300_v9 = vld [vmem:[%s971_s28 + $0x10] sm:$0xff]  ;;  %v298_v10 = vld [vmem:[%s971_s28] sm:$0xff]  ;;  %v301_v12 = vld [vmem:[%s971_s28 + $0x18] sm:$0xff]  ;;  %s1408_s8 = scalar_lea.vmem %s1551_s4, %s965_s25 }
  0x13   : > { %v299_v13 = vld [vmem:[%s971_s28 + $0x8] sm:$0xff]  ;;  %v302_v16 = vld [vmem:[%s971_s28 + $0x20] sm:$0xff]  ;;  %v305_v17 = vld [vmem:[%s971_s28 + $0x38] sm:$0xff] }
  0x14   : > { %v858_v3 = vmul.f32 -1.442695, %v291_v2  ;;  %v303_v14 = vld [vmem:[%s971_s28 + $0x28] sm:$0xff]  ;;  %v304_v18 = vld [vmem:[%s971_s28 + $0x30] sm:$0xff]  ;;  %v306_v24 = vld [vmem:[%s971_s28 + $0x40] sm:$0xff] }
  0x15   : > { %v307_v23 = vld [vmem:[%s971_s28 + $0x48] sm:$0xff]  ;;  %v309_v29 = vld [vmem:[%s971_s28 + $0x58] sm:$0xff]  ;;  %v308_v30 = vld [vmem:[%s971_s28 + $0x50] sm:$0xff] }
  0x16   : > { %888 = vpow2.f32 %v858_v3  ;;  %v311_v31 = vld [vmem:[%s971_s28 + $0x68] sm:$0xff]  ;;  %v310_v34 = vld [vmem:[%s971_s28 + $0x60] sm:$0xff]  ;;  %v313_v35 = vld [vmem:[%s971_s28 + $0x78] sm:$0xff] }
  0x17   : > { %v312_v36 = vld [vmem:[%s971_s28 + $0x70] sm:$0xff]  ;;  %v315_v43 = vld [vmem:[%s971_s28 + $0x88] sm:$0xff]  ;;  %v314_v44 = vld [vmem:[%s971_s28 + $0x80] sm:$0xff] }
  0x18   : > { %v317_v49 = vld [vmem:[%s971_s28 + $0x98] sm:$0xff]  ;;  %v316_v50 = vld [vmem:[%s971_s28 + $0x90] sm:$0xff]  ;;  %v319_v51 = vld [vmem:[%s971_s28 + $0xa8] sm:$0xff] }
  0x19   : > { %v318_v52 = vld [vmem:[%s971_s28 + $0xa0] sm:$0xff]  ;;  %v321_v53 = vld [vmem:[%s971_s28 + $0xb8] sm:$0xff]  ;;  %v320_v54 = vld [vmem:[%s971_s28 + $0xb0] sm:$0xff] }
  0x1a   : > { %v323_v1 = vld [vmem:[%s971_s28 + $0xc8] sm:$0xff]  ;;  %v322_v2 = vld [vmem:[%s971_s28 + $0xc0] sm:$0xff]  ;;  %v324_v3 = vld [vmem:[%s971_s28 + $0xd0] sm:$0xff] }
  0x20   : > { %v889_v4 = vpop.eup %888 }
  0x21   : > { %v295_v5 = vadd.f32 1.0, %v889_v4 }
  0x23   : > { %890 = vrcp.f32 %v295_v5 }
  0x2d   : > { %v891_v11 = vpop.eup %890 }
  0x2e   : > { %v978_v15 = vrot.slane %v891_v11, %v333_v8 }
  0x30   : > { %v990_v19 = vmul.f32 %v978_v15, %v300_v9  ;;  %v993_v20 = vmul.f32 %v978_v15, %v298_v10  ;;  %v996_v21 = vmul.f32 %v978_v15, %v301_v12  ;;  %v999_v22 = vmul.f32 %v978_v15, %v299_v13 }
  0x31   : > { %v1004_v25 = vmul.f32 %v978_v15, %v303_v14  ;;  %v1007_v26 = vmul.f32 %v978_v15, %v302_v16  ;;  %v1010_v27 = vmul.f32 %v978_v15, %v305_v17  ;;  %v1013_v28 = vmul.f32 %v978_v15, %v304_v18 }
  0x32   : > { %v407_v32 = vsel %vm368_vm0, %v990_v19, -inf  ;;  %371 = vst.msk [vmem:[%s987_s5 + $0x10] sm:$0xff] %vm368_vm0, %v990_v19  ;;  %v401_v33 = vsel %vm368_vm0, %v993_v20, -inf  ;;  %369 = vst.msk [vmem:[%s987_s5] sm:$0xff] %vm368_vm0, %v993_v20  ;;  %v410_v37 = vsel %vm368_vm0, %v996_v21, -inf  ;;  %v404_v38 = vsel %vm368_vm0, %v999_v22, -inf }
  0x33   : > { %372 = vst.msk [vmem:[%s987_s5 + $0x18] sm:$0xff] %vm368_vm0, %v996_v21  ;;  %370 = vst.msk [vmem:[%s987_s5 + $0x8] sm:$0xff] %vm368_vm0, %v999_v22  ;;  %408 = vmax.xlane.f32.xlu1 %v407_v32  ;;  %402 = vmax.xlane.f32.xlu0 %v401_v33  ;;  %v1054_v39 = vmul.f32 %v978_v15, %v307_v23  ;;  %v1057_v40 = vmul.f32 %v978_v15, %v306_v24  ;;  %v416_v55 = vsel %vm368_vm0, %v1004_v25, -inf  ;;  %v325_v33 = vld [vmem:[%s971_s28 + $0xd8] sm:$0xff] }
  0x34   : > { %374 = vst.msk [vmem:[%s987_s5 + $0x28] sm:$0xff] %vm368_vm0, %v1004_v25  ;;  %373 = vst.msk [vmem:[%s987_s5 + $0x20] sm:$0xff] %vm368_vm0, %v1007_v26  ;;  %v1060_v41 = vmul.f32 %v978_v15, %v309_v29  ;;  %v1063_v42 = vmul.f32 %v978_v15, %v308_v30  ;;  %v1068_v45 = vmul.f32 %v978_v15, %v311_v31  ;;  %v413_v56 = vsel %vm368_vm0, %v1007_v26, -inf }
  0x35   : > { %376 = vst.msk [vmem:[%s987_s5 + $0x38] sm:$0xff] %vm368_vm0, %v1010_v27  ;;  %375 = vst.msk [vmem:[%s987_s5 + $0x30] sm:$0xff] %vm368_vm0, %v1013_v28  ;;  %v1071_v46 = vmul.f32 %v978_v15, %v310_v34  ;;  %v1074_v47 = vmul.f32 %v978_v15, %v313_v35  ;;  %v1077_v48 = vmul.f32 %v978_v15, %v312_v36  ;;  %v422_v4 = vsel %vm368_vm0, %v1010_v27, -inf  ;;  %v328_v34 = vld [vmem:[%s971_s28 + $0xf0] sm:$0xff] }
  0x36   : > { %378 = vst.msk [vmem:[%s987_s5 + $0x48] sm:$0xff] %vm368_vm0, %v1054_v39  ;;  %377 = vst.msk [vmem:[%s987_s5 + $0x40] sm:$0xff] %vm368_vm0, %v1057_v40  ;;  %v1114_v57 = vmul.f32 %v978_v15, %v315_v43  ;;  %v1117_v58 = vmul.f32 %v978_v15, %v314_v44  ;;  %v1120_v59 = vmul.f32 %v978_v15, %v317_v49  ;;  %v419_v5 = vsel %vm368_vm0, %v1013_v28, -inf }
  0x37   : > { %380 = vst.msk [vmem:[%s987_s5 + $0x58] sm:$0xff] %vm368_vm0, %v1060_v41  ;;  %379 = vst.msk [vmem:[%s987_s5 + $0x50] sm:$0xff] %vm368_vm0, %v1063_v42  ;;  %411 = vmax.xlane.f32.xlu1 %v410_v37  ;;  %405 = vmax.xlane.f32.xlu0 %v404_v38  ;;  %v1123_v60 = vmul.f32 %v978_v15, %v316_v50  ;;  %v1126_v61 = vmul.f32 %v978_v15, %v319_v51  ;;  %v428_v9 = vsel %vm368_vm0, %v1054_v39, -inf }
  0x38   : > { %382 = vst.msk [vmem:[%s987_s5 + $0x68] sm:$0xff] %vm368_vm0, %v1068_v45  ;;  %381 = vst.msk [vmem:[%s987_s5 + $0x60] sm:$0xff] %vm368_vm0, %v1071_v46  ;;  %v1129_v62 = vmul.f32 %v978_v15, %v318_v52  ;;  %v1132_v63 = vmul.f32 %v978_v15, %v321_v53  ;;  %v1135_v0 = vmul.f32 %v978_v15, %v320_v54  ;;  %v425_v10 = vsel %vm368_vm0, %v1057_v40, -inf }
  0x39   : > { %384 = vst.msk [vmem:[%s987_s5 + $0x78] sm:$0xff] %vm368_vm0, %v1074_v47  ;;  %383 = vst.msk [vmem:[%s987_s5 + $0x70] sm:$0xff] %vm368_vm0, %v1077_v48  ;;  %v1169_v6 = vmul.f32 %v978_v15, %v323_v1  ;;  %v1172_v7 = vmul.f32 %v978_v15, %v322_v2  ;;  %v1175_v8 = vmul.f32 %v978_v15, %v324_v3  ;;  %v434_v11 = vsel %vm368_vm0, %v1060_v41, -inf }
  0x3a   : > { %386 = vst.msk [vmem:[%s987_s5 + $0x88] sm:$0xff] %vm368_vm0, %v1114_v57  ;;  %385 = vst.msk [vmem:[%s987_s5 + $0x80] sm:$0xff] %vm368_vm0, %v1117_v58  ;;  %v431_v12 = vsel %vm368_vm0, %v1063_v42, -inf  ;;  %v1196_v13 = vsel %vm368_vm0, %v1013_v28, 0.0  ;;  %v1200_v14 = vsel %vm368_vm0, %v1004_v25, 0.0  ;;  %v1204_v16 = vsel %vm368_vm0, %v1057_v40, 0.0 }
  0x3b   : > { %388 = vst.msk [vmem:[%s987_s5 + $0x98] sm:$0xff] %vm368_vm0, %v1120_v59  ;;  %387 = vst.msk [vmem:[%s987_s5 + $0x90] sm:$0xff] %vm368_vm0, %v1123_v60  ;;  %417 = vmax.xlane.f32.xlu1 %v416_v55  ;;  %414 = vmax.xlane.f32.xlu0 %v413_v56  ;;  %v1208_v17 = vsel %vm368_vm0, %v1010_v27, 0.0  ;;  %v1212_v18 = vsel %vm368_vm0, %v1063_v42, 0.0  ;;  %v1216_v23 = vsel %vm368_vm0, %v1054_v39, 0.0  ;;  %v1220_v24 = vsel %vm368_vm0, %v1071_v46, 0.0 }
  0x3c   : > { %390 = vst.msk [vmem:[%s987_s5 + $0xa8] sm:$0xff] %vm368_vm0, %v1126_v61  ;;  %389 = vst.msk [vmem:[%s987_s5 + $0xa0] sm:$0xff] %vm368_vm0, %v1129_v62  ;;  %v1224_v25 = vsel %vm368_vm0, %v1060_v41, 0.0  ;;  %v1228_v27 = vsel %vm368_vm0, %v1077_v48, 0.0  ;;  %v326_v28 = vld [vmem:[%s971_s28 + $0xe0] sm:$0xff]  ;;  %v1233_v29 = vsel %vm368_vm0, %v1068_v45, 0.0  ;;  %v363_v51 = vmul.f32 %v978_v15, %v325_v33 }
  0x3d   : > { %392 = vst.msk [vmem:[%s987_s5 + $0xb8] sm:$0xff] %vm368_vm0, %v1132_v63  ;;  %391 = vst.msk [vmem:[%s987_s5 + $0xb0] sm:$0xff] %vm368_vm0, %v1135_v0  ;;  %v1237_v30 = vsel %vm368_vm0, %v1117_v58, 0.0  ;;  %v1241_v31 = vsel %vm368_vm0, %v1074_v47, 0.0  ;;  %v1245_v32 = vsel %vm368_vm0, %v1123_v60, 0.0  ;;  %v1251_v35 = vsel %vm368_vm0, %v1114_v57, 0.0 }
  0x3e   : > { %394 = vst.msk [vmem:[%s987_s5 + $0xc8] sm:$0xff] %vm368_vm0, %v1169_v6  ;;  %393 = vst.msk [vmem:[%s987_s5 + $0xc0] sm:$0xff] %vm368_vm0, %v1172_v7  ;;  %v1255_v36 = vsel %vm368_vm0, %v1129_v62, 0.0  ;;  %v1259_v37 = vsel %vm368_vm0, %v1120_v59, 0.0  ;;  %v1263_v38 = vsel %vm368_vm0, %v1135_v0, 0.0  ;;  %v327_v39 = vld [vmem:[%s971_s28 + $0xe8] sm:$0xff]  ;;  %v364_v50 = vmul.f32 %v978_v15, %v326_v28 }
  0x3f   : > { %395 = vst.msk [vmem:[%s987_s5 + $0xd0] sm:$0xff] %vm368_vm0, %v1175_v8  ;;  %423 = vmax.xlane.f32.xlu1 %v422_v4  ;;  %420 = vmax.xlane.f32.xlu0 %v419_v5  ;;  %v329_v40 = vld [vmem:[%s971_s28 + $0xf8] sm:$0xff]  ;;  %v1269_v41 = vsel %vm368_vm0, %v1126_v61, 0.0  ;;  %v1273_v42 = vsel %vm368_vm0, %v1172_v7, 0.0  ;;  %v1277_v43 = vsel %vm368_vm0, %v1132_v63, 0.0  ;;  %v1281_v44 = vsel %vm368_vm0, %v1175_v8, 0.0 }
  0x40   : > { %v1285_v49 = vsel %vm368_vm0, %v1169_v6, 0.0  ;;  %v366_v52 = vmul.f32 %v978_v15, %v328_v34  ;;  %v365_v53 = vmul.f32 %v978_v15, %v327_v39  ;;  %v367_v54 = vmul.f32 %v978_v15, %v329_v40  ;;  %397 = vst.msk [vmem:[%s987_s5 + $0xe0] sm:$0xff] %vm368_vm0, %v364_v50  ;;  %396 = vst.msk [vmem:[%s987_s5 + $0xd8] sm:$0xff] %vm368_vm0, %v363_v51 }
  0x41   : > { %v1295_v55 = vsel %vm368_vm0, %v364_v50, 0.0  ;;  %v1300_v56 = vsel %vm368_vm0, %v363_v51, 0.0  ;;  %v1308_v2 = vsel %vm368_vm0, %v363_v51, -inf  ;;  %v1324_v5 = vsel %vm368_vm0, %v364_v50, -inf }
  0x42   : > { %399 = vst.msk [vmem:[%s987_s5 + $0xf0] sm:$0xff] %vm368_vm0, %v366_v52  ;;  %v1305_v1 = vsel %vm368_vm0, %v366_v52, 0.0  ;;  %398 = vst.msk [vmem:[%s987_s5 + $0xe8] sm:$0xff] %vm368_vm0, %v365_v53  ;;  %v1313_v15 = vsel %vm368_vm0, %v365_v53, 0.0  ;;  %v1318_v3 = vsel %vm368_vm0, %v367_v54, 0.0  ;;  %v1321_v4 = vsel %vm368_vm0, %v365_v53, -inf }
  0x43   : > { %429 = vmax.xlane.f32.xlu1 %v428_v9  ;;  %426 = vmax.xlane.f32.xlu0 %v425_v10  ;;  %400 = vst.msk [vmem:[%s987_s5 + $0xf8] sm:$0xff] %vm368_vm0, %v367_v54  ;;  %v440_v9 = vsel %vm368_vm0, %v1068_v45, -inf  ;;  %v437_v10 = vsel %vm368_vm0, %v1071_v46, -inf  ;;  %v446_v28 = vsel %vm368_vm0, %v1074_v47, -inf  ;;  %v443_v33 = vsel %vm368_vm0, %v1077_v48, -inf }
  0x44   : > { %v452_v45 = vsel %vm368_vm0, %v1114_v57, -inf  ;;  %v449_v46 = vsel %vm368_vm0, %v1117_v58, -inf  ;;  %v458_v34 = vsel %vm368_vm0, %v1120_v59, -inf  ;;  %v455_v39 = vsel %vm368_vm0, %v1123_v60, -inf }
  0x45   : > { %v464_v47 = vsel %vm368_vm0, %v1126_v61, -inf  ;;  %v461_v48 = vsel %vm368_vm0, %v1129_v62, -inf  ;;  %v470_v57 = vsel %vm368_vm0, %v1132_v63, -inf  ;;  %v467_v58 = vsel %vm368_vm0, %v1135_v0, -inf }
  0x46   : > { %v476_v59 = vsel %vm368_vm0, %v1169_v6, -inf  ;;  %v473_v60 = vsel %vm368_vm0, %v1172_v7, -inf  ;;  %v530_v61 = vsel %vm368_vm0, %v993_v20, 0.0  ;;  %v479_v62 = vsel %vm368_vm0, %v1175_v8, -inf }
  0x47   : > { %435 = vmax.xlane.f32.xlu1 %v434_v11  ;;  %432 = vmax.xlane.f32.xlu0 %v431_v12  ;;  %v1331_v11 = vsel %vm368_vm0, %v367_v54, -inf  ;;  %v1334_v12 = vsel %vm368_vm0, %v366_v52, -inf  ;;  %v536_v63 = vsel %vm368_vm0, %v990_v19, 0.0  ;;  %v533_v0 = vsel %vm368_vm0, %v999_v22, 0.0 }
  0x48   : > { %v542_v6 = vsel %vm368_vm0, %v1007_v26, 0.0  ;;  %v539_v7 = vsel %vm368_vm0, %v996_v21, 0.0 }
  0x4b   : > { %441 = vmax.xlane.f32.xlu1 %v440_v9  ;;  %438 = vmax.xlane.f32.xlu0 %v437_v10 }
  0x4f   : > { %447 = vmax.xlane.f32.xlu1 %v446_v28  ;;  %444 = vmax.xlane.f32.xlu0 %v443_v33 }
  0x53   : > { %453 = vmax.xlane.f32.xlu1 %v452_v45  ;;  %450 = vmax.xlane.f32.xlu0 %v449_v46 }
  0x57   : > { %459 = vmax.xlane.f32.xlu1 %v458_v34  ;;  %456 = vmax.xlane.f32.xlu0 %v455_v39 }
  0x5b   : > { %465 = vmax.xlane.f32.xlu1 %v464_v47  ;;  %462 = vmax.xlane.f32.xlu0 %v461_v48 }
  0x5f   : > { %471 = vmax.xlane.f32.xlu1 %v470_v57  ;;  %468 = vmax.xlane.f32.xlu0 %v467_v58 }
  0x63   : > { %477 = vmax.xlane.f32.xlu1 %v476_v59  ;;  %474 = vmax.xlane.f32.xlu0 %v473_v60 }
  0x67   : > { %531 = vadd.xlane.f32.xlu1 %v530_v61  ;;  %480 = vmax.xlane.f32.xlu0 %v479_v62 }
  0x6b   : > { %537 = vadd.xlane.f32.xlu1 %v536_v63  ;;  %534 = vadd.xlane.f32.xlu0 %v533_v0 }
  0x6f   : > { %543 = vadd.xlane.f32.xlu1 %v542_v6  ;;  %540 = vadd.xlane.f32.xlu0 %v539_v7 }
  0x73   : > { %549 = vadd.xlane.f32.xlu1 %v1196_v13  ;;  %546 = vadd.xlane.f32.xlu0 %v1200_v14 }
  0x77   : > { %555 = vadd.xlane.f32.xlu1 %v1204_v16  ;;  %552 = vadd.xlane.f32.xlu0 %v1208_v17 }
  0x7b   : > { %561 = vadd.xlane.f32.xlu1 %v1212_v18  ;;  %558 = vadd.xlane.f32.xlu0 %v1216_v23 }
  0x7f   : > { %567 = vadd.xlane.f32.xlu1 %v1220_v24  ;;  %564 = vadd.xlane.f32.xlu0 %v1224_v25 }
  0x83   : > { %573 = vadd.xlane.f32.xlu1 %v1228_v27  ;;  %570 = vadd.xlane.f32.xlu0 %v1233_v29 }
  0x87   : > { %579 = vadd.xlane.f32.xlu1 %v1237_v30  ;;  %576 = vadd.xlane.f32.xlu0 %v1241_v31 }
  0x8b   : > { %585 = vadd.xlane.f32.xlu1 %v1245_v32  ;;  %582 = vadd.xlane.f32.xlu0 %v1251_v35 }
  0x8f   : > { %591 = vadd.xlane.f32.xlu1 %v1255_v36  ;;  %588 = vadd.xlane.f32.xlu0 %v1259_v37 }
  0x93   : > { %597 = vadd.xlane.f32.xlu1 %v1263_v38  ;;  %594 = vadd.xlane.f32.xlu0 %v1269_v41 }
  0x97   : > { %603 = vadd.xlane.f32.xlu1 %v1273_v42  ;;  %600 = vadd.xlane.f32.xlu0 %v1277_v43 }
  0x9b   : > { %609 = vadd.xlane.f32.xlu1 %v1281_v44  ;;  %606 = vadd.xlane.f32.xlu0 %v1285_v49 }
  0x9f   : > { %615 = vadd.xlane.f32.xlu1 %v1295_v55  ;;  %612 = vadd.xlane.f32.xlu0 %v1300_v56 }
  0xa3   : > { %621 = vadd.xlane.f32.xlu1 %v1305_v1  ;;  %618 = vadd.xlane.f32.xlu0 %v1313_v15 }
  0xa7   : > { %483 = vmax.xlane.f32.xlu1 %v1308_v2  ;;  %624 = vadd.xlane.f32.xlu0 %v1318_v3 }
  0xab   : > { %489 = vmax.xlane.f32.xlu1 %v1321_v4  ;;  %486 = vmax.xlane.f32.xlu0 %v1324_v5 }
  0xaf   : > { %495 = vmax.xlane.f32.xlu1 %v1331_v11  ;;  %492 = vmax.xlane.f32.xlu0 %v1334_v12 }
  0xc0   : > { %v409_v19 = vpop.xlane.xlu1 %408  ;;  %v403_v20 = vpop.xlane.xlu0 %402 }
  0xc1   : > { %500 = vst.msk [vmem:[%s1408_s8 + $0x10] sm:$0xff] %vm497_vm1, %v409_v19  ;;  %498 = vst.msk [vmem:[%s1408_s8] sm:$0xff] %vm497_vm1, %v403_v20 }
  0xc4   : > { %v412_v21 = vpop.xlane.xlu1 %411  ;;  %v406_v22 = vpop.xlane.xlu0 %405 }
  0xc5   : > { %501 = vst.msk [vmem:[%s1408_s8 + $0x18] sm:$0xff] %vm497_vm1, %v412_v21  ;;  %499 = vst.msk [vmem:[%s1408_s8 + $0x8] sm:$0xff] %vm497_vm1, %v406_v22 }
  0xc8   : > { %v418_v26 = vpop.xlane.xlu1 %417  ;;  %v415_v8 = vpop.xlane.xlu0 %414 }
  0xc9   : > { %503 = vst.msk [vmem:[%s1408_s8 + $0x28] sm:$0xff] %vm497_vm1, %v418_v26  ;;  %502 = vst.msk [vmem:[%s1408_s8 + $0x20] sm:$0xff] %vm497_vm1, %v415_v8 }
  0xcc   : > { %v424_v13 = vpop.xlane.xlu1 %423  ;;  %v421_v14 = vpop.xlane.xlu0 %420 }
  0xcd   : > { %505 = vst.msk [vmem:[%s1408_s8 + $0x38] sm:$0xff] %vm497_vm1, %v424_v13  ;;  %504 = vst.msk [vmem:[%s1408_s8 + $0x30] sm:$0xff] %vm497_vm1, %v421_v14 }
  0xd0   : > { %v430_v16 = vpop.xlane.xlu1 %429  ;;  %v427_v17 = vpop.xlane.xlu0 %426 }
  0xd1   : > { %507 = vst.msk [vmem:[%s1408_s8 + $0x48] sm:$0xff] %vm497_vm1, %v430_v16  ;;  %506 = vst.msk [vmem:[%s1408_s8 + $0x40] sm:$0xff] %vm497_vm1, %v427_v17 }
  0xd4   : > { %v436_v18 = vpop.xlane.xlu1 %435  ;;  %v433_v23 = vpop.xlane.xlu0 %432 }
  0xd5   : > { %509 = vst.msk [vmem:[%s1408_s8 + $0x58] sm:$0xff] %vm497_vm1, %v436_v18  ;;  %508 = vst.msk [vmem:[%s1408_s8 + $0x50] sm:$0xff] %vm497_vm1, %v433_v23 }
  0xd8   : > { %v442_v24 = vpop.xlane.xlu1 %441  ;;  %v439_v25 = vpop.xlane.xlu0 %438 }
  0xd9   : > { %511 = vst.msk [vmem:[%s1408_s8 + $0x68] sm:$0xff] %vm497_vm1, %v442_v24  ;;  %510 = vst.msk [vmem:[%s1408_s8 + $0x60] sm:$0xff] %vm497_vm1, %v439_v25 }
  0xdc   : > { %v448_v27 = vpop.xlane.xlu1 %447  ;;  %v445_v29 = vpop.xlane.xlu0 %444 }
  0xdd   : > { %513 = vst.msk [vmem:[%s1408_s8 + $0x78] sm:$0xff] %vm497_vm1, %v448_v27  ;;  %512 = vst.msk [vmem:[%s1408_s8 + $0x70] sm:$0xff] %vm497_vm1, %v445_v29 }
  0xe0   : > { %v454_v30 = vpop.xlane.xlu1 %453  ;;  %v451_v31 = vpop.xlane.xlu0 %450 }
  0xe1   : > { %515 = vst.msk [vmem:[%s1408_s8 + $0x88] sm:$0xff] %vm497_vm1, %v454_v30  ;;  %514 = vst.msk [vmem:[%s1408_s8 + $0x80] sm:$0xff] %vm497_vm1, %v451_v31 }
  0xe4   : > { %v460_v32 = vpop.xlane.xlu1 %459  ;;  %v457_v35 = vpop.xlane.xlu0 %456 }
  0xe5   : > { %517 = vst.msk [vmem:[%s1408_s8 + $0x98] sm:$0xff] %vm497_vm1, %v460_v32  ;;  %516 = vst.msk [vmem:[%s1408_s8 + $0x90] sm:$0xff] %vm497_vm1, %v457_v35 }
  0xe8   : > { %v466_v36 = vpop.xlane.xlu1 %465  ;;  %v463_v37 = vpop.xlane.xlu0 %462 }
  0xe9   : > { %519 = vst.msk [vmem:[%s1408_s8 + $0xa8] sm:$0xff] %vm497_vm1, %v466_v36  ;;  %518 = vst.msk [vmem:[%s1408_s8 + $0xa0] sm:$0xff] %vm497_vm1, %v463_v37 }
  0xec   : > { %v472_v38 = vpop.xlane.xlu1 %471  ;;  %v469_v40 = vpop.xlane.xlu0 %468 }
  0xed   : > { %521 = vst.msk [vmem:[%s1408_s8 + $0xb8] sm:$0xff] %vm497_vm1, %v472_v38  ;;  %520 = vst.msk [vmem:[%s1408_s8 + $0xb0] sm:$0xff] %vm497_vm1, %v469_v40 }
  0xf0   : > { %v478_v41 = vpop.xlane.xlu1 %477  ;;  %v475_v42 = vpop.xlane.xlu0 %474 }
  0xf1   : > { %523 = vst.msk [vmem:[%s1408_s8 + $0xc8] sm:$0xff] %vm497_vm1, %v478_v41  ;;  %522 = vst.msk [vmem:[%s1408_s8 + $0xc0] sm:$0xff] %vm497_vm1, %v475_v42 }
  0xf4   : > { %v532_v43 = vpop.xlane.xlu1 %531  ;;  %v481_v44 = vpop.xlane.xlu0 %480 }
  0xf5   : > { %v627_v49 = vmul.f32 0.0625, %v532_v43  ;;  %524 = vst.msk [vmem:[%s1408_s8 + $0xd0] sm:$0xff] %vm497_vm1, %v481_v44 }
  0xf7   : > { %660 = vst.msk [vmem:[%s1408_s8] sm:$0xff] %vm659_vm2, %v627_v49 }
  0xf8   : > { %v538_v50 = vpop.xlane.xlu1 %537  ;;  %v535_v51 = vpop.xlane.xlu0 %534 }
  0xf9   : > { %v629_v52 = vmul.f32 0.0625, %v538_v50  ;;  %v628_v53 = vmul.f32 0.0625, %v535_v51 }
  0xfb   : > { %662 = vst.msk [vmem:[%s1408_s8 + $0x10] sm:$0xff] %vm659_vm2, %v629_v52  ;;  %661 = vst.msk [vmem:[%s1408_s8 + $0x8] sm:$0xff] %vm659_vm2, %v628_v53 }
  0xfc   : > { %v544_v54 = vpop.xlane.xlu1 %543  ;;  %v541_v55 = vpop.xlane.xlu0 %540 }
  0xfd   : > { %v631_v56 = vmul.f32 0.0625, %v544_v54  ;;  %v630_v1 = vmul.f32 0.0625, %v541_v55 }
  0xff   : > { %664 = vst.msk [vmem:[%s1408_s8 + $0x20] sm:$0xff] %vm659_vm2, %v631_v56  ;;  %663 = vst.msk [vmem:[%s1408_s8 + $0x18] sm:$0xff] %vm659_vm2, %v630_v1 }
 0x100   : > { %v550_v2 = vpop.xlane.xlu1 %549  ;;  %v547_v15 = vpop.xlane.xlu0 %546 }
 0x101   : > { %v633_v3 = vmul.f32 0.0625, %v550_v2  ;;  %v632_v4 = vmul.f32 0.0625, %v547_v15 }
 0x103   : > { %666 = vst.msk [vmem:[%s1408_s8 + $0x30] sm:$0xff] %vm659_vm2, %v633_v3  ;;  %665 = vst.msk [vmem:[%s1408_s8 + $0x28] sm:$0xff] %vm659_vm2, %v632_v4 }
 0x104   : > { %v556_v5 = vpop.xlane.xlu1 %555  ;;  %v553_v9 = vpop.xlane.xlu0 %552 }
 0x105   : > { %v635_v10 = vmul.f32 0.0625, %v556_v5  ;;  %v634_v11 = vmul.f32 0.0625, %v553_v9 }
 0x107   : > { %668 = vst.msk [vmem:[%s1408_s8 + $0x40] sm:$0xff] %vm659_vm2, %v635_v10  ;;  %667 = vst.msk [vmem:[%s1408_s8 + $0x38] sm:$0xff] %vm659_vm2, %v634_v11 }
 0x108   : > { %v562_v12 = vpop.xlane.xlu1 %561  ;;  %v559_v28 = vpop.xlane.xlu0 %558 }
 0x109   : > { %v637_v33 = vmul.f32 0.0625, %v562_v12  ;;  %v636_v45 = vmul.f32 0.0625, %v559_v28 }
 0x10b   : > { %670 = vst.msk [vmem:[%s1408_s8 + $0x50] sm:$0xff] %vm659_vm2, %v637_v33  ;;  %669 = vst.msk [vmem:[%s1408_s8 + $0x48] sm:$0xff] %vm659_vm2, %v636_v45 }
 0x10c   : > { %v568_v46 = vpop.xlane.xlu1 %567  ;;  %v565_v34 = vpop.xlane.xlu0 %564 }
 0x10d   : > { %v639_v39 = vmul.f32 0.0625, %v568_v46  ;;  %v638_v47 = vmul.f32 0.0625, %v565_v34 }
 0x10f   : > { %672 = vst.msk [vmem:[%s1408_s8 + $0x60] sm:$0xff] %vm659_vm2, %v639_v39  ;;  %671 = vst.msk [vmem:[%s1408_s8 + $0x58] sm:$0xff] %vm659_vm2, %v638_v47 }
 0x110   : > { %v574_v48 = vpop.xlane.xlu1 %573  ;;  %v571_v57 = vpop.xlane.xlu0 %570 }
 0x111   : > { %v641_v58 = vmul.f32 0.0625, %v574_v48  ;;  %v640_v59 = vmul.f32 0.0625, %v571_v57 }
 0x113   : > { %674 = vst.msk [vmem:[%s1408_s8 + $0x70] sm:$0xff] %vm659_vm2, %v641_v58  ;;  %673 = vst.msk [vmem:[%s1408_s8 + $0x68] sm:$0xff] %vm659_vm2, %v640_v59 }
 0x114   : > { %v580_v60 = vpop.xlane.xlu1 %579  ;;  %v577_v61 = vpop.xlane.xlu0 %576 }
 0x115   : > { %v643_v62 = vmul.f32 0.0625, %v580_v60  ;;  %v642_v63 = vmul.f32 0.0625, %v577_v61 }
 0x117   : > { %676 = vst.msk [vmem:[%s1408_s8 + $0x80] sm:$0xff] %vm659_vm2, %v643_v62  ;;  %675 = vst.msk [vmem:[%s1408_s8 + $0x78] sm:$0xff] %vm659_vm2, %v642_v63 }
 0x118   : > { %v586_v0 = vpop.xlane.xlu1 %585  ;;  %v583_v6 = vpop.xlane.xlu0 %582 }
 0x119   : > { %v645_v7 = vmul.f32 0.0625, %v586_v0  ;;  %v644_v19 = vmul.f32 0.0625, %v583_v6 }
 0x11b   : > { %678 = vst.msk [vmem:[%s1408_s8 + $0x90] sm:$0xff] %vm659_vm2, %v645_v7  ;;  %677 = vst.msk [vmem:[%s1408_s8 + $0x88] sm:$0xff] %vm659_vm2, %v644_v19 }
 0x11c   : > { %v592_v20 = vpop.xlane.xlu1 %591  ;;  %v589_v21 = vpop.xlane.xlu0 %588 }
 0x11d   : > { %v647_v22 = vmul.f32 0.0625, %v592_v20  ;;  %v646_v26 = vmul.f32 0.0625, %v589_v21 }
 0x11f   : > { %680 = vst.msk [vmem:[%s1408_s8 + $0xa0] sm:$0xff] %vm659_vm2, %v647_v22  ;;  %679 = vst.msk [vmem:[%s1408_s8 + $0x98] sm:$0xff] %vm659_vm2, %v646_v26 }
 0x120   : > { %v598_v8 = vpop.xlane.xlu1 %597  ;;  %v595_v13 = vpop.xlane.xlu0 %594 }
 0x121   : > { %v649_v14 = vmul.f32 0.0625, %v598_v8  ;;  %v648_v16 = vmul.f32 0.0625, %v595_v13 }
 0x123   : > { %682 = vst.msk [vmem:[%s1408_s8 + $0xb0] sm:$0xff] %vm659_vm2, %v649_v14  ;;  %681 = vst.msk [vmem:[%s1408_s8 + $0xa8] sm:$0xff] %vm659_vm2, %v648_v16 }
 0x124   : > { %v604_v17 = vpop.xlane.xlu1 %603  ;;  %v601_v18 = vpop.xlane.xlu0 %600 }
 0x125   : > { %v651_v23 = vmul.f32 0.0625, %v604_v17  ;;  %v650_v24 = vmul.f32 0.0625, %v601_v18 }
 0x127   : > { %684 = vst.msk [vmem:[%s1408_s8 + $0xc0] sm:$0xff] %vm659_vm2, %v651_v23  ;;  %683 = vst.msk [vmem:[%s1408_s8 + $0xb8] sm:$0xff] %vm659_vm2, %v650_v24 }
 0x128   : > { %v610_v25 = vpop.xlane.xlu1 %609  ;;  %v607_v27 = vpop.xlane.xlu0 %606 }
 0x129   : > { %v653_v29 = vmul.f32 0.0625, %v610_v25  ;;  %v652_v30 = vmul.f32 0.0625, %v607_v27 }
 0x12b   : > { %686 = vst.msk [vmem:[%s1408_s8 + $0xd0] sm:$0xff] %vm659_vm2, %v653_v29  ;;  %685 = vst.msk [vmem:[%s1408_s8 + $0xc8] sm:$0xff] %vm659_vm2, %v652_v30 }
 0x12c   : > { %v616_v31 = vpop.xlane.xlu1 %615  ;;  %v613_v32 = vpop.xlane.xlu0 %612 }
 0x12d   : > { %v654_v37 = vmul.f32 0.0625, %v613_v32  ;;  %v655_v41 = vmul.f32 0.0625, %v616_v31 }
 0x130   : > { %v622_v35 = vpop.xlane.xlu1 %621  ;;  %v619_v36 = vpop.xlane.xlu0 %618 }
 0x131   : > { %v656_v42 = vmul.f32 0.0625, %v619_v36  ;;  %v657_v49 = vmul.f32 0.0625, %v622_v35 }
 0x134   : > { %v484_v38 = vpop.xlane.xlu1 %483  ;;  %v625_v40 = vpop.xlane.xlu0 %624 }
 0x135   : > { %525 = vst.msk [vmem:[%s1408_s8 + $0xd8] sm:$0xff] %vm497_vm1, %v484_v38  ;;  %v658_v50 = vmul.f32 0.0625, %v625_v40 }
 0x136   : > { %687 = vst.msk [vmem:[%s1408_s8 + $0xd8] sm:$0xff] %vm659_vm2, %v654_v37 }
 0x138   : > { %v490_v43 = vpop.xlane.xlu1 %489  ;;  %v487_v44 = vpop.xlane.xlu0 %486 }
 0x139   : > { %527 = vst.msk [vmem:[%s1408_s8 + $0xe8] sm:$0xff] %vm497_vm1, %v490_v43  ;;  %526 = vst.msk [vmem:[%s1408_s8 + $0xe0] sm:$0xff] %vm497_vm1, %v487_v44 }
 0x13a   : > { %689 = vst.msk [vmem:[%s1408_s8 + $0xe8] sm:$0xff] %vm659_vm2, %v656_v42  ;;  %688 = vst.msk [vmem:[%s1408_s8 + $0xe0] sm:$0xff] %vm659_vm2, %v655_v41 }
 0x13c   : > { %v496_v51 = vpop.xlane.xlu1 %495  ;;  %v493_v52 = vpop.xlane.xlu0 %492 }
 0x13d   : > { %529 = vst.msk [vmem:[%s1408_s8 + $0xf8] sm:$0xff] %vm497_vm1, %v496_v51  ;;  %528 = vst.msk [vmem:[%s1408_s8 + $0xf0] sm:$0xff] %vm497_vm1, %v493_v52 }
 0x13e   : > { %691 = vst.msk [vmem:[%s1408_s8 + $0xf8] sm:$0xff] %vm659_vm2, %v658_v50  ;;  %690 = vst.msk [vmem:[%s1408_s8 + $0xf0] sm:$0xff] %vm659_vm2, %v657_v49 }
 0x13f PF: > { %s15_s17 = sadd.s32 1, %s914_s17   ;;  %s1552_s15 = smov %s910_s16 }
 0x140   : > { %p12_p5 = scmp.ge.s32.totalorder %s15_s17, 4   ;;  %s1553_s16 = smov %s1555_s18 }
 0x142   :  { %14 = sbr.rel (!%p12_p5) target bundleno = 2 (0x2), region = 80 }

// kernel: ega_forward.21
= control target key start
LH: loop header
LB: loop body
LE: loop exit
PB: predicated region body
PF: predicated region fallthrough
CT: control target
= control target key end

     0   :  { %s1497_s17 = smov 0   ;;  %s1749_s0 = inlined_call_operand.vmem [shape: bf16[512,98], index: 0, kind: input, shape index: {}]   ;;  %s1750_s1 = inlined_call_operand.vmem [shape: bf16[98,1], index: 1, kind: input, shape index: {}]   ;;  %s1751_s2 = inlined_call_operand.<no memory space> [shape: f32[1,1], index: 2, kind: input, shape index: {}]   ;;  %s1752_s3 = inlined_call_operand.vmem [shape: f32[512,16], index: 3, kind: input, shape index: {}]   ;;  %s1753_s4 = inlined_call_operand.vmem [shape: f32[512,16], index: 4, kind: output, shape index: {}]  }
   0x1   :  { %v9_v0 = vstv %s1751_s2 }
   0x2   :  { %10 = vst [vmem:[#allocation2] sm:$0x1] %v9_v0 }
   0x3 LB: > { %s1128_s18 = sadd.s32 4294967295, %s1466_s17   ;;  %p1132_p0 = scmp.ge.s32.totalorder %s1466_s17, 1  ;;  %s1466_s17 = sphi %s1497_s17, %s16_s17  }
   0x4   : > { %p176_p1 = scmp.lt.s32.totalorder %s1466_s17, 3 }
   0x6   : > { %p177_p2 = pnand %p1132_p0, %p176_p1 }
   0x7   : > { %v1309_v1 = vld [vmem:[%s1750_s1] sm:$0xff] (!%p177_p2)   ;;  %v1310_v2 = vld [vmem:[%s1750_s1 + $0x8] sm:$0xff] (!%p177_p2)   ;;  %s1133_s22 = sshll.u32 (!%p177_p2), %s1128_s18, 5  ;;  %v1311_v3 = vld [vmem:[%s1750_s1 + $0x10] sm:$0xff] (!%p177_p2)   ;;  %vm397_vm0 = vcmask (!%p177_p2), 801792   ;;  %vm446_vm1 = vcmask (!%p177_p2), 1040384  }
   0x8   : > { %180 = sbr.rel (%p177_p2) target bundleno = 474 (0x1da), region = 36  ;;  %1236 = vmatprep.subr.bf16.mxu0 (!%p177_p2), %v1309_v1  ;;  %1282 = vmatprep.subr.bf16.mxu1 (!%p177_p2), %v1309_v1  ;;  %p208_p3 = scmp.lt.s32.totalorder (!%p177_p2), %s1133_s22, 63  ;;  %v1312_v4 = vld [vmem:[%s1750_s1 + $0x18] sm:$0xff] (!%p177_p2)   ;;  %v1313_v7 = vld [vmem:[%s1750_s1 + $0x20] sm:$0xff] (!%p177_p2)   ;;  %v1314_v8 = vld [vmem:[%s1750_s1 + $0x28] sm:$0xff] (!%p177_p2)   ;;  %v1468_v25 = vmov (!%p177_p2), 0  }
   0x9   : > { %1237 = vmatpush3.bf16.msra.mxu0 (!%p177_p2), %v1309_v1  ;;  %1289 = vmatpush3.bf16.msra.mxu1 (!%p177_p2), %v1309_v1  ;;  %v1315_v9 = vld [vmem:[%s1750_s1 + $0x30] ss:$0 sps:$4 sm:$0x11] (!%p177_p2)   ;;  %v1566_v26 = vld [vmem:[#allocation2] ss:$0 sm:$0xff] (!%p177_p2)  ;;  %vm1027_vm2 = vcmask (!%p177_p2), 130048  }
   0xa   : > { %1238 = vmatprep.subr.bf16.mxu0 (!%p177_p2), %v1310_v2  ;;  %1283 = vmatprep.subr.bf16.mxu1 (!%p177_p2), %v1310_v2  ;;  %v448_v10 = vsel (!%p177_p2), %vm446_vm1, %v1315_v9, 0 }
   0xb   : > { %1308 = vset.pattern.permute.xlu0 (!%p177_p2), %v1468_v25  ;;  %1307 = vset.pattern.permute.xlu1 (!%p177_p2), %v1468_v25 }
   0xd   : > { %1239 = vmatpush3.bf16.msra.mxu0 (!%p177_p2), %v1310_v2  ;;  %1290 = vmatpush3.bf16.msra.mxu1 (!%p177_p2), %v1310_v2 }
   0xe   : > { %1240 = vmatprep.subr.bf16.mxu0 (!%p177_p2), %v1311_v3  ;;  %1284 = vmatprep.subr.bf16.mxu1 (!%p177_p2), %v1311_v3 }
   0xf   : > { %s1755_s22 = smov (!%p208_p3, %s1133_s22), 63 }
  0x10   : > { %s1134_s25 = sshll.u32 %s1755_s22, 2  ;;  %s1136_s11 = sshll.u32 %s1755_s22, 3 }
  0x11   : > { %s1523_s30 = scalar_lea.vmem %s1749_s0, %s1134_s25  ;;  %1241 = vmatpush3.bf16.msra.mxu0 %v1311_v3  ;;  %1291 = vmatpush3.bf16.msra.mxu1 %v1311_v3  ;;  %s1643_s14 = scalar_lea.vmem %s1752_s3, %s1136_s11 }
  0x12   : > { %v1316_v5 = vld [vmem:[%s1523_s30] sm:$0xff]   ;;  %1242 = vmatprep.subr.bf16.mxu0 %v1312_v4  ;;  %1285 = vmatprep.subr.bf16.mxu1 %v1312_v4  ;;  %v1318_v11 = vld [vmem:[%s1523_s30 + $0x8] sm:$0xff]   ;;  %v1320_v13 = vld [vmem:[%s1523_s30 + $0x10] sm:$0xff]   ;;  %s1650_s18 = scalar_lea.vmem %s1753_s4, %s1136_s11 }
  0x13   : > { %v1317_v6 = vld [vmem:[%s1523_s30 + $0x40] sm:$0xff]   ;;  %1250 = vmatprep.mubr.msk.bf16.mxu0 %vm397_vm0, %v1316_v5  ;;  %v1319_v12 = vld [vmem:[%s1523_s30 + $0x48] sm:$0xff]   ;;  %v1322_v14 = vld [vmem:[%s1523_s30 + $0x50] sm:$0xff]  }
  0x14   : > { %1266 = vmatprep.mubr.msk.bf16.mxu1 %vm397_vm0, %v1317_v6  ;;  %v1321_v15 = vld [vmem:[%s1523_s30 + $0x18] sm:$0xff]   ;;  %v1324_v17 = vld [vmem:[%s1523_s30 + $0x20] sm:$0xff]   ;;  %v1325_v19 = vld [vmem:[%s1523_s30 + $0x28] sm:$0xff]  }
  0x15   : > { %1243 = vmatpush3.bf16.msra.mxu0 %v1312_v4  ;;  %1292 = vmatpush3.bf16.msra.mxu1 %v1312_v4  ;;  %v1323_v16 = vld [vmem:[%s1523_s30 + $0x58] sm:$0xff]   ;;  %v1326_v18 = vld [vmem:[%s1523_s30 + $0x60] sm:$0xff]   ;;  %v1327_v20 = vld [vmem:[%s1523_s30 + $0x68] sm:$0xff]  }
  0x16   : > { %1244 = vmatprep.subr.bf16.mxu0 %v1313_v7  ;;  %1286 = vmatprep.subr.bf16.mxu1 %v1313_v7  ;;  %v1328_v21 = vld [vmem:[%s1523_s30 + $0x30] sm:$0xff]   ;;  %v1329_v23 = vld [vmem:[%s1523_s30 + $0x38] sm:$0xff]  }
  0x17   : > { %v1330_v22 = vld [vmem:[%s1523_s30 + $0x70] sm:$0xff]   ;;  %v1331_v24 = vld [vmem:[%s1523_s30 + $0x78] sm:$0xff]  }
  0x19   : > { %1245 = vmatpush3.bf16.msra.mxu0 %v1313_v7  ;;  %1293 = vmatpush3.bf16.msra.mxu1 %v1313_v7 }
  0x1a   : > { %1246 = vmatprep.subr.bf16.mxu0 %v1314_v8  ;;  %1287 = vmatprep.subr.bf16.mxu1 %v1314_v8 }
  0x1d   : > { %1247 = vmatpush3.bf16.msra.mxu0 %v1314_v8  ;;  %1294 = vmatpush3.bf16.msra.mxu1 %v1314_v8 }
  0x1e   : > { %1296 = vmatprep.subr.msk.bf16.mxu0 %vm446_vm1, %v1315_v9  ;;  %1297 = vmatprep.subr.msk.bf16.mxu1 %vm446_vm1, %v1315_v9 }
  0x21   : > { %1249 = vmatpush3.bf16.msra.mxu0 %v448_v10  ;;  %1295 = vmatpush3.bf16.msra.mxu1 %v448_v10 }
  0x24   : > { %1251 = vmatmul.mubr.msk.bf16.vlgmr.msra.gmra.mrb[0].mxu0 %vm397_vm0, %v1318_v11  ;;  %1267 = vmatmul.mubr.msk.bf16.vlgmr.msra.gmra.mrb[0].mxu1 %vm397_vm0, %v1319_v12 }
  0x25   : > { %1254 = vmatprep.mubr.msk.bf16.mxu0 %vm397_vm0, %v1320_v13  ;;  %1270 = vmatprep.mubr.msk.bf16.mxu1 %vm397_vm0, %v1322_v14 }
  0x2c   : > { %1255 = vmatmul.mubr.msk.bf16.gmra.mrb[4].mxu0 %vm397_vm0, %v1321_v15  ;;  %1271 = vmatmul.mubr.msk.bf16.gmra.mrb[4].mxu1 %vm397_vm0, %v1323_v16 }
  0x2d   : > { %1258 = vmatprep.mubr.msk.bf16.mxu0 %vm397_vm0, %v1324_v17  ;;  %1274 = vmatprep.mubr.msk.bf16.mxu1 %vm397_vm0, %v1326_v18 }
  0x34   : > { %1259 = vmatmul.mubr.msk.bf16.gmra.mrb[8].mxu0 %vm397_vm0, %v1325_v19  ;;  %1275 = vmatmul.mubr.msk.bf16.gmra.mrb[8].mxu1 %vm397_vm0, %v1327_v20 }
  0x35   : > { %1262 = vmatprep.mubr.msk.bf16.mxu0 %vm397_vm0, %v1328_v21  ;;  %1278 = vmatprep.mubr.msk.bf16.mxu1 %vm397_vm0, %v1330_v22 }
  0x3c   : > { %1263 = vmatmul.mubr.msk.bf16.gmra.mrb[12].mxu0 %vm397_vm0, %v1329_v23  ;;  %1279 = vmatmul.mubr.msk.bf16.gmra.mrb[12].mxu1 %vm397_vm0, %v1331_v24 }
  0xf7   : > { %v1252_v27 = vpop.f32.mrb[0].mxu0  ;;  %v1268_v28 = vpop.f32.mrb[0].mxu1 }
  0xf8   : > { %v493_v29 = vadd.f32 %v1252_v27, %v1566_v26  ;;  %v557_v30 = vadd.f32 %v1268_v28, %v1566_v26  ;;  %v484_v31 = vpop.f32.mrb[1].mxu0  ;;  %v548_v32 = vpop.f32.mrb[1].mxu1 }
  0xf9   : > { %v485_v33 = vadd.f32 %v1566_v26, %v484_v31  ;;  %v549_v34 = vadd.f32 %v1566_v26, %v548_v32  ;;  %v1253_v35 = vpop.f32.mrb[2].mxu0  ;;  %v1269_v36 = vpop.f32.mrb[2].mxu1 }
  0xfa   : > { %v1181_v37 = vmul.f32 -1.442695, %v493_v29  ;;  %v1197_v38 = vmul.f32 -1.442695, %v557_v30  ;;  %v496_v39 = vadd.f32 %v1253_v35, %v1566_v26  ;;  %v560_v40 = vadd.f32 %v1269_v36, %v1566_v26  ;;  %v487_v41 = vpop.f32.mrb[3].mxu0  ;;  %v551_v42 = vpop.f32.mrb[3].mxu1 }
  0xfb   : > { %v1179_v43 = vmul.f32 -1.442695, %v485_v33  ;;  %v1195_v44 = vmul.f32 -1.442695, %v549_v34  ;;  %v488_v45 = vadd.f32 %v1566_v26, %v487_v41  ;;  %v552_v47 = vadd.f32 %v1566_v26, %v551_v42 }
  0xfc   : > { %1332 = vpow2.f32 %v1181_v37  ;;  %v1182_v46 = vmul.f32 -1.442695, %v496_v39  ;;  %v1198_v48 = vmul.f32 -1.442695, %v560_v40 }
  0xfd   : > { %1334 = vpow2.f32 %v1197_v38  ;;  %v1180_v49 = vmul.f32 -1.442695, %v488_v45  ;;  %v1196_v52 = vmul.f32 -1.442695, %v552_v47 }
  0xfe   : > { %1336 = vpow2.f32 %v1179_v43 }
  0xff   : > { %1338 = vpow2.f32 %v1195_v44  ;;  %v1256_v50 = vpop.f32.mrb[4].mxu0  ;;  %v1272_v51 = vpop.f32.mrb[4].mxu1 }
 0x100   : > { %1340 = vpow2.f32 %v1182_v46  ;;  %v509_v53 = vadd.f32 %v1256_v50, %v1566_v26  ;;  %v500_v54 = vpop.f32.mrb[5].mxu0  ;;  %v564_v55 = vpop.f32.mrb[5].mxu1  ;;  %v573_v61 = vadd.f32 %v1272_v51, %v1566_v26 }
 0x101   : > { %1342 = vpow2.f32 %v1198_v48  ;;  %v1257_v56 = vpop.f32.mrb[6].mxu0  ;;  %v1273_v57 = vpop.f32.mrb[6].mxu1  ;;  %v501_v8 = vadd.f32 %v1566_v26, %v500_v54  ;;  %v565_v27 = vadd.f32 %v1566_v26, %v564_v55 }
 0x102   : > { %v512_v58 = vadd.f32 %v1257_v56, %v1566_v26  ;;  %v503_v59 = vpop.f32.mrb[7].mxu0  ;;  %v567_v60 = vpop.f32.mrb[7].mxu1  ;;  %1344 = vpow2.f32 %v1180_v49  ;;  %v1185_v62 = vmul.f32 -1.442695, %v509_v53  ;;  %v1201_v3 = vmul.f32 -1.442695, %v573_v61 }
 0x103   : > { %1346 = vpow2.f32 %v1196_v52  ;;  %v504_v20 = vadd.f32 %v1566_v26, %v503_v59  ;;  %v1183_v21 = vmul.f32 -1.442695, %v501_v8  ;;  %v576_v29 = vadd.f32 %v1273_v57, %v1566_v26 }
 0x104   : > { %v1186_v63 = vmul.f32 -1.442695, %v512_v58  ;;  %v1199_v40 = vmul.f32 -1.442695, %v565_v27  ;;  %v568_v45 = vadd.f32 %v1566_v26, %v567_v60 }
 0x105   : > { %v1184_v28 = vmul.f32 -1.442695, %v504_v20  ;;  %v1202_v44 = vmul.f32 -1.442695, %v576_v29 }
 0x106   : > { %v1333_v0 = vpop.eup %1332  ;;  %1348 = vpow2.f32 %v1186_v63  ;;  %v1200_v56 = vmul.f32 -1.442695, %v568_v45 }
 0x107   : > { %v1335_v1 = vpop.eup %1334  ;;  %v709_v2 = vadd.f32 1.0, %v1333_v0  ;;  %v1260_v4 = vpop.f32.mrb[8].mxu0  ;;  %1350 = vpow2.f32 %v1185_v62 }
 0x108   : > { %v1276_v5 = vpop.f32.mrb[8].mxu1  ;;  %v1337_v6 = vpop.eup %1336  ;;  %v725_v7 = vadd.f32 1.0, %v1335_v1  ;;  %v525_v36 = vadd.f32 %v1260_v4, %v1566_v26 }
 0x109   : > { %v1580_v9 = vpop.f32.mrb[9].mxu0  ;;  %v1582_v10 = vpop.f32.mrb[9].mxu1  ;;  %1352 = vrcp.f32 %v709_v2  ;;  %v707_v15 = vadd.f32 1.0, %v1337_v6  ;;  %v589_v51 = vadd.f32 %v1276_v5, %v1566_v26 }
 0x10a   : > { %v1339_v11 = vpop.eup %1338  ;;  %v1261_v12 = vpop.f32.mrb[10].mxu0  ;;  %1354 = vrcp.f32 %v725_v7  ;;  %v1189_v50 = vmul.f32 -1.442695, %v525_v36  ;;  %v517_v59 = vadd.f32 %v1566_v26, %v1580_v9  ;;  %v581_v4 = vadd.f32 %v1566_v26, %v1582_v10 }
 0x10b   : > { %v1584_v13 = vpop.f32.mrb[10].mxu1  ;;  %v1341_v14 = vpop.eup %1340  ;;  %1356 = vpow2.f32 %v1201_v3  ;;  %v723_v25 = vadd.f32 1.0, %v1339_v11  ;;  %v528_v54 = vadd.f32 %v1261_v12, %v1566_v26  ;;  %v1205_v60 = vmul.f32 -1.442695, %v589_v51 }
 0x10c   : > { %v1586_v16 = vpop.f32.mrb[11].mxu0  ;;  %v1588_v17 = vpop.f32.mrb[11].mxu1  ;;  %v710_v19 = vadd.f32 1.0, %v1341_v14  ;;  %v592_v0 = vadd.f32 %v1584_v13, %v1566_v26  ;;  %v1187_v2 = vmul.f32 -1.442695, %v517_v59 }
 0x10d   : > { %v1343_v18 = vpop.eup %1342  ;;  %v1190_v62 = vmul.f32 -1.442695, %v528_v54  ;;  %v520_v8 = vadd.f32 %v1566_v26, %v1586_v16  ;;  %v1203_v13 = vmul.f32 -1.442695, %v581_v4  ;;  %v584_v16 = vadd.f32 %v1566_v26, %v1588_v17 }
 0x10e   : > { %v1345_v22 = vpop.eup %1344  ;;  %1358 = vrcp.f32 %v710_v19  ;;  %v726_v23 = vadd.f32 1.0, %v1343_v18  ;;  %v1206_v9 = vmul.f32 -1.442695, %v592_v0 }
 0x10f   : > { %v1347_v24 = vpop.eup %1346  ;;  %1360 = vrcp.f32 %v707_v15  ;;  %v1593_v30 = vpop.f32.mrb[12].mxu0  ;;  %v708_v32 = vadd.f32 1.0, %v1345_v22  ;;  %v1188_v20 = vmul.f32 -1.442695, %v520_v8 }
 0x110   : > { %v1595_v31 = vpop.f32.mrb[12].mxu1  ;;  %1362 = vpow2.f32 %v1183_v21  ;;  %v1597_v33 = vpop.f32.mrb[13].mxu0  ;;  %v724_v35 = vadd.f32 1.0, %v1347_v24  ;;  %v541_v14 = vadd.f32 %v1593_v30, %v1566_v26  ;;  %v1204_v30 = vmul.f32 -1.442695, %v584_v16 }
 0x111   : > { %v1349_v34 = vpop.eup %1348  ;;  %1364 = vrcp.f32 %v726_v23  ;;  %v1600_v37 = vpop.f32.mrb[14].mxu0 }
 0x112   : > { %v1602_v38 = vpop.f32.mrb[13].mxu1  ;;  %v1351_v39 = vpop.eup %1350  ;;  %1366 = vrcp.f32 %v723_v25  ;;  %v714_v48 = vadd.f32 1.0, %v1349_v34  ;;  %v1193_v24 = vmul.f32 -1.442695, %v541_v14  ;;  %v533_v25 = vadd.f32 %v1566_v26, %v1597_v33 }
 0x113   : > { %v1604_v41 = vpop.f32.mrb[15].mxu0  ;;  %v1281_v42 = vpop.f32.mrb[14].mxu1  ;;  %1368 = vpow2.f32 %v1184_v28  ;;  %v713_v53 = vadd.f32 1.0, %v1351_v39  ;;  %v544_v34 = vadd.f32 %v1600_v37, %v1566_v26  ;;  %v605_v37 = vadd.f32 %v1595_v31, %v1566_v26 }
 0x114   : > { %v1353_v43 = vpop.eup %1352  ;;  %v1607_v46 = vpop.f32.mrb[15].mxu1  ;;  %1370 = vrcp.f32 %v708_v32  ;;  %v1611_v52 = vadd.f32 %v1281_v42, %v1566_v26  ;;  %v536_v33 = vadd.f32 %v1566_v26, %v1604_v41  ;;  %v597_v42 = vadd.f32 %v1566_v26, %v1602_v38 }
 0x115   : > { %v1355_v47 = vpop.eup %1354  ;;  %847 = vperm.xlu1 %1307, %v1353_v43   ;;  %1372 = vrcp.f32 %v724_v35  ;;  %v1191_v35 = vmul.f32 -1.442695, %v533_v25  ;;  %v600_v38 = vadd.f32 %v1566_v26, %v1607_v46 }
 0x116   : > { %v1357_v49 = vpop.eup %1356  ;;  %927 = vperm.xlu0 %1308, %v1355_v47   ;;  %1374 = vpow2.f32 %v1199_v40  ;;  %v1207_v41 = vmul.f32 -1.442695, %v597_v42 }
 0x117   : > { %1376 = vpow2.f32 %v1202_v44  ;;  %v729_v58 = vadd.f32 1.0, %v1357_v49  ;;  %v1194_v44 = vmul.f32 -1.442695, %v544_v34  ;;  %v1192_v49 = vmul.f32 -1.442695, %v536_v33  ;;  %v803_v33 = vld [vmem:[%s1643_s14] sm:$0xff] }
 0x118   : > { %v1359_v55 = vpop.eup %1358  ;;  %1378 = vrcp.f32 %v714_v48 }
 0x119   : > { %v1361_v57 = vpop.eup %1360  ;;  %852 = vperm.xlu1 %1307, %v1359_v55   ;;  %1380 = vpow2.f32 %v1189_v50  ;;  %v1209_v55 = vmul.f32 -1.442695, %v605_v37 }
 0x11a   : > { %837 = vperm.xlu0 %1308, %v1361_v57   ;;  %v1363_v61 = vpop.eup %1362  ;;  %1382 = vrcp.f32 %v713_v53 }
 0x11b   : > { %v1365_v63 = vpop.eup %1364  ;;  %1384 = vpow2.f32 %v1200_v56  ;;  %v711_v6 = vadd.f32 1.0, %v1363_v61 }
 0x11c   : > { %v1367_v1 = vpop.eup %1366  ;;  %1386 = vrcp.f32 %v729_v58  ;;  %v1208_v58 = vmul.f32 -1.442695, %v600_v38  ;;  %v804_v38 = vld [vmem:[%s1643_s14 + $0x8] sm:$0xff] }
 0x11d   : > { %932 = vperm.xlu1 %1307, %v1365_v63   ;;  %v1369_v3 = vpop.eup %1368  ;;  %1388 = vpow2.f32 %v1205_v60  ;;  %v1210_v63 = vmul.f32 -1.442695, %v1611_v52 }
 0x11e   : > { %917 = vperm.xlu0 %1308, %v1367_v1   ;;  %v1371_v5 = vpop.eup %1370  ;;  %1390 = vpow2.f32 %v1190_v62  ;;  %v712_v22 = vadd.f32 1.0, %v1369_v3 }
 0x11f   : > { %v1373_v7 = vpop.eup %1372  ;;  %1392 = vpow2.f32 %v1187_v2 }
 0x120   : > { %v1375_v11 = vpop.eup %1374  ;;  %1394 = vrcp.f32 %v711_v6 }
 0x121   : > { %922 = vperm.xlu1 %1307, %v1373_v7   ;;  %v1377_v12 = vpop.eup %1376  ;;  %v727_v10 = vadd.f32 1.0, %v1375_v11  ;;  %1396 = vpow2.f32 %v1206_v9 }
 0x122   : > { %842 = vperm.xlu0 %1308, %v1371_v5   ;;  %v1379_v15 = vpop.eup %1378  ;;  %v730_v18 = vadd.f32 1.0, %v1377_v12 }
 0x123   : > { %v1381_v19 = vpop.eup %1380 }
 0x124   : > { %v1383_v21 = vpop.eup %1382  ;;  %1398 = vrcp.f32 %v730_v18  ;;  %v717_v28 = vadd.f32 1.0, %v1381_v19 }
 0x125   : > { %872 = vperm.xlu1 %1307, %v1379_v15   ;;  %v1385_v23 = vpop.eup %1384  ;;  %1400 = vpow2.f32 %v1203_v13 }
 0x126   : > { %867 = vperm.xlu0 %1308, %v1383_v21   ;;  %v1387_v27 = vpop.eup %1386  ;;  %1402 = vrcp.f32 %v727_v10  ;;  %v728_v17 = vadd.f32 1.0, %v1385_v23 }
 0x127   : > { %v1389_v29 = vpop.eup %1388  ;;  %1404 = vpow2.f32 %v1188_v20 }
 0x128   : > { %v1391_v32 = vpop.eup %1390  ;;  %1406 = vrcp.f32 %v712_v22  ;;  %v733_v39 = vadd.f32 1.0, %v1389_v29 }
 0x129   : > { %1408 = vpow2.f32 %v1193_v24  ;;  %v1393_v36 = vpop.eup %1392  ;;  %v718_v40 = vadd.f32 1.0, %v1391_v32  ;;  %v821_v32 = vld [vmem:[%s1643_s14 + $0x90] sm:$0xff] }
 0x12a   : > { %947 = vperm.xlu0 %1308, %v1387_v27   ;;  %1410 = vrcp.f32 %v717_v28  ;;  %v1395_v43 = vpop.eup %1394  ;;  %v715_v47 = vadd.f32 1.0, %v1393_v36 }
 0x12b   : > { %1412 = vpow2.f32 %v1204_v30  ;;  %v1397_v45 = vpop.eup %1396  ;;  %v805_v30 = vld [vmem:[%s1643_s14 + $0x10] sm:$0xff] }
 0x12c   : > { %1414 = vrcp.f32 %v728_v17  ;;  %v734_v53 = vadd.f32 1.0, %v1397_v45  ;;  %v822_v45 = vld [vmem:[%s1643_s14 + $0x98] sm:$0xff] }
 0x12d   : > { %1416 = vpow2.f32 %v1191_v35 }
 0x12e   : > { %857 = vperm.xlu0 %1308, %v1395_v43   ;;  %v1399_v48 = vpop.eup %1398  ;;  %1418 = vrcp.f32 %v733_v39  ;;  %v806_v39 = vld [vmem:[%s1643_s14 + $0x18] sm:$0xff] }
 0x12f   : > { %v1401_v50 = vpop.eup %1400  ;;  %1420 = vrcp.f32 %v718_v40  ;;  %952 = vperm.xlu1 %1307, %v1399_v48  }
 0x130   : > { %v1403_v51 = vpop.eup %1402  ;;  %1422 = vpow2.f32 %v1194_v44  ;;  %v731_v31 = vadd.f32 1.0, %v1401_v50 }
 0x131   : > { %v1405_v54 = vpop.eup %1404  ;;  %1424 = vrcp.f32 %v715_v47  ;;  %v819_v47 = vld [vmem:[%s1643_s14 + $0x80] sm:$0xff] }
 0x132   : > { %937 = vperm.xlu0 %1308, %v1403_v51   ;;  %v1407_v56 = vpop.eup %1406  ;;  %1426 = vpow2.f32 %v1192_v49  ;;  %v716_v60 = vadd.f32 1.0, %v1405_v54 }
 0x133   : > { %v1409_v57 = vpop.eup %1408  ;;  %1428 = vpow2.f32 %v1207_v41  ;;  %862 = vperm.xlu1 %1307, %v1407_v56   ;;  %v820_v41 = vld [vmem:[%s1643_s14 + $0x88] sm:$0xff]  ;;  %v810_v56 = vld [vmem:[%s1643_s14 + $0x38] sm:$0xff] }
 0x134   : > { %v1411_v59 = vpop.eup %1410  ;;  %1430 = vrcp.f32 %v734_v53  ;;  %v721_v46 = vadd.f32 1.0, %v1409_v57 }
 0x135   : > { %v1413_v61 = vpop.eup %1412  ;;  %1432 = vpow2.f32 %v1209_v55 }
 0x136   : > { %887 = vperm.xlu0 %1308, %v1411_v59   ;;  %v1415_v26 = vpop.eup %1414  ;;  %1434 = vrcp.f32 %v731_v31  ;;  %v732_v1 = vadd.f32 1.0, %v1413_v61  ;;  %v809_v31 = vld [vmem:[%s1643_s14 + $0x30] sm:$0xff] }
 0x137   : > { %v1417_v62 = vpop.eup %1416  ;;  %1436 = vpow2.f32 %v1208_v58  ;;  %942 = vperm.xlu1 %1307, %v1415_v26   ;;  %v825_v61 = vld [vmem:[%s1643_s14 + $0xb0] sm:$0xff] }
 0x138   : > { %v1419_v0 = vpop.eup %1418  ;;  %1438 = vrcp.f32 %v716_v60  ;;  %v719_v4 = vadd.f32 1.0, %v1417_v62  ;;  %v807_v62 = vld [vmem:[%s1643_s14 + $0x20] sm:$0xff] }
 0x139   : > { %v1421_v2 = vpop.eup %1420  ;;  %1440 = vrcp.f32 %v721_v46 }
 0x13a   : > { %967 = vperm.xlu0 %1308, %v1419_v0   ;;  %v1423_v3 = vpop.eup %1422  ;;  %1442 = vpow2.f32 %v1210_v63  ;;  %v826_v63 = vld [vmem:[%s1643_s14 + $0xb8] sm:$0xff] }
 0x13b   : > { %v1425_v5 = vpop.eup %1424  ;;  %892 = vperm.xlu1 %1307, %v1421_v2   ;;  %1444 = vrcp.f32 %v732_v1  ;;  %v722_v7 = vadd.f32 1.0, %v1423_v3  ;;  %v823_v3 = vld [vmem:[%s1643_s14 + $0xa0] sm:$0xff] }
 0x13c   : > { %v1427_v6 = vpop.eup %1426  ;;  %1446 = vrcp.f32 %v719_v4 }
 0x13d   : > { %v1429_v8 = vpop.eup %1428  ;;  %1448 = vrcp.f32 %v722_v7  ;;  %v720_v13 = vadd.f32 1.0, %v1427_v6 }
 0x13e   : > { %877 = vperm.xlu0 %1308, %v1425_v5   ;;  %v1431_v9 = vpop.eup %1430  ;;  %v735_v52 = vadd.f32 1.0, %v1429_v8  ;;  %v808_v5 = vld [vmem:[%s1643_s14 + $0x28] sm:$0xff] }
 0x13f   : > { %v1433_v11 = vpop.eup %1432  ;;  %972 = vperm.xlu1 %1307, %v1431_v9   ;;  %v813_v9 = vld [vmem:[%s1643_s14 + $0x50] sm:$0xff] }
 0x140   : > { %v1435_v12 = vpop.eup %1434  ;;  %v737_v10 = vadd.f32 1.0, %v1433_v11  ;;  %1450 = vrcp.f32 %v735_v52  ;;  %v824_v11 = vld [vmem:[%s1643_s14 + $0xa8] sm:$0xff] }
 0x141   : > { %v1437_v14 = vpop.eup %1436  ;;  %1452 = vrcp.f32 %v720_v13 }
 0x142   : > { %957 = vperm.xlu0 %1308, %v1435_v12   ;;  %v1439_v15 = vpop.eup %1438  ;;  %v736_v19 = vadd.f32 1.0, %v1437_v14  ;;  %1454 = vrcp.f32 %v737_v10 }
 0x143   : > { %882 = vperm.xlu1 %1307, %v1439_v15   ;;  %v1441_v18 = vpop.eup %1440  ;;  %v829_v15 = vld [vmem:[%s1643_s14 + $0xd0] sm:$0xff] }
 0x144   : > { %v1443_v20 = vpop.eup %1442  ;;  %1456 = vrcp.f32 %v736_v19 }
 0x145   : > { %v1445_v16 = vpop.eup %1444  ;;  %v738_v22 = vadd.f32 1.0, %v1443_v20 }
 0x146   : > { %907 = vperm.xlu0 %1308, %v1441_v18   ;;  %v1447_v21 = vpop.eup %1446  ;;  %v814_v18 = vld [vmem:[%s1643_s14 + $0x58] sm:$0xff] }
 0x147   : > { %962 = vperm.xlu1 %1307, %v1445_v16   ;;  %v1449_v23 = vpop.eup %1448  ;;  %1458 = vrcp.f32 %v738_v22 }
 0x14a   : > { %897 = vperm.xlu0 %1308, %v1447_v21   ;;  %v1451_v24 = vpop.eup %1450  ;;  %v811_v21 = vld [vmem:[%s1643_s14 + $0x40] sm:$0xff] }
 0x14b   : > { %912 = vperm.xlu1 %1307, %v1449_v23   ;;  %v1453_v25 = vpop.eup %1452  ;;  %v830_v23 = vld [vmem:[%s1643_s14 + $0xd8] sm:$0xff] }
 0x14c   : > { %v1455_v27 = vpop.eup %1454 }
 0x14e   : > { %977 = vperm.xlu0 %1308, %v1451_v24   ;;  %v1457_v28 = vpop.eup %1456 }
 0x14f   : > { %902 = vperm.xlu1 %1307, %v1453_v25  }
 0x151   : > { %v1459_v29 = vpop.eup %1458 }
 0x152   : > { %987 = vperm.xlu0 %1308, %v1455_v27  }
 0x153   : > { %982 = vperm.xlu1 %1307, %v1457_v28   ;;  %v827_v28 = vld [vmem:[%s1643_s14 + $0xc0] sm:$0xff] }
 0x157   : > { %992 = vperm.xlu1 %1307, %v1459_v29  }
 0x194   : > { %v848_v17 = vpop.permute.xlu1 %847 }
 0x195   : > { %v928_v34 = vpop.permute.xlu0 %927  ;;  %v997_v35 = vmul.f32 %v848_v17, %v805_v30  ;;  %v812_v30 = vld [vmem:[%s1643_s14 + $0x48] sm:$0xff] }
 0x196   : > { %v1013_v36 = vmul.f32 %v928_v34, %v821_v32 }
 0x197   : > { %1030 = vst.msk [vmem:[%s1650_s18 + $0x10] sm:$0xff] %vm1027_vm2, %v997_v35  ;;  %v817_v35 = vld [vmem:[%s1643_s14 + $0x70] sm:$0xff] }
 0x198   : > { %1046 = vst.msk [vmem:[%s1650_s18 + $0x90] sm:$0xff] %vm1027_vm2, %v1013_v36  ;;  %v853_v40 = vpop.permute.xlu1 %852 }
 0x199   : > { %v998_v42 = vmul.f32 %v853_v40, %v806_v39  ;;  %v838_v43 = vpop.permute.xlu0 %837  ;;  %v828_v39 = vld [vmem:[%s1643_s14 + $0xc8] sm:$0xff] }
 0x19a   : > { %v995_v44 = vmul.f32 %v838_v43, %v803_v33  ;;  %v815_v43 = vld [vmem:[%s1643_s14 + $0x60] sm:$0xff] }
 0x19b   : > { %1031 = vst.msk [vmem:[%s1650_s18 + $0x18] sm:$0xff] %vm1027_vm2, %v998_v42 }
 0x19c   : > { %1028 = vst.msk [vmem:[%s1650_s18] sm:$0xff] %vm1027_vm2, %v995_v44  ;;  %v933_v37 = vpop.permute.xlu1 %932 }
 0x19d   : > { %v1014_v48 = vmul.f32 %v933_v37, %v822_v45  ;;  %v918_v49 = vpop.permute.xlu0 %917  ;;  %v818_v45 = vld [vmem:[%s1643_s14 + $0x78] sm:$0xff] }
 0x19e   : > { %v1011_v50 = vmul.f32 %v918_v49, %v819_v47  ;;  %v831_v49 = vld [vmem:[%s1643_s14 + $0xe0] sm:$0xff] }
 0x19f   : > { %1047 = vst.msk [vmem:[%s1650_s18 + $0x98] sm:$0xff] %vm1027_vm2, %v1014_v48 }
 0x1a0   : > { %1044 = vst.msk [vmem:[%s1650_s18 + $0x80] sm:$0xff] %vm1027_vm2, %v1011_v50  ;;  %v923_v51 = vpop.permute.xlu1 %922 }
 0x1a1   : > { %v1012_v53 = vmul.f32 %v923_v51, %v820_v41  ;;  %v843_v54 = vpop.permute.xlu0 %842  ;;  %v816_v41 = vld [vmem:[%s1643_s14 + $0x68] sm:$0xff] }
 0x1a2   : > { %v996_v55 = vmul.f32 %v843_v54, %v804_v38  ;;  %v833_v54 = vld [vmem:[%s1643_s14 + $0xf0] sm:$0xff] }
 0x1a3   : > { %1045 = vst.msk [vmem:[%s1650_s18 + $0x88] sm:$0xff] %vm1027_vm2, %v1012_v53 }
 0x1a4   : > { %1029 = vst.msk [vmem:[%s1650_s18 + $0x8] sm:$0xff] %vm1027_vm2, %v996_v55  ;;  %v873_v57 = vpop.permute.xlu1 %872 }
 0x1a5   : > { %v1002_v58 = vmul.f32 %v873_v57, %v810_v56  ;;  %v868_v59 = vpop.permute.xlu0 %867  ;;  %v832_v56 = vld [vmem:[%s1643_s14 + $0xe8] sm:$0xff] }
 0x1a6   : > { %v1001_v60 = vmul.f32 %v868_v59, %v809_v31 }
 0x1a7   : > { %1035 = vst.msk [vmem:[%s1650_s18 + $0x38] sm:$0xff] %vm1027_vm2, %v1002_v58 }
 0x1a8   : > { %1034 = vst.msk [vmem:[%s1650_s18 + $0x30] sm:$0xff] %vm1027_vm2, %v1001_v60  ;;  %v834_v60 = vld [vmem:[%s1643_s14 + $0xf8] sm:$0xff] }
 0x1a9   : > { %v948_v26 = vpop.permute.xlu0 %947 }
 0x1aa   : > { %v1017_v46 = vmul.f32 %v948_v26, %v825_v61 }
 0x1ac   : > { %1050 = vst.msk [vmem:[%s1650_s18 + $0xb0] sm:$0xff] %vm1027_vm2, %v1017_v46 }
 0x1ad   : > { %v858_v0 = vpop.permute.xlu0 %857 }
 0x1ae   : > { %v999_v1 = vmul.f32 %v858_v0, %v807_v62  ;;  %v953_v2 = vpop.permute.xlu1 %952 }
 0x1af   : > { %v1018_v4 = vmul.f32 %v953_v2, %v826_v63 }
 0x1b0   : > { %1032 = vst.msk [vmem:[%s1650_s18 + $0x20] sm:$0xff] %vm1027_vm2, %v999_v1 }
 0x1b1   : > { %v938_v6 = vpop.permute.xlu0 %937  ;;  %1051 = vst.msk [vmem:[%s1650_s18 + $0xb8] sm:$0xff] %vm1027_vm2, %v1018_v4 }
 0x1b2   : > { %v1015_v7 = vmul.f32 %v938_v6, %v823_v3  ;;  %v863_v8 = vpop.permute.xlu1 %862 }
 0x1b3   : > { %v1000_v52 = vmul.f32 %v863_v8, %v808_v5 }
 0x1b4   : > { %1048 = vst.msk [vmem:[%s1650_s18 + $0xa0] sm:$0xff] %vm1027_vm2, %v1015_v7 }
 0x1b5   : > { %v888_v12 = vpop.permute.xlu0 %887  ;;  %1033 = vst.msk [vmem:[%s1650_s18 + $0x28] sm:$0xff] %vm1027_vm2, %v1000_v52 }
 0x1b6   : > { %v1005_v13 = vmul.f32 %v888_v12, %v813_v9  ;;  %v943_v14 = vpop.permute.xlu1 %942 }
 0x1b7   : > { %v1016_v10 = vmul.f32 %v943_v14, %v824_v11 }
 0x1b8   : > { %1038 = vst.msk [vmem:[%s1650_s18 + $0x50] sm:$0xff] %vm1027_vm2, %v1005_v13 }
 0x1b9   : > { %v968_v19 = vpop.permute.xlu0 %967  ;;  %1049 = vst.msk [vmem:[%s1650_s18 + $0xa8] sm:$0xff] %vm1027_vm2, %v1016_v10 }
 0x1ba   : > { %v1021_v20 = vmul.f32 %v968_v19, %v829_v15  ;;  %v893_v16 = vpop.permute.xlu1 %892 }
 0x1bb   : > { %v1006_v22 = vmul.f32 %v893_v16, %v814_v18 }
 0x1bc   : > { %1054 = vst.msk [vmem:[%s1650_s18 + $0xd0] sm:$0xff] %vm1027_vm2, %v1021_v20 }
 0x1bd   : > { %v878_v24 = vpop.permute.xlu0 %877  ;;  %1039 = vst.msk [vmem:[%s1650_s18 + $0x58] sm:$0xff] %vm1027_vm2, %v1006_v22 }
 0x1be   : > { %v1003_v25 = vmul.f32 %v878_v24, %v811_v21  ;;  %v973_v27 = vpop.permute.xlu1 %972 }
 0x1bf   : > { %v1022_v29 = vmul.f32 %v973_v27, %v830_v23 }
 0x1c0   : > { %1036 = vst.msk [vmem:[%s1650_s18 + $0x40] sm:$0xff] %vm1027_vm2, %v1003_v25 }
 0x1c1   : > { %v958_v32 = vpop.permute.xlu0 %957  ;;  %1055 = vst.msk [vmem:[%s1650_s18 + $0xd8] sm:$0xff] %vm1027_vm2, %v1022_v29 }
 0x1c2   : > { %v1019_v17 = vmul.f32 %v958_v32, %v827_v28  ;;  %v883_v34 = vpop.permute.xlu1 %882 }
 0x1c3   : > { %v1004_v36 = vmul.f32 %v883_v34, %v812_v30 }
 0x1c4   : > { %1052 = vst.msk [vmem:[%s1650_s18 + $0xc0] sm:$0xff] %vm1027_vm2, %v1019_v17 }
 0x1c5   : > { %v908_v33 = vpop.permute.xlu0 %907  ;;  %1037 = vst.msk [vmem:[%s1650_s18 + $0x48] sm:$0xff] %vm1027_vm2, %v1004_v36 }
 0x1c6   : > { %v1009_v40 = vmul.f32 %v908_v33, %v817_v35  ;;  %v963_v42 = vpop.permute.xlu1 %962 }
 0x1c7   : > { %v1020_v44 = vmul.f32 %v963_v42, %v828_v39 }
 0x1c8   : > { %1042 = vst.msk [vmem:[%s1650_s18 + $0x70] sm:$0xff] %vm1027_vm2, %v1009_v40 }
 0x1c9   : > { %v898_v47 = vpop.permute.xlu0 %897  ;;  %1053 = vst.msk [vmem:[%s1650_s18 + $0xc8] sm:$0xff] %vm1027_vm2, %v1020_v44 }
 0x1ca   : > { %v1007_v37 = vmul.f32 %v898_v47, %v815_v43  ;;  %v913_v48 = vpop.permute.xlu1 %912 }
 0x1cb   : > { %v1010_v50 = vmul.f32 %v913_v48, %v818_v45 }
 0x1cc   : > { %1040 = vst.msk [vmem:[%s1650_s18 + $0x60] sm:$0xff] %vm1027_vm2, %v1007_v37 }
 0x1cd   : > { %v978_v38 = vpop.permute.xlu0 %977  ;;  %1043 = vst.msk [vmem:[%s1650_s18 + $0x78] sm:$0xff] %vm1027_vm2, %v1010_v50 }
 0x1ce   : > { %v1023_v51 = vmul.f32 %v978_v38, %v831_v49  ;;  %v903_v53 = vpop.permute.xlu1 %902 }
 0x1cf   : > { %v1008_v55 = vmul.f32 %v903_v53, %v816_v41 }
 0x1d0   : > { %1056 = vst.msk [vmem:[%s1650_s18 + $0xe0] sm:$0xff] %vm1027_vm2, %v1023_v51 }
 0x1d1   : > { %v988_v31 = vpop.permute.xlu0 %987  ;;  %1041 = vst.msk [vmem:[%s1650_s18 + $0x68] sm:$0xff] %vm1027_vm2, %v1008_v55 }
 0x1d2   : > { %v1025_v57 = vmul.f32 %v988_v31, %v833_v54  ;;  %v983_v58 = vpop.permute.xlu1 %982 }
 0x1d3   : > { %v1024_v59 = vmul.f32 %v983_v58, %v832_v56 }
 0x1d4   : > { %1058 = vst.msk [vmem:[%s1650_s18 + $0xf0] sm:$0xff] %vm1027_vm2, %v1025_v57 }
 0x1d5   : > { %1057 = vst.msk [vmem:[%s1650_s18 + $0xe8] sm:$0xff] %vm1027_vm2, %v1024_v59 }
 0x1d6   : > { %v993_v61 = vpop.permute.xlu1 %992 }
 0x1d7   : > { %v1026_v26 = vmul.f32 %v993_v61, %v834_v60 }
 0x1d9   : > { %1059 = vst.msk [vmem:[%s1650_s18 + $0xf8] sm:$0xff] %vm1027_vm2, %v1026_v26 }
 0x1da PF: > { %s16_s17 = sadd.s32 1, %s1466_s17  }
 0x1db   : > { %p13_p4 = scmp.ge.s32.totalorder %s16_s17, 4  }
 0x1dd   :  { %15 = sbr.rel (!%p13_p4) target bundleno = 3 (0x3), region = 69 }

</bundles_post_ra>
